<compile_context>
chip_gen: v7x
topology: tpu7x:2x2x1
jax: 0.10.0
libtpu: 0.0.40
codegen_flags: <defaults>
</compile_context>

<pallas_src>
import jax
import jax.numpy as jnp
from jax import lax
from jax.experimental import pallas as pl
from jax.experimental.pallas import tpu as pltpu

BN_EPS = 1e-5
BP = 8                        # batch rows zero-padded to one f32 sublane tile (8)
_HO = (16, 8, 4, 2)           # conv output spatial sizes for a 28x28 input
_CPAD = (128, 128, 128, 256)  # lane-padded conv output channels (real: 32, 64, 128, 256)


# ---------------------------------------------------------------------------
# Fused Pallas kernel: conv1..4 (+BN+ReLU) and the dense head in one body.
# NOTE: at this toy size (B=2) a single no-grid invocation is optimal; for large
# batches the M (=B*Ho*Wo) axis should be grid-tiled with accumulate/finalize BN.
# ---------------------------------------------------------------------------
def _make_kernel(batch):
    def _bn_relu(y, gb, real_rows):
        # y: (M, C) f32 conv output (pad rows are exactly zero); gb = [gamma; beta]
        inv_m = 1.0 / float(real_rows)
        mean = jnp.sum(y, axis=0, keepdims=True) * inv_m
        msq = jnp.sum(y * y, axis=0, keepdims=True) * inv_m
        var = msq - mean * mean
        scale = gb[0:1, :] * lax.rsqrt(var + BN_EPS)
        shift = gb[1:2, :] - mean * scale
        return jnp.maximum(y * scale + shift, 0.0)

    def _mask_pad_rows(a4d):
        # zero the padded batch rows so they never pollute the next layer's BN stats
        b_idx = lax.broadcasted_iota(jnp.int32, (1, 1, BP, 1), 2)
        return a4d * (b_idx < batch).astype(a4d.dtype)

    def _pad_hw1(a4d):
        # zero-pad the two (leading) spatial dims of (H, W, BP, C) by 1 on each side
        h, w, bp, c = a4d.shape
        zw = jnp.zeros((h, 1, bp, c), a4d.dtype)
        a4d = jnp.concatenate([zw, a4d, zw], axis=1)
        zh = jnp.zeros((1, w + 2, bp, c), a4d.dtype)
        return jnp.concatenate([zh, a4d, zh], axis=0)

    def _im2col_s2(a_pad, ho, wo):
        # a_pad: (Hp, Wp, BP, C) f32 with Hp, Wp even.  3x3 / stride-2 taps via
        # leading-dim reshape + contiguous slices -> (ho*wo*BP, 9*C) bf16.
        hp, wp, bp, c = a_pad.shape
        r_h = a_pad.reshape(hp // 2, 2, wp, bp, c)
        taps = []
        for dy in range(3):
            a_h = r_h[dy // 2: dy // 2 + ho, dy % 2]           # (ho, wp, bp, c)
            r_w = a_h.reshape(ho, wp // 2, 2, bp, c)
            for dx in range(3):
                t = r_w[:, dx // 2: dx // 2 + wo, dx % 2]       # (ho, wo, bp, c)
                taps.append(t.reshape(ho * wo * bp, c).astype(jnp.bfloat16))
        return jnp.concatenate(taps, axis=-1)                   # (ho*wo*bp, 9c)

    def kernel(p1_ref, w1_ref, w2_ref, w3_ref, w4_ref,
               gb1_ref, gb2_ref, gb3_ref, gb4_ref, wd_ref, bd_ref, out_ref):
        w_refs = (w1_ref, w2_ref, w3_ref, w4_ref)
        gb_refs = (gb1_ref, gb2_ref, gb3_ref, gb4_ref)

        patches = p1_ref[...]                                   # (16*16*BP, 9) bf16
        act = None
        for l in range(4):
            ho = _HO[l]
            # conv as one MXU matmul; conv bias omitted (cancelled by train-mode BN)
            y = jnp.dot(patches, w_refs[l][...],
                        preferred_element_type=jnp.float32)     # (ho*ho*BP, CPAD[l]) f32
            a = _bn_relu(y, gb_refs[l][...], real_rows=batch * ho * ho)
            if l < 3:
                a4d = _mask_pad_rows(a.reshape(ho, ho, BP, _CPAD[l]))
                patches = _im2col_s2(_pad_hw1(a4d), _HO[l + 1], _HO[l + 1])
            else:
                act = a                                         # (2*2*BP, 256) f32

        # dense head: rows of `act` are ordered (ho, wo, b_pad); s = ho*2 + wo.
        act = act.reshape(4, BP, _CPAD[3]).astype(jnp.bfloat16)
        logits = jnp.zeros((BP, 128), jnp.float32)
        for s in range(4):
            logits = logits + jnp.dot(act[s], wd_ref[s],
                                      preferred_element_type=jnp.float32)
        out_ref[...] = logits + bd_ref[...]

    return kernel


def _fused_forward(p1, kp, batch):
    return pl.pallas_call(
        _make_kernel(batch),
        out_shape=jax.ShapeDtypeStruct((BP, 128), jnp.float32),
        compiler_params=pltpu.CompilerParams(vmem_limit_bytes=32 * 1024 * 1024),
    )(p1, kp["w1"], kp["w2"], kp["w3"], kp["w4"],
      kp["gb1"], kp["gb2"], kp["gb3"], kp["gb4"], kp["wd"], kp["bd"])


# ---------------------------------------------------------------------------
# JAX glue: layer-1 im2col on the raw input (cheap, input-only) and parameter packing.
# ---------------------------------------------------------------------------
def _im2col_l1(x_nhwc, pad, k=3, stride=2):
    xp = jnp.pad(x_nhwc, ((0, 0), (pad, pad), (pad, pad), (0, 0)))
    b, hp, wp, c = xp.shape
    ho = (hp - k) // stride + 1
    wo = (wp - k) // stride + 1
    taps = []
    for dy in range(k):
        for dx in range(k):
            taps.append(xp[:, dy: dy + stride * (ho - 1) + 1: stride,
                              dx: dx + stride * (wo - 1) + 1: stride, :])
    p = jnp.stack(taps, axis=3)                                 # (b, ho, wo, 9, c)
    p = jnp.transpose(p, (1, 2, 0, 3, 4))                       # (ho, wo, b, 9, c)
    p = jnp.pad(p, ((0, 0), (0, 0), (0, BP - b), (0, 0), (0, 0)))
    return p.reshape(ho * wo * BP, k * k * c).astype(jnp.bfloat16)


def _bf16_weights(x):
    # store weights as bf16-representable f32 so kernel (bf16 MXU) and reference agree
    return x.astype(jnp.bfloat16).astype(jnp.float32)


def _pack_conv(w, cin_pad, cout_pad):
    cout, cin = w.shape[0], w.shape[1]
    wt = jnp.transpose(w, (2, 3, 1, 0))                         # (3, 3, cin, cout)
    wt = jnp.pad(wt, ((0, 0), (0, 0), (0, cin_pad - cin), (0, cout_pad - cout)))
    return wt.reshape(9 * cin_pad, cout_pad).astype(jnp.bfloat16)


def _pack_gb(gamma, beta, cout_pad):
    g = jnp.pad(gamma, (0, cout_pad - gamma.shape[0]))
    b = jnp.pad(beta, (0, cout_pad - beta.shape[0]))
    return jnp.stack([g, b]).astype(jnp.float32)                # (2, cout_pad)


def _pack_dense(dense_w, dense_b, n_pad=128):
    # torch flatten order on NCHW: feature j = c*4 + (ho*2 + wo) -> wd[s, c, o]
    s = _HO[3] * _HO[3]
    c = dense_w.shape[1] // s
    wd = jnp.transpose(dense_w.reshape(10, c, s), (2, 1, 0))    # (s, c, 10)
    wd = jnp.pad(wd, ((0, 0), (0, 0), (0, n_pad - 10))).astype(jnp.bfloat16)
    bd = jnp.pad(dense_b, (0, n_pad - 10)).reshape(1, n_pad).astype(jnp.float32)
    return wd, bd


def init_params(key, in_ch=1, f=32):
    channel_pairs = [(in_ch, f), (f, 2 * f), (2 * f, 4 * f), (4 * f, 8 * f)]
    convs = []
    for cin, cout in channel_pairs:
        key, k1, k2, k3, k4 = jax.random.split(key, 5)
        w = _bf16_weights(
            jax.random.normal(k1, (cout, cin, 3, 3), jnp.float32) / jnp.sqrt(9.0 * cin))
        b = 0.1 * jax.random.normal(k2, (cout,), jnp.float32)   # reference-only: BN cancels it
        gamma = 1.0 + 0.1 * jax.random.normal(k3, (cout,), jnp.float32)
        beta = 0.1 * jax.random.normal(k4, (cout,), jnp.float32)
        convs.append(dict(w=w, b=b, gamma=gamma, beta=beta))

    key, k1, k2 = jax.random.split(key, 3)
    d_in = 8 * f * _HO[3] * _HO[3]
    dense_w = _bf16_weights(
        jax.random.normal(k1, (10, d_in), jnp.float32) / jnp.sqrt(float(d_in)))
    dense_b = 0.1 * jax.random.normal(k2, (10,), jnp.float32)

    cin_pads = (in_ch, _CPAD[0], _CPAD[1], _CPAD[2])
    kp = {}
    for i, layer in enumerate(convs):
        kp[f"w{i + 1}"] = _pack_conv(layer["w"], cin_pads[i], _CPAD[i])
        kp[f"gb{i + 1}"] = _pack_gb(layer["gamma"], layer["beta"], _CPAD[i])
    kp["wd"], kp["bd"] = _pack_dense(dense_w, dense_b)
    return dict(convs=convs, dense_w=dense_w, dense_b=dense_b, kernel=kp)


@jax.jit
def cnn_forward(x_nchw, params):
    batch = x_nchw.shape[0]
    x = jnp.transpose(x_nchw, (0, 2, 3, 1))                     # NCHW -> NHWC
    p1 = _im2col_l1(x, pad=3)                                   # (16*16*BP, 9*in_ch) bf16
    out = _fused_forward(p1, params["kernel"], batch)           # (BP, 128) f32
    return out[:batch, :10]


# ---------------------------------------------------------------------------
# Pure-JAX reference (mirrors the PyTorch forward in train-mode BN)
# ---------------------------------------------------------------------------
def reference_forward(x_nchw, params):
    pads = [3, 1, 1, 1]
    x = x_nchw
    for layer, pad in zip(params["convs"], pads):
        y = lax.conv_general_dilated(
            x, layer["w"], window_strides=(2, 2),
            padding=[(pad, pad), (pad, pad)],
            dimension_numbers=("NCHW", "OIHW", "NCHW"))
        y = y + layer["b"].reshape(1, -1, 1, 1)
        mean = jnp.mean(y, axis=(0, 2, 3), keepdims=True)
        var = jnp.mean(jnp.square(y - mean), axis=(0, 2, 3), keepdims=True)
        y = (y - mean) * lax.rsqrt(var + BN_EPS)
        y = y * layer["gamma"].reshape(1, -1, 1, 1) + layer["beta"].reshape(1, -1, 1, 1)
        x = jnp.maximum(y, 0.0)
    flat = x.reshape(x.shape[0], -1)
    return flat @ params["dense_w"].T + params["dense_b"]


if __name__ == "__main__":
    key = jax.random.PRNGKey(0)
    kx, kp = jax.random.split(key)
    # MNIST-like input implied by the dense layer (8*f * 2 * 2 = 1024): 28x28, 1 channel.
    x = jax.random.normal(kx, (2, 1, 28, 28), jnp.float32)
    params = init_params(kp, in_ch=1, f=32)

    out = jax.block_until_ready(cnn_forward(x, params))
    ref = jax.block_until_ready(reference_forward(x, params))

    assert out.shape == (2, 10), out.shape
    # bf16 MXU operands (f32 accumulation) -> slightly looser tolerance than pure f32
    assert jnp.allclose(out, ref, atol=5e-2, rtol=5e-2), (out, ref)
    print("KERNEL_OK")
</pallas_src>

<mosaic_0001>
module attributes {stable_mosaic.version = 11 : i64} {
  func.func @kernel(%arg0: memref<2048x9xbf16, #tpu.memory_space<vmem>>, %arg1: memref<9x128xbf16, #tpu.memory_space<vmem>>, %arg2: memref<1152x128xbf16, #tpu.memory_space<vmem>>, %arg3: memref<1152x128xbf16, #tpu.memory_space<vmem>>, %arg4: memref<1152x256xbf16, #tpu.memory_space<vmem>>, %arg5: memref<2x128xf32, #tpu.memory_space<vmem>>, %arg6: memref<2x128xf32, #tpu.memory_space<vmem>>, %arg7: memref<2x128xf32, #tpu.memory_space<vmem>>, %arg8: memref<2x256xf32, #tpu.memory_space<vmem>>, %arg9: memref<4x256x128xbf16, #tpu.memory_space<vmem>>, %arg10: memref<1x128xf32, #tpu.memory_space<vmem>>, %arg11: memref<8x128xf32, #tpu.memory_space<vmem>>) attributes {dimension_semantics = [], scalar_prefetch = 0 : i64, scratch_operands = 0 : i64, tpu.core_type = #tpu.core_type<tc>} {
    %c0 = arith.constant 0 : index
    %c0_0 = arith.constant 0 : index
    %0 = vector.load %arg0[%c0, %c0_0] : memref<2048x9xbf16, #tpu.memory_space<vmem>>, vector<2048x9xbf16>
    %c0_1 = arith.constant 0 : index
    %c0_2 = arith.constant 0 : index
    %1 = vector.load %arg1[%c0_1, %c0_2] : memref<9x128xbf16, #tpu.memory_space<vmem>>, vector<9x128xbf16>
    %cst = arith.constant dense<0.000000e+00> : vector<2048x128xf32>
    %2 = tpu.matmul %0, %1, %cst {dimension_numbers = #tpu.dot_dimension_numbers<[1], [0], [0], [1], [0, 0, 1, 1], [], []>} : vector<2048x9xbf16>, vector<9x128xbf16>, vector<2048x128xf32> -> vector<2048x128xf32>
    %c0_3 = arith.constant 0 : index
    %c0_4 = arith.constant 0 : index
    %3 = vector.load %arg5[%c0_3, %c0_4] : memref<2x128xf32, #tpu.memory_space<vmem>>, vector<2x128xf32>
    %cst_5 = arith.constant dense<0.000000e+00> : vector<128xf32>
    %4 = vector.multi_reduction <add>, %2, %cst_5 [0] : vector<2048x128xf32> to vector<128xf32>
    %5 = vector.shape_cast %4 : vector<128xf32> to vector<1x128xf32>
    %cst_6 = arith.constant 0.001953125 : f32
    %6 = vector.broadcast %cst_6 : f32 to vector<1x128xf32>
    %7 = arith.mulf %5, %6 : vector<1x128xf32>
    %8 = arith.mulf %2, %2 : vector<2048x128xf32>
    %cst_7 = arith.constant dense<0.000000e+00> : vector<128xf32>
    %9 = vector.multi_reduction <add>, %8, %cst_7 [0] : vector<2048x128xf32> to vector<128xf32>
    %10 = vector.shape_cast %9 : vector<128xf32> to vector<1x128xf32>
    %cst_8 = arith.constant 0.001953125 : f32
    %11 = vector.broadcast %cst_8 : f32 to vector<1x128xf32>
    %12 = arith.mulf %10, %11 : vector<1x128xf32>
    %13 = arith.mulf %7, %7 : vector<1x128xf32>
    %14 = arith.subf %12, %13 : vector<1x128xf32>
    %15 = vector.extract_strided_slice %3 {offsets = [0, 0], sizes = [1, 128], strides = [1, 1]} : vector<2x128xf32> to vector<1x128xf32>
    %cst_9 = arith.constant 9.99999974E-6 : f32
    %16 = vector.broadcast %cst_9 : f32 to vector<1x128xf32>
    %17 = arith.addf %14, %16 : vector<1x128xf32>
    %18 = math.rsqrt %17 : vector<1x128xf32>
    %19 = arith.mulf %15, %18 : vector<1x128xf32>
    %20 = vector.extract_strided_slice %3 {offsets = [1, 0], sizes = [1, 128], strides = [1, 1]} : vector<2x128xf32> to vector<1x128xf32>
    %21 = arith.mulf %7, %19 : vector<1x128xf32>
    %22 = arith.subf %20, %21 : vector<1x128xf32>
    %23 = vector.broadcast %19 : vector<1x128xf32> to vector<2048x128xf32>
    %24 = arith.mulf %2, %23 : vector<2048x128xf32>
    %25 = vector.broadcast %22 : vector<1x128xf32> to vector<2048x128xf32>
    %26 = arith.addf %24, %25 : vector<2048x128xf32>
    %cst_10 = arith.constant 0.000000e+00 : f32
    %27 = vector.broadcast %cst_10 : f32 to vector<2048x128xf32>
    %28 = arith.maximumf %26, %27 : vector<2048x128xf32>
    %29 = vector.shape_cast %28 : vector<2048x128xf32> to vector<16x16x8x128xf32>
    %30 = tpu.iota {dimensions = array<i32: 2>} : vector<1x1x8x1xi32>
    %c2_i32 = arith.constant 2 : i32
    %31 = vector.broadcast %c2_i32 : i32 to vector<1x1x8x1xi32>
    %32 = arith.cmpi slt, %30, %31 : vector<1x1x8x1xi32>
    %33 = arith.extui %32 : vector<1x1x8x1xi1> to vector<1x1x8x1xi32>
    %34 = arith.sitofp %33 : vector<1x1x8x1xi32> to vector<1x1x8x1xf32>
    %35 = vector.broadcast %34 : vector<1x1x8x1xf32> to vector<16x16x8x128xf32>
    %36 = arith.mulf %29, %35 : vector<16x16x8x128xf32>
    %cst_11 = arith.constant 0.000000e+00 : f32
    %37 = vector.broadcast %cst_11 : f32 to vector<16x1x8x128xf32>
    %38 = tpu.concatenate %37, %36, %37 in 1 : vector<16x1x8x128xf32>, vector<16x16x8x128xf32>, vector<16x1x8x128xf32> -> vector<16x18x8x128xf32>
    %cst_12 = arith.constant 0.000000e+00 : f32
    %39 = vector.broadcast %cst_12 : f32 to vector<1x18x8x128xf32>
    %40 = tpu.concatenate %39, %38, %39 in 0 : vector<1x18x8x128xf32>, vector<16x18x8x128xf32>, vector<1x18x8x128xf32> -> vector<18x18x8x128xf32>
    %41 = vector.shape_cast %40 : vector<18x18x8x128xf32> to vector<9x2x18x8x128xf32>
    %42 = vector.extract_strided_slice %41 {offsets = [0, 0, 0, 0, 0], sizes = [8, 1, 18, 8, 128], strides = [1, 1, 1, 1, 1]} : vector<9x2x18x8x128xf32> to vector<8x1x18x8x128xf32>
    %43 = vector.shape_cast %42 : vector<8x1x18x8x128xf32> to vector<8x18x8x128xf32>
    %44 = vector.shape_cast %43 : vector<8x18x8x128xf32> to vector<8x9x2x8x128xf32>
    %45 = vector.extract_strided_slice %44 {offsets = [0, 0, 0, 0, 0], sizes = [8, 8, 1, 8, 128], strides = [1, 1, 1, 1, 1]} : vector<8x9x2x8x128xf32> to vector<8x8x1x8x128xf32>
    %46 = vector.shape_cast %45 : vector<8x8x1x8x128xf32> to vector<8x8x8x128xf32>
    %47 = vector.shape_cast %46 : vector<8x8x8x128xf32> to vector<512x128xf32>
    %48 = arith.truncf %47 : vector<512x128xf32> to vector<512x128xbf16>
    %49 = vector.extract_strided_slice %44 {offsets = [0, 0, 1, 0, 0], sizes = [8, 8, 1, 8, 128], strides = [1, 1, 1, 1, 1]} : vector<8x9x2x8x128xf32> to vector<8x8x1x8x128xf32>
    %50 = vector.shape_cast %49 : vector<8x8x1x8x128xf32> to vector<8x8x8x128xf32>
    %51 = vector.shape_cast %50 : vector<8x8x8x128xf32> to vector<512x128xf32>
    %52 = arith.truncf %51 : vector<512x128xf32> to vector<512x128xbf16>
    %53 = vector.extract_strided_slice %44 {offsets = [0, 1, 0, 0, 0], sizes = [8, 8, 1, 8, 128], strides = [1, 1, 1, 1, 1]} : vector<8x9x2x8x128xf32> to vector<8x8x1x8x128xf32>
    %54 = vector.shape_cast %53 : vector<8x8x1x8x128xf32> to vector<8x8x8x128xf32>
    %55 = vector.shape_cast %54 : vector<8x8x8x128xf32> to vector<512x128xf32>
    %56 = arith.truncf %55 : vector<512x128xf32> to vector<512x128xbf16>
    %57 = vector.extract_strided_slice %41 {offsets = [0, 1, 0, 0, 0], sizes = [8, 1, 18, 8, 128], strides = [1, 1, 1, 1, 1]} : vector<9x2x18x8x128xf32> to vector<8x1x18x8x128xf32>
    %58 = vector.shape_cast %57 : vector<8x1x18x8x128xf32> to vector<8x18x8x128xf32>
    %59 = vector.shape_cast %58 : vector<8x18x8x128xf32> to vector<8x9x2x8x128xf32>
    %60 = vector.extract_strided_slice %59 {offsets = [0, 0, 0, 0, 0], sizes = [8, 8, 1, 8, 128], strides = [1, 1, 1, 1, 1]} : vector<8x9x2x8x128xf32> to vector<8x8x1x8x128xf32>
    %61 = vector.shape_cast %60 : vector<8x8x1x8x128xf32> to vector<8x8x8x128xf32>
    %62 = vector.shape_cast %61 : vector<8x8x8x128xf32> to vector<512x128xf32>
    %63 = arith.truncf %62 : vector<512x128xf32> to vector<512x128xbf16>
    %64 = vector.extract_strided_slice %59 {offsets = [0, 0, 1, 0, 0], sizes = [8, 8, 1, 8, 128], strides = [1, 1, 1, 1, 1]} : vector<8x9x2x8x128xf32> to vector<8x8x1x8x128xf32>
    %65 = vector.shape_cast %64 : vector<8x8x1x8x128xf32> to vector<8x8x8x128xf32>
    %66 = vector.shape_cast %65 : vector<8x8x8x128xf32> to vector<512x128xf32>
    %67 = arith.truncf %66 : vector<512x128xf32> to vector<512x128xbf16>
    %68 = vector.extract_strided_slice %59 {offsets = [0, 1, 0, 0, 0], sizes = [8, 8, 1, 8, 128], strides = [1, 1, 1, 1, 1]} : vector<8x9x2x8x128xf32> to vector<8x8x1x8x128xf32>
    %69 = vector.shape_cast %68 : vector<8x8x1x8x128xf32> to vector<8x8x8x128xf32>
    %70 = vector.shape_cast %69 : vector<8x8x8x128xf32> to vector<512x128xf32>
    %71 = arith.truncf %70 : vector<512x128xf32> to vector<512x128xbf16>
    %72 = vector.extract_strided_slice %41 {offsets = [1, 0, 0, 0, 0], sizes = [8, 1, 18, 8, 128], strides = [1, 1, 1, 1, 1]} : vector<9x2x18x8x128xf32> to vector<8x1x18x8x128xf32>
    %73 = vector.shape_cast %72 : vector<8x1x18x8x128xf32> to vector<8x18x8x128xf32>
    %74 = vector.shape_cast %73 : vector<8x18x8x128xf32> to vector<8x9x2x8x128xf32>
    %75 = vector.extract_strided_slice %74 {offsets = [0, 0, 0, 0, 0], sizes = [8, 8, 1, 8, 128], strides = [1, 1, 1, 1, 1]} : vector<8x9x2x8x128xf32> to vector<8x8x1x8x128xf32>
    %76 = vector.shape_cast %75 : vector<8x8x1x8x128xf32> to vector<8x8x8x128xf32>
    %77 = vector.shape_cast %76 : vector<8x8x8x128xf32> to vector<512x128xf32>
    %78 = arith.truncf %77 : vector<512x128xf32> to vector<512x128xbf16>
    %79 = vector.extract_strided_slice %74 {offsets = [0, 0, 1, 0, 0], sizes = [8, 8, 1, 8, 128], strides = [1, 1, 1, 1, 1]} : vector<8x9x2x8x128xf32> to vector<8x8x1x8x128xf32>
    %80 = vector.shape_cast %79 : vector<8x8x1x8x128xf32> to vector<8x8x8x128xf32>
    %81 = vector.shape_cast %80 : vector<8x8x8x128xf32> to vector<512x128xf32>
    %82 = arith.truncf %81 : vector<512x128xf32> to vector<512x128xbf16>
    %83 = vector.extract_strided_slice %74 {offsets = [0, 1, 0, 0, 0], sizes = [8, 8, 1, 8, 128], strides = [1, 1, 1, 1, 1]} : vector<8x9x2x8x128xf32> to vector<8x8x1x8x128xf32>
    %84 = vector.shape_cast %83 : vector<8x8x1x8x128xf32> to vector<8x8x8x128xf32>
    %85 = vector.shape_cast %84 : vector<8x8x8x128xf32> to vector<512x128xf32>
    %86 = arith.truncf %85 : vector<512x128xf32> to vector<512x128xbf16>
    %87 = tpu.concatenate %48, %52, %56, %63, %67, %71, %78, %82, %86 in 1 : vector<512x128xbf16>, vector<512x128xbf16>, vector<512x128xbf16>, vector<512x128xbf16>, vector<512x128xbf16>, vector<512x128xbf16>, vector<512x128xbf16>, vector<512x128xbf16>, vector<512x128xbf16> -> vector<512x1152xbf16>
    %c0_13 = arith.constant 0 : index
    %c0_14 = arith.constant 0 : index
    %88 = vector.load %arg2[%c0_13, %c0_14] : memref<1152x128xbf16, #tpu.memory_space<vmem>>, vector<1152x128xbf16>
    %cst_15 = arith.constant dense<0.000000e+00> : vector<512x128xf32>
    %89 = tpu.matmul %87, %88, %cst_15 {dimension_numbers = #tpu.dot_dimension_numbers<[1], [0], [0], [1], [0, 0, 1, 1], [], []>} : vector<512x1152xbf16>, vector<1152x128xbf16>, vector<512x128xf32> -> vector<512x128xf32>
    %c0_16 = arith.constant 0 : index
    %c0_17 = arith.constant 0 : index
    %90 = vector.load %arg6[%c0_16, %c0_17] : memref<2x128xf32, #tpu.memory_space<vmem>>, vector<2x128xf32>
    %cst_18 = arith.constant dense<0.000000e+00> : vector<128xf32>
    %91 = vector.multi_reduction <add>, %89, %cst_18 [0] : vector<512x128xf32> to vector<128xf32>
    %92 = vector.shape_cast %91 : vector<128xf32> to vector<1x128xf32>
    %cst_19 = arith.constant 7.812500e-03 : f32
    %93 = vector.broadcast %cst_19 : f32 to vector<1x128xf32>
    %94 = arith.mulf %92, %93 : vector<1x128xf32>
    %95 = arith.mulf %89, %89 : vector<512x128xf32>
    %cst_20 = arith.constant dense<0.000000e+00> : vector<128xf32>
    %96 = vector.multi_reduction <add>, %95, %cst_20 [0] : vector<512x128xf32> to vector<128xf32>
    %97 = vector.shape_cast %96 : vector<128xf32> to vector<1x128xf32>
    %cst_21 = arith.constant 7.812500e-03 : f32
    %98 = vector.broadcast %cst_21 : f32 to vector<1x128xf32>
    %99 = arith.mulf %97, %98 : vector<1x128xf32>
    %100 = arith.mulf %94, %94 : vector<1x128xf32>
    %101 = arith.subf %99, %100 : vector<1x128xf32>
    %102 = vector.extract_strided_slice %90 {offsets = [0, 0], sizes = [1, 128], strides = [1, 1]} : vector<2x128xf32> to vector<1x128xf32>
    %cst_22 = arith.constant 9.99999974E-6 : f32
    %103 = vector.broadcast %cst_22 : f32 to vector<1x128xf32>
    %104 = arith.addf %101, %103 : vector<1x128xf32>
    %105 = math.rsqrt %104 : vector<1x128xf32>
    %106 = arith.mulf %102, %105 : vector<1x128xf32>
    %107 = vector.extract_strided_slice %90 {offsets = [1, 0], sizes = [1, 128], strides = [1, 1]} : vector<2x128xf32> to vector<1x128xf32>
    %108 = arith.mulf %94, %106 : vector<1x128xf32>
    %109 = arith.subf %107, %108 : vector<1x128xf32>
    %110 = vector.broadcast %106 : vector<1x128xf32> to vector<512x128xf32>
    %111 = arith.mulf %89, %110 : vector<512x128xf32>
    %112 = vector.broadcast %109 : vector<1x128xf32> to vector<512x128xf32>
    %113 = arith.addf %111, %112 : vector<512x128xf32>
    %cst_23 = arith.constant 0.000000e+00 : f32
    %114 = vector.broadcast %cst_23 : f32 to vector<512x128xf32>
    %115 = arith.maximumf %113, %114 : vector<512x128xf32>
    %116 = vector.shape_cast %115 : vector<512x128xf32> to vector<8x8x8x128xf32>
    %117 = tpu.iota {dimensions = array<i32: 2>} : vector<1x1x8x1xi32>
    %c2_i32_24 = arith.constant 2 : i32
    %118 = vector.broadcast %c2_i32_24 : i32 to vector<1x1x8x1xi32>
    %119 = arith.cmpi slt, %117, %118 : vector<1x1x8x1xi32>
    %120 = arith.extui %119 : vector<1x1x8x1xi1> to vector<1x1x8x1xi32>
    %121 = arith.sitofp %120 : vector<1x1x8x1xi32> to vector<1x1x8x1xf32>
    %122 = vector.broadcast %121 : vector<1x1x8x1xf32> to vector<8x8x8x128xf32>
    %123 = arith.mulf %116, %122 : vector<8x8x8x128xf32>
    %cst_25 = arith.constant 0.000000e+00 : f32
    %124 = vector.broadcast %cst_25 : f32 to vector<8x1x8x128xf32>
    %125 = tpu.concatenate %124, %123, %124 in 1 : vector<8x1x8x128xf32>, vector<8x8x8x128xf32>, vector<8x1x8x128xf32> -> vector<8x10x8x128xf32>
    %cst_26 = arith.constant 0.000000e+00 : f32
    %126 = vector.broadcast %cst_26 : f32 to vector<1x10x8x128xf32>
    %127 = tpu.concatenate %126, %125, %126 in 0 : vector<1x10x8x128xf32>, vector<8x10x8x128xf32>, vector<1x10x8x128xf32> -> vector<10x10x8x128xf32>
    %128 = vector.shape_cast %127 : vector<10x10x8x128xf32> to vector<5x2x10x8x128xf32>
    %129 = vector.extract_strided_slice %128 {offsets = [0, 0, 0, 0, 0], sizes = [4, 1, 10, 8, 128], strides = [1, 1, 1, 1, 1]} : vector<5x2x10x8x128xf32> to vector<4x1x10x8x128xf32>
    %130 = vector.shape_cast %129 : vector<4x1x10x8x128xf32> to vector<4x10x8x128xf32>
    %131 = vector.shape_cast %130 : vector<4x10x8x128xf32> to vector<4x5x2x8x128xf32>
    %132 = vector.extract_strided_slice %131 {offsets = [0, 0, 0, 0, 0], sizes = [4, 4, 1, 8, 128], strides = [1, 1, 1, 1, 1]} : vector<4x5x2x8x128xf32> to vector<4x4x1x8x128xf32>
    %133 = vector.shape_cast %132 : vector<4x4x1x8x128xf32> to vector<4x4x8x128xf32>
    %134 = vector.shape_cast %133 : vector<4x4x8x128xf32> to vector<128x128xf32>
    %135 = arith.truncf %134 : vector<128x128xf32> to vector<128x128xbf16>
    %136 = vector.extract_strided_slice %131 {offsets = [0, 0, 1, 0, 0], sizes = [4, 4, 1, 8, 128], strides = [1, 1, 1, 1, 1]} : vector<4x5x2x8x128xf32> to vector<4x4x1x8x128xf32>
    %137 = vector.shape_cast %136 : vector<4x4x1x8x128xf32> to vector<4x4x8x128xf32>
    %138 = vector.shape_cast %137 : vector<4x4x8x128xf32> to vector<128x128xf32>
    %139 = arith.truncf %138 : vector<128x128xf32> to vector<128x128xbf16>
    %140 = vector.extract_strided_slice %131 {offsets = [0, 1, 0, 0, 0], sizes = [4, 4, 1, 8, 128], strides = [1, 1, 1, 1, 1]} : vector<4x5x2x8x128xf32> to vector<4x4x1x8x128xf32>
    %141 = vector.shape_cast %140 : vector<4x4x1x8x128xf32> to vector<4x4x8x128xf32>
    %142 = vector.shape_cast %141 : vector<4x4x8x128xf32> to vector<128x128xf32>
    %143 = arith.truncf %142 : vector<128x128xf32> to vector<128x128xbf16>
    %144 = vector.extract_strided_slice %128 {offsets = [0, 1, 0, 0, 0], sizes = [4, 1, 10, 8, 128], strides = [1, 1, 1, 1, 1]} : vector<5x2x10x8x128xf32> to vector<4x1x10x8x128xf32>
    %145 = vector.shape_cast %144 : vector<4x1x10x8x128xf32> to vector<4x10x8x128xf32>
    %146 = vector.shape_cast %145 : vector<4x10x8x128xf32> to vector<4x5x2x8x128xf32>
    %147 = vector.extract_strided_slice %146 {offsets = [0, 0, 0, 0, 0], sizes = [4, 4, 1, 8, 128], strides = [1, 1, 1, 1, 1]} : vector<4x5x2x8x128xf32> to vector<4x4x1x8x128xf32>
    %148 = vector.shape_cast %147 : vector<4x4x1x8x128xf32> to vector<4x4x8x128xf32>
    %149 = vector.shape_cast %148 : vector<4x4x8x128xf32> to vector<128x128xf32>
    %150 = arith.truncf %149 : vector<128x128xf32> to vector<128x128xbf16>
    %151 = vector.extract_strided_slice %146 {offsets = [0, 0, 1, 0, 0], sizes = [4, 4, 1, 8, 128], strides = [1, 1, 1, 1, 1]} : vector<4x5x2x8x128xf32> to vector<4x4x1x8x128xf32>
    %152 = vector.shape_cast %151 : vector<4x4x1x8x128xf32> to vector<4x4x8x128xf32>
    %153 = vector.shape_cast %152 : vector<4x4x8x128xf32> to vector<128x128xf32>
    %154 = arith.truncf %153 : vector<128x128xf32> to vector<128x128xbf16>
    %155 = vector.extract_strided_slice %146 {offsets = [0, 1, 0, 0, 0], sizes = [4, 4, 1, 8, 128], strides = [1, 1, 1, 1, 1]} : vector<4x5x2x8x128xf32> to vector<4x4x1x8x128xf32>
    %156 = vector.shape_cast %155 : vector<4x4x1x8x128xf32> to vector<4x4x8x128xf32>
    %157 = vector.shape_cast %156 : vector<4x4x8x128xf32> to vector<128x128xf32>
    %158 = arith.truncf %157 : vector<128x128xf32> to vector<128x128xbf16>
    %159 = vector.extract_strided_slice %128 {offsets = [1, 0, 0, 0, 0], sizes = [4, 1, 10, 8, 128], strides = [1, 1, 1, 1, 1]} : vector<5x2x10x8x128xf32> to vector<4x1x10x8x128xf32>
    %160 = vector.shape_cast %159 : vector<4x1x10x8x128xf32> to vector<4x10x8x128xf32>
    %161 = vector.shape_cast %160 : vector<4x10x8x128xf32> to vector<4x5x2x8x128xf32>
    %162 = vector.extract_strided_slice %161 {offsets = [0, 0, 0, 0, 0], sizes = [4, 4, 1, 8, 128], strides = [1, 1, 1, 1, 1]} : vector<4x5x2x8x128xf32> to vector<4x4x1x8x128xf32>
    %163 = vector.shape_cast %162 : vector<4x4x1x8x128xf32> to vector<4x4x8x128xf32>
    %164 = vector.shape_cast %163 : vector<4x4x8x128xf32> to vector<128x128xf32>
    %165 = arith.truncf %164 : vector<128x128xf32> to vector<128x128xbf16>
    %166 = vector.extract_strided_slice %161 {offsets = [0, 0, 1, 0, 0], sizes = [4, 4, 1, 8, 128], strides = [1, 1, 1, 1, 1]} : vector<4x5x2x8x128xf32> to vector<4x4x1x8x128xf32>
    %167 = vector.shape_cast %166 : vector<4x4x1x8x128xf32> to vector<4x4x8x128xf32>
    %168 = vector.shape_cast %167 : vector<4x4x8x128xf32> to vector<128x128xf32>
    %169 = arith.truncf %168 : vector<128x128xf32> to vector<128x128xbf16>
    %170 = vector.extract_strided_slice %161 {offsets = [0, 1, 0, 0, 0], sizes = [4, 4, 1, 8, 128], strides = [1, 1, 1, 1, 1]} : vector<4x5x2x8x128xf32> to vector<4x4x1x8x128xf32>
    %171 = vector.shape_cast %170 : vector<4x4x1x8x128xf32> to vector<4x4x8x128xf32>
    %172 = vector.shape_cast %171 : vector<4x4x8x128xf32> to vector<128x128xf32>
    %173 = arith.truncf %172 : vector<128x128xf32> to vector<128x128xbf16>
    %174 = tpu.concatenate %135, %139, %143, %150, %154, %158, %165, %169, %173 in 1 : vector<128x128xbf16>, vector<128x128xbf16>, vector<128x128xbf16>, vector<128x128xbf16>, vector<128x128xbf16>, vector<128x128xbf16>, vector<128x128xbf16>, vector<128x128xbf16>, vector<128x128xbf16> -> vector<128x1152xbf16>
    %c0_27 = arith.constant 0 : index
    %c0_28 = arith.constant 0 : index
    %175 = vector.load %arg3[%c0_27, %c0_28] : memref<1152x128xbf16, #tpu.memory_space<vmem>>, vector<1152x128xbf16>
    %cst_29 = arith.constant dense<0.000000e+00> : vector<128x128xf32>
    %176 = tpu.matmul %174, %175, %cst_29 {dimension_numbers = #tpu.dot_dimension_numbers<[1], [0], [0], [1], [0, 0, 1, 1], [], []>} : vector<128x1152xbf16>, vector<1152x128xbf16>, vector<128x128xf32> -> vector<128x128xf32>
    %c0_30 = arith.constant 0 : index
    %c0_31 = arith.constant 0 : index
    %177 = vector.load %arg7[%c0_30, %c0_31] : memref<2x128xf32, #tpu.memory_space<vmem>>, vector<2x128xf32>
    %cst_32 = arith.constant dense<0.000000e+00> : vector<128xf32>
    %178 = vector.multi_reduction <add>, %176, %cst_32 [0] : vector<128x128xf32> to vector<128xf32>
    %179 = vector.shape_cast %178 : vector<128xf32> to vector<1x128xf32>
    %cst_33 = arith.constant 3.125000e-02 : f32
    %180 = vector.broadcast %cst_33 : f32 to vector<1x128xf32>
    %181 = arith.mulf %179, %180 : vector<1x128xf32>
    %182 = arith.mulf %176, %176 : vector<128x128xf32>
    %cst_34 = arith.constant dense<0.000000e+00> : vector<128xf32>
    %183 = vector.multi_reduction <add>, %182, %cst_34 [0] : vector<128x128xf32> to vector<128xf32>
    %184 = vector.shape_cast %183 : vector<128xf32> to vector<1x128xf32>
    %cst_35 = arith.constant 3.125000e-02 : f32
    %185 = vector.broadcast %cst_35 : f32 to vector<1x128xf32>
    %186 = arith.mulf %184, %185 : vector<1x128xf32>
    %187 = arith.mulf %181, %181 : vector<1x128xf32>
    %188 = arith.subf %186, %187 : vector<1x128xf32>
    %189 = vector.extract_strided_slice %177 {offsets = [0, 0], sizes = [1, 128], strides = [1, 1]} : vector<2x128xf32> to vector<1x128xf32>
    %cst_36 = arith.constant 9.99999974E-6 : f32
    %190 = vector.broadcast %cst_36 : f32 to vector<1x128xf32>
    %191 = arith.addf %188, %190 : vector<1x128xf32>
    %192 = math.rsqrt %191 : vector<1x128xf32>
    %193 = arith.mulf %189, %192 : vector<1x128xf32>
    %194 = vector.extract_strided_slice %177 {offsets = [1, 0], sizes = [1, 128], strides = [1, 1]} : vector<2x128xf32> to vector<1x128xf32>
    %195 = arith.mulf %181, %193 : vector<1x128xf32>
    %196 = arith.subf %194, %195 : vector<1x128xf32>
    %197 = vector.broadcast %193 : vector<1x128xf32> to vector<128x128xf32>
    %198 = arith.mulf %176, %197 : vector<128x128xf32>
    %199 = vector.broadcast %196 : vector<1x128xf32> to vector<128x128xf32>
    %200 = arith.addf %198, %199 : vector<128x128xf32>
    %cst_37 = arith.constant 0.000000e+00 : f32
    %201 = vector.broadcast %cst_37 : f32 to vector<128x128xf32>
    %202 = arith.maximumf %200, %201 : vector<128x128xf32>
    %203 = vector.shape_cast %202 : vector<128x128xf32> to vector<4x4x8x128xf32>
    %204 = tpu.iota {dimensions = array<i32: 2>} : vector<1x1x8x1xi32>
    %c2_i32_38 = arith.constant 2 : i32
    %205 = vector.broadcast %c2_i32_38 : i32 to vector<1x1x8x1xi32>
    %206 = arith.cmpi slt, %204, %205 : vector<1x1x8x1xi32>
    %207 = arith.extui %206 : vector<1x1x8x1xi1> to vector<1x1x8x1xi32>
    %208 = arith.sitofp %207 : vector<1x1x8x1xi32> to vector<1x1x8x1xf32>
    %209 = vector.broadcast %208 : vector<1x1x8x1xf32> to vector<4x4x8x128xf32>
    %210 = arith.mulf %203, %209 : vector<4x4x8x128xf32>
    %cst_39 = arith.constant 0.000000e+00 : f32
    %211 = vector.broadcast %cst_39 : f32 to vector<4x1x8x128xf32>
    %212 = tpu.concatenate %211, %210, %211 in 1 : vector<4x1x8x128xf32>, vector<4x4x8x128xf32>, vector<4x1x8x128xf32> -> vector<4x6x8x128xf32>
    %cst_40 = arith.constant 0.000000e+00 : f32
    %213 = vector.broadcast %cst_40 : f32 to vector<1x6x8x128xf32>
    %214 = tpu.concatenate %213, %212, %213 in 0 : vector<1x6x8x128xf32>, vector<4x6x8x128xf32>, vector<1x6x8x128xf32> -> vector<6x6x8x128xf32>
    %215 = vector.shape_cast %214 : vector<6x6x8x128xf32> to vector<3x2x6x8x128xf32>
    %216 = vector.extract_strided_slice %215 {offsets = [0, 0, 0, 0, 0], sizes = [2, 1, 6, 8, 128], strides = [1, 1, 1, 1, 1]} : vector<3x2x6x8x128xf32> to vector<2x1x6x8x128xf32>
    %217 = vector.shape_cast %216 : vector<2x1x6x8x128xf32> to vector<2x6x8x128xf32>
    %218 = vector.shape_cast %217 : vector<2x6x8x128xf32> to vector<2x3x2x8x128xf32>
    %219 = vector.extract_strided_slice %218 {offsets = [0, 0, 0, 0, 0], sizes = [2, 2, 1, 8, 128], strides = [1, 1, 1, 1, 1]} : vector<2x3x2x8x128xf32> to vector<2x2x1x8x128xf32>
    %220 = vector.shape_cast %219 : vector<2x2x1x8x128xf32> to vector<2x2x8x128xf32>
    %221 = vector.shape_cast %220 : vector<2x2x8x128xf32> to vector<32x128xf32>
    %222 = arith.truncf %221 : vector<32x128xf32> to vector<32x128xbf16>
    %223 = vector.extract_strided_slice %218 {offsets = [0, 0, 1, 0, 0], sizes = [2, 2, 1, 8, 128], strides = [1, 1, 1, 1, 1]} : vector<2x3x2x8x128xf32> to vector<2x2x1x8x128xf32>
    %224 = vector.shape_cast %223 : vector<2x2x1x8x128xf32> to vector<2x2x8x128xf32>
    %225 = vector.shape_cast %224 : vector<2x2x8x128xf32> to vector<32x128xf32>
    %226 = arith.truncf %225 : vector<32x128xf32> to vector<32x128xbf16>
    %227 = vector.extract_strided_slice %218 {offsets = [0, 1, 0, 0, 0], sizes = [2, 2, 1, 8, 128], strides = [1, 1, 1, 1, 1]} : vector<2x3x2x8x128xf32> to vector<2x2x1x8x128xf32>
    %228 = vector.shape_cast %227 : vector<2x2x1x8x128xf32> to vector<2x2x8x128xf32>
    %229 = vector.shape_cast %228 : vector<2x2x8x128xf32> to vector<32x128xf32>
    %230 = arith.truncf %229 : vector<32x128xf32> to vector<32x128xbf16>
    %231 = vector.extract_strided_slice %215 {offsets = [0, 1, 0, 0, 0], sizes = [2, 1, 6, 8, 128], strides = [1, 1, 1, 1, 1]} : vector<3x2x6x8x128xf32> to vector<2x1x6x8x128xf32>
    %232 = vector.shape_cast %231 : vector<2x1x6x8x128xf32> to vector<2x6x8x128xf32>
    %233 = vector.shape_cast %232 : vector<2x6x8x128xf32> to vector<2x3x2x8x128xf32>
    %234 = vector.extract_strided_slice %233 {offsets = [0, 0, 0, 0, 0], sizes = [2, 2, 1, 8, 128], strides = [1, 1, 1, 1, 1]} : vector<2x3x2x8x128xf32> to vector<2x2x1x8x128xf32>
    %235 = vector.shape_cast %234 : vector<2x2x1x8x128xf32> to vector<2x2x8x128xf32>
    %236 = vector.shape_cast %235 : vector<2x2x8x128xf32> to vector<32x128xf32>
    %237 = arith.truncf %236 : vector<32x128xf32> to vector<32x128xbf16>
    %238 = vector.extract_strided_slice %233 {offsets = [0, 0, 1, 0, 0], sizes = [2, 2, 1, 8, 128], strides = [1, 1, 1, 1, 1]} : vector<2x3x2x8x128xf32> to vector<2x2x1x8x128xf32>
    %239 = vector.shape_cast %238 : vector<2x2x1x8x128xf32> to vector<2x2x8x128xf32>
    %240 = vector.shape_cast %239 : vector<2x2x8x128xf32> to vector<32x128xf32>
    %241 = arith.truncf %240 : vector<32x128xf32> to vector<32x128xbf16>
    %242 = vector.extract_strided_slice %233 {offsets = [0, 1, 0, 0, 0], sizes = [2, 2, 1, 8, 128], strides = [1, 1, 1, 1, 1]} : vector<2x3x2x8x128xf32> to vector<2x2x1x8x128xf32>
    %243 = vector.shape_cast %242 : vector<2x2x1x8x128xf32> to vector<2x2x8x128xf32>
    %244 = vector.shape_cast %243 : vector<2x2x8x128xf32> to vector<32x128xf32>
    %245 = arith.truncf %244 : vector<32x128xf32> to vector<32x128xbf16>
    %246 = vector.extract_strided_slice %215 {offsets = [1, 0, 0, 0, 0], sizes = [2, 1, 6, 8, 128], strides = [1, 1, 1, 1, 1]} : vector<3x2x6x8x128xf32> to vector<2x1x6x8x128xf32>
    %247 = vector.shape_cast %246 : vector<2x1x6x8x128xf32> to vector<2x6x8x128xf32>
    %248 = vector.shape_cast %247 : vector<2x6x8x128xf32> to vector<2x3x2x8x128xf32>
    %249 = vector.extract_strided_slice %248 {offsets = [0, 0, 0, 0, 0], sizes = [2, 2, 1, 8, 128], strides = [1, 1, 1, 1, 1]} : vector<2x3x2x8x128xf32> to vector<2x2x1x8x128xf32>
    %250 = vector.shape_cast %249 : vector<2x2x1x8x128xf32> to vector<2x2x8x128xf32>
    %251 = vector.shape_cast %250 : vector<2x2x8x128xf32> to vector<32x128xf32>
    %252 = arith.truncf %251 : vector<32x128xf32> to vector<32x128xbf16>
    %253 = vector.extract_strided_slice %248 {offsets = [0, 0, 1, 0, 0], sizes = [2, 2, 1, 8, 128], strides = [1, 1, 1, 1, 1]} : vector<2x3x2x8x128xf32> to vector<2x2x1x8x128xf32>
    %254 = vector.shape_cast %253 : vector<2x2x1x8x128xf32> to vector<2x2x8x128xf32>
    %255 = vector.shape_cast %254 : vector<2x2x8x128xf32> to vector<32x128xf32>
    %256 = arith.truncf %255 : vector<32x128xf32> to vector<32x128xbf16>
    %257 = vector.extract_strided_slice %248 {offsets = [0, 1, 0, 0, 0], sizes = [2, 2, 1, 8, 128], strides = [1, 1, 1, 1, 1]} : vector<2x3x2x8x128xf32> to vector<2x2x1x8x128xf32>
    %258 = vector.shape_cast %257 : vector<2x2x1x8x128xf32> to vector<2x2x8x128xf32>
    %259 = vector.shape_cast %258 : vector<2x2x8x128xf32> to vector<32x128xf32>
    %260 = arith.truncf %259 : vector<32x128xf32> to vector<32x128xbf16>
    %261 = tpu.concatenate %222, %226, %230, %237, %241, %245, %252, %256, %260 in 1 : vector<32x128xbf16>, vector<32x128xbf16>, vector<32x128xbf16>, vector<32x128xbf16>, vector<32x128xbf16>, vector<32x128xbf16>, vector<32x128xbf16>, vector<32x128xbf16>, vector<32x128xbf16> -> vector<32x1152xbf16>
    %c0_41 = arith.constant 0 : index
    %c0_42 = arith.constant 0 : index
    %262 = vector.load %arg4[%c0_41, %c0_42] : memref<1152x256xbf16, #tpu.memory_space<vmem>>, vector<1152x256xbf16>
    %cst_43 = arith.constant dense<0.000000e+00> : vector<32x256xf32>
    %263 = tpu.matmul %261, %262, %cst_43 {dimension_numbers = #tpu.dot_dimension_numbers<[1], [0], [0], [1], [0, 0, 1, 1], [], []>} : vector<32x1152xbf16>, vector<1152x256xbf16>, vector<32x256xf32> -> vector<32x256xf32>
    %c0_44 = arith.constant 0 : index
    %c0_45 = arith.constant 0 : index
    %264 = vector.load %arg8[%c0_44, %c0_45] : memref<2x256xf32, #tpu.memory_space<vmem>>, vector<2x256xf32>
    %cst_46 = arith.constant dense<0.000000e+00> : vector<256xf32>
    %265 = vector.multi_reduction <add>, %263, %cst_46 [0] : vector<32x256xf32> to vector<256xf32>
    %266 = vector.shape_cast %265 : vector<256xf32> to vector<1x256xf32>
    %cst_47 = arith.constant 1.250000e-01 : f32
    %267 = vector.broadcast %cst_47 : f32 to vector<1x256xf32>
    %268 = arith.mulf %266, %267 : vector<1x256xf32>
    %269 = arith.mulf %263, %263 : vector<32x256xf32>
    %cst_48 = arith.constant dense<0.000000e+00> : vector<256xf32>
    %270 = vector.multi_reduction <add>, %269, %cst_48 [0] : vector<32x256xf32> to vector<256xf32>
    %271 = vector.shape_cast %270 : vector<256xf32> to vector<1x256xf32>
    %cst_49 = arith.constant 1.250000e-01 : f32
    %272 = vector.broadcast %cst_49 : f32 to vector<1x256xf32>
    %273 = arith.mulf %271, %272 : vector<1x256xf32>
    %274 = arith.mulf %268, %268 : vector<1x256xf32>
    %275 = arith.subf %273, %274 : vector<1x256xf32>
    %276 = vector.extract_strided_slice %264 {offsets = [0, 0], sizes = [1, 256], strides = [1, 1]} : vector<2x256xf32> to vector<1x256xf32>
    %cst_50 = arith.constant 9.99999974E-6 : f32
    %277 = vector.broadcast %cst_50 : f32 to vector<1x256xf32>
    %278 = arith.addf %275, %277 : vector<1x256xf32>
    %279 = math.rsqrt %278 : vector<1x256xf32>
    %280 = arith.mulf %276, %279 : vector<1x256xf32>
    %281 = vector.extract_strided_slice %264 {offsets = [1, 0], sizes = [1, 256], strides = [1, 1]} : vector<2x256xf32> to vector<1x256xf32>
    %282 = arith.mulf %268, %280 : vector<1x256xf32>
    %283 = arith.subf %281, %282 : vector<1x256xf32>
    %284 = vector.broadcast %280 : vector<1x256xf32> to vector<32x256xf32>
    %285 = arith.mulf %263, %284 : vector<32x256xf32>
    %286 = vector.broadcast %283 : vector<1x256xf32> to vector<32x256xf32>
    %287 = arith.addf %285, %286 : vector<32x256xf32>
    %cst_51 = arith.constant 0.000000e+00 : f32
    %288 = vector.broadcast %cst_51 : f32 to vector<32x256xf32>
    %289 = arith.maximumf %287, %288 : vector<32x256xf32>
    %290 = vector.shape_cast %289 : vector<32x256xf32> to vector<4x8x256xf32>
    %291 = arith.truncf %290 : vector<4x8x256xf32> to vector<4x8x256xbf16>
    %cst_52 = arith.constant 0.000000e+00 : f32
    %292 = vector.broadcast %cst_52 : f32 to vector<8x128xf32>
    %293 = vector.extract_strided_slice %291 {offsets = [0, 0, 0], sizes = [1, 8, 256], strides = [1, 1, 1]} : vector<4x8x256xbf16> to vector<1x8x256xbf16>
    %294 = vector.shape_cast %293 : vector<1x8x256xbf16> to vector<8x256xbf16>
    %c0_53 = arith.constant 0 : index
    %c0_54 = arith.constant 0 : index
    %c0_55 = arith.constant 0 : index
    %295 = vector.load %arg9[%c0_53, %c0_54, %c0_55] : memref<4x256x128xbf16, #tpu.memory_space<vmem>>, vector<1x256x128xbf16>
    %296 = vector.shape_cast %295 : vector<1x256x128xbf16> to vector<256x128xbf16>
    %cst_56 = arith.constant dense<0.000000e+00> : vector<8x128xf32>
    %297 = tpu.matmul %294, %296, %cst_56 {dimension_numbers = #tpu.dot_dimension_numbers<[1], [0], [0], [1], [0, 0, 1, 1], [], []>} : vector<8x256xbf16>, vector<256x128xbf16>, vector<8x128xf32> -> vector<8x128xf32>
    %298 = arith.addf %292, %297 : vector<8x128xf32>
    %299 = vector.extract_strided_slice %291 {offsets = [1, 0, 0], sizes = [1, 8, 256], strides = [1, 1, 1]} : vector<4x8x256xbf16> to vector<1x8x256xbf16>
    %300 = vector.shape_cast %299 : vector<1x8x256xbf16> to vector<8x256xbf16>
    %c1 = arith.constant 1 : index
    %c0_57 = arith.constant 0 : index
    %c0_58 = arith.constant 0 : index
    %301 = vector.load %arg9[%c1, %c0_57, %c0_58] : memref<4x256x128xbf16, #tpu.memory_space<vmem>>, vector<1x256x128xbf16>
    %302 = vector.shape_cast %301 : vector<1x256x128xbf16> to vector<256x128xbf16>
    %cst_59 = arith.constant dense<0.000000e+00> : vector<8x128xf32>
    %303 = tpu.matmul %300, %302, %cst_59 {dimension_numbers = #tpu.dot_dimension_numbers<[1], [0], [0], [1], [0, 0, 1, 1], [], []>} : vector<8x256xbf16>, vector<256x128xbf16>, vector<8x128xf32> -> vector<8x128xf32>
    %304 = arith.addf %298, %303 : vector<8x128xf32>
    %305 = vector.extract_strided_slice %291 {offsets = [2, 0, 0], sizes = [1, 8, 256], strides = [1, 1, 1]} : vector<4x8x256xbf16> to vector<1x8x256xbf16>
    %306 = vector.shape_cast %305 : vector<1x8x256xbf16> to vector<8x256xbf16>
    %c2 = arith.constant 2 : index
    %c0_60 = arith.constant 0 : index
    %c0_61 = arith.constant 0 : index
    %307 = vector.load %arg9[%c2, %c0_60, %c0_61] : memref<4x256x128xbf16, #tpu.memory_space<vmem>>, vector<1x256x128xbf16>
    %308 = vector.shape_cast %307 : vector<1x256x128xbf16> to vector<256x128xbf16>
    %cst_62 = arith.constant dense<0.000000e+00> : vector<8x128xf32>
    %309 = tpu.matmul %306, %308, %cst_62 {dimension_numbers = #tpu.dot_dimension_numbers<[1], [0], [0], [1], [0, 0, 1, 1], [], []>} : vector<8x256xbf16>, vector<256x128xbf16>, vector<8x128xf32> -> vector<8x128xf32>
    %310 = arith.addf %304, %309 : vector<8x128xf32>
    %311 = vector.extract_strided_slice %291 {offsets = [3, 0, 0], sizes = [1, 8, 256], strides = [1, 1, 1]} : vector<4x8x256xbf16> to vector<1x8x256xbf16>
    %312 = vector.shape_cast %311 : vector<1x8x256xbf16> to vector<8x256xbf16>
    %c3 = arith.constant 3 : index
    %c0_63 = arith.constant 0 : index
    %c0_64 = arith.constant 0 : index
    %313 = vector.load %arg9[%c3, %c0_63, %c0_64] : memref<4x256x128xbf16, #tpu.memory_space<vmem>>, vector<1x256x128xbf16>
    %314 = vector.shape_cast %313 : vector<1x256x128xbf16> to vector<256x128xbf16>
    %cst_65 = arith.constant dense<0.000000e+00> : vector<8x128xf32>
    %315 = tpu.matmul %312, %314, %cst_65 {dimension_numbers = #tpu.dot_dimension_numbers<[1], [0], [0], [1], [0, 0, 1, 1], [], []>} : vector<8x256xbf16>, vector<256x128xbf16>, vector<8x128xf32> -> vector<8x128xf32>
    %316 = arith.addf %310, %315 : vector<8x128xf32>
    %c0_66 = arith.constant 0 : index
    %c0_67 = arith.constant 0 : index
    %317 = vector.load %arg10[%c0_66, %c0_67] : memref<1x128xf32, #tpu.memory_space<vmem>>, vector<1x128xf32>
    %318 = vector.broadcast %317 : vector<1x128xf32> to vector<8x128xf32>
    %319 = arith.addf %316, %318 : vector<8x128xf32>
    %c0_68 = arith.constant 0 : index
    %c0_69 = arith.constant 0 : index
    %320 = vector.load %arg11[%c0_68, %c0_69] : memref<8x128xf32, #tpu.memory_space<vmem>>, vector<8x128xf32>
    tpu.vector_store %arg11[%c0_68, %c0_69], %319 {strides = array<i32>} : memref<8x128xf32, #tpu.memory_space<vmem>>, vector<8x128xf32>,
    return
  }
}

</mosaic_0001>

<bundles_post_ra>
// kernel: cnn_forward.1
= control target key start
LH: loop header
LB: loop body
LE: loop exit
PB: predicated region body
PF: predicated region fallthrough
CT: control target
= control target key end

     0   :  { %16 = vsyncpa [#allocation3], 0  ;;  %s21201_s0 = inlined_call_operand.vmem [shape: bf16[2048,9], index: 0, kind: input, shape index: {}]   ;;  %s21202_s1 = inlined_call_operand.hbm [shape: bf16[9,128], index: 1, kind: input, shape index: {}]   ;;  %s21203_s2 = inlined_call_operand.vmem [shape: bf16[1152,128], index: 2, kind: input, shape index: {}]   ;;  %s21204_s3 = inlined_call_operand.vmem [shape: bf16[1152,128], index: 3, kind: input, shape index: {}]   ;;  %s21205_s4 = inlined_call_operand.vmem [shape: bf16[1152,256], index: 4, kind: input, shape index: {}]   ;;  %s21206_s5 = inlined_call_operand.hbm [shape: f32[2,128], index: 5, kind: input, shape index: {}]   ;;  %s21207_s6 = inlined_call_operand.hbm [shape: f32[2,128], index: 6, kind: input, shape index: {}]   ;;  %s21208_s7 = inlined_call_operand.hbm [shape: f32[2,128], index: 7, kind: input, shape index: {}]   ;;  %s21209_s8 = inlined_call_operand.vmem [shape: f32[2,256], index: 8, kind: input, shape index: {}]   ;;  %s21210_s9 = inlined_call_operand.vmem [shape: bf16[4,256,128], index: 9, kind: input, shape index: {}]   ;;  %s21211_s10 = inlined_call_operand.hbm [shape: f32[1,128], index: 10, kind: input, shape index: {}]   ;;  %s21212_s11 = inlined_call_operand.vmem [shape: f32[8,128], index: 11, kind: output, shape index: {}]  }
   0x1   :  { %17 = vsyncpa [#allocation5], 0 }
   0x2   :  { %18 = vsyncpa [#allocation8], 0  ;;  %s12925_s17 = smov [#allocation4]   ;;  %s12926_s19 = smov [#allocation7]  }
   0x3   :  { %s45_s18 = sshll.u32 %s12925_s17, 4  ;;  %s65_s20 = sshll.u32 %s12926_s19, 4  ;;  %s46_s18 = int_to_ptr.vmem [resolvable:$true] %s45_s18  ;;  %s66_s20 = int_to_ptr.vmem [resolvable:$true] %s65_s20 }
   0x4   :  { %s12809_s23 = scalar_lea.hbm %s21206_s5, 32 }
   0x5   :  { %p12810_p0 = scmp.ne.s32.totalorder %s21206_s5, %s12809_s23  ;;  %p12813_p1 = scmp.lt.u32.totalorder %s12809_s23, %s21206_s5 }
   0x7   :  { %p12815_p2 = pnand %p12813_p1, %p12810_p0 }
   0x9   :  { %12818 = shalt.err (!%p12815_p2)
}
   0xa   :  { %s12819_s28 = scalar_lea.vmem %s46_s18, 32  ;;  %p12824_p4 = scmp.lt.s32.totalorder %s46_s18, %s46_s18 }
   0xb   :  { %p12820_p3 = scmp.ne.s32.totalorder %s46_s18, %s12819_s28  ;;  %p12825_p5 = scmp.lt.s32.totalorder %s12819_s28, %s12819_s28 }
   0xd   :  { %p12826_p6 = por %p12825_p5, %p12824_p4 }
   0xf   :  { %p12827_p7 = pnand %p12826_p6, %p12820_p3 }
  0x11   :  { %12830 = shalt.err (!%p12827_p7)
}
  0x12   :  { %48 = dma.hbm_to_vmem [thread:$0]  %s21206_s5, 32, %s46_s18, [#allocation5]  }
  0x13   :  { %s12831_s14 = scalar_lea.hbm %s21208_s7, 32 }
  0x14   :  { %p12832_p8 = scmp.ne.s32.totalorder %s21208_s7, %s12831_s14  ;;  %p12835_p9 = scmp.lt.u32.totalorder %s12831_s14, %s21208_s7 }
  0x16   :  { %p12837_p10 = pnand %p12835_p9, %p12832_p8 }
  0x18   :  { %12840 = shalt.err (!%p12837_p10)
}
  0x19   :  { %s12841_s21 = scalar_lea.vmem %s66_s20, 32  ;;  %p12846_p12 = scmp.lt.s32.totalorder %s66_s20, %s66_s20 }
  0x1a   :  { %p12842_p11 = scmp.ne.s32.totalorder %s66_s20, %s12841_s21  ;;  %p12847_p13 = scmp.lt.s32.totalorder %s12841_s21, %s12841_s21 }
  0x1c   :  { %p12848_p0 = por %p12847_p13, %p12846_p12 }
  0x1e   :  { %p12849_p1 = pnand %p12848_p0, %p12842_p11 }
  0x20   :  { %12852 = shalt.err (!%p12849_p1)
}
  0x21   :  { %68 = dma.hbm_to_vmem [thread:$0]  %s21208_s7, 32, %s66_s20, [#allocation8]  }
  0x22   :  { %s12927_s22 = smov [#allocation2]   ;;  %s12853_s26 = scalar_lea.hbm %s21202_s1, 128 }
  0x23   :  { %s26_s23 = sshll.u32 %s12927_s22, 4  ;;  %p12854_p2 = scmp.ne.s32.totalorder %s21202_s1, %s12853_s26  ;;  %s27_s23 = int_to_ptr.vmem [resolvable:$true] %s26_s23 }
  0x24   :  { %p12857_p3 = scmp.lt.u32.totalorder %s12853_s26, %s21202_s1 }
  0x26   :  { %p12859_p4 = pnand %p12857_p3, %p12854_p2 }
  0x28   :  { %12862 = shalt.err (!%p12859_p4)
}
  0x29   :  { %s12863_s12 = scalar_lea.vmem %s27_s23, 128  ;;  %p12868_p6 = scmp.lt.s32.totalorder %s27_s23, %s27_s23 }
  0x2a   :  { %p12864_p5 = scmp.ne.s32.totalorder %s27_s23, %s12863_s12  ;;  %p12869_p7 = scmp.lt.s32.totalorder %s12863_s12, %s12863_s12 }
  0x2c   :  { %p12870_p8 = por %p12869_p7, %p12868_p6 }
  0x2e   :  { %p12871_p9 = pnand %p12870_p8, %p12864_p5 }
  0x30   :  { %12874 = shalt.err (!%p12871_p9)
}
  0x31   :  { %s12928_s7 = smov 64   ;;  %s12929_s20 = smov 4  }
  0x32   :  { %32 = dma.hbm_to_vmem [thread:$0]  %s21202_s1, 128, %s27_s23, [#allocation3], %s12928_s7, %s12928_s7, %s12929_s20  }
  0x33   :  { %s12930_s15 = smov [#allocation6]   ;;  %s12931_s17 = smov [#allocation9]  }
  0x34   :  { %s55_s16 = sshll.u32 %s12930_s15, 4  ;;  %s79_s19 = sshll.u32 %s12931_s17, 4  ;;  %s56_s16 = int_to_ptr.vmem [resolvable:$true] %s55_s16  ;;  %s80_s19 = int_to_ptr.vmem [resolvable:$true] %s79_s19 }
  0x35   :  { %s12875_s18 = scalar_lea.hbm %s21207_s6, 32 }
  0x36   :  { %p12876_p10 = scmp.ne.s32.totalorder %s21207_s6, %s12875_s18  ;;  %p12879_p11 = scmp.lt.u32.totalorder %s12875_s18, %s21207_s6 }
  0x38   :  { %p12881_p12 = pnand %p12879_p11, %p12876_p10 }
  0x3a   :  { %12884 = shalt.err (!%p12881_p12)
}
  0x3b   :  { %s12885_s1 = scalar_lea.vmem %s56_s16, 32  ;;  %p12890_p0 = scmp.lt.s32.totalorder %s56_s16, %s56_s16 }
  0x3c   :  { %p12886_p13 = scmp.ne.s32.totalorder %s56_s16, %s12885_s1  ;;  %p12891_p1 = scmp.lt.s32.totalorder %s12885_s1, %s12885_s1 }
  0x3e   :  { %p12892_p2 = por %p12891_p1, %p12890_p0 }
  0x40   :  { %p12893_p3 = pnand %p12892_p2, %p12886_p13 }
  0x42   :  { %12896 = shalt.err (!%p12893_p3)
}
  0x43   :  { %58 = dma.hbm_to_vmem [thread:$0]  %s21207_s6, 32, %s56_s16, [#allocation5]  }
  0x44   :  { %s12897_s30 = scalar_lea.hbm %s21211_s10, 16 }
  0x45   :  { %p12898_p4 = scmp.ne.s32.totalorder %s21211_s10, %s12897_s30  ;;  %p12901_p5 = scmp.lt.u32.totalorder %s12897_s30, %s21211_s10 }
  0x47   :  { %p12903_p6 = pnand %p12901_p5, %p12898_p4 }
  0x49   :  { %12906 = shalt.err (!%p12903_p6)
}
  0x4a   :  { %s12907_s14 = scalar_lea.vmem %s80_s19, 16  ;;  %s12911_s15 = scalar_lea.vmem %s80_s19, 32 }
  0x4b   :  { %p12908_p7 = scmp.ne.s32.totalorder %s80_s19, %s12907_s14  ;;  %p12912_p8 = scmp.lt.s32.totalorder %s80_s19, %s80_s19 }
  0x4c   :  { %p12913_p9 = scmp.lt.s32.totalorder %s12911_s15, %s12907_s14 }
  0x4e   :  { %p12914_p10 = por %p12913_p9, %p12912_p8 }
  0x50   :  { %p12915_p11 = pnand %p12914_p10, %p12908_p7 }
  0x52   :  { %12918 = shalt.err (!%p12915_p11)
}
  0x53   :  { %82 = dma.hbm_to_vmem [thread:$0]  %s21211_s10, 16, %s80_s19, [#allocation8]  }
  0x54   :  { %12919 = dma.done.wait [#allocation3], 128  }
  0x55   :  { %12920 = vsyncadd [#allocation3], 4294967168 }
  0x56   :  { %12921 = dma.done.wait [#allocation5], 64  }
  0x57   :  { %12922 = vsyncadd [#allocation5], 4294967232 }
  0x58   :  { %12923 = dma.done.wait [#allocation8], 48  }
  0x59   :  { %12924 = vsyncadd [#allocation8], 4294967248  ;;  %vm1387_vm0 = vcmask 1043456   ;;  %vm1388_vm1 = vcmask 1044480   ;;  %v12932_v0 = vmov 65535   ;;  %vm1002_vm2 = vcmask 72704  }
  0x5a   :  { %v1389_v1 = vsel %vm1387_vm0, 4294967295, %v12932_v0  ;;  %v12246_v3 = vld [vmem:[#allocation2] sm:$0x1f]   ;;  %v12248_v6 = vld [vmem:[%s21201_s0 + $0x8] sm:$0xff]   ;;  %v12249_v7 = vld [vmem:[%s21201_s0 + $0x10] sm:$0xff]  }
  0x5b   :  { %v1390_v2 = vsel %vm1388_vm1, %v1389_v1, 0  ;;  %v12247_v4 = vld [vmem:[%s21201_s0] sm:$0xff]   ;;  %v12250_v8 = vld [vmem:[%s21201_s0 + $0x18] sm:$0xff]   ;;  %v12252_v10 = vld [vmem:[%s21201_s0 + $0x28] sm:$0xff]  }
  0x5c   :  { %v1392_v5 = vand.u32 %v12246_v3, %v1390_v2  ;;  %11450 = vmatprep.mubr.msk.bf16.mxu0 %vm1002_vm2, %v12247_v4  ;;  %v12251_v9 = vld [vmem:[%s21201_s0 + $0x20] sm:$0xff]   ;;  %v12253_v11 = vld [vmem:[%s21201_s0 + $0x30] sm:$0xff]   ;;  %v12254_v12 = vld [vmem:[%s21201_s0 + $0x38] sm:$0xff]  }
  0x5d   :  { %v12255_v13 = vld [vmem:[%s21201_s0 + $0x40] sm:$0xff]   ;;  %v12256_v14 = vld [vmem:[%s21201_s0 + $0x48] sm:$0xff]   ;;  %v12257_v15 = vld [vmem:[%s21201_s0 + $0x50] sm:$0xff]  }
  0x5e   :  { %11448 = vmatprep.subr.bf16.mxu0 %v1392_v5  ;;  %v12258_v16 = vld [vmem:[%s21201_s0 + $0x58] sm:$0xff]   ;;  %v12259_v17 = vld [vmem:[%s21201_s0 + $0x60] sm:$0xff]   ;;  %v12260_v18 = vld [vmem:[%s21201_s0 + $0x68] sm:$0xff]  }
  0x5f   :  { %11449 = vmatpush3.bf16.msra.mxu0 %v1392_v5  ;;  %v12261_v19 = vld [vmem:[%s21201_s0 + $0x70] sm:$0xff]   ;;  %v12262_v20 = vld [vmem:[%s21201_s0 + $0x78] sm:$0xff]   ;;  %v12263_v21 = vld [vmem:[%s21201_s0 + $0x80] sm:$0xff]  }
  0x60   :  { %v12264_v22 = vld [vmem:[%s21201_s0 + $0x88] sm:$0xff]   ;;  %v12265_v23 = vld [vmem:[%s21201_s0 + $0x90] sm:$0xff]   ;;  %v12266_v24 = vld [vmem:[%s21201_s0 + $0x98] sm:$0xff]  }
  0x61   :  { %v12267_v25 = vld [vmem:[%s21201_s0 + $0xa0] sm:$0xff]   ;;  %v12268_v26 = vld [vmem:[%s21201_s0 + $0xa8] sm:$0xff]   ;;  %v12269_v27 = vld [vmem:[%s21201_s0 + $0xb0] sm:$0xff]  }
  0x62   :  { %11451 = vmatmul.mubr.msk.bf16.vlgmr.msra.gmra.mrb[0].mxu0 %vm1002_vm2, %v12248_v6  ;;  %v12270_v28 = vld [vmem:[%s21201_s0 + $0xb8] sm:$0xff]   ;;  %v12271_v29 = vld [vmem:[%s21201_s0 + $0xc0] sm:$0xff]   ;;  %v12272_v30 = vld [vmem:[%s21201_s0 + $0xc8] sm:$0xff]  }
  0x63   :  { %11454 = vmatprep.mubr.msk.bf16.mxu0 %vm1002_vm2, %v12249_v7  ;;  %v12273_v31 = vld [vmem:[%s21201_s0 + $0xd0] sm:$0xff]   ;;  %v12274_v32 = vld [vmem:[%s21201_s0 + $0xd8] sm:$0xff]   ;;  %v12275_v33 = vld [vmem:[%s21201_s0 + $0xe0] sm:$0xff]  }
  0x64   :  { %v12276_v34 = vld [vmem:[%s21201_s0 + $0xe8] sm:$0xff]   ;;  %v12277_v35 = vld [vmem:[%s21201_s0 + $0xf0] sm:$0xff]   ;;  %v12278_v36 = vld [vmem:[%s21201_s0 + $0xf8] sm:$0xff]  }
  0x65   :  { %v12279_v37 = vld [vmem:[%s21201_s0 + $0x100] sm:$0xff]   ;;  %v12280_v38 = vld [vmem:[%s21201_s0 + $0x108] sm:$0xff]   ;;  %v12281_v39 = vld [vmem:[%s21201_s0 + $0x110] sm:$0xff]  }
  0x66   :  { %v12282_v40 = vld [vmem:[%s21201_s0 + $0x118] sm:$0xff]   ;;  %v12283_v41 = vld [vmem:[%s21201_s0 + $0x120] sm:$0xff]   ;;  %v12284_v42 = vld [vmem:[%s21201_s0 + $0x128] sm:$0xff]  }
  0x67   :  { %v12285_v43 = vld [vmem:[%s21201_s0 + $0x130] sm:$0xff]   ;;  %v12286_v44 = vld [vmem:[%s21201_s0 + $0x138] sm:$0xff]   ;;  %v12287_v45 = vld [vmem:[%s21201_s0 + $0x140] sm:$0xff]  }
  0x68   :  { %v12288_v46 = vld [vmem:[%s21201_s0 + $0x148] sm:$0xff]   ;;  %v12289_v47 = vld [vmem:[%s21201_s0 + $0x150] sm:$0xff]   ;;  %v12290_v48 = vld [vmem:[%s21201_s0 + $0x158] sm:$0xff]  }
  0x69   :  { %v12291_v49 = vld [vmem:[%s21201_s0 + $0x160] sm:$0xff]   ;;  %v12292_v50 = vld [vmem:[%s21201_s0 + $0x168] sm:$0xff]   ;;  %v12293_v51 = vld [vmem:[%s21201_s0 + $0x170] sm:$0xff]  }
  0x6a   :  { %11455 = vmatmul.mubr.msk.bf16.gmra.mrb[4].mxu0 %vm1002_vm2, %v12250_v8  ;;  %v12294_v52 = vld [vmem:[%s21201_s0 + $0x178] sm:$0xff]   ;;  %v12295_v53 = vld [vmem:[%s21201_s0 + $0x180] sm:$0xff]   ;;  %v12296_v54 = vld [vmem:[%s21201_s0 + $0x188] sm:$0xff]  }
  0x6b   :  { %11458 = vmatprep.mubr.msk.bf16.mxu0 %vm1002_vm2, %v12251_v9  ;;  %v12297_v55 = vld [vmem:[%s21201_s0 + $0x190] sm:$0xff]   ;;  %v12298_v56 = vld [vmem:[%s21201_s0 + $0x198] sm:$0xff]   ;;  %v12299_v57 = vld [vmem:[%s21201_s0 + $0x1a0] sm:$0xff]  }
  0x6c   :  { %v12300_v58 = vld [vmem:[%s21201_s0 + $0x1a8] sm:$0xff]   ;;  %v12301_v59 = vld [vmem:[%s21201_s0 + $0x1b0] sm:$0xff]   ;;  %v12302_v60 = vld [vmem:[%s21201_s0 + $0x1b8] sm:$0xff]  }
  0x6d   :  { %v12303_v0 = vld [vmem:[%s21201_s0 + $0x1c0] sm:$0xff]   ;;  %v12304_v8 = vld [vmem:[%s21201_s0 + $0x1c8] sm:$0xff]  }
  0x72   :  { %11459 = vmatmul.mubr.msk.bf16.gmra.mrb[8].mxu0 %vm1002_vm2, %v12252_v10 }
  0x73   :  { %11462 = vmatprep.mubr.msk.bf16.mxu0 %vm1002_vm2, %v12253_v11 }
  0x7a   :  { %11463 = vmatmul.mubr.msk.bf16.gmra.mrb[12].mxu0 %vm1002_vm2, %v12254_v12 }
  0x7b   :  { %11466 = vmatprep.mubr.msk.bf16.mxu0 %vm1002_vm2, %v12255_v13 }
  0x82   :  { %11467 = vmatmul.mubr.msk.bf16.gmra.mrb[16].mxu0 %vm1002_vm2, %v12256_v14 }
  0x83   :  { %11470 = vmatprep.mubr.msk.bf16.mxu0 %vm1002_vm2, %v12257_v15 }
  0x8a   :  { %11471 = vmatmul.mubr.msk.bf16.gmra.mrb[20].mxu0 %vm1002_vm2, %v12258_v16 }
  0x8b   :  { %11474 = vmatprep.mubr.msk.bf16.mxu0 %vm1002_vm2, %v12259_v17 }
  0x92   :  { %11475 = vmatmul.mubr.msk.bf16.gmra.mrb[24].mxu0 %vm1002_vm2, %v12260_v18  ;;  %v12305_v18 = vld [vmem:[%s21201_s0 + $0x1d0] sm:$0xff]  }
  0x93   :  { %11478 = vmatprep.mubr.msk.bf16.mxu0 %vm1002_vm2, %v12261_v19 }
  0x9a   :  { %11479 = vmatmul.mubr.msk.bf16.gmra.mrb[28].mxu0 %vm1002_vm2, %v12262_v20 }
  0x9b   :  { %11482 = vmatprep.mubr.msk.bf16.mxu0 %vm1002_vm2, %v12263_v21 }
  0xa2   :  { %11483 = vmatmul.mubr.msk.bf16.gmra.mrb[32].mxu0 %vm1002_vm2, %v12264_v22 }
  0xa3   :  { %11486 = vmatprep.mubr.msk.bf16.mxu0 %vm1002_vm2, %v12265_v23 }
  0xaa   :  { %11487 = vmatmul.mubr.msk.bf16.gmra.mrb[36].mxu0 %vm1002_vm2, %v12266_v24 }
  0xab   :  { %11490 = vmatprep.mubr.msk.bf16.mxu0 %vm1002_vm2, %v12267_v25 }
  0xb2   :  { %11491 = vmatmul.mubr.msk.bf16.gmra.mrb[40].mxu0 %vm1002_vm2, %v12268_v26  ;;  %v12306_v26 = vld [vmem:[%s21201_s0 + $0x1d8] sm:$0xff]  }
  0xb3   :  { %11494 = vmatprep.mubr.msk.bf16.mxu0 %vm1002_vm2, %v12269_v27 }
  0xba   :  { %11495 = vmatmul.mubr.msk.bf16.gmra.mrb[44].mxu0 %vm1002_vm2, %v12270_v28 }
  0xbb   :  { %11498 = vmatprep.mubr.msk.bf16.mxu0 %vm1002_vm2, %v12271_v29 }
  0xc2   :  { %11499 = vmatmul.mubr.msk.bf16.gmra.mrb[48].mxu0 %vm1002_vm2, %v12272_v30 }
  0xc3   :  { %11502 = vmatprep.mubr.msk.bf16.mxu0 %vm1002_vm2, %v12273_v31 }
  0xca   :  { %11503 = vmatmul.mubr.msk.bf16.gmra.mrb[52].mxu0 %vm1002_vm2, %v12274_v32 }
  0xcb   :  { %11506 = vmatprep.mubr.msk.bf16.mxu0 %vm1002_vm2, %v12275_v33 }
  0xd2   :  { %11507 = vmatmul.mubr.msk.bf16.gmra.mrb[56].mxu0 %vm1002_vm2, %v12276_v34 }
  0xd3   :  { %11510 = vmatprep.mubr.msk.bf16.mxu0 %vm1002_vm2, %v12277_v35 }
  0xda   :  { %11511 = vmatmul.mubr.msk.bf16.gmra.mrb[60].mxu0 %vm1002_vm2, %v12278_v36  ;;  %v12307_v36 = vld [vmem:[%s21201_s0 + $0x1e0] sm:$0xff]  }
  0xdb   :  { %11514 = vmatprep.mubr.msk.bf16.mxu0 %vm1002_vm2, %v12279_v37 }
  0xe2   :  { %11515 = vmatmul.mubr.msk.bf16.gmra.mrb[64].mxu0 %vm1002_vm2, %v12280_v38 }
  0xe3   :  { %11518 = vmatprep.mubr.msk.bf16.mxu0 %vm1002_vm2, %v12281_v39 }
  0xea   :  { %11519 = vmatmul.mubr.msk.bf16.gmra.mrb[68].mxu0 %vm1002_vm2, %v12282_v40 }
  0xeb   :  { %11522 = vmatprep.mubr.msk.bf16.mxu0 %vm1002_vm2, %v12283_v41 }
  0xf2   :  { %11523 = vmatmul.mubr.msk.bf16.gmra.mrb[72].mxu0 %vm1002_vm2, %v12284_v42 }
  0xf3   :  { %11526 = vmatprep.mubr.msk.bf16.mxu0 %vm1002_vm2, %v12285_v43 }
  0xfa   :  { %11527 = vmatmul.mubr.msk.bf16.gmra.mrb[76].mxu0 %vm1002_vm2, %v12286_v44  ;;  %v12308_v44 = vld [vmem:[%s21201_s0 + $0x1e8] sm:$0xff]  }
  0xfb   :  { %11530 = vmatprep.mubr.msk.bf16.mxu0 %vm1002_vm2, %v12287_v45 }
 0x102   :  { %11531 = vmatmul.mubr.msk.bf16.gmra.mrb[80].mxu0 %vm1002_vm2, %v12288_v46 }
 0x103   :  { %11534 = vmatprep.mubr.msk.bf16.mxu0 %vm1002_vm2, %v12289_v47 }
 0x10a   :  { %11535 = vmatmul.mubr.msk.bf16.gmra.mrb[84].mxu0 %vm1002_vm2, %v12290_v48 }
 0x10b   :  { %11538 = vmatprep.mubr.msk.bf16.mxu0 %vm1002_vm2, %v12291_v49 }
 0x112   :  { %11539 = vmatmul.mubr.msk.bf16.gmra.mrb[88].mxu0 %vm1002_vm2, %v12292_v50 }
 0x113   :  { %11542 = vmatprep.mubr.msk.bf16.mxu0 %vm1002_vm2, %v12293_v51 }
 0x11a   :  { %11543 = vmatmul.mubr.msk.bf16.gmra.mrb[92].mxu0 %vm1002_vm2, %v12294_v52 }
 0x11b   :  { %11546 = vmatprep.mubr.msk.bf16.mxu0 %vm1002_vm2, %v12295_v53 }
 0x122   :  { %11547 = vmatmul.mubr.msk.bf16.gmra.mrb[96].mxu0 %vm1002_vm2, %v12296_v54  ;;  %v12309_v54 = vld [vmem:[%s21201_s0 + $0x1f0] sm:$0xff]  }
 0x123   :  { %11550 = vmatprep.mubr.msk.bf16.mxu0 %vm1002_vm2, %v12297_v55 }
 0x12a   :  { %11551 = vmatmul.mubr.msk.bf16.gmra.mrb[100].mxu0 %vm1002_vm2, %v12298_v56 }
 0x12b   :  { %11554 = vmatprep.mubr.msk.bf16.mxu0 %vm1002_vm2, %v12299_v57 }
 0x132   :  { %11555 = vmatmul.mubr.msk.bf16.gmra.mrb[104].mxu0 %vm1002_vm2, %v12300_v58 }
 0x133   :  { %11558 = vmatprep.mubr.msk.bf16.mxu0 %vm1002_vm2, %v12301_v59 }
 0x135   :  { %v13280_v61 = vpop.f32.mrb[0].mxu0 }
 0x136   :  { %v13282_v62 = vpop.f32.mrb[1].mxu0  ;;  %v2716_v5 = vmul.f32 %v13280_v61, %v13280_v61 }
 0x137   :  { %v13284_v63 = vpop.f32.mrb[2].mxu0  ;;  %v2714_v2 = vmul.f32 %v13282_v62, %v13282_v62 }
 0x138   :  { %v13289_v1 = vpop.f32.mrb[3].mxu0  ;;  %v2717_v9 = vmul.f32 %v13284_v63, %v13284_v63 }
 0x139   :  { %v2452_v3 = vadd.f32 %v13289_v1, %v13282_v62  ;;  %v2715_v4 = vmul.f32 %v13289_v1, %v13289_v1 }
 0x13a   :  { %11559 = vmatmul.mubr.msk.bf16.gmra.mrb[108].mxu0 %vm1002_vm2, %v12302_v60 }
 0x13b   :  { %v2453_v6 = vadd.f32 %v13280_v61, %v2452_v3  ;;  %v2970_v7 = vadd.f32 %v2715_v4, %v2714_v2  ;;  %11562 = vmatprep.mubr.msk.bf16.mxu0 %vm1002_vm2, %v12303_v0  ;;  %v12310_v2 = vld [vmem:[%s21201_s0 + $0x1f8] sm:$0xff]  }
 0x13d   :  { %v2454_v10 = vadd.f32 %v13284_v63, %v2453_v6  ;;  %v2971_v11 = vadd.f32 %v2970_v7, %v2716_v5  ;;  %v13308_v12 = vpop.f32.mrb[4].mxu0 }
 0x13e   :  { %v13310_v13 = vpop.f32.mrb[5].mxu0  ;;  %v2720_v23 = vmul.f32 %v13308_v12, %v13308_v12 }
 0x13f   :  { %v2972_v14 = vadd.f32 %v2971_v11, %v2717_v9  ;;  %v2455_v15 = vadd.f32 %v2454_v10, %v13310_v13  ;;  %v2718_v16 = vmul.f32 %v13310_v13, %v13310_v13  ;;  %v13315_v17 = vpop.f32.mrb[6].mxu0 }
 0x140   :  { %v13320_v19 = vpop.f32.mrb[7].mxu0  ;;  %v2721_v27 = vmul.f32 %v13315_v17, %v13315_v17 }
 0x141   :  { %v2973_v20 = vadd.f32 %v2972_v14, %v2718_v16  ;;  %v2456_v21 = vadd.f32 %v2455_v15, %v13320_v19  ;;  %v2719_v22 = vmul.f32 %v13320_v19, %v13320_v19  ;;  %v12311_v14 = vld [vmem:[%s21201_s0 + $0x200] sm:$0xff]  }
 0x142   :  { %11563 = vmatmul.mubr.msk.bf16.gmra.mrb[112].mxu0 %vm1002_vm2, %v12304_v8 }
 0x143   :  { %v2457_v24 = vadd.f32 %v13308_v12, %v2456_v21  ;;  %v2974_v25 = vadd.f32 %v2973_v20, %v2719_v22  ;;  %11566 = vmatprep.mubr.msk.bf16.mxu0 %vm1002_vm2, %v12305_v18 }
 0x145   :  { %v2458_v28 = vadd.f32 %v13315_v17, %v2457_v24  ;;  %v2975_v29 = vadd.f32 %v2974_v25, %v2720_v23  ;;  %v13336_v30 = vpop.f32.mrb[8].mxu0  ;;  %v12312_v24 = vld [vmem:[%s21201_s0 + $0x208] sm:$0xff]  }
 0x146   :  { %v13338_v31 = vpop.f32.mrb[9].mxu0  ;;  %v2724_v41 = vmul.f32 %v13336_v30, %v13336_v30 }
 0x147   :  { %v2976_v32 = vadd.f32 %v2975_v29, %v2721_v27  ;;  %v2459_v33 = vadd.f32 %v2458_v28, %v13338_v31  ;;  %v2722_v34 = vmul.f32 %v13338_v31, %v13338_v31  ;;  %v13343_v35 = vpop.f32.mrb[10].mxu0 }
 0x148   :  { %v13348_v37 = vpop.f32.mrb[11].mxu0  ;;  %v2725_v45 = vmul.f32 %v13343_v35, %v13343_v35 }
 0x149   :  { %v2977_v38 = vadd.f32 %v2976_v32, %v2722_v34  ;;  %v2460_v39 = vadd.f32 %v2459_v33, %v13348_v37  ;;  %v2723_v40 = vmul.f32 %v13348_v37, %v13348_v37 }
 0x14a   :  { %11567 = vmatmul.mubr.msk.bf16.gmra.mrb[116].mxu0 %vm1002_vm2, %v12306_v26 }
 0x14b   :  { %v2461_v42 = vadd.f32 %v13336_v30, %v2460_v39  ;;  %v2978_v43 = vadd.f32 %v2977_v38, %v2723_v40  ;;  %11570 = vmatprep.mubr.msk.bf16.mxu0 %vm1002_vm2, %v12307_v36  ;;  %v12313_v38 = vld [vmem:[%s21201_s0 + $0x210] sm:$0xff]  }
 0x14d   :  { %v2462_v46 = vadd.f32 %v13343_v35, %v2461_v42  ;;  %v2979_v47 = vadd.f32 %v2978_v43, %v2724_v41  ;;  %v13364_v48 = vpop.f32.mrb[12].mxu0 }
 0x14e   :  { %v13366_v49 = vpop.f32.mrb[13].mxu0  ;;  %v2728_v59 = vmul.f32 %v13364_v48, %v13364_v48 }
 0x14f   :  { %v2980_v50 = vadd.f32 %v2979_v47, %v2725_v45  ;;  %v2463_v51 = vadd.f32 %v2462_v46, %v13366_v49  ;;  %v2726_v52 = vmul.f32 %v13366_v49, %v13366_v49  ;;  %v13371_v53 = vpop.f32.mrb[14].mxu0 }
 0x150   :  { %v13376_v55 = vpop.f32.mrb[15].mxu0  ;;  %v2729_v3 = vmul.f32 %v13371_v53, %v13371_v53 }
 0x151   :  { %v2981_v56 = vadd.f32 %v2980_v50, %v2726_v52  ;;  %v2464_v57 = vadd.f32 %v2463_v51, %v13376_v55  ;;  %v2727_v58 = vmul.f32 %v13376_v55, %v13376_v55 }
 0x152   :  { %11571 = vmatmul.mubr.msk.bf16.gmra.mrb[120].mxu0 %vm1002_vm2, %v12308_v44 }
 0x153   :  { %v2465_v60 = vadd.f32 %v13364_v48, %v2464_v57  ;;  %v2982_v0 = vadd.f32 %v2981_v56, %v2727_v58  ;;  %11574 = vmatprep.mubr.msk.bf16.mxu0 %vm1002_vm2, %v12309_v54  ;;  %v12314_v54 = vld [vmem:[%s21201_s0 + $0x218] sm:$0xff]  }
 0x155   :  { %v2466_v4 = vadd.f32 %v13371_v53, %v2465_v60  ;;  %v2983_v5 = vadd.f32 %v2982_v0, %v2728_v59  ;;  %v13392_v6 = vpop.f32.mrb[16].mxu0  ;;  %v12315_v60 = vld [vmem:[%s21201_s0 + $0x220] sm:$0xff]  }
 0x156   :  { %v13394_v7 = vpop.f32.mrb[17].mxu0  ;;  %v2732_v21 = vmul.f32 %v13392_v6, %v13392_v6 }
 0x157   :  { %v2984_v8 = vadd.f32 %v2983_v5, %v2729_v3  ;;  %v2467_v9 = vadd.f32 %v2466_v4, %v13394_v7  ;;  %v2730_v10 = vmul.f32 %v13394_v7, %v13394_v7  ;;  %v13399_v11 = vpop.f32.mrb[18].mxu0 }
 0x158   :  { %v13404_v15 = vpop.f32.mrb[19].mxu0  ;;  %v2733_v25 = vmul.f32 %v13399_v11, %v13399_v11 }
 0x159   :  { %v2985_v16 = vadd.f32 %v2984_v8, %v2730_v10  ;;  %v2468_v18 = vadd.f32 %v2467_v9, %v13404_v15  ;;  %v2731_v20 = vmul.f32 %v13404_v15, %v13404_v15 }
 0x15a   :  { %11575 = vmatmul.mubr.msk.bf16.gmra.mrb[124].mxu0 %vm1002_vm2, %v12310_v2 }
 0x15b   :  { %v2469_v22 = vadd.f32 %v13392_v6, %v2468_v18  ;;  %v2986_v23 = vadd.f32 %v2985_v16, %v2731_v20  ;;  %11578 = vmatprep.mubr.msk.bf16.mxu0 %vm1002_vm2, %v12311_v14 }
 0x15d   :  { %v2470_v26 = vadd.f32 %v13399_v11, %v2469_v22  ;;  %v2987_v27 = vadd.f32 %v2986_v23, %v2732_v21  ;;  %v13420_v28 = vpop.f32.mrb[20].mxu0  ;;  %v12316_v21 = vld [vmem:[%s21201_s0 + $0x228] sm:$0xff]  }
 0x15e   :  { %v13422_v29 = vpop.f32.mrb[21].mxu0  ;;  %v2736_v43 = vmul.f32 %v13420_v28, %v13420_v28 }
 0x15f   :  { %v2988_v32 = vadd.f32 %v2987_v27, %v2733_v25  ;;  %v2471_v33 = vadd.f32 %v2470_v26, %v13422_v29  ;;  %v2734_v34 = vmul.f32 %v13422_v29, %v13422_v29  ;;  %v13427_v36 = vpop.f32.mrb[22].mxu0  ;;  %v12317_v26 = vld [vmem:[%s21201_s0 + $0x230] sm:$0xff]  }
 0x160   :  { %v13432_v39 = vpop.f32.mrb[23].mxu0  ;;  %v2737_v46 = vmul.f32 %v13427_v36, %v13427_v36 }
 0x161   :  { %v2989_v40 = vadd.f32 %v2988_v32, %v2734_v34  ;;  %v2472_v41 = vadd.f32 %v2471_v33, %v13432_v39  ;;  %v2735_v42 = vmul.f32 %v13432_v39, %v13432_v39 }
 0x162   :  { %11579 = vmatmul.mubr.msk.bf16.gmra.mrb[128].mxu0 %vm1002_vm2, %v12312_v24 }
 0x163   :  { %v2473_v44 = vadd.f32 %v13420_v28, %v2472_v41  ;;  %v2990_v45 = vadd.f32 %v2989_v40, %v2735_v42  ;;  %11582 = vmatprep.mubr.msk.bf16.mxu0 %vm1002_vm2, %v12313_v38 }
 0x165   :  { %v2474_v47 = vadd.f32 %v13427_v36, %v2473_v44  ;;  %v2991_v50 = vadd.f32 %v2990_v45, %v2736_v43  ;;  %v13445_v51 = vpop.f32.mrb[24].mxu0 }
 0x166   :  { %v13447_v52 = vpop.f32.mrb[25].mxu0  ;;  %v2740_v5 = vmul.f32 %v13445_v51, %v13445_v51 }
 0x167   :  { %v2992_v56 = vadd.f32 %v2991_v50, %v2737_v46  ;;  %v2475_v57 = vadd.f32 %v2474_v47, %v13447_v52  ;;  %v2738_v58 = vmul.f32 %v13447_v52, %v13447_v52  ;;  %v13455_v59 = vpop.f32.mrb[26].mxu0  ;;  %v12318_v47 = vld [vmem:[%s21201_s0 + $0x238] sm:$0xff]  }
 0x168   :  { %v13460_v0 = vpop.f32.mrb[27].mxu0  ;;  %v2741_v10 = vmul.f32 %v13455_v59, %v13455_v59 }
 0x169   :  { %v2993_v2 = vadd.f32 %v2992_v56, %v2738_v58  ;;  %v2476_v3 = vadd.f32 %v2475_v57, %v13460_v0  ;;  %v2739_v4 = vmul.f32 %v13460_v0, %v13460_v0  ;;  %v12319_v58 = vld [vmem:[%s21201_s0 + $0x240] sm:$0xff]  }
 0x16a   :  { %11583 = vmatmul.mubr.msk.bf16.gmra.mrb[132].mxu0 %vm1002_vm2, %v12314_v54 }
 0x16b   :  { %v2477_v8 = vadd.f32 %v13445_v51, %v2476_v3  ;;  %v2994_v9 = vadd.f32 %v2993_v2, %v2739_v4  ;;  %11586 = vmatprep.mubr.msk.bf16.mxu0 %vm1002_vm2, %v12315_v60 }
 0x16d   :  { %v2478_v14 = vadd.f32 %v13455_v59, %v2477_v8  ;;  %v2995_v16 = vadd.f32 %v2994_v9, %v2740_v5  ;;  %v13473_v18 = vpop.f32.mrb[28].mxu0 }
 0x16e   :  { %v13475_v20 = vpop.f32.mrb[29].mxu0  ;;  %v2744_v38 = vmul.f32 %v13473_v18, %v13473_v18 }
 0x16f   :  { %v2996_v22 = vadd.f32 %v2995_v16, %v2741_v10  ;;  %v2479_v23 = vadd.f32 %v2478_v14, %v13475_v20  ;;  %v2742_v24 = vmul.f32 %v13475_v20, %v13475_v20  ;;  %v13483_v25 = vpop.f32.mrb[30].mxu0 }
 0x170   :  { %v13488_v27 = vpop.f32.mrb[31].mxu0  ;;  %v2745_v42 = vmul.f32 %v13483_v25, %v13483_v25 }
 0x171   :  { %v2997_v32 = vadd.f32 %v2996_v22, %v2742_v24  ;;  %v2480_v33 = vadd.f32 %v2479_v23, %v13488_v27  ;;  %v2743_v34 = vmul.f32 %v13488_v27, %v13488_v27  ;;  %v12320_v23 = vld [vmem:[%s21201_s0 + $0x248] sm:$0xff]  }
 0x172   :  { %11587 = vmatmul.mubr.msk.bf16.gmra.mrb[136].mxu0 %vm1002_vm2, %v12316_v21 }
 0x173   :  { %v2481_v40 = vadd.f32 %v13473_v18, %v2480_v33  ;;  %v2998_v41 = vadd.f32 %v2997_v32, %v2743_v34  ;;  %11590 = vmatprep.mubr.msk.bf16.mxu0 %vm1002_vm2, %v12317_v26  ;;  %v12321_v34 = vld [vmem:[%s21201_s0 + $0x250] sm:$0xff]  }
 0x175   :  { %v2482_v43 = vadd.f32 %v13483_v25, %v2481_v40  ;;  %v2999_v44 = vadd.f32 %v2998_v41, %v2744_v38  ;;  %v13501_v45 = vpop.f32.mrb[32].mxu0 }
 0x176   :  { %v13503_v46 = vpop.f32.mrb[33].mxu0  ;;  %v2748_v5 = vmul.f32 %v13501_v45, %v13501_v45 }
 0x177   :  { %v3000_v50 = vadd.f32 %v2999_v44, %v2745_v42  ;;  %v2483_v54 = vadd.f32 %v2482_v43, %v13503_v46  ;;  %v2746_v56 = vmul.f32 %v13503_v46, %v13503_v46  ;;  %v13511_v57 = vpop.f32.mrb[34].mxu0 }
 0x178   :  { %v13516_v60 = vpop.f32.mrb[35].mxu0  ;;  %v2749_v10 = vmul.f32 %v13511_v57, %v13511_v57 }
 0x179   :  { %v3001_v2 = vadd.f32 %v3000_v50, %v2746_v56  ;;  %v2484_v3 = vadd.f32 %v2483_v54, %v13516_v60  ;;  %v2747_v4 = vmul.f32 %v13516_v60, %v13516_v60 }
 0x17a   :  { %11591 = vmatmul.mubr.msk.bf16.gmra.mrb[140].mxu0 %vm1002_vm2, %v12318_v47 }
 0x17b   :  { %v2485_v8 = vadd.f32 %v13501_v45, %v2484_v3  ;;  %v3002_v9 = vadd.f32 %v3001_v2, %v2747_v4  ;;  %11594 = vmatprep.mubr.msk.bf16.mxu0 %vm1002_vm2, %v12319_v58  ;;  %v12322_v3 = vld [vmem:[%s21201_s0 + $0x258] sm:$0xff]  }
 0x17d   :  { %v2486_v14 = vadd.f32 %v13511_v57, %v2485_v8  ;;  %v3003_v16 = vadd.f32 %v3002_v9, %v2748_v5  ;;  %v13529_v21 = vpop.f32.mrb[36].mxu0 }
 0x17e   :  { %v13531_v22 = vpop.f32.mrb[37].mxu0  ;;  %v2752_v43 = vmul.f32 %v13529_v21, %v13529_v21 }
 0x17f   :  { %v3004_v24 = vadd.f32 %v3003_v16, %v2749_v10  ;;  %v2487_v26 = vadd.f32 %v2486_v14, %v13531_v22  ;;  %v2750_v32 = vmul.f32 %v13531_v22, %v13531_v22  ;;  %v13539_v33 = vpop.f32.mrb[38].mxu0  ;;  %v12323_v10 = vld [vmem:[%s21201_s0 + $0x260] sm:$0xff]  }
 0x180   :  { %v13544_v38 = vpop.f32.mrb[39].mxu0  ;;  %v2753_v50 = vmul.f32 %v13539_v33, %v13539_v33 }
 0x181   :  { %v3005_v40 = vadd.f32 %v3004_v24, %v2750_v32  ;;  %v2488_v41 = vadd.f32 %v2487_v26, %v13544_v38  ;;  %v2751_v42 = vmul.f32 %v13544_v38, %v13544_v38 }
 0x182   :  { %11595 = vmatmul.mubr.msk.bf16.gmra.mrb[144].mxu0 %vm1002_vm2, %v12320_v23 }
 0x183   :  { %v2489_v44 = vadd.f32 %v13529_v21, %v2488_v41  ;;  %v3006_v47 = vadd.f32 %v3005_v40, %v2751_v42  ;;  %11598 = vmatprep.mubr.msk.bf16.mxu0 %vm1002_vm2, %v12321_v34 }
 0x185   :  { %v2490_v54 = vadd.f32 %v13539_v33, %v2489_v44  ;;  %v3007_v56 = vadd.f32 %v3006_v47, %v2752_v43  ;;  %v13557_v58 = vpop.f32.mrb[40].mxu0  ;;  %v12324_v47 = vld [vmem:[%s21201_s0 + $0x268] sm:$0xff]  }
 0x186   :  { %v13559_v2 = vpop.f32.mrb[41].mxu0  ;;  %v2756_v26 = vmul.f32 %v13557_v58, %v13557_v58 }
 0x187   :  { %v3008_v4 = vadd.f32 %v3007_v56, %v2753_v50  ;;  %v2491_v5 = vadd.f32 %v2490_v54, %v13559_v2  ;;  %v2754_v8 = vmul.f32 %v13559_v2, %v13559_v2  ;;  %v13567_v9 = vpop.f32.mrb[42].mxu0 }
 0x188   :  { %v13572_v14 = vpop.f32.mrb[43].mxu0  ;;  %v2757_v40 = vmul.f32 %v13567_v9, %v13567_v9 }
 0x189   :  { %v3009_v16 = vadd.f32 %v3008_v4, %v2754_v8  ;;  %v2492_v23 = vadd.f32 %v2491_v5, %v13572_v14  ;;  %v2755_v24 = vmul.f32 %v13572_v14, %v13572_v14  ;;  %v12325_v4 = vld [vmem:[%s21201_s0 + $0x270] sm:$0xff]  }
 0x18a   :  { %11599 = vmatmul.mubr.msk.bf16.gmra.mrb[148].mxu0 %vm1002_vm2, %v12322_v3 }
 0x18b   :  { %v2493_v32 = vadd.f32 %v13557_v58, %v2492_v23  ;;  %v3010_v34 = vadd.f32 %v3009_v16, %v2755_v24  ;;  %11602 = vmatprep.mubr.msk.bf16.mxu0 %vm1002_vm2, %v12323_v10 }
 0x18d   :  { %v2494_v41 = vadd.f32 %v13567_v9, %v2493_v32  ;;  %v3011_v42 = vadd.f32 %v3010_v34, %v2756_v26  ;;  %v13585_v43 = vpop.f32.mrb[44].mxu0 }
 0x18e   :  { %21731 = vst [vmem:[#allocation13_spill] sm:$0xff] %v13585_v43  ;;  %v13587_v44 = vpop.f32.mrb[45].mxu0  ;;  %v2760_v23 = vmul.f32 %v13585_v43, %v13585_v43 }
 0x18f   :  { %v3012_v50 = vadd.f32 %v3011_v42, %v2757_v40  ;;  %v2495_v54 = vadd.f32 %v2494_v41, %v13587_v44  ;;  %v2758_v56 = vmul.f32 %v13587_v44, %v13587_v44  ;;  %v13595_v3 = vpop.f32.mrb[46].mxu0 }
 0x190   :  { %21732 = vst [vmem:[#allocation14_spill] sm:$0xff] %v13595_v3  ;;  %v13600_v5 = vpop.f32.mrb[47].mxu0  ;;  %v2761_v32 = vmul.f32 %v13595_v3, %v13595_v3 }
 0x191   :  { %v3013_v8 = vadd.f32 %v3012_v50, %v2758_v56  ;;  %v2496_v10 = vadd.f32 %v2495_v54, %v13600_v5  ;;  %v2759_v16 = vmul.f32 %v13600_v5, %v13600_v5 }
 0x192   :  { %11603 = vmatmul.mubr.msk.bf16.gmra.mrb[152].mxu0 %vm1002_vm2, %v12324_v47  ;;  %v12326_v47 = vld [vmem:[%s21201_s0 + $0x278] sm:$0xff]  }
 0x193   :  { %v2497_v24 = vadd.f32 %v13585_v43, %v2496_v10  ;;  %v3014_v26 = vadd.f32 %v3013_v8, %v2759_v16  ;;  %11606 = vmatprep.mubr.msk.bf16.mxu0 %vm1002_vm2, %v12325_v4  ;;  %v12327_v8 = vld [vmem:[%s21201_s0 + $0x280] sm:$0xff]  }
 0x195   :  { %v2498_v34 = vadd.f32 %v13595_v3, %v2497_v24  ;;  %v3015_v40 = vadd.f32 %v3014_v26, %v2760_v23  ;;  %v13613_v41 = vpop.f32.mrb[48].mxu0 }
 0x196   :  { %21733 = vst [vmem:[#allocation15_spill] sm:$0xff] %v13613_v41  ;;  %v13615_v42 = vpop.f32.mrb[49].mxu0  ;;  %v2764_v26 = vmul.f32 %v13613_v41, %v13613_v41 }
 0x197   :  { %21734 = vst [vmem:[#allocation16_spill] sm:$0xff] %v13615_v42  ;;  %v3016_v50 = vadd.f32 %v3015_v40, %v2761_v32  ;;  %v2499_v54 = vadd.f32 %v2498_v34, %v13615_v42  ;;  %v2762_v56 = vmul.f32 %v13615_v42, %v13615_v42  ;;  %v13623_v4 = vpop.f32.mrb[50].mxu0 }
 0x198   :  { %21735 = vst [vmem:[#allocation17_spill] sm:$0xff] %v13623_v4  ;;  %v13628_v10 = vpop.f32.mrb[51].mxu0  ;;  %v2765_v40 = vmul.f32 %v13623_v4, %v13623_v4 }
 0x199   :  { %21736 = vst [vmem:[#allocation18_spill] sm:$0xff] %v13628_v10  ;;  %v3017_v16 = vadd.f32 %v3016_v50, %v2762_v56  ;;  %v2500_v23 = vadd.f32 %v2499_v54, %v13628_v10  ;;  %v2763_v24 = vmul.f32 %v13628_v10, %v13628_v10 }
 0x19a   :  { %11607 = vmatmul.mubr.msk.bf16.gmra.mrb[156].mxu0 %vm1002_vm2, %v12326_v47  ;;  %v12328_v47 = vld [vmem:[%s21201_s0 + $0x288] sm:$0xff]  }
 0x19b   :  { %v2501_v32 = vadd.f32 %v13613_v41, %v2500_v23  ;;  %v3018_v34 = vadd.f32 %v3017_v16, %v2763_v24  ;;  %11610 = vmatprep.mubr.msk.bf16.mxu0 %vm1002_vm2, %v12327_v8  ;;  %v12329_v24 = vld [vmem:[%s21201_s0 + $0x290] sm:$0xff]  }
 0x19d   :  { %v2502_v50 = vadd.f32 %v13623_v4, %v2501_v32  ;;  %v3019_v56 = vadd.f32 %v3018_v34, %v2764_v26  ;;  %v13641_v54 = vpop.f32.mrb[52].mxu0 }
 0x19e   :  { %21737 = vst [vmem:[#allocation19_spill] sm:$0xff] %v13641_v54  ;;  %v13643_v42 = vpop.f32.mrb[53].mxu0 }
 0x19f   :  { %21738 = vst [vmem:[#allocation20_spill] sm:$0xff] %v13643_v42  ;;  %v3020_v10 = vadd.f32 %v3019_v56, %v2765_v40  ;;  %v2503_v23 = vadd.f32 %v2502_v50, %v13643_v42  ;;  %v2766_v8 = vmul.f32 %v13643_v42, %v13643_v42  ;;  %v13651_v16 = vpop.f32.mrb[54].mxu0  ;;  %v2768_v40 = vmul.f32 %v13641_v54, %v13641_v54 }
 0x1a0   :  { %21739 = vst [vmem:[#allocation21_spill] sm:$0xff] %v13651_v16  ;;  %v13656_v26 = vpop.f32.mrb[55].mxu0  ;;  %v2769_v42 = vmul.f32 %v13651_v16, %v13651_v16 }
 0x1a1   :  { %21740 = vst [vmem:[#allocation22_spill] sm:$0xff] %v13656_v26  ;;  %v3021_v32 = vadd.f32 %v3020_v10, %v2766_v8  ;;  %v2504_v34 = vadd.f32 %v2503_v23, %v13656_v26  ;;  %v2767_v4 = vmul.f32 %v13656_v26, %v13656_v26 }
 0x1a2   :  { %11611 = vmatmul.mubr.msk.bf16.gmra.mrb[160].mxu0 %vm1002_vm2, %v12328_v47  ;;  %v12330_v47 = vld [vmem:[%s21201_s0 + $0x298] sm:$0xff]  }
 0x1a3   :  { %v2505_v50 = vadd.f32 %v13641_v54, %v2504_v34  ;;  %v3022_v56 = vadd.f32 %v3021_v32, %v2767_v4  ;;  %11614 = vmatprep.mubr.msk.bf16.mxu0 %vm1002_vm2, %v12329_v24  ;;  %v12331_v32 = vld [vmem:[%s21201_s0 + $0x2a0] sm:$0xff]  }
 0x1a5   :  { %v2506_v10 = vadd.f32 %v13651_v16, %v2505_v50  ;;  %v3023_v8 = vadd.f32 %v3022_v56, %v2768_v40  ;;  %v13669_v23 = vpop.f32.mrb[56].mxu0 }
 0x1a6   :  { %21741 = vst [vmem:[#allocation23_spill] sm:$0xff] %v13669_v23  ;;  %v13671_v41 = vpop.f32.mrb[57].mxu0 }
 0x1a7   :  { %21742 = vst [vmem:[#allocation24_spill] sm:$0xff] %v13671_v41  ;;  %v3024_v26 = vadd.f32 %v3023_v8, %v2769_v42  ;;  %v2507_v34 = vadd.f32 %v2506_v10, %v13671_v41  ;;  %v2770_v4 = vmul.f32 %v13671_v41, %v13671_v41  ;;  %v13679_v24 = vpop.f32.mrb[58].mxu0  ;;  %v2772_v42 = vmul.f32 %v13669_v23, %v13669_v23 }
 0x1a8   :  { %21743 = vst [vmem:[#allocation25_spill] sm:$0xff] %v13679_v24  ;;  %v13684_v40 = vpop.f32.mrb[59].mxu0  ;;  %v2773_v41 = vmul.f32 %v13679_v24, %v13679_v24 }
 0x1a9   :  { %21744 = vst [vmem:[#allocation26_spill] sm:$0xff] %v13684_v40  ;;  %v3025_v50 = vadd.f32 %v3024_v26, %v2770_v4  ;;  %v2508_v56 = vadd.f32 %v2507_v34, %v13684_v40  ;;  %v2771_v16 = vmul.f32 %v13684_v40, %v13684_v40 }
 0x1aa   :  { %11615 = vmatmul.mubr.msk.bf16.gmra.mrb[164].mxu0 %vm1002_vm2, %v12330_v47  ;;  %v12332_v47 = vld [vmem:[%s21201_s0 + $0x2a8] sm:$0xff]  }
 0x1ab   :  { %v2509_v10 = vadd.f32 %v13669_v23, %v2508_v56  ;;  %v3026_v8 = vadd.f32 %v3025_v50, %v2771_v16  ;;  %11618 = vmatprep.mubr.msk.bf16.mxu0 %vm1002_vm2, %v12331_v32  ;;  %v12333_v50 = vld [vmem:[%s21201_s0 + $0x2b0] sm:$0xff]  }
 0x1ad   :  { %v2510_v26 = vadd.f32 %v13679_v24, %v2509_v10  ;;  %v3027_v4 = vadd.f32 %v3026_v8, %v2772_v42  ;;  %v13697_v34 = vpop.f32.mrb[60].mxu0 }
 0x1ae   :  { %21745 = vst [vmem:[#allocation27_spill] sm:$0xff] %v13697_v34  ;;  %v13699_v54 = vpop.f32.mrb[61].mxu0 }
 0x1af   :  { %21746 = vst [vmem:[#allocation28_spill] sm:$0xff] %v13699_v54  ;;  %v3028_v40 = vadd.f32 %v3027_v4, %v2773_v41  ;;  %v2511_v56 = vadd.f32 %v2510_v26, %v13699_v54  ;;  %v2774_v16 = vmul.f32 %v13699_v54, %v13699_v54  ;;  %v13707_v32 = vpop.f32.mrb[62].mxu0  ;;  %v2776_v41 = vmul.f32 %v13697_v34, %v13697_v34 }
 0x1b0   :  { %21747 = vst [vmem:[#allocation29_spill] sm:$0xff] %v13707_v32  ;;  %v13712_v42 = vpop.f32.mrb[63].mxu0  ;;  %v2777_v54 = vmul.f32 %v13707_v32, %v13707_v32 }
 0x1b1   :  { %21748 = vst [vmem:[#allocation30_spill] sm:$0xff] %v13712_v42  ;;  %v3029_v10 = vadd.f32 %v3028_v40, %v2774_v16  ;;  %v2512_v8 = vadd.f32 %v2511_v56, %v13712_v42  ;;  %v2775_v24 = vmul.f32 %v13712_v42, %v13712_v42 }
 0x1b2   :  { %11619 = vmatmul.mubr.msk.bf16.gmra.mrb[168].mxu0 %vm1002_vm2, %v12332_v47  ;;  %v12334_v47 = vld [vmem:[%s21201_s0 + $0x2b8] sm:$0xff]  }
 0x1b3   :  { %v2513_v26 = vadd.f32 %v13697_v34, %v2512_v8  ;;  %v3030_v4 = vadd.f32 %v3029_v10, %v2775_v24  ;;  %11622 = vmatprep.mubr.msk.bf16.mxu0 %vm1002_vm2, %v12333_v50  ;;  %v12335_v10 = vld [vmem:[%s21201_s0 + $0x2c0] sm:$0xff]  }
 0x1b5   :  { %v2514_v40 = vadd.f32 %v13707_v32, %v2513_v26  ;;  %v3031_v16 = vadd.f32 %v3030_v4, %v2776_v41  ;;  %v13725_v56 = vpop.f32.mrb[64].mxu0 }
 0x1b6   :  { %21749 = vst [vmem:[#allocation31_spill] sm:$0xff] %v13725_v56  ;;  %v13727_v23 = vpop.f32.mrb[65].mxu0 }
 0x1b7   :  { %21750 = vst [vmem:[#allocation32_spill] sm:$0xff] %v13727_v23  ;;  %v3032_v42 = vadd.f32 %v3031_v16, %v2777_v54  ;;  %v2515_v8 = vadd.f32 %v2514_v40, %v13727_v23  ;;  %v2778_v24 = vmul.f32 %v13727_v23, %v13727_v23  ;;  %v13735_v50 = vpop.f32.mrb[66].mxu0  ;;  %v2780_v54 = vmul.f32 %v13725_v56, %v13725_v56 }
 0x1b8   :  { %21751 = vst [vmem:[#allocation33_spill] sm:$0xff] %v13735_v50  ;;  %v13740_v41 = vpop.f32.mrb[67].mxu0  ;;  %v2781_v23 = vmul.f32 %v13735_v50, %v13735_v50 }
 0x1b9   :  { %21752 = vst [vmem:[#allocation34_spill] sm:$0xff] %v13740_v41  ;;  %v3033_v26 = vadd.f32 %v3032_v42, %v2778_v24  ;;  %v2516_v4 = vadd.f32 %v2515_v8, %v13740_v41  ;;  %v2779_v32 = vmul.f32 %v13740_v41, %v13740_v41 }
 0x1ba   :  { %11623 = vmatmul.mubr.msk.bf16.gmra.mrb[172].mxu0 %vm1002_vm2, %v12334_v47  ;;  %v12336_v47 = vld [vmem:[%s21201_s0 + $0x2c8] sm:$0xff]  }
 0x1bb   :  { %v2517_v40 = vadd.f32 %v13725_v56, %v2516_v4  ;;  %v3034_v16 = vadd.f32 %v3033_v26, %v2779_v32  ;;  %11626 = vmatprep.mubr.msk.bf16.mxu0 %vm1002_vm2, %v12335_v10  ;;  %v12337_v26 = vld [vmem:[%s21201_s0 + $0x2d0] sm:$0xff]  }
 0x1bd   :  { %v2518_v42 = vadd.f32 %v13735_v50, %v2517_v40  ;;  %v3035_v24 = vadd.f32 %v3034_v16, %v2780_v54  ;;  %v13753_v8 = vpop.f32.mrb[68].mxu0 }
 0x1be   :  { %21753 = vst [vmem:[#allocation35_spill] sm:$0xff] %v13753_v8  ;;  %v13755_v34 = vpop.f32.mrb[69].mxu0 }
 0x1bf   :  { %21754 = vst [vmem:[#allocation36_spill] sm:$0xff] %v13755_v34  ;;  %v3036_v41 = vadd.f32 %v3035_v24, %v2781_v23  ;;  %v2519_v4 = vadd.f32 %v2518_v42, %v13755_v34  ;;  %v2782_v32 = vmul.f32 %v13755_v34, %v13755_v34  ;;  %v13763_v10 = vpop.f32.mrb[70].mxu0  ;;  %v2784_v23 = vmul.f32 %v13753_v8, %v13753_v8 }
 0x1c0   :  { %21755 = vst [vmem:[#allocation37_spill] sm:$0xff] %v13763_v10  ;;  %v13768_v54 = vpop.f32.mrb[71].mxu0  ;;  %v2785_v34 = vmul.f32 %v13763_v10, %v13763_v10 }
 0x1c1   :  { %21756 = vst [vmem:[#allocation38_spill] sm:$0xff] %v13768_v54  ;;  %v3037_v40 = vadd.f32 %v3036_v41, %v2782_v32  ;;  %v2520_v16 = vadd.f32 %v2519_v4, %v13768_v54  ;;  %v2783_v50 = vmul.f32 %v13768_v54, %v13768_v54 }
 0x1c2   :  { %11627 = vmatmul.mubr.msk.bf16.gmra.mrb[176].mxu0 %vm1002_vm2, %v12336_v47  ;;  %v12338_v47 = vld [vmem:[%s21201_s0 + $0x2d8] sm:$0xff]  }
 0x1c3   :  { %v2521_v42 = vadd.f32 %v13753_v8, %v2520_v16  ;;  %v3038_v24 = vadd.f32 %v3037_v40, %v2783_v50  ;;  %11630 = vmatprep.mubr.msk.bf16.mxu0 %vm1002_vm2, %v12337_v26  ;;  %v12339_v40 = vld [vmem:[%s21201_s0 + $0x2e0] sm:$0xff]  }
 0x1c5   :  { %v2522_v41 = vadd.f32 %v13763_v10, %v2521_v42  ;;  %v3039_v32 = vadd.f32 %v3038_v24, %v2784_v23  ;;  %v13781_v4 = vpop.f32.mrb[72].mxu0 }
 0x1c6   :  { %21757 = vst [vmem:[#allocation39_spill] sm:$0xff] %v13781_v4  ;;  %v13783_v56 = vpop.f32.mrb[73].mxu0 }
 0x1c7   :  { %21758 = vst [vmem:[#allocation40_spill] sm:$0xff] %v13783_v56  ;;  %v3040_v54 = vadd.f32 %v3039_v32, %v2785_v34  ;;  %v2523_v16 = vadd.f32 %v2522_v41, %v13783_v56  ;;  %v2786_v50 = vmul.f32 %v13783_v56, %v13783_v56  ;;  %v13791_v26 = vpop.f32.mrb[74].mxu0  ;;  %v2788_v34 = vmul.f32 %v13781_v4, %v13781_v4 }
 0x1c8   :  { %21759 = vst [vmem:[#allocation41_spill] sm:$0xff] %v13791_v26  ;;  %v13796_v23 = vpop.f32.mrb[75].mxu0  ;;  %v2789_v56 = vmul.f32 %v13791_v26, %v13791_v26 }
 0x1c9   :  { %21760 = vst [vmem:[#allocation42_spill] sm:$0xff] %v13796_v23  ;;  %v3041_v42 = vadd.f32 %v3040_v54, %v2786_v50  ;;  %v2524_v24 = vadd.f32 %v2523_v16, %v13796_v23  ;;  %v2787_v10 = vmul.f32 %v13796_v23, %v13796_v23 }
 0x1ca   :  { %11631 = vmatmul.mubr.msk.bf16.gmra.mrb[180].mxu0 %vm1002_vm2, %v12338_v47  ;;  %v12340_v47 = vld [vmem:[%s21201_s0 + $0x2e8] sm:$0xff]  }
 0x1cb   :  { %v2525_v41 = vadd.f32 %v13781_v4, %v2524_v24  ;;  %v3042_v32 = vadd.f32 %v3041_v42, %v2787_v10  ;;  %11634 = vmatprep.mubr.msk.bf16.mxu0 %vm1002_vm2, %v12339_v40  ;;  %v12341_v42 = vld [vmem:[%s21201_s0 + $0x2f0] sm:$0xff]  }
 0x1cd   :  { %v2526_v54 = vadd.f32 %v13791_v26, %v2525_v41  ;;  %v3043_v50 = vadd.f32 %v3042_v32, %v2788_v34  ;;  %v13809_v16 = vpop.f32.mrb[76].mxu0 }
 0x1ce   :  { %21761 = vst [vmem:[#allocation43_spill] sm:$0xff] %v13809_v16  ;;  %v13811_v8 = vpop.f32.mrb[77].mxu0 }
 0x1cf   :  { %21762 = vst [vmem:[#allocation44_spill] sm:$0xff] %v13811_v8  ;;  %v3044_v23 = vadd.f32 %v3043_v50, %v2789_v56  ;;  %v2527_v24 = vadd.f32 %v2526_v54, %v13811_v8  ;;  %v2790_v10 = vmul.f32 %v13811_v8, %v13811_v8  ;;  %v13819_v40 = vpop.f32.mrb[78].mxu0  ;;  %v2792_v56 = vmul.f32 %v13809_v16, %v13809_v16 }
 0x1d0   :  { %21763 = vst [vmem:[#allocation45_spill] sm:$0xff] %v13819_v40  ;;  %v13824_v34 = vpop.f32.mrb[79].mxu0  ;;  %v2793_v8 = vmul.f32 %v13819_v40, %v13819_v40 }
 0x1d1   :  { %21764 = vst [vmem:[#allocation46_spill] sm:$0xff] %v13824_v34  ;;  %v3045_v41 = vadd.f32 %v3044_v23, %v2790_v10  ;;  %v2528_v32 = vadd.f32 %v2527_v24, %v13824_v34  ;;  %v2791_v26 = vmul.f32 %v13824_v34, %v13824_v34 }
 0x1d2   :  { %11635 = vmatmul.mubr.msk.bf16.gmra.mrb[184].mxu0 %vm1002_vm2, %v12340_v47  ;;  %v12342_v47 = vld [vmem:[%s21201_s0 + $0x2f8] sm:$0xff]  }
 0x1d3   :  { %v2529_v54 = vadd.f32 %v13809_v16, %v2528_v32  ;;  %v3046_v50 = vadd.f32 %v3045_v41, %v2791_v26  ;;  %11638 = vmatprep.mubr.msk.bf16.mxu0 %vm1002_vm2, %v12341_v42  ;;  %v12343_v41 = vld [vmem:[%s21201_s0 + $0x300] sm:$0xff]  }
 0x1d5   :  { %v2530_v23 = vadd.f32 %v13819_v40, %v2529_v54  ;;  %v3047_v10 = vadd.f32 %v3046_v50, %v2792_v56  ;;  %v13837_v24 = vpop.f32.mrb[80].mxu0 }
 0x1d6   :  { %21765 = vst [vmem:[#allocation47_spill] sm:$0xff] %v13837_v24  ;;  %v13839_v4 = vpop.f32.mrb[81].mxu0 }
 0x1d7   :  { %21766 = vst [vmem:[#allocation48_spill] sm:$0xff] %v13839_v4  ;;  %v3048_v34 = vadd.f32 %v3047_v10, %v2793_v8  ;;  %v2531_v32 = vadd.f32 %v2530_v23, %v13839_v4  ;;  %v2794_v26 = vmul.f32 %v13839_v4, %v13839_v4  ;;  %v13847_v42 = vpop.f32.mrb[82].mxu0  ;;  %v2796_v8 = vmul.f32 %v13837_v24, %v13837_v24 }
 0x1d8   :  { %21767 = vst [vmem:[#allocation49_spill] sm:$0xff] %v13847_v42  ;;  %v13852_v56 = vpop.f32.mrb[83].mxu0  ;;  %v2797_v4 = vmul.f32 %v13847_v42, %v13847_v42 }
 0x1d9   :  { %21768 = vst [vmem:[#allocation50_spill] sm:$0xff] %v13852_v56  ;;  %v3049_v54 = vadd.f32 %v3048_v34, %v2794_v26  ;;  %v2532_v50 = vadd.f32 %v2531_v32, %v13852_v56  ;;  %v2795_v40 = vmul.f32 %v13852_v56, %v13852_v56 }
 0x1da   :  { %11639 = vmatmul.mubr.msk.bf16.gmra.mrb[188].mxu0 %vm1002_vm2, %v12342_v47  ;;  %v12344_v47 = vld [vmem:[%s21201_s0 + $0x308] sm:$0xff]  }
 0x1db   :  { %v2533_v23 = vadd.f32 %v13837_v24, %v2532_v50  ;;  %v3050_v10 = vadd.f32 %v3049_v54, %v2795_v40  ;;  %11642 = vmatprep.mubr.msk.bf16.mxu0 %vm1002_vm2, %v12343_v41  ;;  %v12345_v54 = vld [vmem:[%s21201_s0 + $0x310] sm:$0xff]  }
 0x1dd   :  { %v2534_v34 = vadd.f32 %v13847_v42, %v2533_v23  ;;  %v3051_v26 = vadd.f32 %v3050_v10, %v2796_v8  ;;  %v13865_v32 = vpop.f32.mrb[84].mxu0 }
 0x1de   :  { %21769 = vst [vmem:[#allocation51_spill] sm:$0xff] %v13865_v32  ;;  %v13867_v16 = vpop.f32.mrb[85].mxu0 }
 0x1df   :  { %21770 = vst [vmem:[#allocation52_spill] sm:$0xff] %v13867_v16  ;;  %v3052_v56 = vadd.f32 %v3051_v26, %v2797_v4  ;;  %v2535_v50 = vadd.f32 %v2534_v34, %v13867_v16  ;;  %v2798_v40 = vmul.f32 %v13867_v16, %v13867_v16  ;;  %v13875_v41 = vpop.f32.mrb[86].mxu0  ;;  %v2800_v4 = vmul.f32 %v13865_v32, %v13865_v32 }
 0x1e0   :  { %21771 = vst [vmem:[#allocation53_spill] sm:$0xff] %v13875_v41  ;;  %v13880_v8 = vpop.f32.mrb[87].mxu0  ;;  %v2801_v16 = vmul.f32 %v13875_v41, %v13875_v41 }
 0x1e1   :  { %21772 = vst [vmem:[#allocation54_spill] sm:$0xff] %v13880_v8  ;;  %v3053_v23 = vadd.f32 %v3052_v56, %v2798_v40  ;;  %v2536_v10 = vadd.f32 %v2535_v50, %v13880_v8  ;;  %v2799_v42 = vmul.f32 %v13880_v8, %v13880_v8 }
 0x1e2   :  { %11643 = vmatmul.mubr.msk.bf16.gmra.mrb[192].mxu0 %vm1002_vm2, %v12344_v47  ;;  %v12346_v47 = vld [vmem:[%s21201_s0 + $0x318] sm:$0xff]  }
 0x1e3   :  { %v2537_v34 = vadd.f32 %v13865_v32, %v2536_v10  ;;  %v3054_v26 = vadd.f32 %v3053_v23, %v2799_v42  ;;  %11646 = vmatprep.mubr.msk.bf16.mxu0 %vm1002_vm2, %v12345_v54  ;;  %v12347_v23 = vld [vmem:[%s21201_s0 + $0x320] sm:$0xff]  }
 0x1e5   :  { %v2538_v56 = vadd.f32 %v13875_v41, %v2537_v34  ;;  %v3055_v40 = vadd.f32 %v3054_v26, %v2800_v4  ;;  %v13893_v50 = vpop.f32.mrb[88].mxu0 }
 0x1e6   :  { %21773 = vst [vmem:[#allocation55_spill] sm:$0xff] %v13893_v50  ;;  %v13895_v24 = vpop.f32.mrb[89].mxu0 }
 0x1e7   :  { %21774 = vst [vmem:[#allocation56_spill] sm:$0xff] %v13895_v24  ;;  %v3056_v8 = vadd.f32 %v3055_v40, %v2801_v16  ;;  %v2539_v10 = vadd.f32 %v2538_v56, %v13895_v24  ;;  %v2802_v42 = vmul.f32 %v13895_v24, %v13895_v24  ;;  %v13903_v54 = vpop.f32.mrb[90].mxu0  ;;  %v2804_v16 = vmul.f32 %v13893_v50, %v13893_v50 }
 0x1e8   :  { %21775 = vst [vmem:[#allocation57_spill] sm:$0xff] %v13903_v54  ;;  %v13908_v4 = vpop.f32.mrb[91].mxu0  ;;  %v2805_v24 = vmul.f32 %v13903_v54, %v13903_v54 }
 0x1e9   :  { %21776 = vst [vmem:[#allocation58_spill] sm:$0xff] %v13908_v4  ;;  %v3057_v34 = vadd.f32 %v3056_v8, %v2802_v42  ;;  %v2540_v26 = vadd.f32 %v2539_v10, %v13908_v4  ;;  %v2803_v41 = vmul.f32 %v13908_v4, %v13908_v4 }
 0x1ea   :  { %11647 = vmatmul.mubr.msk.bf16.gmra.mrb[196].mxu0 %vm1002_vm2, %v12346_v47  ;;  %v12348_v47 = vld [vmem:[%s21201_s0 + $0x328] sm:$0xff]  }
 0x1eb   :  { %v2541_v56 = vadd.f32 %v13893_v50, %v2540_v26  ;;  %v3058_v40 = vadd.f32 %v3057_v34, %v2803_v41  ;;  %11650 = vmatprep.mubr.msk.bf16.mxu0 %vm1002_vm2, %v12347_v23  ;;  %v12349_v34 = vld [vmem:[%s21201_s0 + $0x330] sm:$0xff]  }
 0x1ed   :  { %v2542_v8 = vadd.f32 %v13903_v54, %v2541_v56  ;;  %v3059_v42 = vadd.f32 %v3058_v40, %v2804_v16  ;;  %v13921_v10 = vpop.f32.mrb[92].mxu0 }
 0x1ee   :  { %21777 = vst [vmem:[#allocation59_spill] sm:$0xff] %v13921_v10  ;;  %v13923_v32 = vpop.f32.mrb[93].mxu0 }
 0x1ef   :  { %21778 = vst [vmem:[#allocation60_spill] sm:$0xff] %v13923_v32  ;;  %v3060_v4 = vadd.f32 %v3059_v42, %v2805_v24  ;;  %v2543_v26 = vadd.f32 %v2542_v8, %v13923_v32  ;;  %v2806_v41 = vmul.f32 %v13923_v32, %v13923_v32  ;;  %v13931_v23 = vpop.f32.mrb[94].mxu0  ;;  %v2808_v24 = vmul.f32 %v13921_v10, %v13921_v10 }
 0x1f0   :  { %21779 = vst [vmem:[#allocation61_spill] sm:$0xff] %v13931_v23  ;;  %v13936_v16 = vpop.f32.mrb[95].mxu0  ;;  %v2809_v32 = vmul.f32 %v13931_v23, %v13931_v23 }
 0x1f1   :  { %21780 = vst [vmem:[#allocation62_spill] sm:$0xff] %v13936_v16  ;;  %v3061_v56 = vadd.f32 %v3060_v4, %v2806_v41  ;;  %v2544_v40 = vadd.f32 %v2543_v26, %v13936_v16  ;;  %v2807_v54 = vmul.f32 %v13936_v16, %v13936_v16 }
 0x1f2   :  { %11651 = vmatmul.mubr.msk.bf16.gmra.mrb[200].mxu0 %vm1002_vm2, %v12348_v47  ;;  %v12350_v47 = vld [vmem:[%s21201_s0 + $0x338] sm:$0xff]  }
 0x1f3   :  { %v2545_v8 = vadd.f32 %v13921_v10, %v2544_v40  ;;  %v3062_v42 = vadd.f32 %v3061_v56, %v2807_v54  ;;  %11654 = vmatprep.mubr.msk.bf16.mxu0 %vm1002_vm2, %v12349_v34  ;;  %v12351_v56 = vld [vmem:[%s21201_s0 + $0x340] sm:$0xff]  }
 0x1f5   :  { %v2546_v4 = vadd.f32 %v13931_v23, %v2545_v8  ;;  %v3063_v41 = vadd.f32 %v3062_v42, %v2808_v24  ;;  %v13949_v26 = vpop.f32.mrb[96].mxu0 }
 0x1f6   :  { %21781 = vst [vmem:[#allocation63_spill] sm:$0xff] %v13949_v26  ;;  %v13951_v50 = vpop.f32.mrb[97].mxu0 }
 0x1f7   :  { %21782 = vst [vmem:[#allocation64_spill] sm:$0xff] %v13951_v50  ;;  %v3064_v16 = vadd.f32 %v3063_v41, %v2809_v32  ;;  %v2547_v40 = vadd.f32 %v2546_v4, %v13951_v50  ;;  %v2810_v54 = vmul.f32 %v13951_v50, %v13951_v50  ;;  %v13959_v34 = vpop.f32.mrb[98].mxu0  ;;  %v2812_v32 = vmul.f32 %v13949_v26, %v13949_v26 }
 0x1f8   :  { %21783 = vst [vmem:[#allocation65_spill] sm:$0xff] %v13959_v34  ;;  %v13964_v24 = vpop.f32.mrb[99].mxu0  ;;  %v2813_v50 = vmul.f32 %v13959_v34, %v13959_v34 }
 0x1f9   :  { %21784 = vst [vmem:[#allocation66_spill] sm:$0xff] %v13964_v24  ;;  %v3065_v8 = vadd.f32 %v3064_v16, %v2810_v54  ;;  %v2548_v42 = vadd.f32 %v2547_v40, %v13964_v24  ;;  %v2811_v23 = vmul.f32 %v13964_v24, %v13964_v24 }
 0x1fa   :  { %11655 = vmatmul.mubr.msk.bf16.gmra.mrb[204].mxu0 %vm1002_vm2, %v12350_v47  ;;  %v12352_v47 = vld [vmem:[%s21201_s0 + $0x348] sm:$0xff]  }
 0x1fb   :  { %v2549_v4 = vadd.f32 %v13949_v26, %v2548_v42  ;;  %v3066_v41 = vadd.f32 %v3065_v8, %v2811_v23  ;;  %11658 = vmatprep.mubr.msk.bf16.mxu0 %vm1002_vm2, %v12351_v56  ;;  %v12353_v8 = vld [vmem:[%s21201_s0 + $0x350] sm:$0xff]  }
 0x1fd   :  { %v2550_v16 = vadd.f32 %v13959_v34, %v2549_v4  ;;  %v3067_v54 = vadd.f32 %v3066_v41, %v2812_v32  ;;  %v13977_v40 = vpop.f32.mrb[100].mxu0 }
 0x1fe   :  { %21785 = vst [vmem:[#allocation67_spill] sm:$0xff] %v13977_v40  ;;  %v13979_v10 = vpop.f32.mrb[101].mxu0 }
 0x1ff   :  { %21786 = vst [vmem:[#allocation68_spill] sm:$0xff] %v13979_v10  ;;  %v3068_v24 = vadd.f32 %v3067_v54, %v2813_v50  ;;  %v2551_v42 = vadd.f32 %v2550_v16, %v13979_v10  ;;  %v2814_v23 = vmul.f32 %v13979_v10, %v13979_v10  ;;  %v13987_v56 = vpop.f32.mrb[102].mxu0  ;;  %v2816_v50 = vmul.f32 %v13977_v40, %v13977_v40 }
 0x200   :  { %21787 = vst [vmem:[#allocation69_spill] sm:$0xff] %v13987_v56  ;;  %v13992_v32 = vpop.f32.mrb[103].mxu0  ;;  %v2817_v10 = vmul.f32 %v13987_v56, %v13987_v56 }
 0x201   :  { %21788 = vst [vmem:[#allocation70_spill] sm:$0xff] %v13992_v32  ;;  %v3069_v4 = vadd.f32 %v3068_v24, %v2814_v23  ;;  %v2552_v41 = vadd.f32 %v2551_v42, %v13992_v32  ;;  %v2815_v34 = vmul.f32 %v13992_v32, %v13992_v32 }
 0x202   :  { %11659 = vmatmul.mubr.msk.bf16.gmra.mrb[208].mxu0 %vm1002_vm2, %v12352_v47  ;;  %v12354_v47 = vld [vmem:[%s21201_s0 + $0x358] sm:$0xff]  }
 0x203   :  { %v2553_v16 = vadd.f32 %v13977_v40, %v2552_v41  ;;  %v3070_v54 = vadd.f32 %v3069_v4, %v2815_v34  ;;  %11662 = vmatprep.mubr.msk.bf16.mxu0 %vm1002_vm2, %v12353_v8  ;;  %v12355_v4 = vld [vmem:[%s21201_s0 + $0x360] sm:$0xff]  }
 0x205   :  { %v2554_v24 = vadd.f32 %v13987_v56, %v2553_v16  ;;  %v3071_v23 = vadd.f32 %v3070_v54, %v2816_v50  ;;  %v14005_v42 = vpop.f32.mrb[104].mxu0 }
 0x206   :  { %21789 = vst [vmem:[#allocation71_spill] sm:$0xff] %v14005_v42  ;;  %v14007_v26 = vpop.f32.mrb[105].mxu0 }
 0x207   :  { %21790 = vst [vmem:[#allocation72_spill] sm:$0xff] %v14007_v26  ;;  %v3072_v32 = vadd.f32 %v3071_v23, %v2817_v10  ;;  %v2555_v41 = vadd.f32 %v2554_v24, %v14007_v26  ;;  %v2818_v34 = vmul.f32 %v14007_v26, %v14007_v26  ;;  %v14015_v8 = vpop.f32.mrb[106].mxu0  ;;  %v2820_v10 = vmul.f32 %v14005_v42, %v14005_v42 }
 0x208   :  { %21791 = vst [vmem:[#allocation73_spill] sm:$0xff] %v14015_v8  ;;  %v14020_v50 = vpop.f32.mrb[107].mxu0  ;;  %v2821_v26 = vmul.f32 %v14015_v8, %v14015_v8 }
 0x209   :  { %21792 = vst [vmem:[#allocation74_spill] sm:$0xff] %v14020_v50  ;;  %v3073_v16 = vadd.f32 %v3072_v32, %v2818_v34  ;;  %v2556_v54 = vadd.f32 %v2555_v41, %v14020_v50  ;;  %v2819_v56 = vmul.f32 %v14020_v50, %v14020_v50 }
 0x20a   :  { %11663 = vmatmul.mubr.msk.bf16.gmra.mrb[212].mxu0 %vm1002_vm2, %v12354_v47  ;;  %v12356_v47 = vld [vmem:[%s21201_s0 + $0x368] sm:$0xff]  }
 0x20b   :  { %v2557_v24 = vadd.f32 %v14005_v42, %v2556_v54  ;;  %v3074_v23 = vadd.f32 %v3073_v16, %v2819_v56  ;;  %11666 = vmatprep.mubr.msk.bf16.mxu0 %vm1002_vm2, %v12355_v4  ;;  %v12357_v16 = vld [vmem:[%s21201_s0 + $0x370] sm:$0xff]  }
 0x20d   :  { %v2558_v32 = vadd.f32 %v14015_v8, %v2557_v24  ;;  %v3075_v34 = vadd.f32 %v3074_v23, %v2820_v10  ;;  %v14033_v41 = vpop.f32.mrb[108].mxu0 }
 0x20e   :  { %21793 = vst [vmem:[#allocation75_spill] sm:$0xff] %v14033_v41  ;;  %v14035_v40 = vpop.f32.mrb[109].mxu0 }
 0x20f   :  { %21794 = vst [vmem:[#allocation76_spill] sm:$0xff] %v14035_v40  ;;  %v3076_v50 = vadd.f32 %v3075_v34, %v2821_v26  ;;  %v2559_v54 = vadd.f32 %v2558_v32, %v14035_v40  ;;  %v2822_v56 = vmul.f32 %v14035_v40, %v14035_v40  ;;  %v14043_v4 = vpop.f32.mrb[110].mxu0  ;;  %v2824_v26 = vmul.f32 %v14033_v41, %v14033_v41 }
 0x210   :  { %21795 = vst [vmem:[#allocation77_spill] sm:$0xff] %v14043_v4  ;;  %v14048_v10 = vpop.f32.mrb[111].mxu0  ;;  %v2825_v40 = vmul.f32 %v14043_v4, %v14043_v4 }
 0x211   :  { %21796 = vst [vmem:[#allocation78_spill] sm:$0xff] %v14048_v10  ;;  %v3077_v24 = vadd.f32 %v3076_v50, %v2822_v56  ;;  %v2560_v23 = vadd.f32 %v2559_v54, %v14048_v10  ;;  %v2823_v8 = vmul.f32 %v14048_v10, %v14048_v10 }
 0x212   :  { %11667 = vmatmul.mubr.msk.bf16.gmra.mrb[216].mxu0 %vm1002_vm2, %v12356_v47  ;;  %v12358_v47 = vld [vmem:[%s21201_s0 + $0x378] sm:$0xff]  }
 0x213   :  { %v2561_v32 = vadd.f32 %v14033_v41, %v2560_v23  ;;  %v3078_v34 = vadd.f32 %v3077_v24, %v2823_v8  ;;  %11670 = vmatprep.mubr.msk.bf16.mxu0 %vm1002_vm2, %v12357_v16  ;;  %v12359_v24 = vld [vmem:[%s21201_s0 + $0x380] sm:$0xff]  }
 0x215   :  { %v2562_v50 = vadd.f32 %v14043_v4, %v2561_v32  ;;  %v3079_v56 = vadd.f32 %v3078_v34, %v2824_v26  ;;  %v14061_v54 = vpop.f32.mrb[112].mxu0 }
 0x216   :  { %21797 = vst [vmem:[#allocation79_spill] sm:$0xff] %v14061_v54  ;;  %v14063_v42 = vpop.f32.mrb[113].mxu0 }
 0x217   :  { %21798 = vst [vmem:[#allocation80_spill] sm:$0xff] %v14063_v42  ;;  %v3080_v10 = vadd.f32 %v3079_v56, %v2825_v40  ;;  %v2563_v23 = vadd.f32 %v2562_v50, %v14063_v42  ;;  %v2826_v8 = vmul.f32 %v14063_v42, %v14063_v42  ;;  %v14071_v16 = vpop.f32.mrb[114].mxu0  ;;  %v2828_v40 = vmul.f32 %v14061_v54, %v14061_v54 }
 0x218   :  { %21799 = vst [vmem:[#allocation81_spill] sm:$0xff] %v14071_v16  ;;  %v14076_v26 = vpop.f32.mrb[115].mxu0  ;;  %v2829_v42 = vmul.f32 %v14071_v16, %v14071_v16 }
 0x219   :  { %21800 = vst [vmem:[#allocation82_spill] sm:$0xff] %v14076_v26  ;;  %v3081_v32 = vadd.f32 %v3080_v10, %v2826_v8  ;;  %v2564_v34 = vadd.f32 %v2563_v23, %v14076_v26  ;;  %v2827_v4 = vmul.f32 %v14076_v26, %v14076_v26 }
 0x21a   :  { %11671 = vmatmul.mubr.msk.bf16.gmra.mrb[220].mxu0 %vm1002_vm2, %v12358_v47  ;;  %v12360_v47 = vld [vmem:[%s21201_s0 + $0x388] sm:$0xff]  }
 0x21b   :  { %v2565_v50 = vadd.f32 %v14061_v54, %v2564_v34  ;;  %v3082_v56 = vadd.f32 %v3081_v32, %v2827_v4  ;;  %11674 = vmatprep.mubr.msk.bf16.mxu0 %vm1002_vm2, %v12359_v24  ;;  %v12361_v32 = vld [vmem:[%s21201_s0 + $0x390] sm:$0xff]  }
 0x21d   :  { %v2566_v10 = vadd.f32 %v14071_v16, %v2565_v50  ;;  %v3083_v8 = vadd.f32 %v3082_v56, %v2828_v40  ;;  %v14089_v23 = vpop.f32.mrb[116].mxu0 }
 0x21e   :  { %21801 = vst [vmem:[#allocation83_spill] sm:$0xff] %v14089_v23  ;;  %v14091_v41 = vpop.f32.mrb[117].mxu0 }
 0x21f   :  { %21802 = vst [vmem:[#allocation84_spill] sm:$0xff] %v14091_v41  ;;  %v3084_v26 = vadd.f32 %v3083_v8, %v2829_v42  ;;  %v2567_v34 = vadd.f32 %v2566_v10, %v14091_v41  ;;  %v2830_v4 = vmul.f32 %v14091_v41, %v14091_v41  ;;  %v14099_v24 = vpop.f32.mrb[118].mxu0  ;;  %v2832_v42 = vmul.f32 %v14089_v23, %v14089_v23 }
 0x220   :  { %21803 = vst [vmem:[#allocation85_spill] sm:$0xff] %v14099_v24  ;;  %v14104_v40 = vpop.f32.mrb[119].mxu0  ;;  %v2833_v41 = vmul.f32 %v14099_v24, %v14099_v24 }
 0x221   :  { %21804 = vst [vmem:[#allocation86_spill] sm:$0xff] %v14104_v40  ;;  %v3085_v50 = vadd.f32 %v3084_v26, %v2830_v4  ;;  %v2568_v56 = vadd.f32 %v2567_v34, %v14104_v40  ;;  %v2831_v16 = vmul.f32 %v14104_v40, %v14104_v40 }
 0x222   :  { %11675 = vmatmul.mubr.msk.bf16.gmra.mrb[224].mxu0 %vm1002_vm2, %v12360_v47  ;;  %v12362_v47 = vld [vmem:[%s21201_s0 + $0x398] sm:$0xff]  }
 0x223   :  { %v2569_v10 = vadd.f32 %v14089_v23, %v2568_v56  ;;  %v3086_v8 = vadd.f32 %v3085_v50, %v2831_v16  ;;  %11678 = vmatprep.mubr.msk.bf16.mxu0 %vm1002_vm2, %v12361_v32  ;;  %v12363_v50 = vld [vmem:[%s21201_s0 + $0x3a0] sm:$0xff]  }
 0x225   :  { %v2570_v26 = vadd.f32 %v14099_v24, %v2569_v10  ;;  %v3087_v4 = vadd.f32 %v3086_v8, %v2832_v42  ;;  %v14117_v34 = vpop.f32.mrb[120].mxu0 }
 0x226   :  { %21805 = vst [vmem:[#allocation87_spill] sm:$0xff] %v14117_v34  ;;  %v14119_v54 = vpop.f32.mrb[121].mxu0 }
 0x227   :  { %21806 = vst [vmem:[#allocation88_spill] sm:$0xff] %v14119_v54  ;;  %v3088_v40 = vadd.f32 %v3087_v4, %v2833_v41  ;;  %v2571_v56 = vadd.f32 %v2570_v26, %v14119_v54  ;;  %v2834_v16 = vmul.f32 %v14119_v54, %v14119_v54  ;;  %v14127_v32 = vpop.f32.mrb[122].mxu0  ;;  %v2836_v41 = vmul.f32 %v14117_v34, %v14117_v34 }
 0x228   :  { %21807 = vst [vmem:[#allocation89_spill] sm:$0xff] %v14127_v32  ;;  %v14132_v42 = vpop.f32.mrb[123].mxu0  ;;  %v2837_v54 = vmul.f32 %v14127_v32, %v14127_v32 }
 0x229   :  { %21808 = vst [vmem:[#allocation90_spill] sm:$0xff] %v14132_v42  ;;  %v3089_v10 = vadd.f32 %v3088_v40, %v2834_v16  ;;  %v2572_v8 = vadd.f32 %v2571_v56, %v14132_v42  ;;  %v2835_v24 = vmul.f32 %v14132_v42, %v14132_v42 }
 0x22a   :  { %11679 = vmatmul.mubr.msk.bf16.gmra.mrb[228].mxu0 %vm1002_vm2, %v12362_v47  ;;  %v12364_v47 = vld [vmem:[%s21201_s0 + $0x3a8] sm:$0xff]  }
 0x22b   :  { %v2573_v26 = vadd.f32 %v14117_v34, %v2572_v8  ;;  %v3090_v4 = vadd.f32 %v3089_v10, %v2835_v24  ;;  %11682 = vmatprep.mubr.msk.bf16.mxu0 %vm1002_vm2, %v12363_v50  ;;  %v12365_v10 = vld [vmem:[%s21201_s0 + $0x3b0] sm:$0xff]  }
 0x22d   :  { %v2574_v40 = vadd.f32 %v14127_v32, %v2573_v26  ;;  %v3091_v16 = vadd.f32 %v3090_v4, %v2836_v41  ;;  %v14145_v56 = vpop.f32.mrb[124].mxu0 }
 0x22e   :  { %21809 = vst [vmem:[#allocation91_spill] sm:$0xff] %v14145_v56  ;;  %v14147_v23 = vpop.f32.mrb[125].mxu0 }
 0x22f   :  { %21810 = vst [vmem:[#allocation92_spill] sm:$0xff] %v14147_v23  ;;  %v3092_v42 = vadd.f32 %v3091_v16, %v2837_v54  ;;  %v2575_v8 = vadd.f32 %v2574_v40, %v14147_v23  ;;  %v2838_v24 = vmul.f32 %v14147_v23, %v14147_v23  ;;  %v14155_v50 = vpop.f32.mrb[126].mxu0  ;;  %v2840_v54 = vmul.f32 %v14145_v56, %v14145_v56 }
 0x230   :  { %21811 = vst [vmem:[#allocation93_spill] sm:$0xff] %v14155_v50  ;;  %v14160_v41 = vpop.f32.mrb[127].mxu0  ;;  %v2841_v23 = vmul.f32 %v14155_v50, %v14155_v50 }
 0x231   :  { %21812 = vst [vmem:[#allocation94_spill] sm:$0xff] %v14160_v41  ;;  %v3093_v26 = vadd.f32 %v3092_v42, %v2838_v24  ;;  %v2576_v4 = vadd.f32 %v2575_v8, %v14160_v41  ;;  %v2839_v32 = vmul.f32 %v14160_v41, %v14160_v41 }
 0x232   :  { %11683 = vmatmul.mubr.msk.bf16.gmra.mrb[232].mxu0 %vm1002_vm2, %v12364_v47  ;;  %v12366_v47 = vld [vmem:[%s21201_s0 + $0x3b8] sm:$0xff]  }
 0x233   :  { %v2577_v40 = vadd.f32 %v14145_v56, %v2576_v4  ;;  %v3094_v16 = vadd.f32 %v3093_v26, %v2839_v32  ;;  %11686 = vmatprep.mubr.msk.bf16.mxu0 %vm1002_vm2, %v12365_v10  ;;  %v12367_v26 = vld [vmem:[%s21201_s0 + $0x3c0] sm:$0xff]  }
 0x235   :  { %v2578_v42 = vadd.f32 %v14155_v50, %v2577_v40  ;;  %v3095_v24 = vadd.f32 %v3094_v16, %v2840_v54  ;;  %v14173_v8 = vpop.f32.mrb[128].mxu0 }
 0x236   :  { %21813 = vst [vmem:[#allocation95_spill] sm:$0xff] %v14173_v8  ;;  %v14175_v34 = vpop.f32.mrb[129].mxu0 }
 0x237   :  { %21814 = vst [vmem:[#allocation96_spill] sm:$0xff] %v14175_v34  ;;  %v3096_v41 = vadd.f32 %v3095_v24, %v2841_v23  ;;  %v2579_v4 = vadd.f32 %v2578_v42, %v14175_v34  ;;  %v2842_v32 = vmul.f32 %v14175_v34, %v14175_v34  ;;  %v14183_v10 = vpop.f32.mrb[130].mxu0  ;;  %v2844_v23 = vmul.f32 %v14173_v8, %v14173_v8 }
 0x238   :  { %21815 = vst [vmem:[#allocation97_spill] sm:$0xff] %v14183_v10  ;;  %v14188_v54 = vpop.f32.mrb[131].mxu0  ;;  %v2845_v34 = vmul.f32 %v14183_v10, %v14183_v10 }
 0x239   :  { %21816 = vst [vmem:[#allocation98_spill] sm:$0xff] %v14188_v54  ;;  %v3097_v40 = vadd.f32 %v3096_v41, %v2842_v32  ;;  %v2580_v16 = vadd.f32 %v2579_v4, %v14188_v54  ;;  %v2843_v50 = vmul.f32 %v14188_v54, %v14188_v54 }
 0x23a   :  { %11687 = vmatmul.mubr.msk.bf16.gmra.mrb[236].mxu0 %vm1002_vm2, %v12366_v47  ;;  %v12368_v47 = vld [vmem:[%s21201_s0 + $0x3c8] sm:$0xff]  }
 0x23b   :  { %v2581_v42 = vadd.f32 %v14173_v8, %v2580_v16  ;;  %v3098_v24 = vadd.f32 %v3097_v40, %v2843_v50  ;;  %11690 = vmatprep.mubr.msk.bf16.mxu0 %vm1002_vm2, %v12367_v26  ;;  %v12369_v40 = vld [vmem:[%s21201_s0 + $0x3d0] sm:$0xff]  }
 0x23d   :  { %v2582_v41 = vadd.f32 %v14183_v10, %v2581_v42  ;;  %v3099_v32 = vadd.f32 %v3098_v24, %v2844_v23  ;;  %v14201_v4 = vpop.f32.mrb[132].mxu0 }
 0x23e   :  { %21817 = vst [vmem:[#allocation99_spill] sm:$0xff] %v14201_v4  ;;  %v14203_v56 = vpop.f32.mrb[133].mxu0 }
 0x23f   :  { %21818 = vst [vmem:[#allocation100_spill] sm:$0xff] %v14203_v56  ;;  %v3100_v54 = vadd.f32 %v3099_v32, %v2845_v34  ;;  %v2583_v16 = vadd.f32 %v2582_v41, %v14203_v56  ;;  %v2846_v50 = vmul.f32 %v14203_v56, %v14203_v56  ;;  %v14211_v26 = vpop.f32.mrb[134].mxu0  ;;  %v2848_v34 = vmul.f32 %v14201_v4, %v14201_v4 }
 0x240   :  { %21819 = vst [vmem:[#allocation101_spill] sm:$0xff] %v14211_v26  ;;  %v14216_v23 = vpop.f32.mrb[135].mxu0  ;;  %v2849_v56 = vmul.f32 %v14211_v26, %v14211_v26 }
 0x241   :  { %21820 = vst [vmem:[#allocation102_spill] sm:$0xff] %v14216_v23  ;;  %v3101_v42 = vadd.f32 %v3100_v54, %v2846_v50  ;;  %v2584_v24 = vadd.f32 %v2583_v16, %v14216_v23  ;;  %v2847_v10 = vmul.f32 %v14216_v23, %v14216_v23 }
 0x242   :  { %11691 = vmatmul.mubr.msk.bf16.gmra.mrb[240].mxu0 %vm1002_vm2, %v12368_v47  ;;  %v12370_v47 = vld [vmem:[%s21201_s0 + $0x3d8] sm:$0xff]  }
 0x243   :  { %v2585_v41 = vadd.f32 %v14201_v4, %v2584_v24  ;;  %v3102_v32 = vadd.f32 %v3101_v42, %v2847_v10  ;;  %11694 = vmatprep.mubr.msk.bf16.mxu0 %vm1002_vm2, %v12369_v40  ;;  %v12371_v42 = vld [vmem:[%s21201_s0 + $0x3e0] sm:$0xff]  }
 0x245   :  { %v2586_v54 = vadd.f32 %v14211_v26, %v2585_v41  ;;  %v3103_v50 = vadd.f32 %v3102_v32, %v2848_v34  ;;  %v14229_v16 = vpop.f32.mrb[136].mxu0 }
 0x246   :  { %21821 = vst [vmem:[#allocation103_spill] sm:$0xff] %v14229_v16  ;;  %v14231_v8 = vpop.f32.mrb[137].mxu0 }
 0x247   :  { %21822 = vst [vmem:[#allocation104_spill] sm:$0xff] %v14231_v8  ;;  %v3104_v23 = vadd.f32 %v3103_v50, %v2849_v56  ;;  %v2587_v24 = vadd.f32 %v2586_v54, %v14231_v8  ;;  %v2850_v10 = vmul.f32 %v14231_v8, %v14231_v8  ;;  %v14239_v40 = vpop.f32.mrb[138].mxu0  ;;  %v2852_v56 = vmul.f32 %v14229_v16, %v14229_v16 }
 0x248   :  { %21823 = vst [vmem:[#allocation105_spill] sm:$0xff] %v14239_v40  ;;  %v14244_v34 = vpop.f32.mrb[139].mxu0  ;;  %v2853_v8 = vmul.f32 %v14239_v40, %v14239_v40 }
 0x249   :  { %21824 = vst [vmem:[#allocation106_spill] sm:$0xff] %v14244_v34  ;;  %v3105_v41 = vadd.f32 %v3104_v23, %v2850_v10  ;;  %v2588_v32 = vadd.f32 %v2587_v24, %v14244_v34  ;;  %v2851_v26 = vmul.f32 %v14244_v34, %v14244_v34 }
 0x24a   :  { %11695 = vmatmul.mubr.msk.bf16.gmra.mrb[244].mxu0 %vm1002_vm2, %v12370_v47  ;;  %v12372_v47 = vld [vmem:[%s21201_s0 + $0x3e8] sm:$0xff]  }
 0x24b   :  { %v2589_v54 = vadd.f32 %v14229_v16, %v2588_v32  ;;  %v3106_v50 = vadd.f32 %v3105_v41, %v2851_v26  ;;  %11698 = vmatprep.mubr.msk.bf16.mxu0 %vm1002_vm2, %v12371_v42  ;;  %v12373_v41 = vld [vmem:[%s21201_s0 + $0x3f0] sm:$0xff]  }
 0x24d   :  { %v2590_v23 = vadd.f32 %v14239_v40, %v2589_v54  ;;  %v3107_v10 = vadd.f32 %v3106_v50, %v2852_v56  ;;  %v14257_v24 = vpop.f32.mrb[140].mxu0 }
 0x24e   :  { %21825 = vst [vmem:[#allocation107_spill] sm:$0xff] %v14257_v24  ;;  %v14259_v4 = vpop.f32.mrb[141].mxu0 }
 0x24f   :  { %21826 = vst [vmem:[#allocation108_spill] sm:$0xff] %v14259_v4  ;;  %v3108_v34 = vadd.f32 %v3107_v10, %v2853_v8  ;;  %v2591_v32 = vadd.f32 %v2590_v23, %v14259_v4  ;;  %v2854_v26 = vmul.f32 %v14259_v4, %v14259_v4  ;;  %v14267_v42 = vpop.f32.mrb[142].mxu0  ;;  %v2856_v8 = vmul.f32 %v14257_v24, %v14257_v24 }
 0x250   :  { %21827 = vst [vmem:[#allocation109_spill] sm:$0xff] %v14267_v42  ;;  %v14272_v56 = vpop.f32.mrb[143].mxu0  ;;  %v2857_v4 = vmul.f32 %v14267_v42, %v14267_v42 }
 0x251   :  { %21828 = vst [vmem:[#allocation110_spill] sm:$0xff] %v14272_v56  ;;  %v3109_v54 = vadd.f32 %v3108_v34, %v2854_v26  ;;  %v2592_v50 = vadd.f32 %v2591_v32, %v14272_v56  ;;  %v2855_v40 = vmul.f32 %v14272_v56, %v14272_v56 }
 0x252   :  { %11699 = vmatmul.mubr.msk.bf16.gmra.mrb[248].mxu0 %vm1002_vm2, %v12372_v47  ;;  %v12374_v47 = vld [vmem:[%s21201_s0 + $0x3f8] sm:$0xff]  }
 0x253   :  { %v2593_v23 = vadd.f32 %v14257_v24, %v2592_v50  ;;  %v3110_v10 = vadd.f32 %v3109_v54, %v2855_v40  ;;  %11702 = vmatprep.mubr.msk.bf16.mxu0 %vm1002_vm2, %v12373_v41 }
 0x255   :  { %v2594_v34 = vadd.f32 %v14267_v42, %v2593_v23  ;;  %v3111_v26 = vadd.f32 %v3110_v10, %v2856_v8  ;;  %v14285_v32 = vpop.f32.mrb[144].mxu0 }
 0x256   :  { %21829 = vst [vmem:[#allocation111_spill] sm:$0xff] %v14285_v32  ;;  %v14287_v16 = vpop.f32.mrb[145].mxu0 }
 0x257   :  { %21830 = vst [vmem:[#allocation112_spill] sm:$0xff] %v14287_v16  ;;  %v3112_v56 = vadd.f32 %v3111_v26, %v2857_v4  ;;  %v2595_v50 = vadd.f32 %v2594_v34, %v14287_v16  ;;  %v2858_v40 = vmul.f32 %v14287_v16, %v14287_v16  ;;  %v14295_v41 = vpop.f32.mrb[146].mxu0  ;;  %v2860_v4 = vmul.f32 %v14285_v32, %v14285_v32 }
 0x258   :  { %21831 = vst [vmem:[#allocation113_spill] sm:$0xff] %v14295_v41  ;;  %v14297_v54 = vpop.f32.mrb[147].mxu0  ;;  %v2861_v16 = vmul.f32 %v14295_v41, %v14295_v41 }
 0x259   :  { %21832 = vst [vmem:[#allocation114_spill] sm:$0xff] %v14297_v54  ;;  %v3113_v23 = vadd.f32 %v3112_v56, %v2858_v40  ;;  %v2596_v8 = vadd.f32 %v2595_v50, %v14297_v54  ;;  %v2859_v10 = vmul.f32 %v14297_v54, %v14297_v54 }
 0x25a   :  { %11703 = vmatmul.mubr.msk.bf16.gmra.mrb[252].mxu0 %vm1002_vm2, %v12374_v47 }
 0x25b   :  { %v2597_v34 = vadd.f32 %v14285_v32, %v2596_v8  ;;  %v3114_v26 = vadd.f32 %v3113_v23, %v2859_v10 }
 0x25d   :  { %v2598_v42 = vadd.f32 %v14295_v41, %v2597_v34  ;;  %v3115_v24 = vadd.f32 %v3114_v26, %v2860_v4  ;;  %v14309_v56 = vpop.f32.mrb[148].mxu0 }
 0x25e   :  { %21833 = vst [vmem:[#allocation115_spill] sm:$0xff] %v14309_v56  ;;  %v14311_v50 = vpop.f32.mrb[149].mxu0  ;;  %v2864_v34 = vmul.f32 %v14309_v56, %v14309_v56 }
 0x25f   :  { %21834 = vst [vmem:[#allocation116_spill] sm:$0xff] %v14311_v50  ;;  %v3116_v40 = vadd.f32 %v3115_v24, %v2861_v16  ;;  %v2599_v54 = vadd.f32 %v2598_v42, %v14311_v50  ;;  %v2862_v47 = vmul.f32 %v14311_v50, %v14311_v50  ;;  %v14316_v3 = vpop.f32.mrb[150].mxu0 }
 0x260   :  { %21835 = vst [vmem:[#allocation117_spill] sm:$0xff] %v14316_v3  ;;  %v14318_v8 = vpop.f32.mrb[151].mxu0  ;;  %v2865_v42 = vmul.f32 %v14316_v3, %v14316_v3 }
 0x261   :  { %21836 = vst [vmem:[#allocation118_spill] sm:$0xff] %v14318_v8  ;;  %v3117_v23 = vadd.f32 %v3116_v40, %v2862_v47  ;;  %v2600_v10 = vadd.f32 %v2599_v54, %v14318_v8  ;;  %v2863_v4 = vmul.f32 %v14318_v8, %v14318_v8 }
 0x263   :  { %v2601_v16 = vadd.f32 %v14309_v56, %v2600_v10  ;;  %v3118_v24 = vadd.f32 %v3117_v23, %v2863_v4 }
 0x265   :  { %v2602_v26 = vadd.f32 %v14316_v3, %v2601_v16  ;;  %v3119_v50 = vadd.f32 %v3118_v24, %v2864_v34  ;;  %v14329_v41 = vpop.f32.mrb[152].mxu0 }
 0x266   :  { %21837 = vst [vmem:[#allocation119_spill] sm:$0xff] %v14329_v41  ;;  %v14331_v40 = vpop.f32.mrb[153].mxu0  ;;  %v2868_v16 = vmul.f32 %v14329_v41, %v14329_v41 }
 0x267   :  { %21838 = vst [vmem:[#allocation120_spill] sm:$0xff] %v14331_v40  ;;  %v3120_v54 = vadd.f32 %v3119_v50, %v2865_v42  ;;  %v2603_v47 = vadd.f32 %v2602_v26, %v14331_v40  ;;  %v2866_v8 = vmul.f32 %v14331_v40, %v14331_v40  ;;  %v14336_v32 = vpop.f32.mrb[154].mxu0 }
 0x268   :  { %21839 = vst [vmem:[#allocation121_spill] sm:$0xff] %v14336_v32  ;;  %v14338_v10 = vpop.f32.mrb[155].mxu0  ;;  %v2869_v42 = vmul.f32 %v14336_v32, %v14336_v32 }
 0x269   :  { %21840 = vst [vmem:[#allocation122_spill] sm:$0xff] %v14338_v10  ;;  %v3121_v23 = vadd.f32 %v3120_v54, %v2866_v8  ;;  %v2604_v4 = vadd.f32 %v2603_v47, %v14338_v10  ;;  %v2867_v34 = vmul.f32 %v14338_v10, %v14338_v10 }
 0x26b   :  { %v2605_v50 = vadd.f32 %v14329_v41, %v2604_v4  ;;  %v3122_v24 = vadd.f32 %v3121_v23, %v2867_v34 }
 0x26d   :  { %v2606_v26 = vadd.f32 %v14336_v32, %v2605_v50  ;;  %v3123_v40 = vadd.f32 %v3122_v24, %v2868_v16  ;;  %v14349_v3 = vpop.f32.mrb[156].mxu0 }
 0x26e   :  { %21841 = vst [vmem:[#allocation123_spill] sm:$0xff] %v14349_v3  ;;  %v14351_v8 = vpop.f32.mrb[157].mxu0  ;;  %v2872_v50 = vmul.f32 %v14349_v3, %v14349_v3 }
 0x26f   :  { %21842 = vst [vmem:[#allocation124_spill] sm:$0xff] %v14351_v8  ;;  %v3124_v54 = vadd.f32 %v3123_v40, %v2869_v42  ;;  %v2607_v47 = vadd.f32 %v2606_v26, %v14351_v8  ;;  %v2870_v10 = vmul.f32 %v14351_v8, %v14351_v8  ;;  %v14356_v56 = vpop.f32.mrb[158].mxu0 }
 0x270   :  { %21843 = vst [vmem:[#allocation125_spill] sm:$0xff] %v14356_v56  ;;  %v14358_v4 = vpop.f32.mrb[159].mxu0  ;;  %v2873_v42 = vmul.f32 %v14356_v56, %v14356_v56 }
 0x271   :  { %21844 = vst [vmem:[#allocation126_spill] sm:$0xff] %v14358_v4  ;;  %v3125_v23 = vadd.f32 %v3124_v54, %v2870_v10  ;;  %v2608_v34 = vadd.f32 %v2607_v47, %v14358_v4  ;;  %v2871_v16 = vmul.f32 %v14358_v4, %v14358_v4 }
 0x273   :  { %v2609_v40 = vadd.f32 %v14349_v3, %v2608_v34  ;;  %v3126_v24 = vadd.f32 %v3125_v23, %v2871_v16 }
 0x275   :  { %v2610_v26 = vadd.f32 %v14356_v56, %v2609_v40  ;;  %v3127_v8 = vadd.f32 %v3126_v24, %v2872_v50  ;;  %v14369_v32 = vpop.f32.mrb[160].mxu0 }
 0x276   :  { %21845 = vst [vmem:[#allocation127_spill] sm:$0xff] %v14369_v32  ;;  %v14371_v10 = vpop.f32.mrb[161].mxu0  ;;  %v2876_v40 = vmul.f32 %v14369_v32, %v14369_v32 }
 0x277   :  { %21846 = vst [vmem:[#allocation128_spill] sm:$0xff] %v14371_v10  ;;  %v3128_v54 = vadd.f32 %v3127_v8, %v2873_v42  ;;  %v2611_v47 = vadd.f32 %v2610_v26, %v14371_v10  ;;  %v2874_v4 = vmul.f32 %v14371_v10, %v14371_v10  ;;  %v14376_v41 = vpop.f32.mrb[162].mxu0 }
 0x278   :  { %21847 = vst [vmem:[#allocation129_spill] sm:$0xff] %v14376_v41  ;;  %v14378_v34 = vpop.f32.mrb[163].mxu0  ;;  %v2877_v42 = vmul.f32 %v14376_v41, %v14376_v41 }
 0x279   :  { %21848 = vst [vmem:[#allocation130_spill] sm:$0xff] %v14378_v34  ;;  %v3129_v23 = vadd.f32 %v3128_v54, %v2874_v4  ;;  %v2612_v16 = vadd.f32 %v2611_v47, %v14378_v34  ;;  %v2875_v50 = vmul.f32 %v14378_v34, %v14378_v34 }
 0x27b   :  { %v2613_v8 = vadd.f32 %v14369_v32, %v2612_v16  ;;  %v3130_v24 = vadd.f32 %v3129_v23, %v2875_v50 }
 0x27d   :  { %v2614_v26 = vadd.f32 %v14376_v41, %v2613_v8  ;;  %v3131_v10 = vadd.f32 %v3130_v24, %v2876_v40  ;;  %v14389_v56 = vpop.f32.mrb[164].mxu0 }
 0x27e   :  { %21849 = vst [vmem:[#allocation131_spill] sm:$0xff] %v14389_v56  ;;  %v14391_v4 = vpop.f32.mrb[165].mxu0  ;;  %v2880_v8 = vmul.f32 %v14389_v56, %v14389_v56 }
 0x27f   :  { %21850 = vst [vmem:[#allocation132_spill] sm:$0xff] %v14391_v4  ;;  %v3132_v54 = vadd.f32 %v3131_v10, %v2877_v42  ;;  %v2615_v47 = vadd.f32 %v2614_v26, %v14391_v4  ;;  %v2878_v34 = vmul.f32 %v14391_v4, %v14391_v4  ;;  %v14396_v3 = vpop.f32.mrb[166].mxu0 }
 0x280   :  { %21851 = vst [vmem:[#allocation133_spill] sm:$0xff] %v14396_v3  ;;  %v14398_v16 = vpop.f32.mrb[167].mxu0  ;;  %v2881_v42 = vmul.f32 %v14396_v3, %v14396_v3 }
 0x281   :  { %21852 = vst [vmem:[#allocation134_spill] sm:$0xff] %v14398_v16  ;;  %v3133_v23 = vadd.f32 %v3132_v54, %v2878_v34  ;;  %v2616_v50 = vadd.f32 %v2615_v47, %v14398_v16  ;;  %v2879_v40 = vmul.f32 %v14398_v16, %v14398_v16 }
 0x283   :  { %v2617_v10 = vadd.f32 %v14389_v56, %v2616_v50  ;;  %v3134_v24 = vadd.f32 %v3133_v23, %v2879_v40  ;;  %v12375_v23 = vld [vmem:[%s21203_s2] sm:$0xff]  }
 0x285   :  { %v2618_v26 = vadd.f32 %v14396_v3, %v2617_v10  ;;  %v3135_v4 = vadd.f32 %v3134_v24, %v2880_v8  ;;  %v14409_v41 = vpop.f32.mrb[168].mxu0 }
 0x286   :  { %21853 = vst [vmem:[#allocation135_spill] sm:$0xff] %v14409_v41  ;;  %v14411_v34 = vpop.f32.mrb[169].mxu0  ;;  %v2884_v24 = vmul.f32 %v14409_v41, %v14409_v41 }
 0x287   :  { %21854 = vst [vmem:[#allocation136_spill] sm:$0xff] %v14411_v34  ;;  %v3136_v54 = vadd.f32 %v3135_v4, %v2881_v42  ;;  %v2619_v47 = vadd.f32 %v2618_v26, %v14411_v34  ;;  %v2882_v16 = vmul.f32 %v14411_v34, %v14411_v34  ;;  %v14416_v32 = vpop.f32.mrb[170].mxu0  ;;  %v21350_v4 = vmov 0  }
 0x288   :  { %21855 = vst [vmem:[#allocation137_spill] sm:$0xff] %v14416_v32  ;;  %v14418_v50 = vpop.f32.mrb[171].mxu0  ;;  %5048 = vmatprep.subr.bf16.mxu1 %v21350_v4 }
 0x289   :  { %21856 = vst [vmem:[#allocation138_spill] sm:$0xff] %v14418_v50  ;;  %v3137_v40 = vadd.f32 %v3136_v54, %v2882_v16  ;;  %v2620_v8 = vadd.f32 %v2619_v47, %v14418_v50  ;;  %v2883_v10 = vmul.f32 %v14418_v50, %v14418_v50  ;;  %5049 = vmatpush1.bf16.msra.mxu1 %v12375_v23  ;;  %v12376_v16 = vld [vmem:[%s21203_s2 + $0x8] sm:$0xff]  }
 0x28a   :  { %5050 = vmatprep.subr.bf16.mxu1 %v21350_v4  ;;  %v2885_v54 = vmul.f32 %v14416_v32, %v14416_v32 }
 0x28b   :  { %v2621_v42 = vadd.f32 %v14409_v41, %v2620_v8  ;;  %v3138_v26 = vadd.f32 %v3137_v40, %v2883_v10 }
 0x28d   :  { %v2622_v47 = vadd.f32 %v14416_v32, %v2621_v42  ;;  %v3139_v50 = vadd.f32 %v3138_v26, %v2884_v24  ;;  %v14437_v34 = vpop.f32.mrb[172].mxu0  ;;  %5051 = vmatpush1.bf16.msra.mxu1 %v12376_v16  ;;  %v12377_v24 = vld [vmem:[%s21203_s2 + $0x10] sm:$0xff]  }
 0x28e   :  { %21857 = vst [vmem:[#allocation139_spill] sm:$0xff] %v14437_v34  ;;  %v14439_v23 = vpop.f32.mrb[173].mxu0  ;;  %5052 = vmatprep.subr.bf16.mxu1 %v21350_v4  ;;  %v2888_v16 = vmul.f32 %v14437_v34, %v14437_v34 }
 0x28f   :  { %21858 = vst [vmem:[#allocation140_spill] sm:$0xff] %v14439_v23  ;;  %v3140_v3 = vadd.f32 %v3139_v50, %v2885_v54  ;;  %v2623_v40 = vadd.f32 %v2622_v47, %v14439_v23  ;;  %v2886_v8 = vmul.f32 %v14439_v23, %v14439_v23  ;;  %v14444_v10 = vpop.f32.mrb[174].mxu0  ;;  %v12378_v23 = vld [vmem:[%s21203_s2 + $0x18] sm:$0xff]  }
 0x290   :  { %21859 = vst [vmem:[#allocation141_spill] sm:$0xff] %v14444_v10  ;;  %v14447_v41 = vpop.f32.mrb[175].mxu0 }
 0x291   :  { %21860 = vst [vmem:[#allocation142_spill] sm:$0xff] %v14447_v41  ;;  %v3141_v42 = vadd.f32 %v3140_v3, %v2886_v8  ;;  %v2624_v26 = vadd.f32 %v2623_v40, %v14447_v41  ;;  %v2887_v50 = vmul.f32 %v14447_v41, %v14447_v41  ;;  %5053 = vmatpush1.bf16.msra.mxu1 %v12377_v24 }
 0x292   :  { %5054 = vmatprep.subr.bf16.mxu1 %v21350_v4  ;;  %v2889_v3 = vmul.f32 %v14444_v10, %v14444_v10 }
 0x293   :  { %v2625_v54 = vadd.f32 %v14437_v34, %v2624_v26  ;;  %v3142_v47 = vadd.f32 %v3141_v42, %v2887_v50 }
 0x295   :  { %v2626_v40 = vadd.f32 %v14444_v10, %v2625_v54  ;;  %v3143_v8 = vadd.f32 %v3142_v47, %v2888_v16  ;;  %v14465_v41 = vpop.f32.mrb[176].mxu0  ;;  %5055 = vmatpush1.bf16.msra.mxu1 %v12378_v23  ;;  %v12379_v16 = vld [vmem:[%s21203_s2 + $0x20] sm:$0xff]  }
 0x296   :  { %21861 = vst [vmem:[#allocation143_spill] sm:$0xff] %v14465_v41  ;;  %v14467_v24 = vpop.f32.mrb[177].mxu0  ;;  %5056 = vmatprep.subr.bf16.mxu1 %v21350_v4 }
 0x297   :  { %21862 = vst [vmem:[#allocation144_spill] sm:$0xff] %v14467_v24  ;;  %v3144_v32 = vadd.f32 %v3143_v8, %v2889_v3  ;;  %v2627_v42 = vadd.f32 %v2626_v40, %v14467_v24  ;;  %v2890_v26 = vmul.f32 %v14467_v24, %v14467_v24  ;;  %v14472_v50 = vpop.f32.mrb[178].mxu0  ;;  %v2892_v3 = vmul.f32 %v14465_v41, %v14465_v41  ;;  %v12380_v24 = vld [vmem:[%s21203_s2 + $0x28] sm:$0xff]  }
 0x298   :  { %21863 = vst [vmem:[#allocation145_spill] sm:$0xff] %v14472_v50  ;;  %v14475_v34 = vpop.f32.mrb[179].mxu0 }
 0x299   :  { %21864 = vst [vmem:[#allocation146_spill] sm:$0xff] %v14475_v34  ;;  %v3145_v54 = vadd.f32 %v3144_v32, %v2890_v26  ;;  %v2628_v47 = vadd.f32 %v2627_v42, %v14475_v34  ;;  %v2891_v23 = vmul.f32 %v14475_v34, %v14475_v34  ;;  %5057 = vmatpush1.bf16.msra.mxu1 %v12379_v16 }
 0x29a   :  { %5058 = vmatprep.subr.bf16.mxu1 %v21350_v4  ;;  %v2893_v32 = vmul.f32 %v14472_v50, %v14472_v50 }
 0x29b   :  { %v2629_v40 = vadd.f32 %v14465_v41, %v2628_v47  ;;  %v3146_v8 = vadd.f32 %v3145_v54, %v2891_v23 }
 0x29d   :  { %v2630_v42 = vadd.f32 %v14472_v50, %v2629_v40  ;;  %v3147_v26 = vadd.f32 %v3146_v8, %v2892_v3  ;;  %v14493_v34 = vpop.f32.mrb[180].mxu0  ;;  %5059 = vmatpush1.bf16.msra.mxu1 %v12380_v24  ;;  %v12381_v3 = vld [vmem:[%s21203_s2 + $0x30] sm:$0xff]  }
 0x29e   :  { %21865 = vst [vmem:[#allocation147_spill] sm:$0xff] %v14493_v34  ;;  %v14495_v16 = vpop.f32.mrb[181].mxu0  ;;  %5060 = vmatprep.subr.bf16.mxu1 %v21350_v4 }
 0x29f   :  { %21866 = vst [vmem:[#allocation148_spill] sm:$0xff] %v14495_v16  ;;  %v3148_v10 = vadd.f32 %v3147_v26, %v2893_v32  ;;  %v2631_v54 = vadd.f32 %v2630_v42, %v14495_v16  ;;  %v2894_v47 = vmul.f32 %v14495_v16, %v14495_v16  ;;  %v14500_v23 = vpop.f32.mrb[182].mxu0  ;;  %v2896_v32 = vmul.f32 %v14493_v34, %v14493_v34  ;;  %v12382_v16 = vld [vmem:[%s21203_s2 + $0x38] sm:$0xff]  }
 0x2a0   :  { %21867 = vst [vmem:[#allocation149_spill] sm:$0xff] %v14500_v23  ;;  %v14503_v41 = vpop.f32.mrb[183].mxu0 }
 0x2a1   :  { %21868 = vst [vmem:[#allocation150_spill] sm:$0xff] %v14503_v41  ;;  %v3149_v40 = vadd.f32 %v3148_v10, %v2894_v47  ;;  %v2632_v8 = vadd.f32 %v2631_v54, %v14503_v41  ;;  %v2895_v24 = vmul.f32 %v14503_v41, %v14503_v41  ;;  %5061 = vmatpush1.bf16.msra.mxu1 %v12381_v3 }
 0x2a2   :  { %5062 = vmatprep.subr.bf16.mxu1 %v21350_v4  ;;  %v2897_v10 = vmul.f32 %v14500_v23, %v14500_v23 }
 0x2a3   :  { %v2633_v42 = vadd.f32 %v14493_v34, %v2632_v8  ;;  %v3150_v26 = vadd.f32 %v3149_v40, %v2895_v24 }
 0x2a5   :  { %v2634_v54 = vadd.f32 %v14500_v23, %v2633_v42  ;;  %v3151_v47 = vadd.f32 %v3150_v26, %v2896_v32  ;;  %v14521_v41 = vpop.f32.mrb[184].mxu0  ;;  %5063 = vmatpush1.bf16.msra.mxu1 %v12382_v16  ;;  %v12383_v32 = vld [vmem:[%s21203_s2 + $0x40] sm:$0xff]  }
 0x2a6   :  { %21869 = vst [vmem:[#allocation151_spill] sm:$0xff] %v14521_v41  ;;  %v14523_v3 = vpop.f32.mrb[185].mxu0  ;;  %5064 = vmatprep.subr.bf16.mxu1 %v21350_v4 }
 0x2a7   :  { %21870 = vst [vmem:[#allocation152_spill] sm:$0xff] %v14523_v3  ;;  %v3152_v50 = vadd.f32 %v3151_v47, %v2897_v10  ;;  %v2635_v40 = vadd.f32 %v2634_v54, %v14523_v3  ;;  %v2898_v8 = vmul.f32 %v14523_v3, %v14523_v3  ;;  %v14528_v24 = vpop.f32.mrb[186].mxu0  ;;  %v2900_v10 = vmul.f32 %v14521_v41, %v14521_v41  ;;  %v12384_v3 = vld [vmem:[%s21203_s2 + $0x48] sm:$0xff]  }
 0x2a8   :  { %21871 = vst [vmem:[#allocation153_spill] sm:$0xff] %v14528_v24  ;;  %v14531_v34 = vpop.f32.mrb[187].mxu0 }
 0x2a9   :  { %21872 = vst [vmem:[#allocation154_spill] sm:$0xff] %v14531_v34  ;;  %v3153_v42 = vadd.f32 %v3152_v50, %v2898_v8  ;;  %v2636_v26 = vadd.f32 %v2635_v40, %v14531_v34  ;;  %v2899_v16 = vmul.f32 %v14531_v34, %v14531_v34  ;;  %5065 = vmatpush1.bf16.msra.mxu1 %v12383_v32 }
 0x2aa   :  { %5066 = vmatprep.subr.bf16.mxu1 %v21350_v4  ;;  %v2901_v50 = vmul.f32 %v14528_v24, %v14528_v24 }
 0x2ab   :  { %v2637_v54 = vadd.f32 %v14521_v41, %v2636_v26  ;;  %v3154_v47 = vadd.f32 %v3153_v42, %v2899_v16  ;;  %v21876_v41 = vmov 0  }
 0x2ad   :  { %v3155_v40 = vadd.f32 %v3154_v47, %v2900_v10  ;;  %v14548_v8 = vpop.f32.mrb[188].mxu0  ;;  %v2638_v32 = vadd.f32 %v14528_v24, %v2637_v54  ;;  %5067 = vmatpush1.bf16.msra.mxu1 %v12384_v3 }
 0x2ae   :  { %21873 = vst [vmem:[#allocation155_spill] sm:$0xff] %v14548_v8  ;;  %v14551_v34 = vpop.f32.mrb[189].mxu0  ;;  %5068 = vmatprep.subr.bf16.mxu1 %v21876_v41  ;;  %v2904_v3 = vmul.f32 %v14548_v8, %v14548_v8 }
 0x2af   :  { %21874 = vst [vmem:[#allocation156_spill] sm:$0xff] %v14551_v34  ;;  %v2639_v26 = vadd.f32 %v2638_v32, %v14551_v34  ;;  %v2902_v42 = vmul.f32 %v14551_v34, %v14551_v34  ;;  %v3156_v16 = vadd.f32 %v3155_v40, %v2901_v50  ;;  %v14556_v4 = vpop.f32.mrb[190].mxu0 }
 0x2b0   :  { %21875 = vst [vmem:[#allocation157_spill] sm:$0xff] %v14556_v4  ;;  %v14559_v23 = vpop.f32.mrb[191].mxu0  ;;  %v2905_v50 = vmul.f32 %v14556_v4, %v14556_v4 }
 0x2b1   :  { %21877 = vst [vmem:[#allocation158_spill] sm:$0xff] %v14559_v23  ;;  %v3157_v10 = vadd.f32 %v3156_v16, %v2902_v42  ;;  %v2640_v47 = vadd.f32 %v2639_v26, %v14559_v23  ;;  %v2903_v54 = vmul.f32 %v14559_v23, %v14559_v23 }
 0x2b3   :  { %v2641_v32 = vadd.f32 %v14548_v8, %v2640_v47  ;;  %v3158_v24 = vadd.f32 %v3157_v10, %v2903_v54 }
 0x2b5   :  { %v3159_v40 = vadd.f32 %v3158_v24, %v2904_v3  ;;  %v14569_v34 = vpop.f32.mrb[192].mxu0  ;;  %v2642_v56 = vadd.f32 %v14556_v4, %v2641_v32 }
 0x2b6   :  { %21878 = vst [vmem:[#allocation159_spill] sm:$0xff] %v14569_v34  ;;  %v14572_v42 = vpop.f32.mrb[193].mxu0  ;;  %v2908_v3 = vmul.f32 %v14569_v34, %v14569_v34 }
 0x2b7   :  { %21879 = vst [vmem:[#allocation160_spill] sm:$0xff] %v14572_v42  ;;  %v2643_v26 = vadd.f32 %v2642_v56, %v14572_v42  ;;  %v2906_v16 = vmul.f32 %v14572_v42, %v14572_v42  ;;  %v3160_v23 = vadd.f32 %v3159_v40, %v2905_v50  ;;  %v14577_v43 = vpop.f32.mrb[194].mxu0 }
 0x2b8   :  { %21880 = vst [vmem:[#allocation161_spill] sm:$0xff] %v14577_v43  ;;  %v14579_v47 = vpop.f32.mrb[195].mxu0  ;;  %v2909_v42 = vmul.f32 %v14577_v43, %v14577_v43 }
 0x2b9   :  { %21881 = vst [vmem:[#allocation162_spill] sm:$0xff] %v14579_v47  ;;  %v3161_v10 = vadd.f32 %v3160_v23, %v2906_v16  ;;  %v2644_v54 = vadd.f32 %v2643_v26, %v14579_v47  ;;  %v2907_v24 = vmul.f32 %v14579_v47, %v14579_v47 }
 0x2bb   :  { %v2645_v32 = vadd.f32 %v14569_v34, %v2644_v54  ;;  %v3162_v56 = vadd.f32 %v3161_v10, %v2907_v24 }
 0x2bd   :  { %v3163_v50 = vadd.f32 %v3162_v56, %v2908_v3  ;;  %v14589_v40 = vpop.f32.mrb[196].mxu0  ;;  %v2646_v4 = vadd.f32 %v14577_v43, %v2645_v32 }
 0x2be   :  { %21882 = vst [vmem:[#allocation163_spill] sm:$0xff] %v14589_v40  ;;  %v14592_v23 = vpop.f32.mrb[197].mxu0  ;;  %v2912_v32 = vmul.f32 %v14589_v40, %v14589_v40 }
 0x2bf   :  { %21883 = vst [vmem:[#allocation164_spill] sm:$0xff] %v14592_v23  ;;  %v2647_v26 = vadd.f32 %v2646_v4, %v14592_v23  ;;  %v2910_v16 = vmul.f32 %v14592_v23, %v14592_v23  ;;  %v3164_v47 = vadd.f32 %v3163_v50, %v2909_v42  ;;  %v14597_v8 = vpop.f32.mrb[198].mxu0 }
 0x2c0   :  { %21884 = vst [vmem:[#allocation165_spill] sm:$0xff] %v14597_v8  ;;  %v14599_v54 = vpop.f32.mrb[199].mxu0  ;;  %v2913_v23 = vmul.f32 %v14597_v8, %v14597_v8 }
 0x2c1   :  { %21885 = vst [vmem:[#allocation166_spill] sm:$0xff] %v14599_v54  ;;  %v3165_v10 = vadd.f32 %v3164_v47, %v2910_v16  ;;  %v2648_v24 = vadd.f32 %v2647_v26, %v14599_v54  ;;  %v2911_v3 = vmul.f32 %v14599_v54, %v14599_v54 }
 0x2c3   :  { %v2649_v56 = vadd.f32 %v14589_v40, %v2648_v24  ;;  %v3166_v4 = vadd.f32 %v3165_v10, %v2911_v3 }
 0x2c5   :  { %v3167_v42 = vadd.f32 %v3166_v4, %v2912_v32  ;;  %v14609_v50 = vpop.f32.mrb[200].mxu0  ;;  %v2650_v43 = vadd.f32 %v14597_v8, %v2649_v56 }
 0x2c6   :  { %21886 = vst [vmem:[#allocation167_spill] sm:$0xff] %v14609_v50  ;;  %v14612_v47 = vpop.f32.mrb[201].mxu0  ;;  %v2916_v56 = vmul.f32 %v14609_v50, %v14609_v50 }
 0x2c7   :  { %21887 = vst [vmem:[#allocation168_spill] sm:$0xff] %v14612_v47  ;;  %v2651_v26 = vadd.f32 %v2650_v43, %v14612_v47  ;;  %v2914_v16 = vmul.f32 %v14612_v47, %v14612_v47  ;;  %v3168_v54 = vadd.f32 %v3167_v42, %v2913_v23  ;;  %v14617_v34 = vpop.f32.mrb[202].mxu0 }
 0x2c8   :  { %21888 = vst [vmem:[#allocation169_spill] sm:$0xff] %v14617_v34  ;;  %v14619_v24 = vpop.f32.mrb[203].mxu0  ;;  %v2917_v47 = vmul.f32 %v14617_v34, %v14617_v34 }
 0x2c9   :  { %21889 = vst [vmem:[#allocation170_spill] sm:$0xff] %v14619_v24  ;;  %v3169_v10 = vadd.f32 %v3168_v54, %v2914_v16  ;;  %v2652_v3 = vadd.f32 %v2651_v26, %v14619_v24  ;;  %v2915_v32 = vmul.f32 %v14619_v24, %v14619_v24 }
 0x2cb   :  { %v2653_v4 = vadd.f32 %v14609_v50, %v2652_v3  ;;  %v3170_v43 = vadd.f32 %v3169_v10, %v2915_v32 }
 0x2cd   :  { %v3171_v23 = vadd.f32 %v3170_v43, %v2916_v56  ;;  %v14629_v42 = vpop.f32.mrb[204].mxu0  ;;  %v2654_v8 = vadd.f32 %v14617_v34, %v2653_v4 }
 0x2ce   :  { %21890 = vst [vmem:[#allocation171_spill] sm:$0xff] %v14629_v42  ;;  %v14632_v54 = vpop.f32.mrb[205].mxu0  ;;  %v2920_v4 = vmul.f32 %v14629_v42, %v14629_v42 }
 0x2cf   :  { %21891 = vst [vmem:[#allocation172_spill] sm:$0xff] %v14632_v54  ;;  %v2655_v26 = vadd.f32 %v2654_v8, %v14632_v54  ;;  %v2918_v16 = vmul.f32 %v14632_v54, %v14632_v54  ;;  %v3172_v24 = vadd.f32 %v3171_v23, %v2917_v47  ;;  %v14637_v40 = vpop.f32.mrb[206].mxu0 }
 0x2d0   :  { %21892 = vst [vmem:[#allocation173_spill] sm:$0xff] %v14637_v40  ;;  %v14639_v3 = vpop.f32.mrb[207].mxu0  ;;  %v2921_v54 = vmul.f32 %v14637_v40, %v14637_v40 }
 0x2d1   :  { %21893 = vst [vmem:[#allocation174_spill] sm:$0xff] %v14639_v3  ;;  %v3173_v10 = vadd.f32 %v3172_v24, %v2918_v16  ;;  %v2656_v32 = vadd.f32 %v2655_v26, %v14639_v3  ;;  %v2919_v56 = vmul.f32 %v14639_v3, %v14639_v3 }
 0x2d3   :  { %v2657_v43 = vadd.f32 %v14629_v42, %v2656_v32  ;;  %v3174_v8 = vadd.f32 %v3173_v10, %v2919_v56 }
 0x2d5   :  { %v2658_v47 = vadd.f32 %v14637_v40, %v2657_v43  ;;  %v3175_v23 = vadd.f32 %v3174_v8, %v2920_v4  ;;  %v14650_v34 = vpop.f32.mrb[208].mxu0 }
 0x2d6   :  { %21894 = vst [vmem:[#allocation175_spill] sm:$0xff] %v14650_v34  ;;  %v14652_v24 = vpop.f32.mrb[209].mxu0 }
 0x2d7   :  { %21895 = vst [vmem:[#allocation176_spill] sm:$0xff] %v14652_v24  ;;  %v3176_v26 = vadd.f32 %v3175_v23, %v2921_v54  ;;  %v14654_v16 = vpop.f32.mrb[210].mxu0  ;;  %v2659_v3 = vadd.f32 %v2658_v47, %v14652_v24  ;;  %v2922_v50 = vmul.f32 %v14652_v24, %v14652_v24  ;;  %v2924_v54 = vmul.f32 %v14650_v34, %v14650_v34 }
 0x2d8   :  { %21896 = vst [vmem:[#allocation177_spill] sm:$0xff] %v14654_v16  ;;  %v14659_v32 = vpop.f32.mrb[211].mxu0  ;;  %v2925_v24 = vmul.f32 %v14654_v16, %v14654_v16 }
 0x2d9   :  { %21897 = vst [vmem:[#allocation178_spill] sm:$0xff] %v14659_v32  ;;  %v2660_v10 = vadd.f32 %v2659_v3, %v14659_v32  ;;  %v2923_v56 = vmul.f32 %v14659_v32, %v14659_v32  ;;  %v3177_v4 = vadd.f32 %v3176_v26, %v2922_v50 }
 0x2db   :  { %v2661_v43 = vadd.f32 %v14650_v34, %v2660_v10  ;;  %v3178_v8 = vadd.f32 %v3177_v4, %v2923_v56 }
 0x2dd   :  { %v14667_v23 = vpop.f32.mrb[212].mxu0  ;;  %v2662_v47 = vadd.f32 %v14654_v16, %v2661_v43  ;;  %v3179_v40 = vadd.f32 %v3178_v8, %v2924_v54 }
 0x2de   :  { %21898 = vst [vmem:[#allocation179_spill] sm:$0xff] %v14667_v23  ;;  %v14672_v42 = vpop.f32.mrb[213].mxu0  ;;  %v2928_v8 = vmul.f32 %v14667_v23, %v14667_v23 }
 0x2df   :  { %21899 = vst [vmem:[#allocation180_spill] sm:$0xff] %v14672_v42  ;;  %v14674_v3 = vpop.f32.mrb[214].mxu0  ;;  %v2663_v50 = vadd.f32 %v2662_v47, %v14672_v42  ;;  %v2926_v26 = vmul.f32 %v14672_v42, %v14672_v42  ;;  %v3180_v10 = vadd.f32 %v3179_v40, %v2925_v24 }
 0x2e0   :  { %21900 = vst [vmem:[#allocation181_spill] sm:$0xff] %v14674_v3  ;;  %v14679_v34 = vpop.f32.mrb[215].mxu0  ;;  %v2929_v40 = vmul.f32 %v14674_v3, %v14674_v3 }
 0x2e1   :  { %21901 = vst [vmem:[#allocation182_spill] sm:$0xff] %v14679_v34  ;;  %v2664_v56 = vadd.f32 %v2663_v50, %v14679_v34  ;;  %v2927_v4 = vmul.f32 %v14679_v34, %v14679_v34  ;;  %v3181_v43 = vadd.f32 %v3180_v10, %v2926_v26 }
 0x2e3   :  { %v2665_v54 = vadd.f32 %v14667_v23, %v2664_v56  ;;  %v3182_v16 = vadd.f32 %v3181_v43, %v2927_v4 }
 0x2e5   :  { %v14687_v32 = vpop.f32.mrb[216].mxu0  ;;  %v2666_v47 = vadd.f32 %v14674_v3, %v2665_v54  ;;  %v3183_v24 = vadd.f32 %v3182_v16, %v2928_v8 }
 0x2e6   :  { %21902 = vst [vmem:[#allocation183_spill] sm:$0xff] %v14687_v32  ;;  %v14692_v42 = vpop.f32.mrb[217].mxu0  ;;  %v2932_v16 = vmul.f32 %v14687_v32, %v14687_v32 }
 0x2e7   :  { %21903 = vst [vmem:[#allocation184_spill] sm:$0xff] %v14692_v42  ;;  %v2667_v50 = vadd.f32 %v2666_v47, %v14692_v42  ;;  %v2930_v26 = vmul.f32 %v14692_v42, %v14692_v42  ;;  %v3184_v10 = vadd.f32 %v3183_v24, %v2929_v40  ;;  %v14697_v56 = vpop.f32.mrb[218].mxu0 }
 0x2e8   :  { %21904 = vst [vmem:[#allocation185_spill] sm:$0xff] %v14697_v56  ;;  %v14699_v23 = vpop.f32.mrb[219].mxu0  ;;  %v2933_v42 = vmul.f32 %v14697_v56, %v14697_v56 }
 0x2e9   :  { %21905 = vst [vmem:[#allocation186_spill] sm:$0xff] %v14699_v23  ;;  %v3185_v4 = vadd.f32 %v3184_v10, %v2930_v26  ;;  %v2668_v43 = vadd.f32 %v2667_v50, %v14699_v23  ;;  %v2931_v54 = vmul.f32 %v14699_v23, %v14699_v23 }
 0x2eb   :  { %v2669_v8 = vadd.f32 %v14687_v32, %v2668_v43  ;;  %v3186_v47 = vadd.f32 %v3185_v4, %v2931_v54 }
 0x2ed   :  { %v3187_v40 = vadd.f32 %v3186_v47, %v2932_v16  ;;  %v14709_v24 = vpop.f32.mrb[220].mxu0  ;;  %v2670_v3 = vadd.f32 %v14697_v56, %v2669_v8 }
 0x2ee   :  { %21906 = vst [vmem:[#allocation187_spill] sm:$0xff] %v14709_v24  ;;  %v14712_v26 = vpop.f32.mrb[221].mxu0  ;;  %v2936_v8 = vmul.f32 %v14709_v24, %v14709_v24 }
 0x2ef   :  { %21907 = vst [vmem:[#allocation188_spill] sm:$0xff] %v14712_v26  ;;  %v2671_v50 = vadd.f32 %v2670_v3, %v14712_v26  ;;  %v2934_v10 = vmul.f32 %v14712_v26, %v14712_v26  ;;  %v3188_v23 = vadd.f32 %v3187_v40, %v2933_v42  ;;  %v14717_v34 = vpop.f32.mrb[222].mxu0 }
 0x2f0   :  { %21908 = vst [vmem:[#allocation189_spill] sm:$0xff] %v14717_v34  ;;  %v14719_v43 = vpop.f32.mrb[223].mxu0  ;;  %v2937_v26 = vmul.f32 %v14717_v34, %v14717_v34 }
 0x2f1   :  { %21909 = vst [vmem:[#allocation190_spill] sm:$0xff] %v14719_v43  ;;  %v3189_v4 = vadd.f32 %v3188_v23, %v2934_v10  ;;  %v2672_v54 = vadd.f32 %v2671_v50, %v14719_v43  ;;  %v2935_v16 = vmul.f32 %v14719_v43, %v14719_v43 }
 0x2f3   :  { %v2673_v47 = vadd.f32 %v14709_v24, %v2672_v54  ;;  %v3190_v3 = vadd.f32 %v3189_v4, %v2935_v16 }
 0x2f5   :  { %v3191_v42 = vadd.f32 %v3190_v3, %v2936_v8  ;;  %v14729_v40 = vpop.f32.mrb[224].mxu0  ;;  %v2674_v56 = vadd.f32 %v14717_v34, %v2673_v47 }
 0x2f6   :  { %21910 = vst [vmem:[#allocation191_spill] sm:$0xff] %v14729_v40  ;;  %v14732_v23 = vpop.f32.mrb[225].mxu0  ;;  %v2940_v47 = vmul.f32 %v14729_v40, %v14729_v40 }
 0x2f7   :  { %21911 = vst [vmem:[#allocation192_spill] sm:$0xff] %v14732_v23  ;;  %v2675_v50 = vadd.f32 %v2674_v56, %v14732_v23  ;;  %v2938_v10 = vmul.f32 %v14732_v23, %v14732_v23  ;;  %v3192_v43 = vadd.f32 %v3191_v42, %v2937_v26  ;;  %v14737_v32 = vpop.f32.mrb[226].mxu0 }
 0x2f8   :  { %21912 = vst [vmem:[#allocation193_spill] sm:$0xff] %v14737_v32  ;;  %v14739_v54 = vpop.f32.mrb[227].mxu0  ;;  %v2941_v23 = vmul.f32 %v14737_v32, %v14737_v32 }
 0x2f9   :  { %21913 = vst [vmem:[#allocation194_spill] sm:$0xff] %v14739_v54  ;;  %v3193_v4 = vadd.f32 %v3192_v43, %v2938_v10  ;;  %v2676_v16 = vadd.f32 %v2675_v50, %v14739_v54  ;;  %v2939_v8 = vmul.f32 %v14739_v54, %v14739_v54 }
 0x2fb   :  { %v2677_v3 = vadd.f32 %v14729_v40, %v2676_v16  ;;  %v3194_v56 = vadd.f32 %v3193_v4, %v2939_v8 }
 0x2fd   :  { %v3195_v26 = vadd.f32 %v3194_v56, %v2940_v47  ;;  %v14749_v42 = vpop.f32.mrb[228].mxu0  ;;  %v2678_v34 = vadd.f32 %v14737_v32, %v2677_v3 }
 0x2fe   :  { %21914 = vst [vmem:[#allocation195_spill] sm:$0xff] %v14749_v42  ;;  %v14752_v43 = vpop.f32.mrb[229].mxu0  ;;  %v2944_v3 = vmul.f32 %v14749_v42, %v14749_v42 }
 0x2ff   :  { %21915 = vst [vmem:[#allocation196_spill] sm:$0xff] %v14752_v43  ;;  %v2679_v50 = vadd.f32 %v2678_v34, %v14752_v43  ;;  %v2942_v10 = vmul.f32 %v14752_v43, %v14752_v43  ;;  %v3196_v54 = vadd.f32 %v3195_v26, %v2941_v23  ;;  %v14757_v24 = vpop.f32.mrb[230].mxu0 }
 0x300   :  { %21916 = vst [vmem:[#allocation197_spill] sm:$0xff] %v14757_v24  ;;  %v14759_v16 = vpop.f32.mrb[231].mxu0  ;;  %v2945_v43 = vmul.f32 %v14757_v24, %v14757_v24 }
 0x301   :  { %21917 = vst [vmem:[#allocation198_spill] sm:$0xff] %v14759_v16  ;;  %v3197_v4 = vadd.f32 %v3196_v54, %v2942_v10  ;;  %v2680_v8 = vadd.f32 %v2679_v50, %v14759_v16  ;;  %v2943_v47 = vmul.f32 %v14759_v16, %v14759_v16 }
 0x303   :  { %v2681_v56 = vadd.f32 %v14749_v42, %v2680_v8  ;;  %v3198_v34 = vadd.f32 %v3197_v4, %v2943_v47 }
 0x305   :  { %v3199_v23 = vadd.f32 %v3198_v34, %v2944_v3  ;;  %v14769_v26 = vpop.f32.mrb[232].mxu0  ;;  %v2682_v32 = vadd.f32 %v14757_v24, %v2681_v56 }
 0x306   :  { %21918 = vst [vmem:[#allocation199_spill] sm:$0xff] %v14769_v26  ;;  %v14772_v54 = vpop.f32.mrb[233].mxu0  ;;  %v2948_v56 = vmul.f32 %v14769_v26, %v14769_v26 }
 0x307   :  { %21919 = vst [vmem:[#allocation200_spill] sm:$0xff] %v14772_v54  ;;  %v2683_v50 = vadd.f32 %v2682_v32, %v14772_v54  ;;  %v2946_v10 = vmul.f32 %v14772_v54, %v14772_v54  ;;  %v3200_v16 = vadd.f32 %v3199_v23, %v2945_v43  ;;  %v14777_v40 = vpop.f32.mrb[234].mxu0 }
 0x308   :  { %21920 = vst [vmem:[#allocation201_spill] sm:$0xff] %v14777_v40  ;;  %v14779_v8 = vpop.f32.mrb[235].mxu0  ;;  %v2949_v54 = vmul.f32 %v14777_v40, %v14777_v40 }
 0x309   :  { %21921 = vst [vmem:[#allocation202_spill] sm:$0xff] %v14779_v8  ;;  %v3201_v4 = vadd.f32 %v3200_v16, %v2946_v10  ;;  %v2684_v47 = vadd.f32 %v2683_v50, %v14779_v8  ;;  %v2947_v3 = vmul.f32 %v14779_v8, %v14779_v8 }
 0x30b   :  { %v2685_v34 = vadd.f32 %v14769_v26, %v2684_v47  ;;  %v3202_v32 = vadd.f32 %v3201_v4, %v2947_v3  ;;  %v12385_v4 = vld [vmem:[%s21203_s2 + $0x50] sm:$0xff]   ;;  %v12397_v26 = vld [vmem:[%s21203_s2 + $0x220] sm:$0xff]  }
 0x30c   :  { %5069 = vmatpush1.bf16.msra.mxu1 %v12385_v4 }
 0x30d   :  { %v3203_v43 = vadd.f32 %v3202_v32, %v2948_v56  ;;  %v14789_v23 = vpop.f32.mrb[236].mxu0  ;;  %v2686_v24 = vadd.f32 %v14777_v40, %v2685_v34  ;;  %5070 = vmatprep.subr.bf16.mxu1 %v21876_v41 }
 0x30e   :  { %21922 = vst [vmem:[#allocation203_spill] sm:$0xff] %v14789_v23  ;;  %v14792_v16 = vpop.f32.mrb[237].mxu0 }
 0x30f   :  { %21923 = vst [vmem:[#allocation204_spill] sm:$0xff] %v14792_v16  ;;  %v2687_v50 = vadd.f32 %v2686_v24, %v14792_v16  ;;  %v2950_v10 = vmul.f32 %v14792_v16, %v14792_v16  ;;  %v3204_v8 = vadd.f32 %v3203_v43, %v2949_v54  ;;  %v14797_v42 = vpop.f32.mrb[238].mxu0  ;;  %v2952_v24 = vmul.f32 %v14789_v23, %v14789_v23  ;;  %v12386_v43 = vld [vmem:[%s21203_s2 + $0x58] sm:$0xff]  }
 0x310   :  { %21924 = vst [vmem:[#allocation205_spill] sm:$0xff] %v14797_v42  ;;  %v14799_v47 = vpop.f32.mrb[239].mxu0  ;;  %5071 = vmatpush1.bf16.msra.mxu1 %v12386_v43 }
 0x311   :  { %21925 = vst [vmem:[#allocation206_spill] sm:$0xff] %v14799_v47  ;;  %v3205_v3 = vadd.f32 %v3204_v8, %v2950_v10  ;;  %v2688_v56 = vadd.f32 %v2687_v50, %v14799_v47  ;;  %v2951_v34 = vmul.f32 %v14799_v47, %v14799_v47  ;;  %v2953_v8 = vmul.f32 %v14797_v42, %v14797_v42 }
 0x312   :  { %5072 = vmatprep.subr.bf16.mxu1 %v21876_v41 }
 0x313   :  { %v2689_v54 = vadd.f32 %v14789_v23, %v2688_v56  ;;  %v3206_v32 = vadd.f32 %v3205_v3, %v2951_v34 }
 0x315   :  { %v3207_v50 = vadd.f32 %v3206_v32, %v2952_v24  ;;  %v14816_v10 = vpop.f32.mrb[240].mxu0  ;;  %v2690_v4 = vadd.f32 %v14797_v42, %v2689_v54  ;;  %v12387_v24 = vld [vmem:[%s21203_s2 + $0x60] sm:$0xff]  }
 0x316   :  { %21926 = vst [vmem:[#allocation207_spill] sm:$0xff] %v14816_v10  ;;  %v14819_v47 = vpop.f32.mrb[241].mxu0  ;;  %5073 = vmatpush1.bf16.msra.mxu1 %v12387_v24 }
 0x317   :  { %21927 = vst [vmem:[#allocation208_spill] sm:$0xff] %v14819_v47  ;;  %v2691_v56 = vadd.f32 %v2690_v4, %v14819_v47  ;;  %v2954_v3 = vmul.f32 %v14819_v47, %v14819_v47  ;;  %v3208_v34 = vadd.f32 %v3207_v50, %v2953_v8  ;;  %v14824_v23 = vpop.f32.mrb[242].mxu0  ;;  %v2956_v8 = vmul.f32 %v14816_v10, %v14816_v10  ;;  %v12388_v47 = vld [vmem:[%s21203_s2 + $0x68] sm:$0xff]  }
 0x318   :  { %21928 = vst [vmem:[#allocation209_spill] sm:$0xff] %v14824_v23  ;;  %v14827_v16 = vpop.f32.mrb[243].mxu0  ;;  %5074 = vmatprep.subr.bf16.mxu1 %v21876_v41 }
 0x319   :  { %21929 = vst [vmem:[#allocation210_spill] sm:$0xff] %v14827_v16  ;;  %v3209_v54 = vadd.f32 %v3208_v34, %v2954_v3  ;;  %v2692_v32 = vadd.f32 %v2691_v56, %v14827_v16  ;;  %v2955_v43 = vmul.f32 %v14827_v16, %v14827_v16  ;;  %v2957_v3 = vmul.f32 %v14824_v23, %v14824_v23 }
 0x31a   :  { %5075 = vmatpush1.bf16.msra.mxu1 %v12388_v47 }
 0x31b   :  { %v2693_v50 = vadd.f32 %v14816_v10, %v2692_v32  ;;  %v3210_v4 = vadd.f32 %v3209_v54, %v2955_v43  ;;  %5076 = vmatprep.subr.bf16.mxu1 %v21876_v41 }
 0x31d   :  { %v3211_v56 = vadd.f32 %v3210_v4, %v2956_v8  ;;  %v14844_v34 = vpop.f32.mrb[244].mxu0  ;;  %v2694_v24 = vadd.f32 %v14824_v23, %v2693_v50  ;;  %v12389_v8 = vld [vmem:[%s21203_s2 + $0x70] sm:$0xff]  }
 0x31e   :  { %21930 = vst [vmem:[#allocation211_spill] sm:$0xff] %v14844_v34  ;;  %v14847_v16 = vpop.f32.mrb[245].mxu0  ;;  %5077 = vmatpush1.bf16.msra.mxu1 %v12389_v8 }
 0x31f   :  { %21931 = vst [vmem:[#allocation212_spill] sm:$0xff] %v14847_v16  ;;  %v2695_v32 = vadd.f32 %v2694_v24, %v14847_v16  ;;  %v2958_v54 = vmul.f32 %v14847_v16, %v14847_v16  ;;  %v3212_v43 = vadd.f32 %v3211_v56, %v2957_v3  ;;  %v14852_v10 = vpop.f32.mrb[246].mxu0  ;;  %v2960_v3 = vmul.f32 %v14844_v34, %v14844_v34  ;;  %v12390_v16 = vld [vmem:[%s21203_s2 + $0x78] sm:$0xff]  }
 0x320   :  { %21932 = vst [vmem:[#allocation213_spill] sm:$0xff] %v14852_v10  ;;  %v14855_v42 = vpop.f32.mrb[247].mxu0  ;;  %5078 = vmatprep.subr.bf16.mxu1 %v21876_v41 }
 0x321   :  { %21933 = vst [vmem:[#allocation214_spill] sm:$0xff] %v14855_v42  ;;  %v3213_v50 = vadd.f32 %v3212_v43, %v2958_v54  ;;  %v2696_v4 = vadd.f32 %v2695_v32, %v14855_v42  ;;  %v2959_v47 = vmul.f32 %v14855_v42, %v14855_v42  ;;  %v2961_v54 = vmul.f32 %v14852_v10, %v14852_v10 }
 0x322   :  { %5079 = vmatpush1.bf16.msra.mxu1 %v12390_v16 }
 0x323   :  { %v2697_v56 = vadd.f32 %v14844_v34, %v2696_v4  ;;  %v3214_v24 = vadd.f32 %v3213_v50, %v2959_v47  ;;  %5337 = vmatprep.subr.bf16.mxu1 %v21876_v41 }
 0x325   :  { %v3215_v32 = vadd.f32 %v3214_v24, %v2960_v3  ;;  %v14872_v43 = vpop.f32.mrb[248].mxu0  ;;  %v2698_v8 = vadd.f32 %v14852_v10, %v2697_v56  ;;  %v12392_v3 = vld [vmem:[%s21203_s2 + $0x200] sm:$0xff]   ;;  %v21416_v56 = vmov 0.0|0.0  }
 0x326   :  { %21934 = vst [vmem:[#allocation215_spill] sm:$0xff] %v14872_v43  ;;  %v14875_v42 = vpop.f32.mrb[249].mxu0  ;;  %5080 = vmatprep.mubr.bf16.mxu1 %v21416_v56  ;;  %11706 = vmatprep.subr.bf16.mxu0 %v12392_v3 }
 0x327   :  { %21935 = vst [vmem:[#allocation216_spill] sm:$0xff] %v14875_v42  ;;  %v2699_v4 = vadd.f32 %v2698_v8, %v14875_v42  ;;  %v2962_v50 = vmul.f32 %v14875_v42, %v14875_v42  ;;  %v3216_v47 = vadd.f32 %v3215_v32, %v2961_v54  ;;  %v14880_v34 = vpop.f32.mrb[250].mxu0  ;;  %5081 = vmatmul.mubr.bf16.vlgmr.msra.gmra.mrb[0].mxu1 %v21416_v56 }
 0x328   :  { %21936 = vst [vmem:[#allocation217_spill] sm:$0xff] %v14880_v34  ;;  %v14886_v24 = vpop.f32.mrb[251].mxu0  ;;  %11707 = vmatpush3.bf16.msra.mxu0 %v12392_v3  ;;  %5088 = vmatprep.mubr.bf16.mxu1 %v21416_v56  ;;  %v2964_v54 = vmul.f32 %v14872_v43, %v14872_v43 }
 0x329   :  { %21937 = vst [vmem:[#allocation218_spill] sm:$0xff] %v14886_v24  ;;  %v3217_v16 = vadd.f32 %v3216_v47, %v2962_v50  ;;  %v2700_v8 = vadd.f32 %v2699_v4, %v14886_v24  ;;  %v2963_v42 = vmul.f32 %v14886_v24, %v14886_v24  ;;  %v12393_v50 = vld [vmem:[%s21203_s2 + $0x208] sm:$0xff]   ;;  %v2965_v4 = vmul.f32 %v14880_v34, %v14880_v34 }
 0x32a   :  { %11708 = vmatprep.subr.bf16.mxu0 %v12393_v50 }
 0x32b   :  { %v2701_v32 = vadd.f32 %v14872_v43, %v2700_v8  ;;  %v3218_v10 = vadd.f32 %v3217_v16, %v2963_v42 }
 0x32c   :  { %11709 = vmatpush3.bf16.msra.mxu0 %v12393_v50 }
 0x32d   :  { %v3219_v47 = vadd.f32 %v3218_v10, %v2964_v54  ;;  %v14902_v24 = vpop.f32.mrb[252].mxu0  ;;  %v2702_v3 = vadd.f32 %v14880_v34, %v2701_v32  ;;  %v12394_v10 = vld [vmem:[%s21203_s2 + $0x210] sm:$0xff]   ;;  %v21940_v34 = vmov 0.0|0.0  }
 0x32e   :  { %21938 = vst [vmem:[#allocation219_spill] sm:$0xff] %v14902_v24  ;;  %v14905_v56 = vpop.f32.mrb[253].mxu0  ;;  %11710 = vmatprep.subr.bf16.mxu0 %v12394_v10 }
 0x32f   :  { %21939 = vst [vmem:[#allocation220_spill] sm:$0xff] %v14905_v56  ;;  %v2703_v23 = vadd.f32 %v2702_v3, %v14905_v56  ;;  %v2966_v42 = vmul.f32 %v14905_v56, %v14905_v56  ;;  %v3220_v16 = vadd.f32 %v3219_v47, %v2965_v4  ;;  %v14910_v8 = vpop.f32.mrb[254].mxu0  ;;  %5089 = vmatmul.mubr.bf16.gmra.mrb[4].mxu1 %v21940_v34 }
 0x330   :  { %v14915_v54 = vpop.f32.mrb[255].mxu0  ;;  %11711 = vmatpush3.bf16.msra.mxu0 %v12394_v10  ;;  %5096 = vmatprep.mubr.bf16.mxu1 %v21940_v34  ;;  %v2968_v4 = vmul.f32 %v14902_v24, %v14902_v24 }
 0x331   :  { %v3221_v43 = vadd.f32 %v3220_v16, %v2966_v42  ;;  %v2704_v32 = vadd.f32 %v2703_v23, %v14915_v54  ;;  %v2967_v50 = vmul.f32 %v14915_v54, %v14915_v54  ;;  %v12395_v42 = vld [vmem:[%s21203_s2 + $0x218] sm:$0xff]   ;;  %v2969_v23 = vmul.f32 %v14910_v8, %v14910_v8 }
 0x332   :  { %11712 = vmatprep.subr.bf16.mxu0 %v12395_v42 }
 0x333   :  { %v2705_v47 = vadd.f32 %v14902_v24, %v2704_v32  ;;  %v3222_v3 = vadd.f32 %v3221_v43, %v2967_v50 }
 0x334   :  { %11713 = vmatpush3.bf16.msra.mxu0 %v12395_v42 }
 0x335   :  { %v2706_v16 = vadd.f32 %v14910_v8, %v2705_v47  ;;  %v3223_v56 = vadd.f32 %v3222_v3, %v2968_v4  ;;  %11714 = vmatprep.subr.bf16.mxu0 %v12397_v26  ;;  %v12398_v4 = vld [vmem:[%s21203_s2 + $0x228] sm:$0xff]  }
 0x337   :  { %v2707_v10 = vrot.slane %v2706_v16, 4  ;;  %v3224_v40 = vadd.f32 %v3223_v56, %v2969_v23  ;;  %5097 = vmatmul.mubr.bf16.gmra.mrb[8].mxu1 %v21940_v34  ;;  %v12399_v23 = vld [vmem:[%s21203_s2 + $0x230] sm:$0xff]  }
 0x338   :  { %11715 = vmatpush3.bf16.msra.mxu0 %v12397_v26  ;;  %5104 = vmatprep.mubr.bf16.mxu1 %v21940_v34 }
 0x339   :  { %v2708_v32 = vadd.f32 %v2707_v10, %v2706_v16  ;;  %v3225_v43 = vrot.slane %v3224_v40, 4  ;;  %11716 = vmatprep.subr.bf16.mxu0 %v12398_v4 }
 0x33b   :  { %v2709_v50 = vrot.slane %v2708_v32, 2  ;;  %v3226_v24 = vadd.f32 %v3225_v43, %v3224_v40 }
 0x33c   :  { %11717 = vmatpush3.bf16.msra.mxu0 %v12398_v4 }
 0x33d   :  { %v2710_v47 = vadd.f32 %v2709_v50, %v2708_v32  ;;  %v3227_v56 = vrot.slane %v3226_v24, 2  ;;  %11718 = vmatprep.subr.bf16.mxu0 %v12399_v23  ;;  %v12400_v32 = vld [vmem:[%s21203_s2 + $0x238] sm:$0xff]  }
 0x33f   :  { %v2711_v3 = vrot.slane %v2710_v47, 1  ;;  %v3228_v42 = vadd.f32 %v3227_v56, %v3226_v24  ;;  %5105 = vmatmul.mubr.bf16.gmra.mrb[12].mxu1 %v21940_v34  ;;  %v12391_v24 = vld [vmem:[%s21203_s2 + $0x80] sm:$0xff]   ;;  %v22022_v34 = vld [vmem:[#allocation34_spill] sm:$0xff] }
 0x340   :  { %11719 = vmatpush3.bf16.msra.mxu0 %v12399_v23  ;;  %5338 = vmatpush1.bf16.msra.mxu1 %v12391_v24 }
 0x341   :  { %v2712_v16 = vadd.f32 %v2711_v3, %v2710_v47  ;;  %v3229_v26 = vrot.slane %v3228_v42, 1  ;;  %11720 = vmatprep.subr.bf16.mxu0 %v12400_v32  ;;  %v12396_v47 = vld [vmem:[%s21203_s2 + $0x88] sm:$0xff]   ;;  %5339 = vmatprep.subr.bf16.mxu1 %v21876_v41  ;;  %v3242_v3 = vlaneseq }
 0x343   :  { %v2713_v40 = vmul.f32 0.001953125, %v2712_v16  ;;  %v3230_v10 = vadd.f32 %v3229_v26, %v3228_v42  ;;  %v12401_v42 = vld [vmem:[%s21203_s2 + $0x90] sm:$0xff]   ;;  %v14957_v23 = vshrl.u32 %v3242_v3, 7  ;;  %v2451_v16 = vld [vmem:[#allocation4] sm:$0x3] }
 0x344   :  { %11721 = vmatpush3.bf16.msra.mxu0 %v12400_v32  ;;  %5340 = vmatpush1.bf16.msra.mxu1 %v12396_v47 }
 0x345   :  { %v3231_v43 = vmul.f32 0.001953125, %v3230_v10  ;;  %v3232_v50 = vmul.f32 %v2713_v40, %v2713_v40  ;;  %5341 = vmatprep.subr.bf16.mxu1 %v21876_v41  ;;  %21941 = vst [vmem:[#allocation221_spill] sm:$0xff] %v14957_v23  ;;  %v14961_v32 = vsub.s32 0, %v14957_v23  ;;  %vm4020_vm3 = vcmp.lt.s32.totalorder %v14957_v23, 2 }
 0x347   :  { %v3233_v4 = vsub.f32 %v3231_v43, %v3232_v50  ;;  %21942 = vst [vmem:[#allocation222_spill] sm:$0xff] %v14961_v32 }
 0x348   :  { %5342 = vmatpush1.bf16.msra.mxu1 %v12401_v42 }
 0x349   :  { %v3234_v56 = vadd.f32 1e-05, %v3233_v4  ;;  %5343 = vmatprep.subr.bf16.mxu1 %v21876_v41  ;;  %v14967_v4 = vsub.s32 1, %v14957_v23  ;;  %v21994_v23 = vld [vmem:[#allocation18_spill] sm:$0xff] }
 0x34b   :  { %12799 = vrsqrt.f32 %v3234_v56  ;;  %21944 = vst [vmem:[#allocation224_spill] sm:$0xff] %v14967_v4 }
 0x355   :  { %v12800_v26 = vpop.eup %12799 }
 0x356   :  { %v3236_v10 = vmul.f32 %v12800_v26, %v2451_v16 }
 0x358   :  { %v3237_v43 = vmul.f32 %v3236_v10, %v2713_v40  ;;  %v14964_v24 = vrot.slane %v3236_v10, %v14961_v32  ;;  %v12402_v10 = vld [vmem:[%s21203_s2 + $0x98] sm:$0xff]   ;;  %v21998_v32 = vld [vmem:[#allocation17_spill] sm:$0xff] }
 0x359   :  { %5344 = vmatpush1.bf16.msra.mxu1 %v12402_v10 }
 0x35a   :  { %v3239_v50 = vrot.slane %v3237_v43, 7  ;;  %21943 = vst [vmem:[#allocation223_spill] sm:$0xff] %v14964_v24  ;;  %v3499_v56 = vmul.f32 %v14964_v24, %v14915_v54  ;;  %v3501_v3 = vmul.f32 %v14910_v8, %v14964_v24  ;;  %v14987_v54 = vmul.f32 %v14964_v24, %v13282_v62  ;;  %5345 = vmatprep.subr.bf16.mxu1 %v21876_v41 }
 0x35b   :  { %v14991_v8 = vmul.f32 %v14964_v24, %v13289_v1  ;;  %v15007_v62 = vmul.f32 %v14964_v24, %v13320_v19  ;;  %v15011_v1 = vmul.f32 %v13308_v12, %v14964_v24  ;;  %v15024_v19 = vmul.f32 %v14964_v24, %v13348_v37 }
 0x35c   :  { %v3241_v47 = vsub.f32 %v2451_v16, %v3239_v50  ;;  %v21425_v16 = vmov 0.0   ;;  %v14995_v50 = vmul.f32 %v13280_v61, %v14964_v24  ;;  %v15015_v61 = vmul.f32 %v13315_v17, %v14964_v24 }
 0x35d   :  { %v14983_v43 = vsel %vm4020_vm3, 1.0, %v21425_v16  ;;  %21946 = vst [vmem:[#allocation226_spill] sm:$0xff] %v14991_v8  ;;  %21949 = vst [vmem:[#allocation229_spill] sm:$0xff] %v15007_v62  ;;  %v15028_v12 = vmul.f32 %v13336_v30, %v14964_v24  ;;  %v15032_v17 = vmul.f32 %v13343_v35, %v14964_v24  ;;  %v15044_v37 = vmul.f32 %v13364_v48, %v14964_v24  ;;  %v21992_v16 = vld [vmem:[#allocation16_spill] sm:$0xff]  ;;  %v22070_v8 = vld [vmem:[#allocation55_spill] sm:$0xff] }
 0x35e   :  { %v14975_v42 = vrot.slane %v3241_v47, %v14967_v4  ;;  %21945 = vst [vmem:[#allocation225_spill] sm:$0xff] %v14983_v43  ;;  %v14999_v47 = vmul.f32 %v13284_v63, %v14964_v24  ;;  %21950 = vst [vmem:[#allocation230_spill] sm:$0xff] %v15011_v1  ;;  %v15019_v63 = vmul.f32 %v14964_v24, %v13338_v31  ;;  %v21996_v4 = vld [vmem:[#allocation15_spill] sm:$0xff]  ;;  %v22086_v62 = vld [vmem:[#allocation65_spill] sm:$0xff] }
 0x35f   :  { %21951 = vst [vmem:[#allocation231_spill] sm:$0xff] %v15015_v61  ;;  %21953 = vst [vmem:[#allocation233_spill] sm:$0xff] %v15024_v19  ;;  %v15036_v31 = vmul.f32 %v14964_v24, %v13366_v49  ;;  %v15048_v30 = vmul.f32 %v13371_v53, %v14964_v24  ;;  %v15052_v35 = vmul.f32 %v14964_v24, %v13394_v7  ;;  %v22082_v19 = vld [vmem:[#allocation66_spill] sm:$0xff]  ;;  %v22084_v61 = vld [vmem:[#allocation63_spill] sm:$0xff] }
 0x360   :  { %v3759_v40 = vadd.f32 %v14975_v42, %v3499_v56  ;;  %v3761_v26 = vadd.f32 %v14975_v42, %v3501_v3  ;;  %21947 = vst [vmem:[#allocation227_spill] sm:$0xff] %v14999_v47  ;;  %v15003_v56 = vmul.f32 %v14964_v24, %v13310_v13  ;;  %21952 = vst [vmem:[#allocation232_spill] sm:$0xff] %v15019_v63  ;;  %v22020_v63 = vld [vmem:[#allocation32_spill] sm:$0xff] }
 0x361   :  { %21954 = vst [vmem:[#allocation234_spill] sm:$0xff] %v15028_v12  ;;  %21955 = vst [vmem:[#allocation235_spill] sm:$0xff] %v15032_v17  ;;  %v15056_v49 = vmul.f32 %v14964_v24, %v13404_v15  ;;  %v15064_v48 = vmul.f32 %v13399_v11, %v14964_v24  ;;  %v15068_v53 = vmul.f32 %v14964_v24, %v13422_v29  ;;  %v22019_v12 = vld [vmem:[#allocation29_spill] sm:$0xff]  ;;  %v22080_v17 = vld [vmem:[#allocation64_spill] sm:$0xff] }
 0x362   :  { %21948 = vst [vmem:[#allocation228_spill] sm:$0xff] %v15003_v56  ;;  %v4015_v13 = vmax.f32 %v3759_v40, 0.0  ;;  %v4017_v3 = vmax.f32 %v3761_v26, 0.0  ;;  %21956 = vst [vmem:[#allocation236_spill] sm:$0xff] %v15036_v31  ;;  %v15040_v40 = vmul.f32 %v14964_v24, %v13376_v55  ;;  %v15060_v55 = vmul.f32 %v13392_v6, %v14964_v24  ;;  %v22016_v31 = vld [vmem:[#allocation30_spill] sm:$0xff]  ;;  %v22088_v47 = vld [vmem:[#allocation68_spill] sm:$0xff] }
 0x363   :  { %21958 = vst [vmem:[#allocation238_spill] sm:$0xff] %v15044_v37  ;;  %21959 = vst [vmem:[#allocation239_spill] sm:$0xff] %v15048_v30  ;;  %v15072_v7 = vmul.f32 %v14964_v24, %v13432_v39  ;;  %v15076_v15 = vmul.f32 %v13420_v28, %v14964_v24  ;;  %v15086_v11 = vmul.f32 %v13427_v36, %v14964_v24  ;;  %v22017_v30 = vld [vmem:[#allocation27_spill] sm:$0xff] }
 0x364   :  { %21957 = vst [vmem:[#allocation237_spill] sm:$0xff] %v15040_v40  ;;  %21960 = vst [vmem:[#allocation240_spill] sm:$0xff] %v15052_v35  ;;  %v15079_v26 = vmul.f32 %v14983_v43, %v4015_v13  ;;  %v15082_v6 = vmul.f32 %v14983_v43, %v4017_v3  ;;  %v15090_v29 = vmul.f32 %v14964_v24, %v13447_v52  ;;  %v21988_v3 = vld [vmem:[#allocation13_spill] sm:$0xff]  ;;  %v22324_v35 = vld [vmem:[#allocation207_spill] sm:$0xff] }
 0x365   :  { %21961 = vst [vmem:[#allocation241_spill] sm:$0xff] %v15056_v49  ;;  %21962 = vst [vmem:[#allocation242_spill] sm:$0xff] %v15060_v55  ;;  %v15094_v39 = vmul.f32 %v14964_v24, %v13460_v0  ;;  %v15098_v28 = vmul.f32 %v13445_v51, %v14964_v24  ;;  %v15102_v10 = vmul.f32 %v13455_v59, %v14964_v24  ;;  %v22079_v40 = vld [vmem:[#allocation61_spill] sm:$0xff]  ;;  %v22320_v49 = vld [vmem:[#allocation208_spill] sm:$0xff] }
 0x366   :  { %21963 = vst [vmem:[#allocation243_spill] sm:$0xff] %v15064_v48  ;;  %21964 = vst [vmem:[#allocation244_spill] sm:$0xff] %v15068_v53  ;;  %v15106_v36 = vmul.f32 %v14964_v24, %v13475_v20  ;;  %v15110_v52 = vmul.f32 %v14964_v24, %v13488_v27  ;;  %v15114_v0 = vmul.f32 %v13473_v18, %v14964_v24  ;;  %v22316_v53 = vld [vmem:[#allocation203_spill] sm:$0xff]  ;;  %v22318_v48 = vld [vmem:[#allocation205_spill] sm:$0xff] }
 0x367   :  { %21965 = vst [vmem:[#allocation245_spill] sm:$0xff] %v15076_v15  ;;  %21966 = vst [vmem:[#allocation246_spill] sm:$0xff] %v15079_v26  ;;  %v15118_v51 = vmul.f32 %v13483_v25, %v14964_v24  ;;  %v15122_v59 = vmul.f32 %v14964_v24, %v13503_v46  ;;  %v15126_v20 = vmul.f32 %v14964_v24, %v13516_v60  ;;  %v21990_v46 = vld [vmem:[#allocation14_spill] sm:$0xff]  ;;  %v22326_v43 = vld [vmem:[#allocation209_spill] sm:$0xff] }
 0x368   :  { %21967 = vst [vmem:[#allocation247_spill] sm:$0xff] %v15082_v6  ;;  %21968 = vst [vmem:[#allocation248_spill] sm:$0xff] %v15090_v29  ;;  %v15130_v27 = vmul.f32 %v13501_v45, %v14964_v24  ;;  %v15134_v18 = vmul.f32 %v13511_v57, %v14964_v24  ;;  %v15138_v25 = vmul.f32 %v14964_v24, %v13531_v22  ;;  %v22312_v29 = vld [vmem:[#allocation199_spill] sm:$0xff]  ;;  %v22315_v15 = vld [vmem:[#allocation206_spill] sm:$0xff] }
 0x369   :  { %21969 = vst [vmem:[#allocation249_spill] sm:$0xff] %v15094_v39  ;;  %21970 = vst [vmem:[#allocation250_spill] sm:$0xff] %v15098_v28  ;;  %v15144_v13 = vmul.f32 %v14964_v24, %v13544_v38  ;;  %v15148_v60 = vmul.f32 %v13529_v21, %v14964_v24  ;;  %v15152_v45 = vmul.f32 %v13539_v33, %v14964_v24  ;;  %v22311_v28 = vld [vmem:[#allocation202_spill] sm:$0xff]  ;;  %v22314_v39 = vld [vmem:[#allocation204_spill] sm:$0xff] }
 0x36a   :  { %21971 = vst [vmem:[#allocation251_spill] sm:$0xff] %v15102_v10  ;;  %21972 = vst [vmem:[#allocation252_spill] sm:$0xff] %v15106_v36  ;;  %v15156_v57 = vmul.f32 %v14964_v24, %v13559_v2  ;;  %v15160_v22 = vmul.f32 %v14964_v24, %v13572_v14  ;;  %v15164_v38 = vmul.f32 %v13557_v58, %v14964_v24  ;;  %v22308_v36 = vld [vmem:[#allocation195_spill] sm:$0xff]  ;;  %v22313_v10 = vld [vmem:[#allocation201_spill] sm:$0xff] }
 0x36b   :  { %21973 = vst [vmem:[#allocation253_spill] sm:$0xff] %v15114_v0  ;;  %21974 = vst [vmem:[#allocation254_spill] sm:$0xff] %v15122_v59  ;;  %v15168_v21 = vmul.f32 %v13567_v9, %v14964_v24  ;;  %v15172_v33 = vmul.f32 %v14964_v24, %v13587_v44  ;;  %v15176_v2 = vmul.f32 %v14964_v24, %v13600_v5  ;;  %v22014_v59 = vld [vmem:[#allocation28_spill] sm:$0xff]  ;;  %v22307_v0 = vld [vmem:[#allocation198_spill] sm:$0xff] }
 0x36c   :  { %21975 = vst [vmem:[#allocation255_spill] sm:$0xff] %v15126_v20  ;;  %21976 = vst [vmem:[#allocation256_spill] sm:$0xff] %v15130_v27  ;;  %v15180_v14 = vmul.f32 %v21988_v3, %v14964_v24  ;;  %v15184_v58 = vmul.f32 %v21990_v46, %v14964_v24  ;;  %v15188_v9 = vmul.f32 %v14964_v24, %v21992_v16  ;;  %v22012_v27 = vld [vmem:[#allocation25_spill] sm:$0xff]  ;;  %v22322_v55 = vld [vmem:[#allocation210_spill] sm:$0xff] }
 0x36d   :  { %21977 = vst [vmem:[#allocation257_spill] sm:$0xff] %v15134_v18  ;;  %21978 = vst [vmem:[#allocation258_spill] sm:$0xff] %v15138_v25  ;;  %v15192_v44 = vmul.f32 %v14964_v24, %v21994_v23  ;;  %v15196_v5 = vmul.f32 %v21996_v4, %v14964_v24  ;;  %v15200_v3 = vmul.f32 %v21998_v32, %v14964_v24  ;;  %v12403_v32 = vld [vmem:[%s21203_s2 + $0xa0] sm:$0xff]   ;;  %v22065_v20 = vld [vmem:[#allocation53_spill] sm:$0xff] }
 0x36e   :  { %21979 = vst [vmem:[#allocation259_spill] sm:$0xff] %v15144_v13  ;;  %21980 = vst [vmem:[#allocation260_spill] sm:$0xff] %v15148_v60  ;;  %v22008_v60 = vld [vmem:[#allocation26_spill] sm:$0xff]  ;;  %v22010_v25 = vld [vmem:[#allocation23_spill] sm:$0xff]  ;;  %v15239_v37 = vmul.f32 %v14964_v24, %v22014_v59  ;;  %5346 = vmatpush1.bf16.msra.mxu1 %v12403_v32  ;;  %v15259_v59 = vmul.f32 %v14964_v24, %v22022_v34 }
 0x36f   :  { %21981 = vst [vmem:[#allocation261_spill] sm:$0xff] %v15152_v45  ;;  %21982 = vst [vmem:[#allocation262_spill] sm:$0xff] %v15156_v57  ;;  %v22006_v57 = vld [vmem:[#allocation24_spill] sm:$0xff]  ;;  %5347 = vmatprep.subr.bf16.mxu1 %v21876_v41  ;;  %v22032_v34 = vld [vmem:[#allocation35_spill] sm:$0xff] }
 0x370   :  { %21983 = vst [vmem:[#allocation263_spill] sm:$0xff] %v15160_v22  ;;  %21984 = vst [vmem:[#allocation264_spill] sm:$0xff] %v15164_v38  ;;  %v22005_v38 = vld [vmem:[#allocation21_spill] sm:$0xff]  ;;  %v15280_v26 = vmul.f32 %v22032_v34, %v14964_v24  ;;  %v22074_v45 = vld [vmem:[#allocation60_spill] sm:$0xff] }
 0x371   :  { %21985 = vst [vmem:[#allocation265_spill] sm:$0xff] %v15168_v21  ;;  %21986 = vst [vmem:[#allocation266_spill] sm:$0xff] %v15172_v33  ;;  %v22002_v33 = vld [vmem:[#allocation22_spill] sm:$0xff]  ;;  %v15216_v4 = vmul.f32 %v22005_v38, %v14964_v24  ;;  %v15235_v38 = vmul.f32 %v22012_v27, %v14964_v24  ;;  %v15255_v27 = vmul.f32 %v14964_v24, %v22020_v63  ;;  %v22072_v22 = vld [vmem:[#allocation57_spill] sm:$0xff] }
 0x372   :  { %21987 = vst [vmem:[#allocation267_spill] sm:$0xff] %v15176_v2  ;;  %21989 = vst [vmem:[#allocation13_spill] sm:$0xff] %v15180_v14  ;;  %v22000_v14 = vld [vmem:[#allocation20_spill] sm:$0xff]  ;;  %v15208_v16 = vmul.f32 %v14964_v24, %v22002_v33  ;;  %v15227_v33 = vmul.f32 %v14964_v24, %v22008_v60  ;;  %v15247_v60 = vmul.f32 %v22017_v30, %v14964_v24  ;;  %v22026_v30 = vld [vmem:[#allocation33_spill] sm:$0xff] }
 0x373   :  { %21991 = vst [vmem:[#allocation14_spill] sm:$0xff] %v15184_v58  ;;  %21993 = vst [vmem:[#allocation16_spill] sm:$0xff] %v15188_v9  ;;  %v15204_v46 = vmul.f32 %v14964_v24, %v22000_v14  ;;  %v22003_v58 = vld [vmem:[#allocation19_spill] sm:$0xff]  ;;  %v15223_v14 = vmul.f32 %v14964_v24, %v22006_v57  ;;  %v15243_v57 = vmul.f32 %v14964_v24, %v22016_v31  ;;  %v22030_v63 = vld [vmem:[#allocation38_spill] sm:$0xff] }
 0x374   :  { %21995 = vst [vmem:[#allocation18_spill] sm:$0xff] %v15192_v44  ;;  %21997 = vst [vmem:[#allocation15_spill] sm:$0xff] %v15196_v5  ;;  %v15212_v23 = vmul.f32 %v22003_v58, %v14964_v24  ;;  %v15231_v58 = vmul.f32 %v22010_v25, %v14964_v24  ;;  %v15251_v25 = vmul.f32 %v22019_v12, %v14964_v24  ;;  %v22024_v31 = vld [vmem:[#allocation31_spill] sm:$0xff]  ;;  %v22028_v12 = vld [vmem:[#allocation36_spill] sm:$0xff] }
 0x375   :  { %21999 = vst [vmem:[#allocation17_spill] sm:$0xff] %v15200_v3  ;;  %22001 = vst [vmem:[#allocation20_spill] sm:$0xff] %v15204_v46  ;;  %v15263_v1 = vmul.f32 %v22024_v31, %v14964_v24  ;;  %v15267_v56 = vmul.f32 %v22026_v30, %v14964_v24  ;;  %v15272_v32 = vmul.f32 %v14964_v24, %v22028_v12  ;;  %v22034_v31 = vld [vmem:[#allocation37_spill] sm:$0xff]  ;;  %v22036_v30 = vld [vmem:[#allocation40_spill] sm:$0xff] }
 0x376   :  { %22004 = vst [vmem:[#allocation22_spill] sm:$0xff] %v15212_v23  ;;  %22007 = vst [vmem:[#allocation19_spill] sm:$0xff] %v15223_v14  ;;  %v15288_v6 = vmul.f32 %v14964_v24, %v22036_v30  ;;  %v22066_v2 = vld [vmem:[#allocation56_spill] sm:$0xff]  ;;  %v22068_v21 = vld [vmem:[#allocation58_spill] sm:$0xff] }
 0x377   :  { %22009 = vst [vmem:[#allocation21_spill] sm:$0xff] %v15227_v33  ;;  %22011 = vst [vmem:[#allocation24_spill] sm:$0xff] %v15231_v58  ;;  %v22076_v13 = vld [vmem:[#allocation62_spill] sm:$0xff]  ;;  %v22077_v18 = vld [vmem:[#allocation59_spill] sm:$0xff] }
 0x378   :  { %22013 = vst [vmem:[#allocation26_spill] sm:$0xff] %v15235_v38  ;;  %22015 = vst [vmem:[#allocation23_spill] sm:$0xff] %v15239_v37  ;;  %v22206_v37 = vld [vmem:[#allocation129_spill] sm:$0xff]  ;;  %v22256_v14 = vld [vmem:[#allocation158_spill] sm:$0xff] }
 0x379   :  { %22018 = vst [vmem:[#allocation25_spill] sm:$0xff] %v15247_v60  ;;  %22021 = vst [vmem:[#allocation28_spill] sm:$0xff] %v15255_v27  ;;  %v15276_v27 = vmul.f32 %v14964_v24, %v22030_v63  ;;  %v22196_v60 = vld [vmem:[#allocation126_spill] sm:$0xff]  ;;  %v22300_v46 = vld [vmem:[#allocation187_spill] sm:$0xff] }
 0x37a   :  { %22023 = vst [vmem:[#allocation30_spill] sm:$0xff] %v15259_v59  ;;  %22025 = vst [vmem:[#allocation27_spill] sm:$0xff] %v15263_v1  ;;  %v15284_v1 = vmul.f32 %v22034_v31, %v14964_v24  ;;  %v22038_v59 = vld [vmem:[#allocation42_spill] sm:$0xff]  ;;  %v22304_v9 = vld [vmem:[#allocation191_spill] sm:$0xff] }
 0x37b   :  { %22027 = vst [vmem:[#allocation29_spill] sm:$0xff] %v15267_v56  ;;  %22029 = vst [vmem:[#allocation32_spill] sm:$0xff] %v15272_v32  ;;  %v15292_v12 = vmul.f32 %v14964_v24, %v22038_v59  ;;  %v22040_v32 = vld [vmem:[#allocation39_spill] sm:$0xff]  ;;  %v22299_v23 = vld [vmem:[#allocation190_spill] sm:$0xff] }
 0x37c   :  { %22031 = vst [vmem:[#allocation34_spill] sm:$0xff] %v15276_v27  ;;  %22033 = vst [vmem:[#allocation31_spill] sm:$0xff] %v15280_v26  ;;  %v15296_v63 = vmul.f32 %v22040_v32, %v14964_v24  ;;  %v22042_v27 = vld [vmem:[#allocation41_spill] sm:$0xff]  ;;  %v22044_v26 = vld [vmem:[#allocation44_spill] sm:$0xff] }
 0x37d   :  { %22035 = vst [vmem:[#allocation33_spill] sm:$0xff] %v15284_v1  ;;  %22037 = vst [vmem:[#allocation36_spill] sm:$0xff] %v15288_v6  ;;  %v15300_v34 = vmul.f32 %v22042_v27, %v14964_v24  ;;  %v15304_v31 = vmul.f32 %v14964_v24, %v22044_v26  ;;  %v22046_v1 = vld [vmem:[#allocation46_spill] sm:$0xff]  ;;  %v22048_v6 = vld [vmem:[#allocation43_spill] sm:$0xff] }
 0x37e   :  { %22039 = vst [vmem:[#allocation38_spill] sm:$0xff] %v15292_v12  ;;  %22041 = vst [vmem:[#allocation35_spill] sm:$0xff] %v15296_v63  ;;  %v15308_v30 = vmul.f32 %v14964_v24, %v22046_v1  ;;  %v15312_v59 = vmul.f32 %v22048_v6, %v14964_v24  ;;  %v22050_v12 = vld [vmem:[#allocation45_spill] sm:$0xff]  ;;  %v22052_v63 = vld [vmem:[#allocation48_spill] sm:$0xff] }
 0x37f   :  { %22043 = vst [vmem:[#allocation37_spill] sm:$0xff] %v15300_v34  ;;  %22045 = vst [vmem:[#allocation40_spill] sm:$0xff] %v15304_v31  ;;  %v15316_v32 = vmul.f32 %v22050_v12, %v14964_v24  ;;  %v15320_v27 = vmul.f32 %v14964_v24, %v22052_v63  ;;  %v22054_v34 = vld [vmem:[#allocation50_spill] sm:$0xff]  ;;  %v22056_v31 = vld [vmem:[#allocation47_spill] sm:$0xff] }
 0x380   :  { %22047 = vst [vmem:[#allocation42_spill] sm:$0xff] %v15308_v30  ;;  %22049 = vst [vmem:[#allocation39_spill] sm:$0xff] %v15312_v59  ;;  %v15324_v26 = vmul.f32 %v14964_v24, %v22054_v34  ;;  %v15328_v1 = vmul.f32 %v22056_v31, %v14964_v24  ;;  %v22058_v30 = vld [vmem:[#allocation49_spill] sm:$0xff]  ;;  %v22060_v59 = vld [vmem:[#allocation52_spill] sm:$0xff]  ;;  %v15348_v31 = vmul.f32 %v22065_v20, %v14964_v24 }
 0x381   :  { %22051 = vst [vmem:[#allocation41_spill] sm:$0xff] %v15316_v32  ;;  %22053 = vst [vmem:[#allocation44_spill] sm:$0xff] %v15320_v27  ;;  %v15332_v6 = vmul.f32 %v22058_v30, %v14964_v24  ;;  %v15336_v12 = vmul.f32 %v14964_v24, %v22060_v59  ;;  %v22062_v32 = vld [vmem:[#allocation54_spill] sm:$0xff]  ;;  %v22063_v56 = vld [vmem:[#allocation51_spill] sm:$0xff]  ;;  %v15352_v30 = vmul.f32 %v14964_v24, %v22066_v2 }
 0x382   :  { %22055 = vst [vmem:[#allocation46_spill] sm:$0xff] %v15324_v26  ;;  %22057 = vst [vmem:[#allocation43_spill] sm:$0xff] %v15328_v1  ;;  %v15340_v63 = vmul.f32 %v14964_v24, %v22062_v32  ;;  %v15344_v34 = vmul.f32 %v22063_v56, %v14964_v24  ;;  %v15356_v59 = vmul.f32 %v14964_v24, %v22068_v21  ;;  %v22139_v1 = vld [vmem:[#allocation93_spill] sm:$0xff]  ;;  %v22142_v27 = vld [vmem:[#allocation98_spill] sm:$0xff] }
 0x383   :  { %22059 = vst [vmem:[#allocation45_spill] sm:$0xff] %v15332_v6  ;;  %22061 = vst [vmem:[#allocation48_spill] sm:$0xff] %v15336_v12  ;;  %v15360_v32 = vmul.f32 %v22070_v8, %v14964_v24  ;;  %v15364_v56 = vmul.f32 %v22072_v22, %v14964_v24  ;;  %v15368_v20 = vmul.f32 %v14964_v24, %v22074_v45  ;;  %v22136_v12 = vld [vmem:[#allocation94_spill] sm:$0xff]  ;;  %v22301_v6 = vld [vmem:[#allocation189_spill] sm:$0xff] }
 0x384   :  { %22064 = vst [vmem:[#allocation50_spill] sm:$0xff] %v15344_v34  ;;  %22067 = vst [vmem:[#allocation47_spill] sm:$0xff] %v15352_v30  ;;  %v15372_v2 = vmul.f32 %v14964_v24, %v22076_v13  ;;  %v15376_v21 = vmul.f32 %v22077_v18, %v14964_v24  ;;  %v15380_v8 = vmul.f32 %v22079_v40, %v14964_v24  ;;  %v22134_v30 = vld [vmem:[#allocation92_spill] sm:$0xff]  ;;  %v22303_v5 = vld [vmem:[#allocation194_spill] sm:$0xff] }
 0x385   :  { %22069 = vst [vmem:[#allocation49_spill] sm:$0xff] %v15356_v59  ;;  %22071 = vst [vmem:[#allocation52_spill] sm:$0xff] %v15360_v32  ;;  %v15384_v22 = vmul.f32 %v14964_v24, %v22080_v17  ;;  %v15388_v45 = vmul.f32 %v14964_v24, %v22082_v19  ;;  %v15392_v13 = vmul.f32 %v22084_v61, %v14964_v24  ;;  %v22130_v32 = vld [vmem:[#allocation87_spill] sm:$0xff]  ;;  %v22298_v59 = vld [vmem:[#allocation188_spill] sm:$0xff] }
 0x386   :  { %22073 = vst [vmem:[#allocation54_spill] sm:$0xff] %v15364_v56  ;;  %22075 = vst [vmem:[#allocation51_spill] sm:$0xff] %v15368_v20  ;;  %v15396_v18 = vmul.f32 %v22086_v62, %v14964_v24  ;;  %v15400_v40 = vmul.f32 %v14964_v24, %v22088_v47  ;;  %v22125_v20 = vld [vmem:[#allocation85_spill] sm:$0xff]  ;;  %v15499_v34 = vmul.f32 %v14964_v24, %v22134_v30  ;;  %v22278_v56 = vld [vmem:[#allocation170_spill] sm:$0xff] }
 0x387   :  { %22078 = vst [vmem:[#allocation53_spill] sm:$0xff] %v15376_v21  ;;  %22081 = vst [vmem:[#allocation56_spill] sm:$0xff] %v15384_v22  ;;  %v22090_v21 = vld [vmem:[#allocation70_spill] sm:$0xff]  ;;  %v22092_v22 = vld [vmem:[#allocation67_spill] sm:$0xff]  ;;  %v15519_v30 = vmul.f32 %v14964_v24, %v22142_v27 }
 0x388   :  { %22083 = vst [vmem:[#allocation58_spill] sm:$0xff] %v15388_v45  ;;  %22085 = vst [vmem:[#allocation55_spill] sm:$0xff] %v15392_v13  ;;  %v15404_v17 = vmul.f32 %v14964_v24, %v22090_v21  ;;  %v15408_v19 = vmul.f32 %v22092_v22, %v14964_v24  ;;  %v22094_v45 = vld [vmem:[#allocation69_spill] sm:$0xff]  ;;  %v22096_v13 = vld [vmem:[#allocation72_spill] sm:$0xff] }
 0x389   :  { %22087 = vst [vmem:[#allocation57_spill] sm:$0xff] %v15396_v18  ;;  %22089 = vst [vmem:[#allocation60_spill] sm:$0xff] %v15400_v40  ;;  %v15412_v61 = vmul.f32 %v22094_v45, %v14964_v24  ;;  %v15416_v62 = vmul.f32 %v14964_v24, %v22096_v13  ;;  %v22098_v18 = vld [vmem:[#allocation74_spill] sm:$0xff]  ;;  %v22100_v40 = vld [vmem:[#allocation71_spill] sm:$0xff] }
 0x38a   :  { %22091 = vst [vmem:[#allocation62_spill] sm:$0xff] %v15404_v17  ;;  %22093 = vst [vmem:[#allocation59_spill] sm:$0xff] %v15408_v19  ;;  %v15420_v47 = vmul.f32 %v14964_v24, %v22098_v18  ;;  %v15424_v21 = vmul.f32 %v22100_v40, %v14964_v24  ;;  %v22102_v17 = vld [vmem:[#allocation73_spill] sm:$0xff]  ;;  %v22104_v19 = vld [vmem:[#allocation76_spill] sm:$0xff] }
 0x38b   :  { %22095 = vst [vmem:[#allocation61_spill] sm:$0xff] %v15412_v61  ;;  %22097 = vst [vmem:[#allocation64_spill] sm:$0xff] %v15416_v62  ;;  %v15428_v22 = vmul.f32 %v22102_v17, %v14964_v24  ;;  %v15432_v45 = vmul.f32 %v14964_v24, %v22104_v19  ;;  %v22106_v61 = vld [vmem:[#allocation78_spill] sm:$0xff]  ;;  %v22108_v62 = vld [vmem:[#allocation75_spill] sm:$0xff] }
 0x38c   :  { %22099 = vst [vmem:[#allocation66_spill] sm:$0xff] %v15420_v47  ;;  %22101 = vst [vmem:[#allocation63_spill] sm:$0xff] %v15424_v21  ;;  %v15436_v13 = vmul.f32 %v14964_v24, %v22106_v61  ;;  %v15440_v18 = vmul.f32 %v22108_v62, %v14964_v24  ;;  %v22110_v47 = vld [vmem:[#allocation77_spill] sm:$0xff]  ;;  %v22112_v21 = vld [vmem:[#allocation80_spill] sm:$0xff] }
 0x38d   :  { %22103 = vst [vmem:[#allocation65_spill] sm:$0xff] %v15428_v22  ;;  %22105 = vst [vmem:[#allocation68_spill] sm:$0xff] %v15432_v45  ;;  %v15444_v40 = vmul.f32 %v22110_v47, %v14964_v24  ;;  %v15448_v17 = vmul.f32 %v14964_v24, %v22112_v21  ;;  %v22114_v22 = vld [vmem:[#allocation82_spill] sm:$0xff]  ;;  %v22116_v45 = vld [vmem:[#allocation79_spill] sm:$0xff] }
 0x38e   :  { %22107 = vst [vmem:[#allocation70_spill] sm:$0xff] %v15436_v13  ;;  %22109 = vst [vmem:[#allocation67_spill] sm:$0xff] %v15440_v18  ;;  %v15452_v19 = vmul.f32 %v14964_v24, %v22114_v22  ;;  %v15456_v61 = vmul.f32 %v22116_v45, %v14964_v24  ;;  %v22118_v13 = vld [vmem:[#allocation81_spill] sm:$0xff]  ;;  %v22120_v18 = vld [vmem:[#allocation84_spill] sm:$0xff]  ;;  %v15476_v45 = vmul.f32 %v22125_v20, %v14964_v24 }
 0x38f   :  { %22111 = vst [vmem:[#allocation69_spill] sm:$0xff] %v15444_v40  ;;  %22113 = vst [vmem:[#allocation72_spill] sm:$0xff] %v15448_v17  ;;  %v15460_v62 = vmul.f32 %v22118_v13, %v14964_v24  ;;  %v15464_v47 = vmul.f32 %v14964_v24, %v22120_v18  ;;  %v22122_v40 = vld [vmem:[#allocation86_spill] sm:$0xff]  ;;  %v22123_v17 = vld [vmem:[#allocation83_spill] sm:$0xff] }
 0x390   :  { %22115 = vst [vmem:[#allocation74_spill] sm:$0xff] %v15452_v19  ;;  %22117 = vst [vmem:[#allocation71_spill] sm:$0xff] %v15456_v61  ;;  %v15468_v21 = vmul.f32 %v14964_v24, %v22122_v40  ;;  %v15472_v22 = vmul.f32 %v22123_v17, %v14964_v24  ;;  %v12404_v13 = vld [vmem:[%s21203_s2 + $0xa8] sm:$0xff]   ;;  %v15491_v17 = vmul.f32 %v22130_v32, %v14964_v24  ;;  %v22152_v27 = vld [vmem:[#allocation99_spill] sm:$0xff] }
 0x391   :  { %22119 = vst [vmem:[#allocation73_spill] sm:$0xff] %v15460_v62  ;;  %22121 = vst [vmem:[#allocation76_spill] sm:$0xff] %v15464_v47  ;;  %v22126_v61 = vld [vmem:[#allocation88_spill] sm:$0xff]  ;;  %v22128_v47 = vld [vmem:[#allocation90_spill] sm:$0xff]  ;;  %v15511_v32 = vmul.f32 %v22139_v1, %v14964_v24  ;;  %5348 = vmatpush1.bf16.msra.mxu1 %v12404_v13 }
 0x392   :  { %22124 = vst [vmem:[#allocation78_spill] sm:$0xff] %v15472_v22  ;;  %v15483_v18 = vmul.f32 %v14964_v24, %v22126_v61  ;;  %v15487_v40 = vmul.f32 %v14964_v24, %v22128_v47  ;;  %22131 = vst [vmem:[#allocation80_spill] sm:$0xff] %v15491_v17  ;;  %v22132_v22 = vld [vmem:[#allocation89_spill] sm:$0xff]  ;;  %v15503_v61 = vmul.f32 %v14964_v24, %v22136_v12  ;;  %v22140_v17 = vld [vmem:[#allocation96_spill] sm:$0xff]  ;;  %5349 = vmatprep.subr.bf16.mxu1 %v21876_v41 }
 0x393   :  { %v15495_v20 = vmul.f32 %v22132_v22, %v14964_v24  ;;  %22135 = vst [vmem:[#allocation79_spill] sm:$0xff] %v15499_v34  ;;  %v15515_v22 = vmul.f32 %v14964_v24, %v22140_v17  ;;  %22143 = vst [vmem:[#allocation86_spill] sm:$0xff] %v15519_v30  ;;  %v22144_v12 = vld [vmem:[#allocation95_spill] sm:$0xff]  ;;  %v22148_v1 = vld [vmem:[#allocation100_spill] sm:$0xff]  ;;  %v15540_v30 = vmul.f32 %v22152_v27, %v14964_v24 }
 0x394   :  { %22127 = vst [vmem:[#allocation75_spill] sm:$0xff] %v15483_v18  ;;  %22129 = vst [vmem:[#allocation77_spill] sm:$0xff] %v15487_v40  ;;  %v22137_v18 = vld [vmem:[#allocation91_spill] sm:$0xff]  ;;  %v15523_v34 = vmul.f32 %v22144_v12, %v14964_v24  ;;  %v15532_v13 = vmul.f32 %v14964_v24, %v22148_v1  ;;  %v22150_v17 = vld [vmem:[#allocation102_spill] sm:$0xff] }
 0x395   :  { %22133 = vst [vmem:[#allocation82_spill] sm:$0xff] %v15495_v20  ;;  %v15507_v47 = vmul.f32 %v22137_v18, %v14964_v24  ;;  %22141 = vst [vmem:[#allocation84_spill] sm:$0xff] %v15515_v22  ;;  %v22146_v18 = vld [vmem:[#allocation97_spill] sm:$0xff]  ;;  %v15536_v22 = vmul.f32 %v14964_v24, %v22150_v17  ;;  %v22158_v20 = vld [vmem:[#allocation106_spill] sm:$0xff] }
 0x396   :  { %22145 = vst [vmem:[#allocation83_spill] sm:$0xff] %v15523_v34  ;;  %22149 = vst [vmem:[#allocation88_spill] sm:$0xff] %v15532_v13  ;;  %v22154_v12 = vld [vmem:[#allocation101_spill] sm:$0xff]  ;;  %v15552_v1 = vmul.f32 %v14964_v24, %v22158_v20  ;;  %v22160_v13 = vld [vmem:[#allocation103_spill] sm:$0xff] }
 0x397   :  { %22138 = vst [vmem:[#allocation81_spill] sm:$0xff] %v15507_v47  ;;  %v15527_v47 = vmul.f32 %v22146_v18, %v14964_v24  ;;  %22151 = vst [vmem:[#allocation90_spill] sm:$0xff] %v15536_v22  ;;  %v15544_v34 = vmul.f32 %v22154_v12, %v14964_v24  ;;  %v22156_v18 = vld [vmem:[#allocation104_spill] sm:$0xff]  ;;  %v15556_v17 = vmul.f32 %v22160_v13, %v14964_v24  ;;  %v22162_v22 = vld [vmem:[#allocation105_spill] sm:$0xff] }
 0x398   :  { %22153 = vst [vmem:[#allocation87_spill] sm:$0xff] %v15540_v30  ;;  %22159 = vst [vmem:[#allocation94_spill] sm:$0xff] %v15552_v1  ;;  %v15560_v27 = vmul.f32 %v22162_v22, %v14964_v24  ;;  %v22164_v30 = vld [vmem:[#allocation108_spill] sm:$0xff]  ;;  %v22170_v1 = vld [vmem:[#allocation109_spill] sm:$0xff] }
 0x399   :  { %22147 = vst [vmem:[#allocation85_spill] sm:$0xff] %v15527_v47  ;;  %22155 = vst [vmem:[#allocation89_spill] sm:$0xff] %v15544_v34  ;;  %v15548_v47 = vmul.f32 %v14964_v24, %v22156_v18  ;;  %v15564_v12 = vmul.f32 %v14964_v24, %v22164_v30  ;;  %v22166_v34 = vld [vmem:[#allocation110_spill] sm:$0xff]  ;;  %v15576_v13 = vmul.f32 %v22170_v1, %v14964_v24  ;;  %v22192_v40 = vld [vmem:[#allocation121_spill] sm:$0xff] }
 0x39a   :  { %22161 = vst [vmem:[#allocation91_spill] sm:$0xff] %v15556_v17  ;;  %22163 = vst [vmem:[#allocation93_spill] sm:$0xff] %v15560_v27  ;;  %v15568_v18 = vmul.f32 %v14964_v24, %v22166_v34  ;;  %v22172_v17 = vld [vmem:[#allocation112_spill] sm:$0xff]  ;;  %v22174_v27 = vld [vmem:[#allocation114_spill] sm:$0xff] }
 0x39b   :  { %22157 = vst [vmem:[#allocation92_spill] sm:$0xff] %v15548_v47  ;;  %22165 = vst [vmem:[#allocation96_spill] sm:$0xff] %v15564_v12  ;;  %v22168_v47 = vld [vmem:[#allocation107_spill] sm:$0xff]  ;;  %v15580_v22 = vmul.f32 %v14964_v24, %v22172_v17  ;;  %v15584_v30 = vmul.f32 %v14964_v24, %v22174_v27  ;;  %v22210_v62 = vld [vmem:[#allocation134_spill] sm:$0xff] }
 0x39c   :  { %22167 = vst [vmem:[#allocation98_spill] sm:$0xff] %v15568_v18  ;;  %v15572_v20 = vmul.f32 %v22168_v47, %v14964_v24  ;;  %22171 = vst [vmem:[#allocation97_spill] sm:$0xff] %v15576_v13  ;;  %v22176_v12 = vld [vmem:[#allocation111_spill] sm:$0xff]  ;;  %v22178_v18 = vld [vmem:[#allocation113_spill] sm:$0xff] }
 0x39d   :  { %22173 = vst [vmem:[#allocation100_spill] sm:$0xff] %v15580_v22  ;;  %22175 = vst [vmem:[#allocation102_spill] sm:$0xff] %v15584_v30  ;;  %v15588_v34 = vmul.f32 %v22176_v12, %v14964_v24  ;;  %v15592_v47 = vmul.f32 %v22178_v18, %v14964_v24  ;;  %v22182_v13 = vld [vmem:[#allocation118_spill] sm:$0xff]  ;;  %v22183_v22 = vld [vmem:[#allocation115_spill] sm:$0xff] }
 0x39e   :  { %22169 = vst [vmem:[#allocation95_spill] sm:$0xff] %v15572_v20  ;;  %v22180_v20 = vld [vmem:[#allocation116_spill] sm:$0xff]  ;;  %v15600_v17 = vmul.f32 %v14964_v24, %v22182_v13  ;;  %v15604_v27 = vmul.f32 %v22183_v22, %v14964_v24  ;;  %v22185_v30 = vld [vmem:[#allocation117_spill] sm:$0xff]  ;;  %v15624_v22 = vmul.f32 %v22192_v40, %v14964_v24 }
 0x39f   :  { %22177 = vst [vmem:[#allocation99_spill] sm:$0xff] %v15588_v34  ;;  %22179 = vst [vmem:[#allocation101_spill] sm:$0xff] %v15592_v47  ;;  %v15596_v1 = vmul.f32 %v14964_v24, %v22180_v20  ;;  %v15608_v12 = vmul.f32 %v22185_v30, %v14964_v24  ;;  %v22186_v34 = vld [vmem:[#allocation120_spill] sm:$0xff]  ;;  %v22188_v47 = vld [vmem:[#allocation122_spill] sm:$0xff] }
 0x3a0   :  { %22184 = vst [vmem:[#allocation106_spill] sm:$0xff] %v15604_v27  ;;  %v15612_v18 = vmul.f32 %v14964_v24, %v22186_v34  ;;  %v15616_v20 = vmul.f32 %v14964_v24, %v22188_v47  ;;  %22193 = vst [vmem:[#allocation110_spill] sm:$0xff] %v15624_v22  ;;  %v22194_v27 = vld [vmem:[#allocation124_spill] sm:$0xff]  ;;  %v15632_v34 = vmul.f32 %v14964_v24, %v22196_v60  ;;  %v22202_v22 = vld [vmem:[#allocation130_spill] sm:$0xff] }
 0x3a1   :  { %22181 = vst [vmem:[#allocation104_spill] sm:$0xff] %v15596_v1  ;;  %v22190_v1 = vld [vmem:[#allocation119_spill] sm:$0xff]  ;;  %v15628_v30 = vmul.f32 %v14964_v24, %v22194_v27  ;;  %v15648_v27 = vmul.f32 %v14964_v24, %v22202_v22  ;;  %v22254_v19 = vld [vmem:[#allocation156_spill] sm:$0xff]  ;;  %v22305_v38 = vld [vmem:[#allocation193_spill] sm:$0xff] }
 0x3a2   :  { %22187 = vst [vmem:[#allocation103_spill] sm:$0xff] %v15612_v18  ;;  %22189 = vst [vmem:[#allocation105_spill] sm:$0xff] %v15616_v20  ;;  %v15620_v13 = vmul.f32 %v22190_v1, %v14964_v24  ;;  %v22197_v18 = vld [vmem:[#allocation123_spill] sm:$0xff]  ;;  %v22199_v20 = vld [vmem:[#allocation125_spill] sm:$0xff]  ;;  %v15759_v58 = vmul.f32 %v14964_v24, %v22254_v19 }
 0x3a3   :  { %22195 = vst [vmem:[#allocation107_spill] sm:$0xff] %v15628_v30  ;;  %v15636_v47 = vmul.f32 %v22197_v18, %v14964_v24  ;;  %v15640_v1 = vmul.f32 %v22199_v20, %v14964_v24  ;;  %22203 = vst [vmem:[#allocation114_spill] sm:$0xff] %v15648_v27  ;;  %v22204_v30 = vld [vmem:[#allocation127_spill] sm:$0xff]  ;;  %v15656_v18 = vmul.f32 %v22206_v37, %v14964_v24  ;;  %v22214_v27 = vld [vmem:[#allocation133_spill] sm:$0xff] }
 0x3a4   :  { %22191 = vst [vmem:[#allocation108_spill] sm:$0xff] %v15620_v13  ;;  %v22200_v13 = vld [vmem:[#allocation128_spill] sm:$0xff]  ;;  %v15652_v60 = vmul.f32 %v22204_v30, %v14964_v24  ;;  %v15672_v30 = vmul.f32 %v22214_v27, %v14964_v24  ;;  %v22309_v3 = vld [vmem:[#allocation197_spill] sm:$0xff] }
 0x3a5   :  { %22198 = vst [vmem:[#allocation109_spill] sm:$0xff] %v15636_v47  ;;  %v15644_v40 = vmul.f32 %v14964_v24, %v22200_v13  ;;  %22207 = vst [vmem:[#allocation113_spill] sm:$0xff] %v15656_v18  ;;  %v22208_v47 = vld [vmem:[#allocation132_spill] sm:$0xff]  ;;  %v15664_v13 = vmul.f32 %v14964_v24, %v22210_v62  ;;  %v22218_v18 = vld [vmem:[#allocation138_spill] sm:$0xff] }
 0x3a6   :  { %22205 = vst [vmem:[#allocation111_spill] sm:$0xff] %v15652_v60  ;;  %v15660_v20 = vmul.f32 %v14964_v24, %v22208_v47  ;;  %22215 = vst [vmem:[#allocation117_spill] sm:$0xff] %v15672_v30  ;;  %v22216_v60 = vld [vmem:[#allocation136_spill] sm:$0xff]  ;;  %v15680_v47 = vmul.f32 %v14964_v24, %v22218_v18  ;;  %v22226_v30 = vld [vmem:[#allocation142_spill] sm:$0xff] }
 0x3a7   :  { %22201 = vst [vmem:[#allocation112_spill] sm:$0xff] %v15644_v40  ;;  %22211 = vst [vmem:[#allocation118_spill] sm:$0xff] %v15664_v13  ;;  %v22212_v40 = vld [vmem:[#allocation131_spill] sm:$0xff]  ;;  %v15676_v37 = vmul.f32 %v14964_v24, %v22216_v60  ;;  %v22222_v13 = vld [vmem:[#allocation137_spill] sm:$0xff]  ;;  %v15696_v60 = vmul.f32 %v14964_v24, %v22226_v30 }
 0x3a8   :  { %22209 = vst [vmem:[#allocation116_spill] sm:$0xff] %v15660_v20  ;;  %v15668_v22 = vmul.f32 %v22212_v40, %v14964_v24  ;;  %22219 = vst [vmem:[#allocation122_spill] sm:$0xff] %v15680_v47  ;;  %v22220_v20 = vld [vmem:[#allocation135_spill] sm:$0xff]  ;;  %v15688_v40 = vmul.f32 %v22222_v13, %v14964_v24  ;;  %v22230_v47 = vld [vmem:[#allocation141_spill] sm:$0xff] }
 0x3a9   :  { %22217 = vst [vmem:[#allocation120_spill] sm:$0xff] %v15676_v37  ;;  %v15684_v62 = vmul.f32 %v22220_v20, %v14964_v24  ;;  %22227 = vst [vmem:[#allocation126_spill] sm:$0xff] %v15696_v60  ;;  %v22228_v37 = vld [vmem:[#allocation139_spill] sm:$0xff]  ;;  %v15704_v20 = vmul.f32 %v22230_v47, %v14964_v24  ;;  %v22238_v60 = vld [vmem:[#allocation145_spill] sm:$0xff] }
 0x3aa   :  { %22213 = vst [vmem:[#allocation115_spill] sm:$0xff] %v15668_v22  ;;  %22223 = vst [vmem:[#allocation121_spill] sm:$0xff] %v15688_v40  ;;  %v22224_v22 = vld [vmem:[#allocation140_spill] sm:$0xff]  ;;  %v15700_v18 = vmul.f32 %v22228_v37, %v14964_v24  ;;  %v22234_v40 = vld [vmem:[#allocation146_spill] sm:$0xff]  ;;  %v15720_v37 = vmul.f32 %v22238_v60, %v14964_v24 }
 0x3ab   :  { %22221 = vst [vmem:[#allocation119_spill] sm:$0xff] %v15684_v62  ;;  %v15692_v27 = vmul.f32 %v14964_v24, %v22224_v22  ;;  %22231 = vst [vmem:[#allocation125_spill] sm:$0xff] %v15704_v20  ;;  %v22232_v62 = vld [vmem:[#allocation144_spill] sm:$0xff]  ;;  %v15712_v22 = vmul.f32 %v14964_v24, %v22234_v40  ;;  %v22242_v20 = vld [vmem:[#allocation150_spill] sm:$0xff] }
 0x3ac   :  { %22229 = vst [vmem:[#allocation123_spill] sm:$0xff] %v15700_v18  ;;  %v15708_v13 = vmul.f32 %v14964_v24, %v22232_v62  ;;  %22239 = vst [vmem:[#allocation129_spill] sm:$0xff] %v15720_v37  ;;  %v22240_v18 = vld [vmem:[#allocation148_spill] sm:$0xff]  ;;  %v15728_v62 = vmul.f32 %v14964_v24, %v22242_v20  ;;  %v12405_v60 = vld [vmem:[%s21203_s2 + $0xb0] sm:$0xff]  }
 0x3ad   :  { %22225 = vst [vmem:[#allocation124_spill] sm:$0xff] %v15692_v27  ;;  %22235 = vst [vmem:[#allocation130_spill] sm:$0xff] %v15712_v22  ;;  %v22236_v27 = vld [vmem:[#allocation143_spill] sm:$0xff]  ;;  %v15724_v47 = vmul.f32 %v14964_v24, %v22240_v18  ;;  %v22245_v22 = vld [vmem:[#allocation149_spill] sm:$0xff]  ;;  %5350 = vmatpush1.bf16.msra.mxu1 %v12405_v60 }
 0x3ae   :  { %22233 = vst [vmem:[#allocation128_spill] sm:$0xff] %v15708_v13  ;;  %v15716_v30 = vmul.f32 %v22236_v27, %v14964_v24  ;;  %v22243_v13 = vld [vmem:[#allocation147_spill] sm:$0xff]  ;;  %v15736_v27 = vmul.f32 %v22245_v22, %v14964_v24  ;;  %22255 = vst [vmem:[#allocation135_spill] sm:$0xff] %v15759_v58  ;;  %5351 = vmatprep.subr.bf16.mxu1 %v21876_v41  ;;  %v22302_v26 = vld [vmem:[#allocation192_spill] sm:$0xff] }
 0x3af   :  { %22241 = vst [vmem:[#allocation132_spill] sm:$0xff] %v15724_v47  ;;  %v15732_v40 = vmul.f32 %v22243_v13, %v14964_v24  ;;  %v22248_v47 = vld [vmem:[#allocation154_spill] sm:$0xff]  ;;  %v22250_v37 = vld [vmem:[#allocation151_spill] sm:$0xff]  ;;  %v22306_v33 = vld [vmem:[#allocation196_spill] sm:$0xff] }
 0x3b0   :  { %22237 = vst [vmem:[#allocation127_spill] sm:$0xff] %v15716_v30  ;;  %v22246_v30 = vld [vmem:[#allocation152_spill] sm:$0xff]  ;;  %v15747_v20 = vmul.f32 %v14964_v24, %v22248_v47  ;;  %v15751_v13 = vmul.f32 %v22250_v37, %v14964_v24 }
 0x3b1   :  { %22244 = vst [vmem:[#allocation134_spill] sm:$0xff] %v15732_v40  ;;  %v15743_v18 = vmul.f32 %v14964_v24, %v22246_v30  ;;  %v22252_v40 = vld [vmem:[#allocation153_spill] sm:$0xff]  ;;  %v15763_v30 = vmul.f32 %v14964_v24, %v22256_v14  ;;  %v22264_v14 = vld [vmem:[#allocation159_spill] sm:$0xff]  ;;  %v22310_v44 = vld [vmem:[#allocation200_spill] sm:$0xff] }
 0x3b2   :  { %22249 = vst [vmem:[#allocation133_spill] sm:$0xff] %v15747_v20  ;;  %22251 = vst [vmem:[#allocation136_spill] sm:$0xff] %v15751_v13  ;;  %v15755_v22 = vmul.f32 %v22252_v40, %v14964_v24  ;;  %v22259_v20 = vld [vmem:[#allocation157_spill] sm:$0xff]  ;;  %v22260_v13 = vld [vmem:[#allocation160_spill] sm:$0xff]  ;;  %v15783_v58 = vmul.f32 %v22264_v14, %v14964_v24 }
 0x3b3   :  { %22247 = vst [vmem:[#allocation131_spill] sm:$0xff] %v15743_v18  ;;  %v22257_v18 = vld [vmem:[#allocation155_spill] sm:$0xff]  ;;  %v15771_v37 = vmul.f32 %v22259_v20, %v14964_v24  ;;  %v15775_v40 = vmul.f32 %v14964_v24, %v22260_v13  ;;  %v22268_v20 = vld [vmem:[#allocation164_spill] sm:$0xff]  ;;  %v22270_v13 = vld [vmem:[#allocation166_spill] sm:$0xff] }
 0x3b4   :  { %22253 = vst [vmem:[#allocation138_spill] sm:$0xff] %v15755_v22  ;;  %v15767_v47 = vmul.f32 %v22257_v18, %v14964_v24  ;;  %v22262_v22 = vld [vmem:[#allocation162_spill] sm:$0xff]  ;;  %22265 = vst [vmem:[#allocation139_spill] sm:$0xff] %v15783_v58  ;;  %v22266_v18 = vld [vmem:[#allocation161_spill] sm:$0xff]  ;;  %v15792_v60 = vmul.f32 %v14964_v24, %v22268_v20  ;;  %v15812_v20 = vmul.f32 %v14964_v24, %v22278_v56 }
 0x3b5   :  { %22261 = vst [vmem:[#allocation140_spill] sm:$0xff] %v15775_v40  ;;  %v15779_v19 = vmul.f32 %v14964_v24, %v22262_v22  ;;  %v15796_v40 = vmul.f32 %v14964_v24, %v22270_v13  ;;  %v22272_v22 = vld [vmem:[#allocation163_spill] sm:$0xff]  ;;  %v22274_v14 = vld [vmem:[#allocation165_spill] sm:$0xff] }
 0x3b6   :  { %22258 = vst [vmem:[#allocation137_spill] sm:$0xff] %v15767_v47  ;;  %v15787_v47 = vmul.f32 %v22266_v18, %v14964_v24  ;;  %22269 = vst [vmem:[#allocation144_spill] sm:$0xff] %v15792_v60  ;;  %v15804_v58 = vmul.f32 %v22274_v14, %v14964_v24  ;;  %v22276_v18 = vld [vmem:[#allocation168_spill] sm:$0xff]  ;;  %v22280_v60 = vld [vmem:[#allocation167_spill] sm:$0xff] }
 0x3b7   :  { %22263 = vst [vmem:[#allocation142_spill] sm:$0xff] %v15779_v19  ;;  %22271 = vst [vmem:[#allocation146_spill] sm:$0xff] %v15796_v40  ;;  %v15800_v19 = vmul.f32 %v22272_v22, %v14964_v24  ;;  %v15816_v13 = vmul.f32 %v22280_v60, %v14964_v24  ;;  %v22282_v40 = vld [vmem:[#allocation169_spill] sm:$0xff] }
 0x3b8   :  { %22267 = vst [vmem:[#allocation141_spill] sm:$0xff] %v15787_v47  ;;  %22275 = vst [vmem:[#allocation145_spill] sm:$0xff] %v15804_v58  ;;  %v15808_v47 = vmul.f32 %v14964_v24, %v22276_v18  ;;  %v15820_v22 = vmul.f32 %v22282_v40, %v14964_v24  ;;  %v22286_v58 = vld [vmem:[#allocation174_spill] sm:$0xff] }
 0x3b9   :  { %22273 = vst [vmem:[#allocation143_spill] sm:$0xff] %v15800_v19  ;;  %22279 = vst [vmem:[#allocation150_spill] sm:$0xff] %v15812_v20  ;;  %v22284_v19 = vld [vmem:[#allocation172_spill] sm:$0xff]  ;;  %v15828_v18 = vmul.f32 %v14964_v24, %v22286_v58  ;;  %v22290_v20 = vld [vmem:[#allocation173_spill] sm:$0xff] }
 0x3ba   :  { %22277 = vst [vmem:[#allocation148_spill] sm:$0xff] %v15808_v47  ;;  %22281 = vst [vmem:[#allocation147_spill] sm:$0xff] %v15816_v13  ;;  %v15824_v14 = vmul.f32 %v14964_v24, %v22284_v19  ;;  %v22288_v47 = vld [vmem:[#allocation171_spill] sm:$0xff]  ;;  %v15836_v60 = vmul.f32 %v22290_v20, %v14964_v24  ;;  %v22292_v13 = vld [vmem:[#allocation182_spill] sm:$0xff] }
 0x3bb   :  { %22283 = vst [vmem:[#allocation149_spill] sm:$0xff] %v15820_v22  ;;  %22287 = vst [vmem:[#allocation154_spill] sm:$0xff] %v15828_v18  ;;  %v15832_v56 = vmul.f32 %v22288_v47, %v14964_v24  ;;  %v15840_v40 = vmul.f32 %v14964_v24, %v22292_v13  ;;  %v22293_v22 = vld [vmem:[#allocation181_spill] sm:$0xff]  ;;  %v22295_v18 = vld [vmem:[#allocation186_spill] sm:$0xff] }
 0x3bc   :  { %22285 = vst [vmem:[#allocation152_spill] sm:$0xff] %v15824_v14  ;;  %22291 = vst [vmem:[#allocation153_spill] sm:$0xff] %v15836_v60  ;;  %v15844_v19 = vmul.f32 %v22293_v22, %v14964_v24  ;;  %v22294_v14 = vld [vmem:[#allocation184_spill] sm:$0xff]  ;;  %v15852_v47 = vmul.f32 %v14964_v24, %v22295_v18  ;;  %v22297_v60 = vld [vmem:[#allocation185_spill] sm:$0xff]  ;;  %v15864_v22 = vmul.f32 %v14964_v24, %v22298_v59 }
 0x3bd   :  { %22289 = vst [vmem:[#allocation151_spill] sm:$0xff] %v15832_v56  ;;  %v15848_v58 = vmul.f32 %v14964_v24, %v22294_v14  ;;  %v22296_v56 = vld [vmem:[#allocation183_spill] sm:$0xff]  ;;  %v15860_v13 = vmul.f32 %v22297_v60, %v14964_v24  ;;  %v15868_v14 = vmul.f32 %v14964_v24, %v22299_v23  ;;  %v15872_v18 = vmul.f32 %v22300_v46, %v14964_v24 }
 0x3be   :  { %v15856_v20 = vmul.f32 %v22296_v56, %v14964_v24  ;;  %v15876_v56 = vmul.f32 %v22301_v6, %v14964_v24  ;;  %v15880_v60 = vmul.f32 %v14964_v24, %v22302_v26  ;;  %v15884_v59 = vmul.f32 %v14964_v24, %v22303_v5 }
 0x3bf   :  { %v15888_v23 = vmul.f32 %v22304_v9, %v14964_v24  ;;  %v15892_v46 = vmul.f32 %v22305_v38, %v14964_v24  ;;  %v15896_v6 = vmul.f32 %v14964_v24, %v22306_v33  ;;  %v15900_v26 = vmul.f32 %v14964_v24, %v22307_v0 }
 0x3c0   :  { %v15904_v5 = vmul.f32 %v22308_v36, %v14964_v24  ;;  %v15908_v9 = vmul.f32 %v22309_v3, %v14964_v24  ;;  %v15912_v38 = vmul.f32 %v14964_v24, %v22310_v44  ;;  %v15916_v33 = vmul.f32 %v14964_v24, %v22311_v28 }
 0x3c1   :  { %v15920_v0 = vmul.f32 %v22312_v29, %v14964_v24  ;;  %v15924_v36 = vmul.f32 %v22313_v10, %v14964_v24  ;;  %v15928_v3 = vmul.f32 %v14964_v24, %v22314_v39  ;;  %v15932_v44 = vmul.f32 %v14964_v24, %v22315_v15 }
 0x3c2   :  { %v15936_v28 = vmul.f32 %v22316_v53, %v14964_v24  ;;  %v15940_v29 = vmul.f32 %v22318_v48, %v14964_v24  ;;  %v15944_v10 = vmul.f32 %v14964_v24, %v22320_v49  ;;  %v15948_v39 = vmul.f32 %v14964_v24, %v22322_v55 }
 0x3c3   :  { %v15952_v15 = vmul.f32 %v22324_v35, %v14964_v24  ;;  %v15956_v53 = vmul.f32 %v22326_v43, %v14964_v24 }
 0x3c4   :  { %22317 = vst [vmem:[#allocation156_spill] sm:$0xff] %v15936_v28  ;;  %22319 = vst [vmem:[#allocation158_spill] sm:$0xff] %v15940_v29  ;;  %v22328_v28 = vld [vmem:[#allocation212_spill] sm:$0xff]  ;;  %v22330_v29 = vld [vmem:[#allocation214_spill] sm:$0xff] }
 0x3c5   :  { %22321 = vst [vmem:[#allocation155_spill] sm:$0xff] %v15944_v10  ;;  %22323 = vst [vmem:[#allocation157_spill] sm:$0xff] %v15948_v39  ;;  %v15960_v48 = vmul.f32 %v14964_v24, %v22328_v28  ;;  %v15964_v49 = vmul.f32 %v14964_v24, %v22330_v29  ;;  %v22332_v10 = vld [vmem:[#allocation211_spill] sm:$0xff]  ;;  %v22334_v39 = vld [vmem:[#allocation213_spill] sm:$0xff] }
 0x3c6   :  { %22325 = vst [vmem:[#allocation160_spill] sm:$0xff] %v15952_v15  ;;  %22327 = vst [vmem:[#allocation162_spill] sm:$0xff] %v15956_v53  ;;  %v15968_v55 = vmul.f32 %v22332_v10, %v14964_v24  ;;  %v15972_v35 = vmul.f32 %v22334_v39, %v14964_v24  ;;  %v22336_v15 = vld [vmem:[#allocation216_spill] sm:$0xff]  ;;  %v22337_v53 = vld [vmem:[#allocation218_spill] sm:$0xff] }
 0x3c7   :  { %22329 = vst [vmem:[#allocation159_spill] sm:$0xff] %v15960_v48  ;;  %22331 = vst [vmem:[#allocation161_spill] sm:$0xff] %v15964_v49  ;;  %v15976_v43 = vmul.f32 %v14964_v24, %v22336_v15  ;;  %v15980_v28 = vmul.f32 %v14964_v24, %v22337_v53  ;;  %v22338_v48 = vld [vmem:[#allocation215_spill] sm:$0xff]  ;;  %v22339_v49 = vld [vmem:[#allocation217_spill] sm:$0xff] }
 0x3c8   :  { %22333 = vst [vmem:[#allocation164_spill] sm:$0xff] %v15968_v55  ;;  %22335 = vst [vmem:[#allocation166_spill] sm:$0xff] %v15972_v35  ;;  %v15984_v29 = vmul.f32 %v22338_v48, %v14964_v24  ;;  %v15988_v10 = vmul.f32 %v22339_v49, %v14964_v24  ;;  %v22340_v55 = vld [vmem:[#allocation220_spill] sm:$0xff]  ;;  %v22341_v35 = vld [vmem:[#allocation219_spill] sm:$0xff]  ;;  %v16003_v48 = vadd.f32 %v14975_v42, %v14987_v54 }
 0x3c9   :  { %v15992_v39 = vmul.f32 %v14964_v24, %v22340_v55  ;;  %v15996_v15 = vmul.f32 %v22341_v35, %v14964_v24  ;;  %v12406_v53 = vld [vmem:[%s21203_s2 + $0xb8] sm:$0xff]   ;;  %v16007_v49 = vadd.f32 %v14975_v42, %v14995_v50  ;;  %v16011_v55 = vadd.f32 %v14975_v42, %v15072_v7 }
 0x3ca   :  { %v16015_v35 = vadd.f32 %v14975_v42, %v15086_v11  ;;  %v16019_v24 = vadd.f32 %v14975_v42, %v15110_v52  ;;  %v16023_v54 = vadd.f32 %v14975_v42, %v15118_v51  ;;  %v16027_v50 = vadd.f32 %v14975_v42, %v15208_v16  ;;  %5352 = vmatpush1.bf16.msra.mxu1 %v12406_v53 }
 0x3cb   :  { %v16031_v7 = vadd.f32 %v14975_v42, %v15216_v4  ;;  %v16035_v11 = vadd.f32 %v14975_v42, %v15243_v57  ;;  %v16039_v52 = vadd.f32 %v14975_v42, %v15251_v25  ;;  %v16043_v51 = vadd.f32 %v14975_v42, %v15340_v63  ;;  %5353 = vmatprep.subr.bf16.mxu1 %v21876_v41  ;;  %v22360_v53 = vld [vmem:[#allocation156_spill] sm:$0xff] }
 0x3cc   :  { %v16047_v16 = vadd.f32 %v14975_v42, %v15348_v31  ;;  %v16052_v4 = vadd.f32 %v14975_v42, %v15372_v2  ;;  %v16056_v57 = vadd.f32 %v14975_v42, %v15380_v8  ;;  %v16060_v25 = vadd.f32 %v14975_v42, %v15468_v21 }
 0x3cd   :  { %v16064_v63 = vadd.f32 %v14975_v42, %v15476_v45  ;;  %v16068_v31 = vadd.f32 %v14975_v42, %v15503_v61  ;;  %v16072_v2 = vadd.f32 %v14975_v42, %v15511_v32  ;;  %v16076_v8 = vadd.f32 %v14975_v42, %v15600_v17 }
 0x3ce   :  { %v16080_v21 = vadd.f32 %v14975_v42, %v15608_v12  ;;  %v16084_v45 = vadd.f32 %v14975_v42, %v15632_v34  ;;  %v16088_v61 = vadd.f32 %v14975_v42, %v15640_v1  ;;  %v16092_v32 = vadd.f32 %v14975_v42, %v15728_v62 }
 0x3cf   :  { %v16096_v17 = vadd.f32 %v14975_v42, %v15736_v27  ;;  %v16100_v12 = vadd.f32 %v14975_v42, %v15763_v30  ;;  %v16104_v34 = vadd.f32 %v14975_v42, %v15771_v37  ;;  %v16108_v1 = vadd.f32 %v14975_v42, %v15840_v40 }
 0x3d0   :  { %v16112_v62 = vadd.f32 %v14975_v42, %v15844_v19  ;;  %v16116_v27 = vadd.f32 %v14975_v42, %v15848_v58  ;;  %v16120_v30 = vadd.f32 %v14975_v42, %v15852_v47  ;;  %v16124_v37 = vadd.f32 %v14975_v42, %v15856_v20 }
 0x3d1   :  { %v16128_v40 = vadd.f32 %v14975_v42, %v15860_v13  ;;  %v16132_v19 = vadd.f32 %v14975_v42, %v15864_v22  ;;  %v16136_v58 = vadd.f32 %v14975_v42, %v15868_v14  ;;  %v16140_v47 = vadd.f32 %v14975_v42, %v15872_v18 }
 0x3d2   :  { %22342 = vst [vmem:[#allocation163_spill] sm:$0xff] %v16116_v27  ;;  %22343 = vst [vmem:[#allocation165_spill] sm:$0xff] %v16124_v37  ;;  %v16144_v20 = vadd.f32 %v14975_v42, %v15876_v56  ;;  %v16148_v13 = vadd.f32 %v14975_v42, %v15880_v60  ;;  %v16152_v22 = vadd.f32 %v14975_v42, %v15884_v59 }
 0x3d3   :  { %22344 = vst [vmem:[#allocation168_spill] sm:$0xff] %v16132_v19  ;;  %22345 = vst [vmem:[#allocation170_spill] sm:$0xff] %v16140_v47  ;;  %v16156_v14 = vadd.f32 %v14975_v42, %v15888_v23  ;;  %v16160_v18 = vadd.f32 %v14975_v42, %v15892_v46  ;;  %v16164_v56 = vadd.f32 %v14975_v42, %v15896_v6 }
 0x3d4   :  { %22346 = vst [vmem:[#allocation167_spill] sm:$0xff] %v16148_v13  ;;  %22347 = vst [vmem:[#allocation169_spill] sm:$0xff] %v16152_v22  ;;  %v16168_v60 = vadd.f32 %v14975_v42, %v15900_v26  ;;  %v16172_v59 = vadd.f32 %v14975_v42, %v15904_v5  ;;  %v16176_v23 = vadd.f32 %v14975_v42, %v15908_v9  ;;  %v22386_v22 = vld [vmem:[#allocation225_spill] sm:$0xff]  ;;  %v22413_v13 = vld [vmem:[#allocation244_spill] sm:$0xff] }
 0x3d5   :  { %22348 = vst [vmem:[#allocation172_spill] sm:$0xff] %v16156_v14  ;;  %22349 = vst [vmem:[#allocation174_spill] sm:$0xff] %v16160_v18  ;;  %v16180_v46 = vadd.f32 %v14975_v42, %v15912_v38  ;;  %v16184_v6 = vadd.f32 %v14975_v42, %v15916_v33  ;;  %v16188_v26 = vadd.f32 %v14975_v42, %v15920_v0  ;;  %v22392_v14 = vmax.f32 %v16003_v48, 0.0 }
 0x3d6   :  { %22350 = vst [vmem:[#allocation171_spill] sm:$0xff] %v16164_v56  ;;  %22351 = vst [vmem:[#allocation173_spill] sm:$0xff] %v16168_v60  ;;  %v16192_v5 = vadd.f32 %v14975_v42, %v15924_v36  ;;  %v16196_v9 = vadd.f32 %v14975_v42, %v15928_v3  ;;  %v16200_v38 = vadd.f32 %v14975_v42, %v15932_v44  ;;  %v22416_v60 = vld [vmem:[#allocation251_spill] sm:$0xff]  ;;  %v22446_v56 = vld [vmem:[#allocation54_spill] sm:$0xff] }
 0x3d7   :  { %22352 = vst [vmem:[#allocation182_spill] sm:$0xff] %v16172_v59  ;;  %22353 = vst [vmem:[#allocation181_spill] sm:$0xff] %v16176_v23  ;;  %v16204_v33 = vadd.f32 %v14975_v42, %v22360_v53 }
 0x3d8   :  { %22354 = vst [vmem:[#allocation184_spill] sm:$0xff] %v16180_v46  ;;  %22355 = vst [vmem:[#allocation186_spill] sm:$0xff] %v16184_v6  ;;  %v22362_v6 = vld [vmem:[#allocation158_spill] sm:$0xff] }
 0x3d9   :  { %22356 = vst [vmem:[#allocation183_spill] sm:$0xff] %v16188_v26  ;;  %22357 = vst [vmem:[#allocation185_spill] sm:$0xff] %v16192_v5  ;;  %v16208_v0 = vadd.f32 %v14975_v42, %v22362_v6  ;;  %v22364_v26 = vld [vmem:[#allocation155_spill] sm:$0xff]  ;;  %v22366_v5 = vld [vmem:[#allocation157_spill] sm:$0xff] }
 0x3da   :  { %22358 = vst [vmem:[#allocation188_spill] sm:$0xff] %v16196_v9  ;;  %22359 = vst [vmem:[#allocation190_spill] sm:$0xff] %v16200_v38  ;;  %v16212_v36 = vadd.f32 %v14975_v42, %v22364_v26  ;;  %v16216_v3 = vadd.f32 %v14975_v42, %v22366_v5  ;;  %v22368_v9 = vld [vmem:[#allocation160_spill] sm:$0xff]  ;;  %v22370_v38 = vld [vmem:[#allocation162_spill] sm:$0xff] }
 0x3db   :  { %22361 = vst [vmem:[#allocation187_spill] sm:$0xff] %v16204_v33  ;;  %22363 = vst [vmem:[#allocation189_spill] sm:$0xff] %v16208_v0  ;;  %v16220_v44 = vadd.f32 %v14975_v42, %v22368_v9  ;;  %v16224_v53 = vadd.f32 %v14975_v42, %v22370_v38  ;;  %v22371_v33 = vld [vmem:[#allocation159_spill] sm:$0xff]  ;;  %v22373_v0 = vld [vmem:[#allocation161_spill] sm:$0xff]  ;;  %v16244_v38 = vadd.f32 %v14975_v42, %v15976_v43 }
 0x3dc   :  { %22365 = vst [vmem:[#allocation192_spill] sm:$0xff] %v16212_v36  ;;  %22367 = vst [vmem:[#allocation194_spill] sm:$0xff] %v16216_v3  ;;  %v16228_v6 = vadd.f32 %v14975_v42, %v22371_v33  ;;  %v16232_v26 = vadd.f32 %v14975_v42, %v22373_v0  ;;  %v22374_v36 = vld [vmem:[#allocation164_spill] sm:$0xff]  ;;  %v22376_v3 = vld [vmem:[#allocation166_spill] sm:$0xff]  ;;  %v16248_v33 = vadd.f32 %v14975_v42, %v15980_v28 }
 0x3dd   :  { %22369 = vst [vmem:[#allocation191_spill] sm:$0xff] %v16220_v44  ;;  %v16236_v5 = vadd.f32 %v14975_v42, %v22374_v36  ;;  %v16240_v9 = vadd.f32 %v14975_v42, %v22376_v3  ;;  %22377 = vst [vmem:[#allocation198_spill] sm:$0xff] %v16244_v38  ;;  %v16252_v0 = vadd.f32 %v14975_v42, %v15984_v29  ;;  %v12407_v3 = vld [vmem:[%s21203_s2 + $0xc0] sm:$0xff]   ;;  %v3847_v29 = vmax.f32 %v16043_v51, 0.0  ;;  %v22414_v38 = vld [vmem:[#allocation245_spill] sm:$0xff] }
 0x3de   :  { %22372 = vst [vmem:[#allocation193_spill] sm:$0xff] %v16228_v6  ;;  %22378 = vst [vmem:[#allocation195_spill] sm:$0xff] %v16248_v33  ;;  %v16256_v36 = vadd.f32 %v14975_v42, %v15988_v10  ;;  %v16263_v43 = vadd.f32 %v14975_v42, %v15992_v39  ;;  %v16267_v28 = vadd.f32 %v14975_v42, %v15996_v15  ;;  %v3785_v10 = vmax.f32 %v16015_v35, 0.0  ;;  %v22458_v33 = vld [vmem:[#allocation23_spill] sm:$0xff] }
 0x3df   :  { %22375 = vst [vmem:[#allocation196_spill] sm:$0xff] %v16236_v5  ;;  %22379 = vst [vmem:[#allocation197_spill] sm:$0xff] %v16252_v0  ;;  %v3783_v0 = vmax.f32 %v16011_v55, 0.0  ;;  %v3791_v5 = vmax.f32 %v16019_v24, 0.0  ;;  %v3793_v6 = vmax.f32 %v16023_v54, 0.0  ;;  %5354 = vmatpush1.bf16.msra.mxu1 %v12407_v3  ;;  %v3815_v39 = vmax.f32 %v16027_v50, 0.0 }
 0x3e0   :  { %22380 = vst [vmem:[#allocation200_spill] sm:$0xff] %v16256_v36  ;;  %22381 = vst [vmem:[#allocation202_spill] sm:$0xff] %v16263_v43  ;;  %v3817_v43 = vmax.f32 %v16031_v7, 0.0  ;;  %v3823_v15 = vmax.f32 %v16035_v11, 0.0  ;;  %5355 = vmatprep.subr.bf16.mxu1 %v21876_v41  ;;  %v3849_v55 = vmax.f32 %v16047_v16, 0.0  ;;  %v3855_v35 = vmax.f32 %v16052_v4, 0.0 }
 0x3e1   :  { %22382 = vst [vmem:[#allocation199_spill] sm:$0xff] %v16267_v28  ;;  %v3825_v28 = vmax.f32 %v16039_v52, 0.0  ;;  %v3857_v24 = vmax.f32 %v16056_v57, 0.0  ;;  %v3879_v54 = vmax.f32 %v16060_v25, 0.0  ;;  %v3881_v50 = vmax.f32 %v16064_v63, 0.0  ;;  %v22412_v63 = vld [vmem:[#allocation243_spill] sm:$0xff] }
 0x3e2   :  { %v3887_v7 = vmax.f32 %v16068_v31, 0.0  ;;  %v3889_v11 = vmax.f32 %v16072_v2, 0.0  ;;  %v3911_v52 = vmax.f32 %v16076_v8, 0.0  ;;  %v3913_v3 = vmax.f32 %v16080_v21, 0.0 }
 0x3e3   :  { %v16319_v8 = vmul.f32 %v22386_v22, %v3783_v0  ;;  %v16322_v21 = vmul.f32 %v22386_v22, %v3785_v10  ;;  %v16325_v51 = vmul.f32 %v22386_v22, %v3791_v5  ;;  %v4054_v4 = vmul.f32 %v22386_v22, %v3793_v6 }
 0x3e4   :  { %v16329_v57 = vmul.f32 %v22386_v22, %v3815_v39  ;;  %v16332_v25 = vmul.f32 %v22386_v22, %v3817_v43  ;;  %v16335_v31 = vmul.f32 %v22386_v22, %v3823_v15  ;;  %v4086_v0 = vmul.f32 %v22386_v22, %v3825_v28  ;;  %v12408_v28 = vld [vmem:[%s21203_s2 + $0xc8] sm:$0xff]  }
 0x3e5   :  { %v16339_v2 = vmul.f32 %v22386_v22, %v3847_v29  ;;  %v16342_v10 = vmul.f32 %v22386_v22, %v3849_v55  ;;  %v16345_v5 = vmul.f32 %v22386_v22, %v3855_v35  ;;  %v4118_v6 = vmul.f32 %v22386_v22, %v3857_v24  ;;  %5356 = vmatpush1.bf16.msra.mxu1 %v12408_v28 }
 0x3e6   :  { %v16349_v39 = vmul.f32 %v22386_v22, %v3879_v54  ;;  %v16352_v43 = vmul.f32 %v22386_v22, %v3881_v50  ;;  %v16358_v29 = vmul.f32 %v22386_v22, %v3887_v7  ;;  %v4150_v15 = vmul.f32 %v22386_v22, %v3889_v11  ;;  %5357 = vmatprep.subr.bf16.mxu1 %v21876_v41 }
 0x3e7   :  { %v16362_v55 = vmul.f32 %v22386_v22, %v3911_v52  ;;  %v16365_v35 = vmul.f32 %v22386_v22, %v3913_v3  ;;  %v16375_v11 = vmul.f32 %v22386_v22, %v22392_v14  ;;  %v16379_v52 = vpack.c.bf16 %v16322_v21, %v16319_v8 }
 0x3e8   :  { %v16382_v3 = vpack.c.bf16 %v4054_v4, %v16325_v51  ;;  %v16387_v44 = vpack.c.bf16 %v16332_v25, %v16329_v57  ;;  %v16390_v28 = vpack.c.bf16 %v4086_v0, %v16335_v31  ;;  %v16394_v48 = vpack.c.bf16 %v16342_v10, %v16339_v2 }
 0x3e9   :  { %22393 = vst [vmem:[#allocation201_spill] sm:$0xff] %v16375_v11  ;;  %22394 = vst [vmem:[#allocation204_spill] sm:$0xff] %v16379_v52  ;;  %v16397_v14 = vpack.c.bf16 %v4118_v6, %v16345_v5  ;;  %v22400_v54 = vmax.f32 %v16007_v49, 0.0  ;;  %v16406_v59 = vpack.c.bf16 %v16352_v43, %v16349_v39  ;;  %v16409_v50 = vpack.c.bf16 %v4150_v15, %v16358_v29 }
 0x3ea   :  { %22395 = vst [vmem:[#allocation206_spill] sm:$0xff] %v16382_v3  ;;  %22396 = vst [vmem:[#allocation203_spill] sm:$0xff] %v16387_v44  ;;  %v16413_v0 = vpack.c.bf16 %v16365_v35, %v16362_v55  ;;  %v22405_v7 = vmax.f32 %v16084_v45, 0.0  ;;  %v22406_v49 = vmax.f32 %v16088_v61, 0.0  ;;  %v22407_v16 = vmax.f32 %v16092_v32, 0.0  ;;  %v22411_v61 = vld [vmem:[#allocation241_spill] sm:$0xff] }
 0x3eb   :  { %22397 = vst [vmem:[#allocation205_spill] sm:$0xff] %v16390_v28  ;;  %22398 = vst [vmem:[#allocation208_spill] sm:$0xff] %v16394_v48  ;;  %v16402_v4 = vmul.f32 %v22386_v22, %v22400_v54  ;;  %v22408_v15 = vmax.f32 %v16096_v17, 0.0  ;;  %v3525_v32 = vadd.f32 %v14975_v42, %v22412_v63  ;;  %v3528_v17 = vadd.f32 %v14975_v42, %v22414_v38 }
 0x3ec   :  { %22399 = vst [vmem:[#allocation210_spill] sm:$0xff] %v16397_v14  ;;  %22402 = vst [vmem:[#allocation209_spill] sm:$0xff] %v16406_v59  ;;  %v16418_v6 = vmul.f32 %v22386_v22, %v22405_v7  ;;  %v16423_v54 = vmul.f32 %v22386_v22, %v22406_v49  ;;  %v16428_v24 = vmul.f32 %v22386_v22, %v22407_v16  ;;  %v22410_v7 = vld [vmem:[#allocation242_spill] sm:$0xff] }
 0x3ed   :  { %22401 = vst [vmem:[#allocation207_spill] sm:$0xff] %v16402_v4  ;;  %22403 = vst [vmem:[#allocation212_spill] sm:$0xff] %v16409_v50  ;;  %v16433_v46 = vmul.f32 %v22386_v22, %v22408_v15  ;;  %v22409_v4 = vld [vmem:[#allocation240_spill] sm:$0xff]  ;;  %v3524_v11 = vadd.f32 %v14975_v42, %v22410_v7  ;;  %v3523_v49 = vadd.f32 %v14975_v42, %v22411_v61  ;;  %v22415_v15 = vld [vmem:[#allocation249_spill] sm:$0xff]  ;;  %v3781_v19 = vmax.f32 %v3525_v32, 0.0 }
 0x3ee   :  { %22404 = vst [vmem:[#allocation214_spill] sm:$0xff] %v16413_v0  ;;  %v3522_v45 = vadd.f32 %v14975_v42, %v22409_v4  ;;  %v3526_v16 = vadd.f32 %v14975_v42, %v22413_v13  ;;  %v3531_v23 = vadd.f32 %v14975_v42, %v22415_v15  ;;  %v3533_v4 = vadd.f32 %v14975_v42, %v22416_v60 }
 0x3ef   :  { %v3780_v7 = vmax.f32 %v3524_v11, 0.0  ;;  %v3779_v47 = vmax.f32 %v3523_v49, 0.0  ;;  %v3784_v37 = vmax.f32 %v3528_v17, 0.0  ;;  %v4042_v0 = vmul.f32 %v22386_v22, %v3781_v19  ;;  %v22424_v17 = vld [vmem:[#allocation248_spill] sm:$0xff] }
 0x3f0   :  { %v3778_v18 = vmax.f32 %v3522_v45, 0.0  ;;  %v3782_v61 = vmax.f32 %v3526_v16, 0.0  ;;  %v3787_v27 = vmax.f32 %v3531_v23, 0.0  ;;  %v3789_v63 = vmax.f32 %v3533_v4, 0.0 }
 0x3f1   :  { %v4041_v13 = vmul.f32 %v22386_v22, %v3780_v7  ;;  %v4040_v38 = vmul.f32 %v22386_v22, %v3779_v47  ;;  %v4045_v60 = vmul.f32 %v22386_v22, %v3784_v37  ;;  %v22419_v32 = vmov 0.0   ;;  %v22426_v7 = vld [vmem:[#allocation18_spill] sm:$0xff] }
 0x3f2   :  { %v4039_v36 = vmul.f32 %v22386_v22, %v3778_v18  ;;  %v4043_v15 = vmul.f32 %v22386_v22, %v3782_v61  ;;  %v4048_v11 = vmul.f32 %v22386_v22, %v3787_v27  ;;  %v4050_v45 = vmul.f32 %v22386_v22, %v3789_v63  ;;  %v22425_v27 = vld [vmem:[#allocation250_spill] sm:$0xff] }
 0x3f3   :  { %v16461_v23 = vpack.c.bf16 %v4042_v0, %v4040_v38  ;;  %v16464_v18 = vpack.c.bf16 %v4040_v38, %v22419_v32  ;;  %v16467_v16 = vpack.c.bf16 %v16319_v8, %v4042_v0  ;;  %v3530_v37 = vadd.f32 %v14975_v42, %v22424_v17  ;;  %v22427_v0 = vld [vmem:[#allocation17_spill] sm:$0xff] }
 0x3f4   :  { %v16459_v49 = vpack.c.bf16 %v4041_v13, %v4039_v36  ;;  %v16469_v47 = vpack.c.bf16 %v4045_v60, %v4043_v15  ;;  %v16471_v19 = vpack.c.bf16 %v4050_v45, %v4048_v11  ;;  %v3532_v4 = vadd.f32 %v14975_v42, %v22425_v27  ;;  %v22429_v15 = vld [vmem:[#allocation252_spill] sm:$0xff]  ;;  %v22430_v17 = vld [vmem:[#allocation253_spill] sm:$0xff] }
 0x3f5   :  { %22418 = vst [vmem:[#allocation213_spill] sm:$0xff] %v16461_v23  ;;  %22420 = vst [vmem:[#allocation216_spill] sm:$0xff] %v16464_v18  ;;  %11722 = vmatprep.mubr.bf16.mxu0 %v16461_v23  ;;  %v3555_v8 = vadd.f32 %v14975_v42, %v22426_v7  ;;  %v3557_v61 = vadd.f32 %v14975_v42, %v22427_v0  ;;  %v16485_v63 = vpack.c.bf16 %v4048_v11, %v16322_v21  ;;  %v12409_v7 = vld [vmem:[%s21203_s2 + $0xd0] sm:$0xff]   ;;  %v22444_v23 = vld [vmem:[#allocation22_spill] sm:$0xff] }
 0x3f6   :  { %22417 = vst [vmem:[#allocation211_spill] sm:$0xff] %v16459_v49  ;;  %22421 = vst [vmem:[#allocation218_spill] sm:$0xff] %v16467_v16  ;;  %5112 = vmatprep.mubr.bf16.mxu1 %v16459_v49  ;;  %11723 = vmatmul.mubr.bf16.vlgmr.msra.gmra.mrb[0].mxu0 %v16379_v52  ;;  %v3786_v13 = vmax.f32 %v3530_v37, 0.0  ;;  %v3788_v38 = vmax.f32 %v3532_v4, 0.0  ;;  %v3534_v60 = vadd.f32 %v14975_v42, %v22429_v15  ;;  %v22431_v0 = vld [vmem:[#allocation21_spill] sm:$0xff]  ;;  %v22432_v4 = vld [vmem:[#allocation26_spill] sm:$0xff] }
 0x3f7   :  { %22422 = vst [vmem:[#allocation215_spill] sm:$0xff] %v16469_v47  ;;  %22423 = vst [vmem:[#allocation217_spill] sm:$0xff] %v16471_v19  ;;  %5113 = vmatmul.mubr.bf16.gmra.mrb[16].mxu1 %v16464_v18  ;;  %v3536_v27 = vadd.f32 %v14975_v42, %v22430_v17  ;;  %11726 = vmatprep.mubr.bf16.mxu0 %v16471_v19  ;;  %v3811_v21 = vmax.f32 %v3555_v8, 0.0  ;;  %v3813_v11 = vmax.f32 %v3557_v61, 0.0 }
 0x3f8   :  { %22428 = vst [vmem:[#allocation220_spill] sm:$0xff] %v16485_v63  ;;  %5120 = vmatprep.mubr.bf16.mxu1 %v16469_v47  ;;  %v3563_v37 = vadd.f32 %v14975_v42, %v22431_v0  ;;  %v3565_v36 = vadd.f32 %v14975_v42, %v22432_v4  ;;  %v4047_v15 = vmul.f32 %v22386_v22, %v3786_v13  ;;  %v3790_v18 = vmax.f32 %v3534_v60, 0.0 }
 0x3f9   :  { %v4049_v17 = vmul.f32 %v22386_v22, %v3788_v38  ;;  %v3792_v49 = vmax.f32 %v3536_v27, 0.0  ;;  %5358 = vmatpush1.bf16.msra.mxu1 %v12409_v7  ;;  %v16505_v52 = vmul.f32 %v22386_v22, %v3811_v21  ;;  %v4074_v47 = vmul.f32 %v22386_v22, %v3813_v11  ;;  %v22436_v21 = vld [vmem:[#allocation16_spill] sm:$0xff] }
 0x3fa   :  { %v3819_v8 = vmax.f32 %v3563_v37, 0.0  ;;  %v3821_v61 = vmax.f32 %v3565_v36, 0.0  ;;  %5359 = vmatprep.subr.bf16.mxu1 %v21876_v41  ;;  %v4051_v4 = vmul.f32 %v22386_v22, %v3790_v18  ;;  %v16514_v38 = vpack.c.bf16 %v16325_v51, %v4050_v45  ;;  %v22438_v37 = vld [vmem:[#allocation15_spill] sm:$0xff]  ;;  %v22440_v51 = vld [vmem:[#allocation45_spill] sm:$0xff] }
 0x3fb   :  { %v16509_v0 = vpack.c.bf16 %v4049_v17, %v4047_v15  ;;  %v4053_v13 = vmul.f32 %v22386_v22, %v3792_v49  ;;  %v16517_v60 = vpack.c.bf16 %v4074_v47, %v16505_v52  ;;  %v3554_v36 = vadd.f32 %v14975_v42, %v22436_v21  ;;  %v22439_v15 = vld [vmem:[#allocation46_spill] sm:$0xff]  ;;  %v22443_v21 = vld [vmem:[#allocation20_spill] sm:$0xff] }
 0x3fc   :  { %22434 = vst [vmem:[#allocation156_spill] sm:$0xff] %v16514_v38  ;;  %v4080_v27 = vmul.f32 %v22386_v22, %v3819_v8  ;;  %v4082_v7 = vmul.f32 %v22386_v22, %v3821_v61  ;;  %v3556_v18 = vadd.f32 %v14975_v42, %v22438_v37  ;;  %v3587_v49 = vadd.f32 %v14975_v42, %v22439_v15 }
 0x3fd   :  { %22433 = vst [vmem:[#allocation219_spill] sm:$0xff] %v16509_v0  ;;  %22435 = vst [vmem:[#allocation158_spill] sm:$0xff] %v16517_v60  ;;  %v16523_v11 = vpack.c.bf16 %v4053_v13, %v4051_v4  ;;  %v3589_v45 = vadd.f32 %v14975_v42, %v22440_v51  ;;  %v22441_v17 = vmax.f32 %v16100_v12, 0.0  ;;  %v3810_v19 = vmax.f32 %v3554_v36, 0.0 }
 0x3fe   :  { %v16536_v61 = vpack.c.bf16 %v4082_v7, %v4080_v27  ;;  %v3558_v4 = vadd.f32 %v14975_v42, %v22443_v21  ;;  %11727 = vmatmul.mubr.bf16.gmra.mrb[4].mxu0 %v16382_v3  ;;  %v3812_v13 = vmax.f32 %v3556_v18, 0.0  ;;  %v3843_v37 = vmax.f32 %v3587_v49, 0.0  ;;  %v22455_v3 = vld [vmem:[#allocation73_spill] sm:$0xff] }
 0x3ff   :  { %22437 = vst [vmem:[#allocation155_spill] sm:$0xff] %v16523_v11  ;;  %v16534_v8 = vmul.f32 %v22386_v22, %v22441_v17  ;;  %5121 = vmatmul.mubr.bf16.gmra.mrb[20].mxu1 %v16467_v16  ;;  %v3845_v15 = vmax.f32 %v3589_v45, 0.0  ;;  %v3560_v51 = vadd.f32 %v14975_v42, %v22444_v23  ;;  %11730 = vmatprep.mubr.bf16.mxu0 %v16517_v60  ;;  %v22445_v17 = vld [vmem:[#allocation49_spill] sm:$0xff] }
 0x400   :  { %22442 = vst [vmem:[#allocation157_spill] sm:$0xff] %v16536_v61  ;;  %5128 = vmatprep.mubr.bf16.mxu1 %v16509_v0  ;;  %v4071_v12 = vmul.f32 %v22386_v22, %v3810_v19  ;;  %v3814_v36 = vmax.f32 %v3558_v4, 0.0  ;;  %v3595_v21 = vadd.f32 %v14975_v42, %v22445_v17  ;;  %v3597_v16 = vadd.f32 %v14975_v42, %v22446_v56 }
 0x401   :  { %v4073_v18 = vmul.f32 %v22386_v22, %v3812_v13  ;;  %v16553_v49 = vmul.f32 %v22386_v22, %v3843_v37  ;;  %v16556_v23 = vmul.f32 %v22386_v22, %v3845_v15  ;;  %v3816_v45 = vmax.f32 %v3560_v51, 0.0  ;;  %v22451_v37 = vld [vmem:[#allocation19_spill] sm:$0xff] }
 0x402   :  { %v4075_v0 = vmul.f32 %v22386_v22, %v3814_v36  ;;  %v3851_v60 = vmax.f32 %v3595_v21, 0.0  ;;  %v3853_v19 = vmax.f32 %v3597_v16, 0.0  ;;  %v16560_v4 = vpack.c.bf16 %v16329_v57, %v4074_v47  ;;  %v22452_v16 = vld [vmem:[#allocation24_spill] sm:$0xff]  ;;  %v22453_v47 = vld [vmem:[#allocation74_spill] sm:$0xff] }
 0x403   :  { %22447 = vst [vmem:[#allocation160_spill] sm:$0xff] %v16553_v49  ;;  %v16562_v17 = vpack.c.bf16 %v4073_v18, %v4071_v12  ;;  %v16566_v56 = vpack.c.bf16 %v16556_v23, %v16553_v49  ;;  %v4077_v13 = vmul.f32 %v22386_v22, %v3816_v45  ;;  %v3562_v15 = vadd.f32 %v14975_v42, %v22451_v37 }
 0x404   :  { %22448 = vst [vmem:[#allocation162_spill] sm:$0xff] %v16560_v4  ;;  %v16572_v51 = vmul.f32 %v22386_v22, %v3851_v60  ;;  %v16575_v36 = vmul.f32 %v22386_v22, %v3853_v19  ;;  %v3564_v57 = vadd.f32 %v14975_v42, %v22452_v16  ;;  %v3619_v12 = vadd.f32 %v14975_v42, %v22453_v47 }
 0x405   :  { %22449 = vst [vmem:[#allocation159_spill] sm:$0xff] %v16562_v17  ;;  %22450 = vst [vmem:[#allocation161_spill] sm:$0xff] %v16566_v56  ;;  %v16581_v21 = vpack.c.bf16 %v4077_v13, %v4075_v0  ;;  %v3818_v18 = vmax.f32 %v3562_v15, 0.0  ;;  %v3621_v45 = vadd.f32 %v14975_v42, %v22455_v3  ;;  %v16586_v37 = vpack.c.bf16 %v4080_v27, %v16332_v25  ;;  %v22459_v3 = vld [vmem:[#allocation25_spill] sm:$0xff] }
 0x406   :  { %v16590_v60 = vpack.c.bf16 %v16575_v36, %v16572_v51  ;;  %v3820_v19 = vmax.f32 %v3564_v57, 0.0  ;;  %v3875_v49 = vmax.f32 %v3619_v12, 0.0  ;;  %v3566_v16 = vadd.f32 %v14975_v42, %v22458_v33  ;;  %11731 = vmatmul.mubr.bf16.gmra.mrb[8].mxu0 %v16387_v44  ;;  %v22460_v27 = vld [vmem:[#allocation77_spill] sm:$0xff]  ;;  %v12410_v57 = vld [vmem:[%s21203_s2 + $0xd8] sm:$0xff]  }
 0x407   :  { %22454 = vst [vmem:[#allocation164_spill] sm:$0xff] %v16581_v21  ;;  %22456 = vst [vmem:[#allocation166_spill] sm:$0xff] %v16586_v37  ;;  %5129 = vmatmul.mubr.bf16.gmra.mrb[24].mxu1 %v16485_v63  ;;  %v4079_v0 = vmul.f32 %v22386_v22, %v3818_v18  ;;  %v3877_v13 = vmax.f32 %v3621_v45, 0.0  ;;  %v3568_v25 = vadd.f32 %v14975_v42, %v22459_v3  ;;  %11734 = vmatprep.mubr.bf16.mxu0 %v16536_v61  ;;  %v22462_v18 = vld [vmem:[#allocation82_spill] sm:$0xff] }
 0x408   :  { %22457 = vst [vmem:[#allocation240_spill] sm:$0xff] %v16590_v60  ;;  %v3627_v15 = vadd.f32 %v14975_v42, %v22460_v27  ;;  %5136 = vmatprep.mubr.bf16.mxu1 %v16523_v11  ;;  %v4081_v33 = vmul.f32 %v22386_v22, %v3820_v19  ;;  %v16608_v47 = vmul.f32 %v22386_v22, %v3875_v49  ;;  %v3822_v12 = vmax.f32 %v3566_v16, 0.0  ;;  %v22465_v49 = vld [vmem:[#allocation44_spill] sm:$0xff] }
 0x409   :  { %v3629_v45 = vadd.f32 %v14975_v42, %v22462_v18  ;;  %v16613_v3 = vmul.f32 %v22386_v22, %v3877_v13  ;;  %v3824_v27 = vmax.f32 %v3568_v25, 0.0  ;;  %v16616_v44 = vpack.c.bf16 %v16335_v31, %v4082_v7  ;;  %5360 = vmatpush1.bf16.msra.mxu1 %v12410_v57  ;;  %v22467_v7 = vld [vmem:[#allocation43_spill] sm:$0xff]  ;;  %v22469_v18 = vld [vmem:[#allocation101_spill] sm:$0xff] }
 0x40a   :  { %22461 = vst [vmem:[#allocation242_spill] sm:$0xff] %v16608_v47  ;;  %v3883_v63 = vmax.f32 %v3627_v15, 0.0  ;;  %v16618_v11 = vpack.c.bf16 %v4081_v33, %v4079_v0  ;;  %v4083_v19 = vmul.f32 %v22386_v22, %v3822_v12  ;;  %v3586_v16 = vadd.f32 %v14975_v42, %v22465_v49  ;;  %5361 = vmatprep.subr.bf16.mxu1 %v21876_v41  ;;  %v22468_v33 = vld [vmem:[#allocation102_spill] sm:$0xff] }
 0x40b   :  { %22463 = vst [vmem:[#allocation241_spill] sm:$0xff] %v16616_v44  ;;  %v3885_v61 = vmax.f32 %v3629_v45, 0.0  ;;  %v16626_v13 = vpack.c.bf16 %v16613_v3, %v16608_v47  ;;  %v4085_v25 = vmul.f32 %v22386_v22, %v3824_v27  ;;  %v3588_v0 = vadd.f32 %v14975_v42, %v22467_v7  ;;  %v22472_v47 = vld [vmem:[#allocation48_spill] sm:$0xff] }
 0x40c   :  { %22464 = vst [vmem:[#allocation243_spill] sm:$0xff] %v16618_v11  ;;  %v16630_v31 = vmul.f32 %v22386_v22, %v3883_v63  ;;  %v3842_v57 = vmax.f32 %v3586_v16, 0.0  ;;  %v3651_v12 = vadd.f32 %v14975_v42, %v22468_v33  ;;  %v3653_v45 = vadd.f32 %v14975_v42, %v22469_v18  ;;  %v22475_v18 = vld [vmem:[#allocation105_spill] sm:$0xff] }
 0x40d   :  { %22466 = vst [vmem:[#allocation244_spill] sm:$0xff] %v16626_v13  ;;  %v16635_v15 = vmul.f32 %v22386_v22, %v3885_v61  ;;  %v16643_v49 = vpack.c.bf16 %v16505_v52, %v22419_v32  ;;  %v16645_v27 = vpack.c.bf16 %v4085_v25, %v4083_v19  ;;  %v3844_v63 = vmax.f32 %v3588_v0, 0.0  ;;  %v22474_v19 = vld [vmem:[#allocation50_spill] sm:$0xff] }
 0x40e   :  { %v3590_v7 = vadd.f32 %v14975_v42, %v22472_v47  ;;  %v4103_v16 = vmul.f32 %v22386_v22, %v3842_v57  ;;  %v3907_v33 = vmax.f32 %v3651_v12, 0.0  ;;  %v3909_v50 = vmax.f32 %v3653_v45, 0.0  ;;  %11735 = vmatmul.mubr.bf16.gmra.mrb[12].mxu0 %v16390_v28  ;;  %v22477_v45 = vld [vmem:[#allocation110_spill] sm:$0xff] }
 0x40f   :  { %22470 = vst [vmem:[#allocation245_spill] sm:$0xff] %v16643_v49  ;;  %22471 = vst [vmem:[#allocation249_spill] sm:$0xff] %v16645_v27  ;;  %v16651_v61 = vpack.c.bf16 %v16635_v15, %v16630_v31  ;;  %5137 = vmatmul.mubr.bf16.gmra.mrb[28].mxu1 %v16514_v38  ;;  %v4105_v52 = vmul.f32 %v22386_v22, %v3844_v63  ;;  %v3592_v25 = vadd.f32 %v14975_v42, %v22474_v19 }
 0x410   :  { %v3846_v0 = vmax.f32 %v3590_v7, 0.0  ;;  %v3659_v47 = vadd.f32 %v14975_v42, %v22475_v18  ;;  %5144 = vmatprep.mubr.bf16.mxu1 %v16562_v17  ;;  %11738 = vmatprep.mubr.bf16.mxu0 %v16566_v56  ;;  %v16665_v57 = vmul.f32 %v22386_v22, %v3907_v33  ;;  %v16668_v12 = vmul.f32 %v22386_v22, %v3909_v50  ;;  %v22481_v50 = vld [vmem:[#allocation47_spill] sm:$0xff] }
 0x411   :  { %22473 = vst [vmem:[#allocation251_spill] sm:$0xff] %v16651_v61  ;;  %v3661_v63 = vadd.f32 %v14975_v42, %v22477_v45  ;;  %v16672_v19 = vpack.c.bf16 %v4105_v52, %v4103_v16  ;;  %v3848_v7 = vmax.f32 %v3592_v25, 0.0  ;;  %v16681_v33 = vpack.c.bf16 %v16339_v2, %v16556_v23  ;;  %v22482_v52 = vld [vmem:[#allocation52_spill] sm:$0xff]  ;;  %v22484_v2 = vld [vmem:[#allocation129_spill] sm:$0xff] }
 0x412   :  { %22476 = vst [vmem:[#allocation248_spill] sm:$0xff] %v16665_v57  ;;  %v4107_v18 = vmul.f32 %v22386_v22, %v3846_v0  ;;  %v3915_v38 = vmax.f32 %v3659_v47, 0.0  ;;  %v16677_v32 = vpack.c.bf16 %v16668_v12, %v16665_v57  ;;  %v3594_v56 = vadd.f32 %v14975_v42, %v22481_v50  ;;  %v22483_v0 = vld [vmem:[#allocation130_spill] sm:$0xff] }
 0x413   :  { %22478 = vst [vmem:[#allocation250_spill] sm:$0xff] %v16672_v19  ;;  %v3917_v17 = vmax.f32 %v3661_v63, 0.0  ;;  %22480 = vst [vmem:[#allocation17_spill] sm:$0xff] %v16681_v33  ;;  %v4109_v45 = vmul.f32 %v22386_v22, %v3848_v7  ;;  %v3596_v25 = vadd.f32 %v14975_v42, %v22482_v52  ;;  %v3683_v47 = vadd.f32 %v14975_v42, %v22483_v0  ;;  %v22487_v33 = vld [vmem:[#allocation51_spill] sm:$0xff] }
 0x414   :  { %22479 = vst [vmem:[#allocation18_spill] sm:$0xff] %v16677_v32  ;;  %v16687_v16 = vmul.f32 %v22386_v22, %v3915_v38  ;;  %v3850_v28 = vmax.f32 %v3594_v56, 0.0  ;;  %v3685_v23 = vadd.f32 %v14975_v42, %v22484_v2  ;;  %v16700_v50 = vpack.c.bf16 %v16572_v51, %v16342_v10  ;;  %v22489_v32 = vld [vmem:[#allocation53_spill] sm:$0xff] }
 0x415   :  { %v16694_v63 = vmul.f32 %v22386_v22, %v3917_v17  ;;  %v16702_v7 = vpack.c.bf16 %v4109_v45, %v4107_v18  ;;  %v3852_v38 = vmax.f32 %v3596_v25, 0.0  ;;  %v3939_v57 = vmax.f32 %v3683_v47, 0.0  ;;  %v22492_v47 = vld [vmem:[#allocation138_spill] sm:$0xff] }
 0x416   :  { %22485 = vst [vmem:[#allocation252_spill] sm:$0xff] %v16700_v50  ;;  %v3598_v52 = vadd.f32 %v14975_v42, %v22487_v33  ;;  %v4111_v17 = vmul.f32 %v22386_v22, %v3850_v28  ;;  %v3941_v56 = vmax.f32 %v3685_v23, 0.0  ;;  %v3600_v2 = vadd.f32 %v14975_v42, %v22489_v32  ;;  %11739 = vmatmul.mubr.bf16.gmra.mrb[16].mxu0 %v16394_v48  ;;  %v22490_v33 = vld [vmem:[#allocation133_spill] sm:$0xff]  ;;  %v12411_v28 = vld [vmem:[%s21203_s2 + $0xe0] sm:$0xff]  }
 0x417   :  { %22486 = vst [vmem:[#allocation253_spill] sm:$0xff] %v16702_v7  ;;  %v16708_v0 = vpack.c.bf16 %v16694_v63, %v16687_v16  ;;  %5145 = vmatmul.mubr.bf16.gmra.mrb[32].mxu1 %v16643_v49  ;;  %v4113_v10 = vmul.f32 %v22386_v22, %v3852_v38  ;;  %v16717_v51 = vmul.f32 %v22386_v22, %v3939_v57  ;;  %v22495_v49 = vld [vmem:[#allocation72_spill] sm:$0xff]  ;;  %v22501_v48 = vmax.f32 %v16104_v34, 0.0 }
 0x418   :  { %v3854_v18 = vmax.f32 %v3598_v52, 0.0  ;;  %v3691_v45 = vadd.f32 %v14975_v42, %v22490_v33  ;;  %5152 = vmatprep.mubr.bf16.mxu1 %v16581_v21  ;;  %11742 = vmatprep.mubr.bf16.mxu0 %v16590_v60  ;;  %v16727_v32 = vmul.f32 %v22386_v22, %v3941_v56  ;;  %v3856_v25 = vmax.f32 %v3600_v2, 0.0  ;;  %v22497_v60 = vld [vmem:[#allocation71_spill] sm:$0xff] }
 0x419   :  { %22488 = vst [vmem:[#allocation21_spill] sm:$0xff] %v16708_v0  ;;  %v3693_v57 = vadd.f32 %v14975_v42, %v22492_v47  ;;  %v16733_v23 = vpack.c.bf16 %v16345_v5, %v16575_v36  ;;  %v16735_v38 = vpack.c.bf16 %v4113_v10, %v4111_v17  ;;  %v3618_v21 = vadd.f32 %v14975_v42, %v22495_v49  ;;  %v22498_v10 = vld [vmem:[#allocation178_spill] sm:$0xff] }
 0x41a   :  { %22491 = vst [vmem:[#allocation26_spill] sm:$0xff] %v16727_v32  ;;  %v4115_v52 = vmul.f32 %v22386_v22, %v3854_v18  ;;  %v3947_v33 = vmax.f32 %v3691_v45, 0.0  ;;  %5362 = vmatpush1.bf16.msra.mxu1 %v12411_v28  ;;  %v16742_v56 = vpack.c.bf16 %v16727_v32, %v16717_v51  ;;  %v4117_v2 = vmul.f32 %v22386_v22, %v3856_v25  ;;  %v22499_v18 = vld [vmem:[#allocation223_spill] sm:$0xff]  ;;  %v22500_v45 = vld [vmem:[#allocation177_spill] sm:$0xff] }
 0x41b   :  { %22493 = vst [vmem:[#allocation16_spill] sm:$0xff] %v16733_v23  ;;  %22494 = vst [vmem:[#allocation15_spill] sm:$0xff] %v16735_v38  ;;  %v3949_v47 = vmax.f32 %v3693_v57, 0.0  ;;  %v3620_v5 = vadd.f32 %v14975_v42, %v22497_v60  ;;  %5363 = vmatprep.subr.bf16.mxu1 %v21876_v41  ;;  %v3874_v17 = vmax.f32 %v3618_v21, 0.0  ;;  %v3455_v49 = vmul.f32 %v22499_v18, %v22498_v10 }
 0x41c   :  { %22496 = vst [vmem:[#allocation46_spill] sm:$0xff] %v16742_v56  ;;  %v16749_v36 = vmul.f32 %v22386_v22, %v3947_v33  ;;  %v3457_v28 = vmul.f32 %v22500_v45, %v22499_v18  ;;  %v4214_v25 = vmul.f32 %v22386_v22, %v22501_v48  ;;  %v16758_v57 = vpack.c.bf16 %v4117_v2, %v4115_v52 }
 0x41d   :  { %v16761_v60 = vmul.f32 %v22386_v22, %v3949_v47  ;;  %v3876_v23 = vmax.f32 %v3620_v5, 0.0  ;;  %v4135_v33 = vmul.f32 %v22386_v22, %v3874_v17  ;;  %v3715_v21 = vadd.f32 %v14975_v42, %v3455_v49  ;;  %v22506_v47 = vld [vmem:[#allocation76_spill] sm:$0xff]  ;;  %v22507_v49 = vld [vmem:[#allocation78_spill] sm:$0xff] }
 0x41e   :  { %22502 = vst [vmem:[#allocation45_spill] sm:$0xff] %v16758_v57  ;;  %v3717_v32 = vadd.f32 %v14975_v42, %v3457_v28  ;;  %v22503_v10 = vmax.f32 %v16108_v1, 0.0  ;;  %v22505_v52 = vmax.f32 %v16112_v62, 0.0  ;;  %v3622_v5 = vadd.f32 %v14975_v42, %v22506_v47  ;;  %11743 = vmatmul.mubr.bf16.gmra.mrb[20].mxu0 %v16397_v14 }
 0x41f   :  { %v16773_v34 = vpack.c.bf16 %v16761_v60, %v16749_v36  ;;  %v4137_v48 = vmul.f32 %v22386_v22, %v3876_v23  ;;  %5153 = vmatmul.mubr.bf16.gmra.mrb[36].mxu1 %v16560_v4  ;;  %v3971_v1 = vmax.f32 %v3715_v21, 0.0  ;;  %v3624_v28 = vadd.f32 %v14975_v42, %v22507_v49  ;;  %11746 = vmatprep.mubr.bf16.mxu0 %v16626_v13 }
 0x420   :  { %v16769_v45 = vmul.f32 %v22386_v22, %v22503_v10  ;;  %v16779_v2 = vmul.f32 %v22386_v22, %v22505_v52  ;;  %v3973_v17 = vmax.f32 %v3717_v32, 0.0  ;;  %v22508_v10 = vmax.f32 %v16120_v30, 0.0  ;;  %5160 = vmatprep.mubr.bf16.mxu1 %v16618_v11  ;;  %v22517_v11 = vld [vmem:[#allocation80_spill] sm:$0xff] }
 0x421   :  { %22504 = vst [vmem:[#allocation20_spill] sm:$0xff] %v16773_v34  ;;  %v16794_v62 = vpack.c.bf16 %v4137_v48, %v4135_v33  ;;  %v3878_v21 = vmax.f32 %v3622_v5, 0.0  ;;  %v22511_v32 = vmax.f32 %v16128_v40, 0.0  ;;  %v16806_v30 = vmul.f32 %v22386_v22, %v3971_v1  ;;  %v22516_v40 = vld [vmem:[#allocation75_spill] sm:$0xff] }
 0x422   :  { %v16790_v23 = vmul.f32 %v22386_v22, %v22508_v10  ;;  %v16798_v52 = vpack.c.bf16 %v16779_v2, %v16769_v45  ;;  %v16809_v49 = vmul.f32 %v22386_v22, %v3973_v17  ;;  %v3880_v10 = vmax.f32 %v3624_v28, 0.0 }
 0x423   :  { %22509 = vst [vmem:[#allocation22_spill] sm:$0xff] %v16794_v62  ;;  %v16803_v47 = vmul.f32 %v22386_v22, %v22511_v32  ;;  %22513 = vst [vmem:[#allocation19_spill] sm:$0xff] %v16806_v30  ;;  %v16813_v33 = vpack.c.bf16 %v16349_v39, %v16613_v3  ;;  %v4139_v48 = vmul.f32 %v22386_v22, %v3878_v21  ;;  %v22518_v17 = vmax.f32 %v16136_v58, 0.0  ;;  %v22523_v58 = vld [vmem:[#allocation79_spill] sm:$0xff] }
 0x424   :  { %22510 = vst [vmem:[#allocation49_spill] sm:$0xff] %v16798_v52  ;;  %v3626_v32 = vadd.f32 %v14975_v42, %v22516_v40  ;;  %v3628_v1 = vadd.f32 %v14975_v42, %v22517_v11  ;;  %v22520_v39 = vmax.f32 %v16144_v20, 0.0  ;;  %v16834_v21 = vpack.c.bf16 %v16809_v49, %v16806_v30  ;;  %v22545_v30 = vld [vmem:[#allocation107_spill] sm:$0xff] }
 0x425   :  { %22512 = vst [vmem:[#allocation54_spill] sm:$0xff] %v16803_v47  ;;  %22514 = vst [vmem:[#allocation24_spill] sm:$0xff] %v16813_v33  ;;  %v16818_v5 = vpack.c.bf16 %v16803_v47, %v16790_v23  ;;  %v16827_v28 = vmul.f32 %v22386_v22, %v22518_v17  ;;  %v4141_v4 = vmul.f32 %v22386_v22, %v3880_v10  ;;  %v22524_v14 = vmax.f32 %v16232_v26, 0.0 }
 0x426   :  { %v4246_v3 = vmul.f32 %v22386_v22, %v22520_v39  ;;  %22521 = vst [vmem:[#allocation23_spill] sm:$0xff] %v16834_v21  ;;  %v3882_v13 = vmax.f32 %v3626_v32, 0.0  ;;  %v3884_v40 = vmax.f32 %v3628_v1, 0.0  ;;  %v16839_v11 = vpack.c.bf16 %v16630_v31, %v16352_v43  ;;  %v22529_v32 = vld [vmem:[#allocation81_spill] sm:$0xff]  ;;  %11747 = vmatmul.mubr.bf16.gmra.mrb[24].mxu0 %v16406_v59  ;;  %v22538_v59 = vld [vmem:[#allocation106_spill] sm:$0xff] }
 0x427   :  { %22515 = vst [vmem:[#allocation74_spill] sm:$0xff] %v16818_v5  ;;  %22519 = vst [vmem:[#allocation73_spill] sm:$0xff] %v16827_v28  ;;  %v3630_v17 = vadd.f32 %v14975_v42, %v22523_v58  ;;  %v16846_v20 = vmul.f32 %v22386_v22, %v22524_v14  ;;  %v22526_v39 = vmax.f32 %v16240_v9, 0.0  ;;  %v16853_v10 = vpack.c.bf16 %v4141_v4, %v4139_v48  ;;  %v22532_v48 = vld [vmem:[#allocation100_spill] sm:$0xff] }
 0x428   :  { %22522 = vst [vmem:[#allocation25_spill] sm:$0xff] %v16839_v11  ;;  %v3632_v1 = vadd.f32 %v14975_v42, %v22529_v32  ;;  %v16859_v43 = vpack.c.bf16 %v16423_v54, %v16418_v6  ;;  %v4143_v31 = vmul.f32 %v22386_v22, %v3882_v13  ;;  %v4145_v26 = vmul.f32 %v22386_v22, %v3884_v40  ;;  %v12412_v13 = vld [vmem:[%s21203_s2 + $0xe8] sm:$0xff]  }
 0x429   :  { %22525 = vst [vmem:[#allocation77_spill] sm:$0xff] %v16846_v20  ;;  %v16851_v47 = vmul.f32 %v22386_v22, %v22526_v39  ;;  %22528 = vst [vmem:[#allocation44_spill] sm:$0xff] %v16853_v10  ;;  %v3886_v14 = vmax.f32 %v3630_v17, 0.0  ;;  %5161 = vmatmul.mubr.bf16.gmra.mrb[40].mxu1 %v16586_v37  ;;  %v16867_v4 = vpack.c.bf16 %v16358_v29, %v16635_v15  ;;  %v22533_v39 = vld [vmem:[#allocation99_spill] sm:$0xff]  ;;  %11750 = vmatprep.mubr.bf16.mxu0 %v16651_v61  ;;  %v22537_v40 = vld [vmem:[#allocation104_spill] sm:$0xff] }
 0x42a   :  { %22530 = vst [vmem:[#allocation43_spill] sm:$0xff] %v16859_v43  ;;  %v3888_v9 = vmax.f32 %v3632_v1, 0.0  ;;  %v3650_v58 = vadd.f32 %v14975_v42, %v22532_v48  ;;  %v3652_v54 = vadd.f32 %v14975_v42, %v22533_v39  ;;  %v16879_v17 = vpack.c.bf16 %v16433_v46, %v16428_v24  ;;  %5168 = vmatprep.mubr.bf16.mxu1 %v16645_v27 }
 0x42b   :  { %22527 = vst [vmem:[#allocation82_spill] sm:$0xff] %v16851_v47  ;;  %22531 = vst [vmem:[#allocation102_spill] sm:$0xff] %v16867_v4  ;;  %v16883_v29 = vpack.c.bf16 %v4145_v26, %v4143_v31  ;;  %v4147_v15 = vmul.f32 %v22386_v22, %v3886_v14  ;;  %v16887_v32 = vpack.c.bf16 %v4214_v25, %v16534_v8  ;;  %5364 = vmatpush1.bf16.msra.mxu1 %v12412_v13  ;;  %v22540_v26 = vld [vmem:[#allocation103_spill] sm:$0xff] }
 0x42c   :  { %22534 = vst [vmem:[#allocation101_spill] sm:$0xff] %v16879_v17  ;;  %v4149_v1 = vmul.f32 %v22386_v22, %v3888_v9  ;;  %v3906_v48 = vmax.f32 %v3650_v58, 0.0  ;;  %v3908_v39 = vmax.f32 %v3652_v54, 0.0  ;;  %v3654_v37 = vadd.f32 %v14975_v42, %v22537_v40  ;;  %5365 = vmatprep.subr.bf16.mxu1 %v21876_v41  ;;  %v22542_v54 = vld [vmem:[#allocation108_spill] sm:$0xff] }
 0x42d   :  { %22535 = vst [vmem:[#allocation48_spill] sm:$0xff] %v16883_v29  ;;  %22536 = vst [vmem:[#allocation50_spill] sm:$0xff] %v16887_v32  ;;  %v3656_v27 = vadd.f32 %v14975_v42, %v22538_v59  ;;  %v16896_v31 = vpack.c.bf16 %v16362_v55, %v16668_v12  ;;  %v3658_v14 = vadd.f32 %v14975_v42, %v22540_v26 }
 0x42e   :  { %v16901_v25 = vpack.c.bf16 %v4149_v1, %v4147_v15  ;;  %v4167_v9 = vmul.f32 %v22386_v22, %v3906_v48  ;;  %v4169_v58 = vmul.f32 %v22386_v22, %v3908_v39  ;;  %v3660_v13 = vadd.f32 %v14975_v42, %v22542_v54  ;;  %v22546_v1 = vld [vmem:[#allocation109_spill] sm:$0xff] }
 0x42f   :  { %22539 = vst [vmem:[#allocation105_spill] sm:$0xff] %v16896_v31  ;;  %v3910_v40 = vmax.f32 %v3654_v37, 0.0  ;;  %v3912_v59 = vmax.f32 %v3656_v27, 0.0  ;;  %v3914_v61 = vmax.f32 %v3658_v14, 0.0  ;;  %v16909_v55 = vpack.c.bf16 %v16687_v16, %v16365_v35  ;;  %v22548_v35 = vld [vmem:[#allocation212_spill] sm:$0xff] }
 0x430   :  { %22541 = vst [vmem:[#allocation110_spill] sm:$0xff] %v16901_v25  ;;  %v16911_v12 = vpack.c.bf16 %v4169_v58, %v4167_v9  ;;  %v3916_v26 = vmax.f32 %v3660_v13, 0.0  ;;  %v3662_v15 = vadd.f32 %v14975_v42, %v22545_v30  ;;  %v3664_v48 = vadd.f32 %v14975_v42, %v22546_v1  ;;  %11751 = vmatmul.mubr.bf16.gmra.mrb[28].mxu0 %v22548_v35  ;;  %v22549_v58 = vld [vmem:[#allocation128_spill] sm:$0xff]  ;;  %v22550_v13 = vld [vmem:[#allocation195_spill] sm:$0xff] }
 0x431   :  { %22543 = vst [vmem:[#allocation47_spill] sm:$0xff] %v16909_v55  ;;  %v16918_v39 = vpack.c.bf16 %v4246_v3, %v16827_v28  ;;  %v4171_v37 = vmul.f32 %v22386_v22, %v3910_v40  ;;  %v4173_v27 = vmul.f32 %v22386_v22, %v3912_v59  ;;  %v4175_v14 = vmul.f32 %v22386_v22, %v3914_v61  ;;  %v22551_v59 = vld [vmem:[#allocation18_spill] sm:$0xff]  ;;  %v22553_v1 = vld [vmem:[#allocation127_spill] sm:$0xff]  ;;  %v22556_v35 = vld [vmem:[#allocation160_spill] sm:$0xff] }
 0x432   :  { %22544 = vst [vmem:[#allocation52_spill] sm:$0xff] %v16911_v12  ;;  %5169 = vmatmul.mubr.bf16.gmra.mrb[44].mxu1 %v16616_v44  ;;  %v4177_v16 = vmul.f32 %v22386_v22, %v3916_v26  ;;  %v3918_v9 = vmax.f32 %v3662_v15, 0.0  ;;  %v3920_v30 = vmax.f32 %v3664_v48, 0.0  ;;  %v3682_v54 = vadd.f32 %v14975_v42, %v22549_v58  ;;  %11754 = vmatprep.mubr.bf16.mxu0 %v22551_v59 }
 0x433   :  { %22547 = vst [vmem:[#allocation130_spill] sm:$0xff] %v16918_v39  ;;  %5176 = vmatprep.mubr.bf16.mxu1 %v16672_v19  ;;  %v16933_v61 = vpack.c.bf16 %v4173_v27, %v4171_v37  ;;  %v3684_v44 = vadd.f32 %v14975_v42, %v22553_v1  ;;  %v22555_v3 = vmov 0.0   ;;  %v22558_v19 = vld [vmem:[#allocation132_spill] sm:$0xff]  ;;  %v22559_v37 = vld [vmem:[#allocation134_spill] sm:$0xff] }
 0x434   :  { %v16937_v26 = vpack.c.bf16 %v4177_v16, %v4175_v14  ;;  %v4179_v15 = vmul.f32 %v22386_v22, %v3918_v9  ;;  %v4181_v48 = vmul.f32 %v22386_v22, %v3920_v30  ;;  %v3938_v58 = vmax.f32 %v3682_v54, 0.0  ;;  %v22561_v16 = vld [vmem:[#allocation131_spill] sm:$0xff]  ;;  %v22562_v30 = vld [vmem:[#allocation136_spill] sm:$0xff] }
 0x435   :  { %22552 = vst [vmem:[#allocation129_spill] sm:$0xff] %v16933_v61  ;;  %v16943_v28 = vpack.c.bf16 %v22556_v35, %v22555_v3  ;;  %v3940_v40 = vmax.f32 %v3684_v44, 0.0  ;;  %v3686_v59 = vadd.f32 %v14975_v42, %v22558_v19  ;;  %v3688_v27 = vadd.f32 %v14975_v42, %v22559_v37  ;;  %v22563_v35 = vld [vmem:[#allocation242_spill] sm:$0xff] }
 0x436   :  { %22554 = vst [vmem:[#allocation51_spill] sm:$0xff] %v16937_v26  ;;  %v16949_v55 = vpack.c.bf16 %v4181_v48, %v4179_v15  ;;  %v4199_v14 = vmul.f32 %v22386_v22, %v3938_v58  ;;  %v3690_v9 = vadd.f32 %v14975_v42, %v22561_v16  ;;  %v3692_v54 = vadd.f32 %v14975_v42, %v22562_v30  ;;  %v22565_v15 = vld [vmem:[#allocation135_spill] sm:$0xff]  ;;  %v22566_v58 = vld [vmem:[#allocation137_spill] sm:$0xff]  ;;  %v22567_v16 = vld [vmem:[#allocation194_spill] sm:$0xff] }
 0x437   :  { %22557 = vst [vmem:[#allocation53_spill] sm:$0xff] %v16943_v28  ;;  %v16958_v1 = vpack.c.bf16 %v22563_v35, %v22555_v3  ;;  %v4201_v44 = vmul.f32 %v22386_v22, %v3940_v40  ;;  %v3942_v19 = vmax.f32 %v3686_v59, 0.0  ;;  %v3944_v26 = vmax.f32 %v3688_v27, 0.0  ;;  %v22571_v59 = vld [vmem:[#allocation214_spill] sm:$0xff] }
 0x438   :  { %22560 = vst [vmem:[#allocation133_spill] sm:$0xff] %v16949_v55  ;;  %v3946_v31 = vmax.f32 %v3690_v9, 0.0  ;;  %v3948_v37 = vmax.f32 %v3692_v54, 0.0  ;;  %v3694_v48 = vadd.f32 %v14975_v42, %v22565_v15  ;;  %v3696_v55 = vadd.f32 %v14975_v42, %v22566_v58  ;;  %11755 = vmatmul.mubr.bf16.gmra.mrb[32].mxu0 %v22571_v59  ;;  %v22594_v59 = vld [vmem:[#allocation17_spill] sm:$0xff] }
 0x439   :  { %22564 = vst [vmem:[#allocation138_spill] sm:$0xff] %v16958_v1  ;;  %v22568_v61 = vmax.f32 %v22567_v16, 0.0  ;;  %v16970_v12 = vpack.c.bf16 %v4201_v44, %v4199_v14  ;;  %v4203_v35 = vmul.f32 %v22386_v22, %v3942_v19  ;;  %v4205_v40 = vmul.f32 %v22386_v22, %v3944_v26  ;;  %v22572_v14 = vld [vmem:[#allocation200_spill] sm:$0xff]  ;;  %11758 = vmatprep.mubr.bf16.mxu0 %v16708_v0 }
 0x43a   :  { %5177 = vmatmul.mubr.bf16.gmra.mrb[48].mxu1 %v16943_v28  ;;  %v4207_v27 = vmul.f32 %v22386_v22, %v3946_v31  ;;  %v4209_v9 = vmul.f32 %v22386_v22, %v3948_v37  ;;  %v3950_v54 = vmax.f32 %v3694_v48, 0.0  ;;  %v3952_v15 = vmax.f32 %v3696_v55, 0.0  ;;  %v22574_v19 = vld [vmem:[#allocation176_spill] sm:$0xff]  ;;  %v22575_v31 = vld [vmem:[#allocation175_spill] sm:$0xff] }
 0x43b   :  { %v16968_v30 = vmul.f32 %v22386_v22, %v22568_v61  ;;  %22570 = vst [vmem:[#allocation71_spill] sm:$0xff] %v16970_v12  ;;  %v12413_v61 = vld [vmem:[%s21203_s2 + $0xf0] sm:$0xff]   ;;  %v4013_v44 = vmax.f32 %v22572_v14, 0.0  ;;  %5184 = vmatprep.mubr.bf16.mxu1 %v16702_v7  ;;  %v16984_v26 = vpack.c.bf16 %v4205_v40, %v4203_v35  ;;  %v3454_v58 = vmul.f32 %v22499_v18, %v22574_v19  ;;  %v22579_v19 = vld [vmem:[#allocation180_spill] sm:$0xff] }
 0x43c   :  { %v3456_v37 = vmul.f32 %v22575_v31, %v22499_v18  ;;  %v22576_v55 = vmax.f32 %v16224_v53, 0.0  ;;  %v16995_v16 = vpack.c.bf16 %v4209_v9, %v4207_v27  ;;  %v4211_v14 = vmul.f32 %v22386_v22, %v3950_v54  ;;  %5366 = vmatpush1.bf16.msra.mxu1 %v12413_v61  ;;  %v22580_v31 = vld [vmem:[#allocation179_spill] sm:$0xff]  ;;  %v22585_v61 = vld [vmem:[#allocation165_spill] sm:$0xff] }
 0x43d   :  { %22569 = vst [vmem:[#allocation72_spill] sm:$0xff] %v16968_v30  ;;  %22573 = vst [vmem:[#allocation178_spill] sm:$0xff] %v16984_v26  ;;  %v4213_v7 = vmul.f32 %v22386_v22, %v3952_v15  ;;  %v3714_v35 = vadd.f32 %v14975_v42, %v3454_v58  ;;  %v3458_v28 = vmul.f32 %v22499_v18, %v22579_v19  ;;  %5367 = vmatprep.subr.bf16.mxu1 %v21876_v41  ;;  %v22583_v9 = vld [vmem:[#allocation163_spill] sm:$0xff] }
 0x43e   :  { %v16993_v48 = vmul.f32 %v22386_v22, %v22576_v55  ;;  %22578 = vst [vmem:[#allocation177_spill] sm:$0xff] %v16995_v16  ;;  %v3716_v40 = vadd.f32 %v14975_v42, %v3456_v37  ;;  %v3460_v53 = vmul.f32 %v22580_v31, %v22499_v18  ;;  %v17010_v27 = vpack.c.bf16 %v16769_v45, %v16809_v49  ;;  %v22589_v49 = vld [vmem:[#allocation168_spill] sm:$0xff]  ;;  %v22654_v16 = vld [vmem:[#allocation98_spill] sm:$0xff] }
 0x43f   :  { %v17006_v55 = vpack.c.bf16 %v4213_v7, %v4211_v14  ;;  %v22584_v54 = vmax.f32 %v22583_v9, 0.0  ;;  %v22586_v58 = vmax.f32 %v22585_v61, 0.0  ;;  %v3970_v19 = vmax.f32 %v3714_v35, 0.0 }
 0x440   :  { %22577 = vst [vmem:[#allocation223_spill] sm:$0xff] %v16993_v48  ;;  %22582 = vst [vmem:[#allocation78_spill] sm:$0xff] %v17010_v27  ;;  %v3972_v0 = vmax.f32 %v3716_v40, 0.0  ;;  %v3718_v18 = vadd.f32 %v14975_v42, %v3458_v28  ;;  %v3720_v31 = vadd.f32 %v14975_v42, %v3460_v53  ;;  %v17024_v45 = vpack.c.bf16 %v16790_v23, %v16779_v2 }
 0x441   :  { %22581 = vst [vmem:[#allocation76_spill] sm:$0xff] %v17006_v55  ;;  %v4239_v15 = vmul.f32 %v22386_v22, %v22584_v54  ;;  %v4241_v37 = vmul.f32 %v22386_v22, %v22586_v58  ;;  %v22590_v14 = vmax.f32 %v22589_v49, 0.0  ;;  %v22591_v54 = vld [vmem:[#allocation170_spill] sm:$0xff]  ;;  %v4231_v35 = vmul.f32 %v22386_v22, %v3970_v19  ;;  %11759 = vmatmul.mubr.bf16.gmra.mrb[36].mxu0 %v16859_v43  ;;  %v22608_v43 = vld [vmem:[#allocation248_spill] sm:$0xff] }
 0x442   :  { %22588 = vst [vmem:[#allocation80_spill] sm:$0xff] %v17024_v45  ;;  %v22592_v61 = vmax.f32 %v22591_v54, 0.0  ;;  %v4233_v28 = vmul.f32 %v22386_v22, %v3972_v0  ;;  %v3974_v40 = vmax.f32 %v3718_v18, 0.0  ;;  %v3976_v53 = vmax.f32 %v3720_v31, 0.0  ;;  %5185 = vmatmul.mubr.bf16.gmra.mrb[52].mxu1 %v22594_v59  ;;  %11762 = vmatprep.mubr.bf16.mxu0 %v16742_v56  ;;  %v22643_v19 = vld [vmem:[#allocation30_spill] sm:$0xff] }
 0x443   :  { %v17020_v7 = vpack.c.bf16 %v4241_v37, %v4239_v15  ;;  %v4243_v9 = vmul.f32 %v22386_v22, %v22590_v14  ;;  %v22595_v2 = vmax.f32 %v22550_v13, 0.0  ;;  %v17043_v49 = vmul.f32 %v22386_v22, %v4013_v44  ;;  %5192 = vmatprep.mubr.bf16.mxu1 %v16735_v38  ;;  %v22607_v38 = vld [vmem:[#allocation237_spill] sm:$0xff] }
 0x444   :  { %v4245_v58 = vmul.f32 %v22386_v22, %v22592_v61  ;;  %v17050_v18 = vpack.c.bf16 %v4233_v28, %v4231_v35  ;;  %v4235_v31 = vmul.f32 %v22386_v22, %v3974_v40  ;;  %v4237_v13 = vmul.f32 %v22386_v22, %v3976_v53  ;;  %v22601_v61 = vld [vmem:[#allocation227_spill] sm:$0xff]  ;;  %v22605_v35 = vld [vmem:[#allocation233_spill] sm:$0xff] }
 0x445   :  { %22587 = vst [vmem:[#allocation75_spill] sm:$0xff] %v17020_v7  ;;  %v17040_v23 = vmul.f32 %v22386_v22, %v22595_v2  ;;  %22597 = vst [vmem:[#allocation81_spill] sm:$0xff] %v17043_v49  ;;  %v3509_v44 = vadd.f32 %v14975_v42, %v22601_v61  ;;  %v22603_v2 = vld [vmem:[#allocation231_spill] sm:$0xff]  ;;  %v3515_v28 = vadd.f32 %v14975_v42, %v22605_v35  ;;  %v22625_v61 = vld [vmem:[#allocation265_spill] sm:$0xff] }
 0x446   :  { %v17045_v14 = vpack.c.bf16 %v4245_v58, %v4243_v9  ;;  %22600 = vst [vmem:[#allocation99_spill] sm:$0xff] %v17050_v18  ;;  %v22602_v9 = vld [vmem:[#allocation229_spill] sm:$0xff]  ;;  %v3513_v0 = vadd.f32 %v14975_v42, %v22603_v2  ;;  %v17062_v37 = vpack.c.bf16 %v4237_v13, %v4235_v31  ;;  %v22606_v40 = vld [vmem:[#allocation235_spill] sm:$0xff]  ;;  %v3519_v54 = vadd.f32 %v14975_v42, %v22607_v38 }
 0x447   :  { %22596 = vst [vmem:[#allocation79_spill] sm:$0xff] %v17040_v23  ;;  %v3511_v58 = vadd.f32 %v14975_v42, %v22602_v9  ;;  %v3517_v53 = vadd.f32 %v14975_v42, %v22606_v40  ;;  %v3765_v59 = vmax.f32 %v3509_v44, 0.0  ;;  %v17074_v2 = vpack.c.bf16 %v22608_v43, %v22555_v3  ;;  %v22650_v18 = vld [vmem:[#allocation89_spill] sm:$0xff] }
 0x448   :  { %22598 = vst [vmem:[#allocation100_spill] sm:$0xff] %v17045_v14  ;;  %22604 = vst [vmem:[#allocation104_spill] sm:$0xff] %v17062_v37  ;;  %v3769_v9 = vmax.f32 %v3513_v0, 0.0  ;;  %v3771_v31 = vmax.f32 %v3515_v28, 0.0  ;;  %v3775_v14 = vmax.f32 %v3519_v54, 0.0  ;;  %v17078_v35 = vpack.c.bf16 %v16418_v6, %v16694_v63  ;;  %v22642_v63 = vld [vmem:[#allocation66_spill] sm:$0xff] }
 0x449   :  { %v3767_v56 = vmax.f32 %v3511_v58, 0.0  ;;  %22609 = vst [vmem:[#allocation106_spill] sm:$0xff] %v17074_v2  ;;  %v3773_v13 = vmax.f32 %v3517_v53, 0.0  ;;  %v17081_v40 = vmul.f32 %v22386_v22, %v3765_v59  ;;  %v17091_v43 = vpack.c.bf16 %v16717_v51, %v22555_v3  ;;  %11763 = vmatmul.mubr.bf16.gmra.mrb[40].mxu0 %v16879_v17  ;;  %v12414_v51 = vld [vmem:[%s21203_s2 + $0xf8] sm:$0xff]   ;;  %v22616_v58 = vld [vmem:[#allocation257_spill] sm:$0xff]  ;;  %v22617_v53 = vld [vmem:[#allocation259_spill] sm:$0xff] }
 0x44a   :  { %22610 = vst [vmem:[#allocation103_spill] sm:$0xff] %v17078_v35  ;;  %v17087_v44 = vmul.f32 %v22386_v22, %v3769_v9  ;;  %v17094_v0 = vmul.f32 %v22386_v22, %v3771_v31  ;;  %v17100_v6 = vmul.f32 %v22386_v22, %v3775_v14  ;;  %5193 = vmatmul.mubr.bf16.gmra.mrb[56].mxu1 %v16700_v50  ;;  %v22622_v17 = vld [vmem:[#allocation263_spill] sm:$0xff] }
 0x44b   :  { %22611 = vst [vmem:[#allocation108_spill] sm:$0xff] %v17081_v40  ;;  %v17084_v38 = vmul.f32 %v22386_v22, %v3767_v56  ;;  %22614 = vst [vmem:[#allocation128_spill] sm:$0xff] %v17091_v43  ;;  %v17097_v54 = vmul.f32 %v22386_v22, %v3773_v13  ;;  %v3541_v28 = vadd.f32 %v14975_v42, %v22616_v58  ;;  %5200 = vmatprep.mubr.bf16.mxu1 %v16758_v57  ;;  %v22619_v13 = vld [vmem:[#allocation26_spill] sm:$0xff] }
 0x44c   :  { %22613 = vst [vmem:[#allocation109_spill] sm:$0xff] %v17087_v44  ;;  %v3543_v14 = vadd.f32 %v14975_v42, %v22617_v53  ;;  %11766 = vmatprep.mubr.bf16.mxu0 %v16773_v34  ;;  %v17119_v59 = vpack.c.bf16 %v16428_v24, %v22619_v13  ;;  %5368 = vmatpush1.bf16.msra.mxu1 %v12414_v51  ;;  %v22621_v53 = vld [vmem:[#allocation261_spill] sm:$0xff]  ;;  %v22624_v24 = vld [vmem:[#allocation226_spill] sm:$0xff] }
 0x44d   :  { %22612 = vst [vmem:[#allocation107_spill] sm:$0xff] %v17084_v38  ;;  %v3797_v58 = vmax.f32 %v3541_v28, 0.0  ;;  %v3545_v31 = vadd.f32 %v14975_v42, %v22621_v53  ;;  %v3547_v57 = vadd.f32 %v14975_v42, %v22622_v17  ;;  %v17131_v34 = vpack.c.bf16 %v16749_v36, %v16433_v46  ;;  %5626 = vmatprep.subr.bf16.mxu1 %v21876_v41  ;;  %v22626_v28 = vld [vmem:[#allocation267_spill] sm:$0xff]  ;;  %v22628_v41 = vld [vmem:[#allocation29_spill] sm:$0xff] }
 0x44e   :  { %22620 = vst [vmem:[#allocation195_spill] sm:$0xff] %v17119_v59  ;;  %v3799_v50 = vmax.f32 %v3543_v14, 0.0  ;;  %v3507_v13 = vadd.f32 %v14975_v42, %v22624_v24  ;;  %v3549_v51 = vadd.f32 %v14975_v42, %v22625_v61  ;;  %v3551_v14 = vadd.f32 %v14975_v42, %v22626_v28  ;;  %v22627_v36 = vld [vmem:[#allocation255_spill] sm:$0xff]  ;;  %v22632_v61 = vld [vmem:[#allocation33_spill] sm:$0xff] }
 0x44f   :  { %22623 = vst [vmem:[#allocation127_spill] sm:$0xff] %v17131_v34  ;;  %v17141_v53 = vmul.f32 %v22386_v22, %v3797_v58  ;;  %v3801_v56 = vmax.f32 %v3545_v31, 0.0  ;;  %v3803_v46 = vmax.f32 %v3547_v57, 0.0  ;;  %v3539_v45 = vadd.f32 %v14975_v42, %v22627_v36  ;;  %v22653_v34 = vld [vmem:[#allocation93_spill] sm:$0xff] }
 0x450   :  { %v17144_v17 = vmul.f32 %v22386_v22, %v3799_v50  ;;  %v3805_v24 = vmax.f32 %v3549_v51, 0.0  ;;  %v3807_v7 = vmax.f32 %v3551_v14, 0.0  ;;  %v3573_v27 = vadd.f32 %v14975_v42, %v22628_v41  ;;  %v22629_v50 = vld [vmem:[#allocation34_spill] sm:$0xff]  ;;  %v22631_v14 = vld [vmem:[#allocation16_spill] sm:$0xff] }
 0x451   :  { %v17153_v28 = vmul.f32 %v22386_v22, %v3801_v56  ;;  %v17156_v58 = vmul.f32 %v22386_v22, %v3803_v46  ;;  %v3575_v57 = vadd.f32 %v14975_v42, %v22629_v50  ;;  %v3763_v31 = vmax.f32 %v3507_v13, 0.0  ;;  %11767 = vmatmul.mubr.bf16.gmra.mrb[44].mxu0 %v16887_v32  ;;  %v22633_v50 = vld [vmem:[#allocation38_spill] sm:$0xff] }
 0x452   :  { %v17161_v36 = vmul.f32 %v22386_v22, %v3805_v24  ;;  %v17164_v51 = vmul.f32 %v22386_v22, %v3807_v7  ;;  %v3829_v41 = vmax.f32 %v3573_v27, 0.0  ;;  %5201 = vmatmul.mubr.bf16.gmra.mrb[60].mxu1 %v22631_v14  ;;  %v3577_v37 = vadd.f32 %v14975_v42, %v22632_v61  ;;  %11770 = vmatprep.mubr.bf16.mxu0 %v16834_v21  ;;  %v22635_v14 = vld [vmem:[#allocation37_spill] sm:$0xff]  ;;  %v22639_v32 = vld [vmem:[#allocation62_spill] sm:$0xff] }
 0x453   :  { %v3831_v46 = vmax.f32 %v3575_v57, 0.0  ;;  %v3579_v13 = vadd.f32 %v14975_v42, %v22633_v50  ;;  %5208 = vmatprep.mubr.bf16.mxu1 %v16794_v62  ;;  %v17178_v27 = vpack.c.bf16 %v16534_v8, %v16761_v60  ;;  %v3795_v7 = vmax.f32 %v3539_v45, 0.0  ;;  %v22637_v8 = vld [vmem:[#allocation42_spill] sm:$0xff]  ;;  %v22638_v45 = vld [vmem:[#allocation57_spill] sm:$0xff] }
 0x454   :  { %22630 = vst [vmem:[#allocation160_spill] sm:$0xff] %v17161_v36  ;;  %v17183_v57 = vmul.f32 %v22386_v22, %v3829_v41  ;;  %v3833_v56 = vmax.f32 %v3577_v37, 0.0  ;;  %v3581_v62 = vadd.f32 %v14975_v42, %v22635_v14  ;;  %v17191_v21 = vmul.f32 %v22386_v22, %v3763_v31 }
 0x455   :  { %22634 = vst [vmem:[#allocation132_spill] sm:$0xff] %v17178_v27  ;;  %v17186_v61 = vmul.f32 %v22386_v22, %v3831_v46  ;;  %v3835_v50 = vmax.f32 %v3579_v13, 0.0  ;;  %v3583_v60 = vadd.f32 %v14975_v42, %v22637_v8  ;;  %v3605_v24 = vadd.f32 %v14975_v42, %v22638_v45  ;;  %v22641_v46 = vld [vmem:[#allocation61_spill] sm:$0xff]  ;;  %v22645_v45 = vld [vmem:[#allocation70_spill] sm:$0xff] }
 0x456   :  { %22636 = vst [vmem:[#allocation134_spill] sm:$0xff] %v17191_v21  ;;  %v3607_v41 = vadd.f32 %v14975_v42, %v22639_v32  ;;  %v17202_v37 = vmul.f32 %v22386_v22, %v3833_v56  ;;  %v3837_v31 = vmax.f32 %v3581_v62, 0.0  ;;  %v17208_v13 = vmul.f32 %v22386_v22, %v3795_v7 }
 0x457   :  { %v17205_v14 = vmul.f32 %v22386_v22, %v3835_v50  ;;  %v3839_v8 = vmax.f32 %v3583_v60, 0.0  ;;  %v3861_v3 = vmax.f32 %v3605_v24, 0.0  ;;  %v3609_v56 = vadd.f32 %v14975_v42, %v22641_v46 }
 0x458   :  { %v3863_v9 = vmax.f32 %v3607_v41, 0.0  ;;  %v17213_v32 = vmul.f32 %v22386_v22, %v3837_v31  ;;  %v3611_v50 = vadd.f32 %v14975_v42, %v22642_v63  ;;  %v3571_v62 = vadd.f32 %v14975_v42, %v22643_v19  ;;  %v22644_v31 = vld [vmem:[#allocation65_spill] sm:$0xff] }
 0x459   :  { %v17222_v7 = vmul.f32 %v22386_v22, %v3839_v8  ;;  %v17225_v24 = vmul.f32 %v22386_v22, %v3861_v3  ;;  %11771 = vmatmul.mubr.bf16.gmra.mrb[48].mxu0 %v16798_v52  ;;  %v3865_v41 = vmax.f32 %v3609_v56, 0.0  ;;  %v3613_v63 = vadd.f32 %v14975_v42, %v22644_v31  ;;  %v22648_v52 = vld [vmem:[#allocation85_spill] sm:$0xff]  ;;  %v22649_v8 = vld [vmem:[#allocation90_spill] sm:$0xff] }
 0x45a   :  { %22640 = vst [vmem:[#allocation131_spill] sm:$0xff] %v17213_v32  ;;  %v17228_v60 = vmul.f32 %v22386_v22, %v3863_v9  ;;  %5209 = vmatmul.mubr.bf16.gmra.mrb[64].mxu1 %v16958_v1  ;;  %v3867_v46 = vmax.f32 %v3611_v50, 0.0  ;;  %v3615_v19 = vadd.f32 %v14975_v42, %v22645_v45  ;;  %11774 = vmatprep.mubr.bf16.mxu0 %v16818_v5  ;;  %v22647_v9 = vld [vmem:[#allocation58_spill] sm:$0xff]  ;;  %v22759_v32 = vld [vmem:[#allocation133_spill] sm:$0xff] }
 0x45b   :  { %5216 = vmatprep.mubr.bf16.mxu1 %v16853_v10  ;;  %v3603_v1 = vadd.f32 %v14975_v42, %v22647_v9  ;;  %v17246_v50 = vmul.f32 %v22386_v22, %v3865_v41  ;;  %v3869_v31 = vmax.f32 %v3613_v63, 0.0  ;;  %v3827_v10 = vmax.f32 %v3571_v62, 0.0  ;;  %v22652_v63 = vld [vmem:[#allocation94_spill] sm:$0xff] }
 0x45c   :  { %v17249_v45 = vmul.f32 %v22386_v22, %v3867_v46  ;;  %v3871_v15 = vmax.f32 %v3615_v19, 0.0  ;;  %v3637_v5 = vadd.f32 %v14975_v42, %v22648_v52  ;;  %v3639_v3 = vadd.f32 %v14975_v42, %v22649_v8 }
 0x45d   :  { %v3641_v9 = vadd.f32 %v14975_v42, %v22650_v18  ;;  %v17260_v41 = vmul.f32 %v22386_v22, %v3869_v31  ;;  %v3643_v62 = vadd.f32 %v14975_v42, %v22652_v63  ;;  %v3859_v19 = vmax.f32 %v3603_v1, 0.0  ;;  %v22665_v63 = vld [vmem:[#allocation126_spill] sm:$0xff] }
 0x45e   :  { %v17263_v46 = vmul.f32 %v22386_v22, %v3871_v15  ;;  %v3893_v52 = vmax.f32 %v3637_v5, 0.0  ;;  %v3895_v27 = vmax.f32 %v3639_v3, 0.0  ;;  %v3645_v56 = vadd.f32 %v14975_v42, %v22653_v34  ;;  %v22655_v34 = vld [vmem:[#allocation86_spill] sm:$0xff] }
 0x45f   :  { %v3897_v55 = vmax.f32 %v3641_v9, 0.0  ;;  %v3899_v18 = vmax.f32 %v3643_v62, 0.0  ;;  %v3647_v31 = vadd.f32 %v14975_v42, %v22654_v16  ;;  %v17274_v15 = vmul.f32 %v22386_v22, %v3827_v10  ;;  %v22660_v62 = vld [vmem:[#allocation114_spill] sm:$0xff] }
 0x460   :  { %22651 = vst [vmem:[#allocation136_spill] sm:$0xff] %v17263_v46  ;;  %v17277_v59 = vmul.f32 %v22386_v22, %v3893_v52  ;;  %v17280_v5 = vmul.f32 %v22386_v22, %v3895_v27  ;;  %v3635_v3 = vadd.f32 %v14975_v42, %v22655_v34  ;;  %v3901_v10 = vmax.f32 %v3645_v56, 0.0  ;;  %v22659_v34 = vld [vmem:[#allocation113_spill] sm:$0xff] }
 0x461   :  { %v17283_v1 = vmul.f32 %v22386_v22, %v3897_v55  ;;  %11775 = vmatmul.mubr.bf16.gmra.mrb[52].mxu0 %v16918_v39  ;;  %v17290_v16 = vmul.f32 %v22386_v22, %v3899_v18  ;;  %v3903_v9 = vmax.f32 %v3647_v31, 0.0  ;;  %v22658_v55 = vpack.c.bf16 %v16993_v48, %v16968_v30  ;;  %v22662_v52 = vld [vmem:[#allocation117_spill] sm:$0xff] }
 0x462   :  { %5217 = vmatmul.mubr.bf16.gmra.mrb[68].mxu1 %v16813_v33  ;;  %v17298_v27 = vmul.f32 %v22386_v22, %v3859_v19  ;;  %v3669_v18 = vadd.f32 %v14975_v42, %v22659_v34  ;;  %v17307_v31 = vmul.f32 %v22386_v22, %v3901_v10  ;;  %v22661_v19 = vld [vmem:[#allocation118_spill] sm:$0xff]  ;;  %v3891_v56 = vmax.f32 %v3635_v3, 0.0  ;;  %v22664_v39 = vld [vmem:[#allocation121_spill] sm:$0xff] }
 0x463   :  { %22656 = vst [vmem:[#allocation242_spill] sm:$0xff] %v17290_v16  ;;  %5224 = vmatprep.mubr.bf16.mxu1 %v16883_v29  ;;  %11778 = vmatprep.mubr.bf16.mxu0 %v22658_v55  ;;  %v17310_v8 = vmul.f32 %v22386_v22, %v3903_v9  ;;  %v3667_v55 = vadd.f32 %v14975_v42, %v22660_v62  ;;  %v22663_v34 = vld [vmem:[#allocation122_spill] sm:$0xff] }
 0x464   :  { %v3671_v48 = vadd.f32 %v14975_v42, %v22661_v19  ;;  %v3925_v30 = vmax.f32 %v3669_v18, 0.0  ;;  %v3673_v29 = vadd.f32 %v14975_v42, %v22662_v52  ;;  %v3675_v33 = vadd.f32 %v14975_v42, %v22663_v34  ;;  %v22666_v34 = vld [vmem:[#allocation142_spill] sm:$0xff] }
 0x465   :  { %v3677_v9 = vadd.f32 %v14975_v42, %v22664_v39  ;;  %v3679_v62 = vadd.f32 %v14975_v42, %v22665_v63  ;;  %v3923_v52 = vmax.f32 %v3667_v55, 0.0  ;;  %v3699_v3 = vadd.f32 %v14975_v42, %v22666_v34 }
 0x466   :  { %v3927_v26 = vmax.f32 %v3671_v48, 0.0  ;;  %v17327_v19 = vmul.f32 %v22386_v22, %v3925_v30  ;;  %v3929_v18 = vmax.f32 %v3673_v29, 0.0  ;;  %v3931_v43 = vmax.f32 %v3675_v33, 0.0  ;;  %v22667_v48 = vld [vmem:[#allocation141_spill] sm:$0xff] }
 0x467   :  { %v3933_v16 = vmax.f32 %v3677_v9, 0.0  ;;  %v3935_v46 = vmax.f32 %v3679_v62, 0.0  ;;  %v3701_v30 = vadd.f32 %v14975_v42, %v22667_v48  ;;  %v22668_v33 = vpack.c.bf16 %v16851_v47, %v16846_v20  ;;  %v22670_v9 = vld [vmem:[#allocation146_spill] sm:$0xff]  ;;  %v22672_v48 = vld [vmem:[#allocation145_spill] sm:$0xff] }
 0x468   :  { %v17332_v10 = vmul.f32 %v22386_v22, %v3927_v26  ;;  %v17335_v39 = vmul.f32 %v22386_v22, %v3929_v18  ;;  %v17338_v63 = vmul.f32 %v22386_v22, %v3931_v43  ;;  %v3955_v55 = vmax.f32 %v3699_v3, 0.0  ;;  %v22673_v47 = vld [vmem:[#allocation150_spill] sm:$0xff] }
 0x469   :  { %11779 = vmatmul.mubr.bf16.gmra.mrb[56].mxu0 %v22668_v33  ;;  %v17347_v29 = vmul.f32 %v22386_v22, %v3933_v16  ;;  %v17350_v26 = vmul.f32 %v22386_v22, %v3935_v46  ;;  %v3703_v43 = vadd.f32 %v14975_v42, %v22670_v9  ;;  %v22671_v62 = vpack.c.bf16 %v17043_v49, %v17040_v23  ;;  %v22675_v23 = vld [vmem:[#allocation149_spill] sm:$0xff]  ;;  %v22676_v16 = vld [vmem:[#allocation154_spill] sm:$0xff] }
 0x46a   :  { %5225 = vmatmul.mubr.bf16.gmra.mrb[72].mxu1 %v16839_v11  ;;  %v3957_v34 = vmax.f32 %v3701_v30, 0.0  ;;  %v3705_v46 = vadd.f32 %v14975_v42, %v22672_v48  ;;  %v17365_v3 = vmul.f32 %v22386_v22, %v3891_v56  ;;  %v3709_v30 = vadd.f32 %v14975_v42, %v22675_v23 }
 0x46b   :  { %22669 = vst [vmem:[#allocation135_spill] sm:$0xff] %v17350_v26  ;;  %5232 = vmatprep.mubr.bf16.mxu1 %v16901_v25  ;;  %11782 = vmatprep.mubr.bf16.mxu0 %v22671_v62  ;;  %v3959_v9 = vmax.f32 %v3703_v43, 0.0  ;;  %v3707_v62 = vadd.f32 %v14975_v42, %v22673_v47  ;;  %v3711_v48 = vadd.f32 %v14975_v42, %v22676_v16  ;;  %v22680_v25 = vld [vmem:[#allocation174_spill] sm:$0xff]  ;;  %v22683_v16 = vld [vmem:[#allocation169_spill] sm:$0xff] }
 0x46c   :  { %v17372_v49 = vmul.f32 %v22386_v22, %v3957_v34  ;;  %v3961_v18 = vmax.f32 %v3705_v46, 0.0  ;;  %v17379_v56 = vmul.f32 %v22386_v22, %v3923_v52  ;;  %v17382_v20 = vmul.f32 %v22386_v22, %v3955_v55 }
 0x46d   :  { %v17385_v43 = vmul.f32 %v22386_v22, %v3959_v9  ;;  %v3963_v47 = vmax.f32 %v3707_v62, 0.0  ;;  %v3965_v46 = vmax.f32 %v3709_v30, 0.0  ;;  %v3967_v33 = vmax.f32 %v3711_v48, 0.0 }
 0x46e   :  { %22674 = vst [vmem:[#allocation137_spill] sm:$0xff] %v17372_v49  ;;  %22677 = vst [vmem:[#allocation194_spill] sm:$0xff] %v17382_v20  ;;  %v17388_v34 = vmul.f32 %v22386_v22, %v3961_v18  ;;  %v22681_v23 = vmax.f32 %v22680_v25, 0.0  ;;  %v22684_v9 = vmax.f32 %v22683_v16, 0.0  ;;  %v22686_v18 = vld [vmem:[#allocation173_spill] sm:$0xff]  ;;  %v22692_v16 = vld [vmem:[#allocation186_spill] sm:$0xff] }
 0x46f   :  { %22678 = vst [vmem:[#allocation200_spill] sm:$0xff] %v17385_v43  ;;  %v17398_v55 = vmul.f32 %v22386_v22, %v3963_v47  ;;  %v22687_v26 = vmax.f32 %v22686_v18, 0.0  ;;  %v17411_v25 = vmul.f32 %v22386_v22, %v3965_v46  ;;  %v17414_v48 = vmul.f32 %v22386_v22, %v3967_v33  ;;  %v22697_v46 = vld [vmem:[#allocation246_spill] sm:$0xff]  ;;  %v22708_v18 = vld [vmem:[#allocation228_spill] sm:$0xff] }
 0x470   :  { %22679 = vst [vmem:[#allocation176_spill] sm:$0xff] %v17388_v34  ;;  %v17393_v11 = vmul.f32 %v22386_v22, %v22681_v23  ;;  %v17403_v62 = vmul.f32 %v22386_v22, %v22684_v9  ;;  %v22690_v23 = vld [vmem:[#allocation181_spill] sm:$0xff]  ;;  %v22693_v43 = vmax.f32 %v22692_v16, 0.0 }
 0x471   :  { %22682 = vst [vmem:[#allocation175_spill] sm:$0xff] %v17398_v55  ;;  %v17408_v30 = vmul.f32 %v22386_v22, %v22687_v26  ;;  %22688 = vst [vmem:[#allocation179_spill] sm:$0xff] %v17411_v25  ;;  %v22691_v52 = vmax.f32 %v22690_v23, 0.0  ;;  %v22696_v26 = vld [vmem:[#allocation247_spill] sm:$0xff]  ;;  %v22699_v23 = vld [vmem:[#allocation185_spill] sm:$0xff] }
 0x472   :  { %22685 = vst [vmem:[#allocation180_spill] sm:$0xff] %v17403_v62  ;;  %22689 = vst [vmem:[#allocation163_spill] sm:$0xff] %v17414_v48  ;;  %v17424_v9 = vmul.f32 %v22386_v22, %v22693_v43  ;;  %5233 = vmatmul.mubr.bf16.gmra.mrb[76].mxu1 %v16867_v4  ;;  %v22698_v49 = vpack.c.bf16 %v22696_v26, %v22697_v46  ;;  %v22700_v20 = vmax.f32 %v22699_v23, 0.0  ;;  %v22702_v43 = vld [vmem:[#allocation52_spill] sm:$0xff]  ;;  %v22709_v48 = vld [vmem:[#allocation230_spill] sm:$0xff] }
 0x473   :  { %v17419_v47 = vmul.f32 %v22386_v22, %v22691_v52  ;;  %5240 = vmatprep.mubr.bf16.mxu1 %v22702_v43  ;;  %v3510_v62 = vadd.f32 %v14975_v42, %v22708_v18  ;;  %v3512_v26 = vadd.f32 %v14975_v42, %v22709_v48  ;;  %v22711_v52 = vld [vmem:[#allocation232_spill] sm:$0xff]  ;;  %v22712_v23 = vld [vmem:[#allocation234_spill] sm:$0xff]  ;;  %v22713_v18 = vld [vmem:[#allocation239_spill] sm:$0xff] }
 0x474   :  { %22694 = vst [vmem:[#allocation165_spill] sm:$0xff] %v17424_v9  ;;  %11783 = vmatmul.mubr.bf16.gmra.mrb[60].mxu0 %v22698_v49  ;;  %v17438_v16 = vmul.f32 %v22386_v22, %v22700_v20  ;;  %v22703_v49 = vld [vmem:[#allocation190_spill] sm:$0xff]  ;;  %v22710_v9 = vmov 0.0|0.0   ;;  %v3514_v20 = vadd.f32 %v14975_v42, %v22711_v52  ;;  %v3516_v43 = vadd.f32 %v14975_v42, %v22712_v23  ;;  %v22714_v48 = vld [vmem:[#allocation236_spill] sm:$0xff] }
 0x475   :  { %v22704_v46 = vmax.f32 %v22703_v49, 0.0  ;;  %7628 = vmatprep.mubr.bf16.mxu0 %v22710_v9  ;;  %v3766_v4 = vmax.f32 %v3510_v62, 0.0  ;;  %v3768_v44 = vmax.f32 %v3512_v26, 0.0  ;;  %v3521_v40 = vadd.f32 %v14975_v42, %v22713_v18 }
 0x476   :  { %22701 = vst [vmem:[#allocation168_spill] sm:$0xff] %v17438_v16  ;;  %v3518_v38 = vadd.f32 %v14975_v42, %v22714_v48  ;;  %v3770_v9 = vmax.f32 %v3514_v20, 0.0  ;;  %v3772_v21 = vmax.f32 %v3516_v43, 0.0  ;;  %v22720_v48 = vld [vmem:[#allocation254_spill] sm:$0xff] }
 0x477   :  { %v17448_v33 = vmul.f32 %v22386_v22, %v22704_v46  ;;  %v22715_v46 = vld [vmem:[#allocation238_spill] sm:$0xff]  ;;  %v17478_v52 = vmul.f32 %v22386_v22, %v3766_v4  ;;  %v17481_v62 = vmul.f32 %v22386_v22, %v3768_v44  ;;  %v3777_v26 = vmax.f32 %v3521_v40, 0.0 }
 0x478   :  { %v3774_v23 = vmax.f32 %v3518_v38, 0.0  ;;  %v17484_v18 = vmul.f32 %v22386_v22, %v3770_v9  ;;  %v17487_v20 = vmul.f32 %v22386_v22, %v3772_v21  ;;  %v22723_v38 = vld [vmem:[#allocation256_spill] sm:$0xff]  ;;  %v22724_v21 = vld [vmem:[#allocation129_spill] sm:$0xff]  ;;  %v22729_v4 = vld [vmem:[#allocation262_spill] sm:$0xff] }
 0x479   :  { %22705 = vst [vmem:[#allocation170_spill] sm:$0xff] %v17448_v33  ;;  %v3520_v33 = vadd.f32 %v14975_v42, %v22715_v46  ;;  %22716 = vst [vmem:[#allocation227_spill] sm:$0xff] %v17478_v52  ;;  %v3538_v46 = vadd.f32 %v14975_v42, %v22720_v48  ;;  %v17495_v44 = vmul.f32 %v22386_v22, %v3777_v26 }
 0x47a   :  { %22717 = vst [vmem:[#allocation229_spill] sm:$0xff] %v17481_v62  ;;  %22718 = vst [vmem:[#allocation231_spill] sm:$0xff] %v17484_v18  ;;  %5241 = vmatmul.mubr.bf16.gmra.mrb[80].mxu1 %v17074_v2  ;;  %v17498_v40 = vmul.f32 %v22386_v22, %v3774_v23  ;;  %v3540_v9 = vadd.f32 %v14975_v42, %v22723_v38  ;;  %v22726_v2 = vld [vmem:[#allocation258_spill] sm:$0xff]  ;;  %v22727_v38 = vld [vmem:[#allocation260_spill] sm:$0xff]  ;;  %v3546_v18 = vadd.f32 %v14975_v42, %v22729_v4 }
 0x47b   :  { %22719 = vst [vmem:[#allocation233_spill] sm:$0xff] %v17487_v20  ;;  %v3776_v43 = vmax.f32 %v3520_v33, 0.0  ;;  %22721 = vst [vmem:[#allocation235_spill] sm:$0xff] %v17495_v44  ;;  %5248 = vmatprep.mubr.bf16.mxu1 %v22724_v21  ;;  %v3794_v49 = vmax.f32 %v3538_v46, 0.0  ;;  %v3542_v52 = vadd.f32 %v14975_v42, %v22726_v2  ;;  %v3544_v21 = vadd.f32 %v14975_v42, %v22727_v38  ;;  %v22731_v44 = vld [vmem:[#allocation264_spill] sm:$0xff]  ;;  %v22732_v62 = vld [vmem:[#allocation14_spill] sm:$0xff] }
 0x47c   :  { %22722 = vst [vmem:[#allocation237_spill] sm:$0xff] %v17498_v40  ;;  %v3796_v23 = vmax.f32 %v3540_v9, 0.0  ;;  %v3548_v38 = vadd.f32 %v14975_v42, %v22731_v44  ;;  %v3802_v20 = vmax.f32 %v3546_v18, 0.0  ;;  %v3553_v33 = vadd.f32 %v14975_v42, %v22732_v62 }
 0x47d   :  { %v17506_v48 = vmul.f32 %v22386_v22, %v3776_v43  ;;  %v17519_v43 = vmul.f32 %v22386_v22, %v3794_v49  ;;  %v3798_v26 = vmax.f32 %v3542_v52, 0.0  ;;  %v3800_v2 = vmax.f32 %v3544_v21, 0.0  ;;  %v22733_v49 = vld [vmem:[#allocation266_spill] sm:$0xff] }
 0x47e   :  { %v17526_v9 = vmul.f32 %v22386_v22, %v3796_v23  ;;  %v3550_v40 = vadd.f32 %v14975_v42, %v22733_v49  ;;  %v3804_v44 = vmax.f32 %v3548_v38, 0.0  ;;  %v17545_v18 = vmul.f32 %v22386_v22, %v3802_v20  ;;  %v22738_v49 = vld [vmem:[#allocation105_spill] sm:$0xff] }
 0x47f   :  { %22725 = vst [vmem:[#allocation248_spill] sm:$0xff] %v17506_v48  ;;  %22728 = vst [vmem:[#allocation257_spill] sm:$0xff] %v17519_v43  ;;  %v22734_v48 = vld [vmem:[#allocation13_spill] sm:$0xff]  ;;  %v17539_v23 = vmul.f32 %v22386_v22, %v3798_v26  ;;  %v17542_v52 = vmul.f32 %v22386_v22, %v3800_v2  ;;  %v3809_v62 = vmax.f32 %v3553_v33, 0.0  ;;  %v22740_v2 = vld [vmem:[#allocation28_spill] sm:$0xff] }
 0x480   :  { %22730 = vst [vmem:[#allocation259_spill] sm:$0xff] %v17526_v9  ;;  %v3552_v46 = vadd.f32 %v14975_v42, %v22734_v48  ;;  %22737 = vst [vmem:[#allocation263_spill] sm:$0xff] %v17545_v18  ;;  %v3806_v21 = vmax.f32 %v3550_v40, 0.0  ;;  %v17551_v4 = vmul.f32 %v22386_v22, %v3804_v44  ;;  %v3570_v38 = vadd.f32 %v14975_v42, %v22740_v2  ;;  %v22741_v43 = vld [vmem:[#allocation51_spill] sm:$0xff]  ;;  %v22749_v26 = vld [vmem:[#allocation36_spill] sm:$0xff] }
 0x481   :  { %22735 = vst [vmem:[#allocation26_spill] sm:$0xff] %v17539_v23  ;;  %22736 = vst [vmem:[#allocation261_spill] sm:$0xff] %v17542_v52  ;;  %v17559_v20 = vmul.f32 %v22386_v22, %v3809_v62  ;;  %v22747_v23 = vld [vmem:[#allocation31_spill] sm:$0xff] }
 0x482   :  { %v3808_v36 = vmax.f32 %v3552_v46, 0.0  ;;  %5249 = vmatmul.mubr.bf16.gmra.mrb[84].mxu1 %v22738_v49  ;;  %22739 = vst [vmem:[#allocation226_spill] sm:$0xff] %v17551_v4  ;;  %v17562_v40 = vmul.f32 %v22386_v22, %v3806_v21  ;;  %v22745_v46 = vld [vmem:[#allocation27_spill] sm:$0xff]  ;;  %v3826_v48 = vmax.f32 %v3570_v38, 0.0 }
 0x483   :  { %5256 = vmatprep.mubr.bf16.mxu1 %v22741_v43  ;;  %22742 = vst [vmem:[#allocation265_spill] sm:$0xff] %v17559_v20  ;;  %v3572_v44 = vadd.f32 %v14975_v42, %v22745_v46  ;;  %v22746_v43 = vld [vmem:[#allocation32_spill] sm:$0xff]  ;;  %v3576_v46 = vadd.f32 %v14975_v42, %v22747_v23  ;;  %v22751_v20 = vld [vmem:[#allocation35_spill] sm:$0xff] }
 0x484   :  { %22743 = vst [vmem:[#allocation267_spill] sm:$0xff] %v17562_v40  ;;  %v17565_v33 = vmul.f32 %v22386_v22, %v3808_v36  ;;  %v3574_v62 = vadd.f32 %v14975_v42, %v22746_v43  ;;  %v17582_v52 = vmul.f32 %v22386_v22, %v3826_v48  ;;  %v3578_v43 = vadd.f32 %v14975_v42, %v22749_v26  ;;  %v22752_v36 = vld [vmem:[#allocation41_spill] sm:$0xff]  ;;  %v22754_v40 = vld [vmem:[#allocation40_spill] sm:$0xff]  ;;  %v22757_v9 = vld [vmem:[#allocation47_spill] sm:$0xff] }
 0x485   :  { %v3828_v49 = vmax.f32 %v3572_v44, 0.0  ;;  %v3832_v21 = vmax.f32 %v3576_v46, 0.0  ;;  %v3580_v44 = vadd.f32 %v14975_v42, %v22751_v20  ;;  %v3585_v23 = vadd.f32 %v14975_v42, %v22752_v36 }
 0x486   :  { %22744 = vst [vmem:[#allocation255_spill] sm:$0xff] %v17565_v33  ;;  %22748 = vst [vmem:[#allocation29_spill] sm:$0xff] %v17582_v52  ;;  %v3830_v38 = vmax.f32 %v3574_v62, 0.0  ;;  %v3834_v62 = vmax.f32 %v3578_v43, 0.0  ;;  %v3582_v2 = vadd.f32 %v14975_v42, %v22754_v40  ;;  %v22755_v33 = vld [vmem:[#allocation39_spill] sm:$0xff]  ;;  %v22820_v52 = vld [vmem:[#allocation194_spill] sm:$0xff] }
 0x487   :  { %v17589_v18 = vmul.f32 %v22386_v22, %v3828_v49  ;;  %v3584_v26 = vadd.f32 %v14975_v42, %v22755_v33  ;;  %v17605_v46 = vmul.f32 %v22386_v22, %v3832_v21  ;;  %v3836_v20 = vmax.f32 %v3580_v44, 0.0  ;;  %v22765_v40 = vld [vmem:[#allocation55_spill] sm:$0xff] }
 0x488   :  { %v17596_v48 = vmul.f32 %v22386_v22, %v3830_v38  ;;  %v3841_v4 = vmax.f32 %v3585_v23, 0.0  ;;  %v17609_v36 = vmul.f32 %v22386_v22, %v3834_v62  ;;  %v3838_v38 = vmax.f32 %v3582_v2, 0.0  ;;  %v22762_v23 = vld [vmem:[#allocation56_spill] sm:$0xff] }
 0x489   :  { %22750 = vst [vmem:[#allocation34_spill] sm:$0xff] %v17589_v18  ;;  %22756 = vst [vmem:[#allocation38_spill] sm:$0xff] %v17605_v46  ;;  %v3840_v43 = vmax.f32 %v3584_v26, 0.0  ;;  %v17617_v21 = vmul.f32 %v22386_v22, %v3836_v20  ;;  %v3602_v62 = vadd.f32 %v14975_v42, %v22762_v23  ;;  %v3604_v49 = vadd.f32 %v14975_v42, %v22765_v40  ;;  %v22766_v23 = vld [vmem:[#allocation60_spill] sm:$0xff]  ;;  %v22831_v18 = vld [vmem:[#allocation143_spill] sm:$0xff] }
 0x48a   :  { %22753 = vst [vmem:[#allocation33_spill] sm:$0xff] %v17596_v48  ;;  %5257 = vmatmul.mubr.bf16.gmra.mrb[88].mxu1 %v22757_v9  ;;  %22758 = vst [vmem:[#allocation37_spill] sm:$0xff] %v17609_v36  ;;  %v17620_v44 = vmul.f32 %v22386_v22, %v3841_v4  ;;  %v17625_v2 = vmul.f32 %v22386_v22, %v3838_v38  ;;  %v3606_v38 = vadd.f32 %v14975_v42, %v22766_v23  ;;  %v22767_v48 = vld [vmem:[#allocation59_spill] sm:$0xff]  ;;  %v22769_v36 = vld [vmem:[#allocation64_spill] sm:$0xff] }
 0x48b   :  { %5264 = vmatprep.mubr.bf16.mxu1 %v22759_v32  ;;  %22760 = vst [vmem:[#allocation42_spill] sm:$0xff] %v17617_v21  ;;  %v17628_v26 = vmul.f32 %v22386_v22, %v3840_v43  ;;  %v3858_v32 = vmax.f32 %v3602_v62, 0.0  ;;  %v3860_v9 = vmax.f32 %v3604_v49, 0.0  ;;  %v3608_v40 = vadd.f32 %v14975_v42, %v22767_v48  ;;  %v22770_v4 = vld [vmem:[#allocation63_spill] sm:$0xff]  ;;  %v22772_v43 = vld [vmem:[#allocation69_spill] sm:$0xff] }
 0x48c   :  { %22761 = vst [vmem:[#allocation57_spill] sm:$0xff] %v17620_v44  ;;  %22763 = vst [vmem:[#allocation62_spill] sm:$0xff] %v17625_v2  ;;  %v3862_v20 = vmax.f32 %v3606_v38, 0.0  ;;  %v3610_v62 = vadd.f32 %v14975_v42, %v22769_v36  ;;  %v3612_v23 = vadd.f32 %v14975_v42, %v22770_v4  ;;  %v3617_v48 = vadd.f32 %v14975_v42, %v22772_v43  ;;  %v22773_v2 = vld [vmem:[#allocation68_spill] sm:$0xff]  ;;  %v22775_v21 = vld [vmem:[#allocation67_spill] sm:$0xff] }
 0x48d   :  { %22764 = vst [vmem:[#allocation61_spill] sm:$0xff] %v17628_v26  ;;  %v17647_v46 = vmul.f32 %v22386_v22, %v3858_v32  ;;  %v17654_v44 = vmul.f32 %v22386_v22, %v3860_v9  ;;  %v3864_v49 = vmax.f32 %v3608_v40, 0.0  ;;  %v3614_v33 = vadd.f32 %v14975_v42, %v22773_v2  ;;  %v22783_v9 = vld [vmem:[#allocation83_spill] sm:$0xff] }
 0x48e   :  { %v17661_v32 = vmul.f32 %v22386_v22, %v3862_v20  ;;  %v3866_v38 = vmax.f32 %v3610_v62, 0.0  ;;  %v3868_v26 = vmax.f32 %v3612_v23, 0.0  ;;  %v3616_v36 = vadd.f32 %v14975_v42, %v22775_v21 }
 0x48f   :  { %22768 = vst [vmem:[#allocation66_spill] sm:$0xff] %v17647_v46  ;;  %22771 = vst [vmem:[#allocation30_spill] sm:$0xff] %v17654_v44  ;;  %v17669_v4 = vmul.f32 %v22386_v22, %v3864_v49  ;;  %v3873_v43 = vmax.f32 %v3617_v48, 0.0  ;;  %v3870_v40 = vmax.f32 %v3614_v33, 0.0  ;;  %v22781_v48 = vld [vmem:[#allocation84_spill] sm:$0xff]  ;;  %v3636_v21 = vadd.f32 %v14975_v42, %v22783_v9 }
 0x490   :  { %22774 = vst [vmem:[#allocation65_spill] sm:$0xff] %v17661_v32  ;;  %v17673_v2 = vmul.f32 %v22386_v22, %v3866_v38  ;;  %v17676_v20 = vmul.f32 %v22386_v22, %v3868_v26  ;;  %v3872_v62 = vmax.f32 %v3616_v36, 0.0  ;;  %v3634_v38 = vadd.f32 %v14975_v42, %v22781_v48  ;;  %v22786_v48 = vld [vmem:[#allocation87_spill] sm:$0xff] }
 0x491   :  { %22776 = vst [vmem:[#allocation70_spill] sm:$0xff] %v17669_v4  ;;  %v17683_v49 = vmul.f32 %v22386_v22, %v3873_v43  ;;  %v17686_v33 = vmul.f32 %v22386_v22, %v3870_v40  ;;  %v22784_v43 = vld [vmem:[#allocation136_spill] sm:$0xff]  ;;  %v3640_v4 = vadd.f32 %v14975_v42, %v22786_v48  ;;  %v3892_v26 = vmax.f32 %v3636_v21, 0.0 }
 0x492   :  { %5265 = vmatmul.mubr.bf16.gmra.mrb[92].mxu1 %v17078_v35  ;;  %22777 = vst [vmem:[#allocation58_spill] sm:$0xff] %v17673_v2  ;;  %22778 = vst [vmem:[#allocation85_spill] sm:$0xff] %v17676_v20  ;;  %v17693_v36 = vmul.f32 %v22386_v22, %v3872_v62  ;;  %v3890_v40 = vmax.f32 %v3634_v38, 0.0  ;;  %v22785_v35 = vld [vmem:[#allocation88_spill] sm:$0xff]  ;;  %v22787_v2 = vld [vmem:[#allocation242_spill] sm:$0xff] }
 0x493   :  { %5272 = vmatprep.mubr.bf16.mxu1 %v16970_v12  ;;  %22779 = vst [vmem:[#allocation90_spill] sm:$0xff] %v17683_v49  ;;  %22780 = vst [vmem:[#allocation89_spill] sm:$0xff] %v17686_v33  ;;  %v3638_v32 = vadd.f32 %v14975_v42, %v22785_v35  ;;  %v22788_v20 = vld [vmem:[#allocation92_spill] sm:$0xff]  ;;  %v3896_v12 = vmax.f32 %v3640_v4, 0.0  ;;  %v22790_v49 = vld [vmem:[#allocation91_spill] sm:$0xff]  ;;  %v17717_v48 = vmul.f32 %v22386_v22, %v3892_v26 }
 0x494   :  { %22782 = vst [vmem:[#allocation94_spill] sm:$0xff] %v17693_v36  ;;  %v3642_v23 = vadd.f32 %v14975_v42, %v22788_v20  ;;  %v17712_v46 = vmul.f32 %v22386_v22, %v3890_v40  ;;  %v3644_v35 = vadd.f32 %v14975_v42, %v22790_v49  ;;  %v22792_v62 = vld [vmem:[#allocation97_spill] sm:$0xff]  ;;  %v22793_v33 = vld [vmem:[#allocation96_spill] sm:$0xff]  ;;  %v22797_v49 = vld [vmem:[#allocation95_spill] sm:$0xff] }
 0x495   :  { %v3894_v38 = vmax.f32 %v3638_v32, 0.0  ;;  %22791 = vst [vmem:[#allocation98_spill] sm:$0xff] %v17717_v48  ;;  %v3649_v21 = vadd.f32 %v14975_v42, %v22792_v62  ;;  %v3646_v9 = vadd.f32 %v14975_v42, %v22793_v33  ;;  %v22794_v36 = vld [vmem:[#allocation128_spill] sm:$0xff]  ;;  %v17728_v32 = vmul.f32 %v22386_v22, %v3896_v12  ;;  %v22798_v40 = vld [vmem:[#allocation178_spill] sm:$0xff] }
 0x496   :  { %22789 = vst [vmem:[#allocation93_spill] sm:$0xff] %v17712_v46  ;;  %v3898_v44 = vmax.f32 %v3642_v23, 0.0  ;;  %v3900_v4 = vmax.f32 %v3644_v35, 0.0  ;;  %v3648_v26 = vadd.f32 %v14975_v42, %v22797_v49 }
 0x497   :  { %v17725_v20 = vmul.f32 %v22386_v22, %v3894_v38  ;;  %22796 = vst [vmem:[#allocation113_spill] sm:$0xff] %v17728_v32  ;;  %v3905_v33 = vmax.f32 %v3649_v21, 0.0  ;;  %v22807_v32 = vld [vmem:[#allocation115_spill] sm:$0xff] }
 0x498   :  { %v17736_v62 = vmul.f32 %v22386_v22, %v3898_v44  ;;  %v17741_v12 = vmul.f32 %v22386_v22, %v3900_v4  ;;  %v3904_v35 = vmax.f32 %v3648_v26, 0.0  ;;  %v22803_v44 = vld [vmem:[#allocation112_spill] sm:$0xff] }
 0x499   :  { %22795 = vst [vmem:[#allocation86_spill] sm:$0xff] %v17725_v20  ;;  %v3666_v21 = vadd.f32 %v14975_v42, %v22803_v44 }
 0x49a   :  { %5273 = vmatmul.mubr.bf16.gmra.mrb[96].mxu1 %v22794_v36  ;;  %22799 = vst [vmem:[#allocation114_spill] sm:$0xff] %v17736_v62  ;;  %v3902_v36 = vmax.f32 %v3646_v9, 0.0  ;;  %22800 = vst [vmem:[#allocation118_spill] sm:$0xff] %v17741_v12  ;;  %v22804_v9 = vld [vmem:[#allocation111_spill] sm:$0xff]  ;;  %v17758_v26 = vmul.f32 %v22386_v22, %v3904_v35  ;;  %v22808_v12 = vld [vmem:[#allocation120_spill] sm:$0xff] }
 0x49b   :  { %5280 = vmatprep.mubr.bf16.mxu1 %v22798_v40  ;;  %v17746_v40 = vmul.f32 %v22386_v22, %v3905_v33  ;;  %v3668_v46 = vadd.f32 %v14975_v42, %v22804_v9  ;;  %v22806_v33 = vld [vmem:[#allocation116_spill] sm:$0xff]  ;;  %v3922_v20 = vmax.f32 %v3666_v21, 0.0  ;;  %v3672_v9 = vadd.f32 %v14975_v42, %v22807_v32  ;;  %v22811_v21 = vld [vmem:[#allocation119_spill] sm:$0xff]  ;;  %v22814_v35 = vld [vmem:[#allocation125_spill] sm:$0xff] }
 0x49c   :  { %v17749_v23 = vmul.f32 %v22386_v22, %v3902_v36  ;;  %22805 = vst [vmem:[#allocation121_spill] sm:$0xff] %v17758_v26  ;;  %v3670_v38 = vadd.f32 %v14975_v42, %v22806_v33  ;;  %v3674_v49 = vadd.f32 %v14975_v42, %v22808_v12  ;;  %v3676_v32 = vadd.f32 %v14975_v42, %v22811_v21  ;;  %v22815_v12 = vld [vmem:[#allocation124_spill] sm:$0xff]  ;;  %v22816_v26 = vld [vmem:[#allocation177_spill] sm:$0xff] }
 0x49d   :  { %22801 = vst [vmem:[#allocation117_spill] sm:$0xff] %v17746_v40  ;;  %v3924_v44 = vmax.f32 %v3668_v46, 0.0  ;;  %v17775_v33 = vmul.f32 %v22386_v22, %v3922_v20  ;;  %v3928_v46 = vmax.f32 %v3672_v9, 0.0  ;;  %v22812_v40 = vld [vmem:[#allocation195_spill] sm:$0xff]  ;;  %v3678_v20 = vadd.f32 %v14975_v42, %v22815_v12  ;;  %v22827_v12 = vld [vmem:[#allocation200_spill] sm:$0xff] }
 0x49e   :  { %22802 = vst [vmem:[#allocation122_spill] sm:$0xff] %v17749_v23  ;;  %v3926_v62 = vmax.f32 %v3670_v38, 0.0  ;;  %v3930_v4 = vmax.f32 %v3674_v49, 0.0  ;;  %v3681_v23 = vadd.f32 %v14975_v42, %v22814_v35  ;;  %v3932_v21 = vmax.f32 %v3676_v32, 0.0 }
 0x49f   :  { %22809 = vst [vmem:[#allocation126_spill] sm:$0xff] %v17775_v33  ;;  %v17778_v36 = vmul.f32 %v22386_v22, %v3924_v44  ;;  %v17794_v9 = vmul.f32 %v22386_v22, %v3928_v46  ;;  %v3934_v35 = vmax.f32 %v3678_v20, 0.0  ;;  %v22823_v33 = vld [vmem:[#allocation140_spill] sm:$0xff] }
 0x4a0   :  { %v17784_v38 = vmul.f32 %v22386_v22, %v3926_v62  ;;  %v17799_v49 = vmul.f32 %v22386_v22, %v3930_v4  ;;  %v3937_v48 = vmax.f32 %v3681_v23, 0.0  ;;  %v17806_v44 = vmul.f32 %v22386_v22, %v3932_v21  ;;  %v22826_v23 = vld [vmem:[#allocation139_spill] sm:$0xff]  ;;  %v22838_v21 = vld [vmem:[#allocation76_spill] sm:$0xff] }
 0x4a1   :  { %22810 = vst [vmem:[#allocation142_spill] sm:$0xff] %v17778_v36  ;;  %22817 = vst [vmem:[#allocation146_spill] sm:$0xff] %v17794_v9  ;;  %v3698_v32 = vadd.f32 %v14975_v42, %v22823_v33  ;;  %v17814_v4 = vmul.f32 %v22386_v22, %v3934_v35  ;;  %v3700_v20 = vadd.f32 %v14975_v42, %v22826_v23  ;;  %v22829_v33 = vld [vmem:[#allocation144_spill] sm:$0xff]  ;;  %v22837_v36 = vld [vmem:[#allocation153_spill] sm:$0xff] }
 0x4a2   :  { %5281 = vmatmul.mubr.bf16.gmra.mrb[100].mxu1 %v22812_v40  ;;  %22813 = vst [vmem:[#allocation141_spill] sm:$0xff] %v17784_v38  ;;  %v22818_v40 = vld [vmem:[#allocation123_spill] sm:$0xff]  ;;  %22819 = vst [vmem:[#allocation145_spill] sm:$0xff] %v17799_v49  ;;  %v3704_v23 = vadd.f32 %v14975_v42, %v22831_v18  ;;  %v22833_v49 = vld [vmem:[#allocation148_spill] sm:$0xff]  ;;  %v3713_v25 = vadd.f32 %v14975_v42, %v22837_v36 }
 0x4a3   :  { %5288 = vmatprep.mubr.bf16.mxu1 %v22816_v26  ;;  %v3680_v62 = vadd.f32 %v14975_v42, %v22818_v40  ;;  %22822 = vst [vmem:[#allocation150_spill] sm:$0xff] %v17806_v44  ;;  %v17811_v40 = vmul.f32 %v22386_v22, %v3937_v48  ;;  %22825 = vst [vmem:[#allocation154_spill] sm:$0xff] %v17814_v4  ;;  %v3954_v26 = vmax.f32 %v3698_v32, 0.0  ;;  %v22830_v38 = vld [vmem:[#allocation135_spill] sm:$0xff]  ;;  %v3956_v9 = vmax.f32 %v3700_v20, 0.0  ;;  %v22840_v4 = vld [vmem:[#allocation152_spill] sm:$0xff] }
 0x4a4   :  { %v3702_v48 = vadd.f32 %v14975_v42, %v22829_v33  ;;  %v3706_v33 = vadd.f32 %v14975_v42, %v22833_v49  ;;  %v22834_v44 = vld [vmem:[#allocation127_spill] sm:$0xff]  ;;  %v3960_v35 = vmax.f32 %v3704_v23, 0.0  ;;  %v3710_v49 = vadd.f32 %v14975_v42, %v22840_v4 }
 0x4a5   :  { %v3936_v46 = vmax.f32 %v3680_v62, 0.0  ;;  %22824 = vst [vmem:[#allocation149_spill] sm:$0xff] %v17811_v40  ;;  %v17842_v20 = vmul.f32 %v22386_v22, %v3956_v9  ;;  %v22836_v18 = vld [vmem:[#allocation147_spill] sm:$0xff]  ;;  %v3969_v36 = vmax.f32 %v3713_v25, 0.0 }
 0x4a6   :  { %v3958_v32 = vmax.f32 %v3702_v48, 0.0  ;;  %v3708_v40 = vadd.f32 %v14975_v42, %v22836_v18  ;;  %v3962_v48 = vmax.f32 %v3706_v33, 0.0  ;;  %v17859_v18 = vmul.f32 %v22386_v22, %v3960_v35  ;;  %v22844_v33 = vld [vmem:[#allocation180_spill] sm:$0xff]  ;;  %v22847_v35 = vld [vmem:[#allocation167_spill] sm:$0xff] }
 0x4a7   :  { %v17823_v62 = vmul.f32 %v22386_v22, %v3936_v46  ;;  %v17836_v46 = vmul.f32 %v22386_v22, %v3954_v26  ;;  %22835 = vst [vmem:[#allocation173_spill] sm:$0xff] %v17842_v20  ;;  %v22856_v23 = vld [vmem:[#allocation171_spill] sm:$0xff] }
 0x4a8   :  { %v17850_v26 = vmul.f32 %v22386_v22, %v3958_v32  ;;  %22842 = vst [vmem:[#allocation186_spill] sm:$0xff] %v17859_v18  ;;  %v3966_v32 = vmax.f32 %v3710_v49, 0.0 }
 0x4a9   :  { %22828 = vst [vmem:[#allocation174_spill] sm:$0xff] %v17823_v62  ;;  %22832 = vst [vmem:[#allocation169_spill] sm:$0xff] %v17836_v46  ;;  %v3964_v62 = vmax.f32 %v3708_v40, 0.0  ;;  %v22848_v40 = vmax.f32 %v22847_v35, 0.0  ;;  %v22855_v35 = vld [vmem:[#allocation163_spill] sm:$0xff] }
 0x4aa   :  { %5289 = vmatmul.mubr.bf16.gmra.mrb[104].mxu1 %v22834_v44  ;;  %22839 = vst [vmem:[#allocation181_spill] sm:$0xff] %v17850_v26  ;;  %v22841_v44 = vld [vmem:[#allocation151_spill] sm:$0xff] }
 0x4ab   :  { %5296 = vmatprep.mubr.bf16.mxu1 %v22838_v21  ;;  %v3712_v9 = vadd.f32 %v14975_v42, %v22841_v44  ;;  %v17862_v21 = vmul.f32 %v22386_v22, %v3962_v48  ;;  %v17869_v42 = vmul.f32 %v22386_v22, %v3964_v62  ;;  %v17872_v44 = vmul.f32 %v22386_v22, %v3969_v36  ;;  %v22862_v36 = vld [vmem:[#allocation165_spill] sm:$0xff] }
 0x4ac   :  { %v17877_v25 = vmul.f32 %v22386_v22, %v22848_v40  ;;  %v17880_v48 = vmul.f32 %v22386_v22, %v3966_v32  ;;  %v22857_v32 = vmax.f32 %v22856_v23, 0.0  ;;  %v22863_v40 = vld [vmem:[#allocation184_spill] sm:$0xff] }
 0x4ad   :  { %22843 = vst [vmem:[#allocation247_spill] sm:$0xff] %v17862_v21  ;;  %v3968_v34 = vmax.f32 %v3712_v9, 0.0  ;;  %22845 = vst [vmem:[#allocation185_spill] sm:$0xff] %v17869_v42  ;;  %v22852_v9 = vld [vmem:[#allocation172_spill] sm:$0xff] }
 0x4ae   :  { %22846 = vst [vmem:[#allocation190_spill] sm:$0xff] %v17872_v44  ;;  %22849 = vst [vmem:[#allocation228_spill] sm:$0xff] %v17877_v25  ;;  %v22853_v55 = vmax.f32 %v22852_v9, 0.0  ;;  %v17899_v26 = vmul.f32 %v22386_v22, %v22857_v32  ;;  %v22864_v44 = vmax.f32 %v22863_v40, 0.0  ;;  %v22866_v32 = vld [vmem:[#allocation132_spill] sm:$0xff] }
 0x4af   :  { %22850 = vst [vmem:[#allocation230_spill] sm:$0xff] %v17880_v48  ;;  %v17883_v49 = vmul.f32 %v22386_v22, %v3968_v34  ;;  %v22859_v34 = vld [vmem:[#allocation182_spill] sm:$0xff]  ;;  %v22870_v48 = vld [vmem:[#allocation189_spill] sm:$0xff]  ;;  %v22873_v21 = vld [vmem:[#allocation188_spill] sm:$0xff] }
 0x4b0   :  { %v17888_v4 = vmul.f32 %v22386_v22, %v22853_v55  ;;  %22858 = vst [vmem:[#allocation239_spill] sm:$0xff] %v17899_v26  ;;  %v22860_v18 = vmax.f32 %v22859_v34, 0.0  ;;  %v17915_v23 = vmul.f32 %v22386_v22, %v22864_v44  ;;  %v22867_v34 = vld [vmem:[#allocation183_spill] sm:$0xff]  ;;  %v22871_v62 = vmax.f32 %v22870_v48, 0.0 }
 0x4b1   :  { %22851 = vst [vmem:[#allocation232_spill] sm:$0xff] %v17883_v49  ;;  %v22868_v42 = vmax.f32 %v22867_v34, 0.0  ;;  %v22874_v40 = vmax.f32 %v22873_v21, 0.0  ;;  %v22877_v49 = vld [vmem:[#allocation99_spill] sm:$0xff] }
 0x4b2   :  { %22854 = vst [vmem:[#allocation234_spill] sm:$0xff] %v17888_v4  ;;  %v17904_v9 = vmul.f32 %v22386_v22, %v22860_v18  ;;  %22865 = vst [vmem:[#allocation238_spill] sm:$0xff] %v17915_v23  ;;  %5297 = vmatmul.mubr.bf16.gmra.mrb[108].mxu1 %v22866_v32  ;;  %v17928_v25 = vmul.f32 %v22386_v22, %v22871_v62  ;;  %v22876_v4 = vld [vmem:[#allocation199_spill] sm:$0xff] }
 0x4b3   :  { %v17923_v55 = vmul.f32 %v22386_v22, %v22868_v42  ;;  %v17933_v44 = vmul.f32 %v22386_v22, %v22874_v40  ;;  %v4016_v32 = vmax.f32 %v22876_v4, 0.0  ;;  %5304 = vmatprep.mubr.bf16.mxu1 %v22877_v49  ;;  %v22878_v18 = vld [vmem:[#allocation187_spill] sm:$0xff]  ;;  %v22881_v42 = vld [vmem:[#allocation192_spill] sm:$0xff]  ;;  %v22887_v40 = vld [vmem:[#allocation170_spill] sm:$0xff] }
 0x4b4   :  { %22861 = vst [vmem:[#allocation236_spill] sm:$0xff] %v17904_v9  ;;  %22872 = vst [vmem:[#allocation256_spill] sm:$0xff] %v17928_v25  ;;  %v22879_v26 = vmax.f32 %v22878_v18, 0.0  ;;  %v22882_v9 = vmax.f32 %v22881_v42, 0.0  ;;  %v22884_v62 = vld [vmem:[#allocation191_spill] sm:$0xff]  ;;  %v22888_v18 = vld [vmem:[#allocation193_spill] sm:$0xff] }
 0x4b5   :  { %22869 = vst [vmem:[#allocation254_spill] sm:$0xff] %v17923_v55  ;;  %22875 = vst [vmem:[#allocation258_spill] sm:$0xff] %v17933_v44  ;;  %v22885_v46 = vmax.f32 %v22884_v62, 0.0  ;;  %v22889_v20 = vmax.f32 %v22888_v18, 0.0  ;;  %v22891_v42 = vld [vmem:[#allocation196_spill] sm:$0xff]  ;;  %v22894_v4 = vld [vmem:[#allocation198_spill] sm:$0xff]  ;;  %v17988_v62 = vmul.f32 %v22386_v22, %v4016_v32 }
 0x4b6   :  { %v17940_v34 = vmul.f32 %v22386_v22, %v22879_v26  ;;  %v17945_v48 = vmul.f32 %v22386_v22, %v22882_v9  ;;  %v22892_v16 = vmax.f32 %v22891_v42, 0.0  ;;  %v22895_v23 = vmax.f32 %v22894_v4, 0.0  ;;  %v22897_v18 = vld [vmem:[#allocation197_spill] sm:$0xff]  ;;  %v22910_v32 = vld [vmem:[#allocation80_spill] sm:$0xff] }
 0x4b7   :  { %v17950_v21 = vmul.f32 %v22386_v22, %v22885_v46  ;;  %v17959_v26 = vmul.f32 %v22386_v22, %v22889_v20  ;;  %v22898_v25 = vmax.f32 %v22897_v18, 0.0  ;;  %22903 = vst [vmem:[#allocation32_spill] sm:$0xff] %v17988_v62  ;;  %v22904_v4 = vmov 0.0   ;;  %v22916_v18 = vld [vmem:[#allocation54_spill] sm:$0xff]  ;;  %v22996_v44 = vld [vmem:[#allocation161_spill] sm:$0xff] }
 0x4b8   :  { %22880 = vst [vmem:[#allocation260_spill] sm:$0xff] %v17940_v34  ;;  %22883 = vst [vmem:[#allocation262_spill] sm:$0xff] %v17945_v48  ;;  %v17964_v9 = vmul.f32 %v22386_v22, %v22892_v16  ;;  %v17973_v49 = vmul.f32 %v22386_v22, %v22895_v23  ;;  %v22900_v16 = vld [vmem:[#allocation202_spill] sm:$0xff]  ;;  %v22905_v48 = vld [vmem:[#allocation19_spill] sm:$0xff] }
 0x4b9   :  { %22886 = vst [vmem:[#allocation264_spill] sm:$0xff] %v17950_v21  ;;  %22890 = vst [vmem:[#allocation14_spill] sm:$0xff] %v17959_v26  ;;  %v17980_v42 = vmul.f32 %v22386_v22, %v22898_v25  ;;  %v22901_v55 = vmax.f32 %v22900_v16, 0.0  ;;  %v17992_v23 = vpack.c.bf16 %v22905_v48, %v22904_v4  ;;  %v22907_v25 = vld [vmem:[#allocation104_spill] sm:$0xff]  ;;  %v22908_v16 = vld [vmem:[#allocation78_spill] sm:$0xff] }
 0x4ba   :  { %22893 = vst [vmem:[#allocation266_spill] sm:$0xff] %v17964_v9  ;;  %22896 = vst [vmem:[#allocation13_spill] sm:$0xff] %v17973_v49  ;;  %v23032_v34 = vld [vmem:[#allocation20_spill] sm:$0xff] }
 0x4bb   :  { %22899 = vst [vmem:[#allocation28_spill] sm:$0xff] %v17980_v42  ;;  %v17985_v46 = vmul.f32 %v22386_v22, %v22901_v55  ;;  %22906 = vst [vmem:[#allocation31_spill] sm:$0xff] %v17992_v23  ;;  %5305 = vmatmul.mubr.bf16.gmra.mrb[112].mxu1 %v17992_v23  ;;  %v22909_v55 = vld [vmem:[#allocation75_spill] sm:$0xff]  ;;  %v22911_v22 = vld [vmem:[#allocation100_spill] sm:$0xff] }
 0x4bc   :  { %5312 = vmatprep.mubr.bf16.mxu1 %v22907_v25  ;;  %v22919_v42 = vld [vmem:[#allocation134_spill] sm:$0xff] }
 0x4bd   :  { %22902 = vst [vmem:[#allocation27_spill] sm:$0xff] %v17985_v46  ;;  %v22917_v46 = vld [vmem:[#allocation73_spill] sm:$0xff]  ;;  %v4364_v9 = vpack.c.bf16 %v22919_v42, %v22904_v4  ;;  %v22972_v23 = vld [vmem:[#allocation158_spill] sm:$0xff] }
 0x4be   :  { %v18014_v62 = vpack.c.bf16 %v22917_v46, %v22916_v18  ;;  %v22924_v46 = vmov 0.0|0.0   ;;  %v22925_v18 = vld [vmem:[#allocation107_spill] sm:$0xff] }
 0x4c0   :  { %22918 = vst [vmem:[#allocation39_spill] sm:$0xff] %v18014_v62 }
 0x4c3   :  { %5313 = vmatmul.mubr.bf16.gmra.mrb[116].mxu1 %v22908_v16 }
 0x4c4   :  { %5320 = vmatprep.mubr.bf16.mxu1 %v22909_v55 }
 0x4c9   :  { %v18004_v48 = vpop.f32.mrb[0].mxu0 }
 0x4ca   :  { %22912 = vst [vmem:[#allocation36_spill] sm:$0xff] %v18004_v48  ;;  %v18006_v26 = vpop.f32.mrb[1].mxu0 }
 0x4cb   :  { %5321 = vmatmul.mubr.bf16.gmra.mrb[120].mxu1 %v22910_v32  ;;  %22913 = vst [vmem:[#allocation35_spill] sm:$0xff] %v18006_v26  ;;  %v18008_v20 = vpop.f32.mrb[2].mxu0  ;;  %v22926_v26 = vld [vmem:[#allocation108_spill] sm:$0xff] }
 0x4cc   :  { %5328 = vmatprep.mubr.bf16.mxu1 %v22911_v22  ;;  %22914 = vst [vmem:[#allocation41_spill] sm:$0xff] %v18008_v20  ;;  %v18010_v49 = vpop.f32.mrb[3].mxu0  ;;  %v12415_v20 = vld [vmem:[%s21203_s2 + $0x100] sm:$0xff]   ;;  %v22927_v32 = vpack.c.bf16 %v22925_v18, %v22926_v26 }
 0x4cd   :  { %22915 = vst [vmem:[#allocation40_spill] sm:$0xff] %v18010_v49 }
 0x4d1   :  { %v18019_v21 = vpop.f32.mrb[4].mxu0 }
 0x4d2   :  { %22920 = vst [vmem:[#allocation56_spill] sm:$0xff] %v18019_v21  ;;  %v18021_v22 = vpop.f32.mrb[5].mxu0  ;;  %v22928_v21 = vmov 0  }
 0x4d3   :  { %5329 = vmatmul.mubr.bf16.gmra.mrb[124].mxu1 %v18014_v62  ;;  %22921 = vst [vmem:[#allocation55_spill] sm:$0xff] %v18021_v22  ;;  %v18023_v48 = vpop.f32.mrb[6].mxu0 }
 0x4d4   :  { %5369 = vmatprep.mubr.bf16.mxu1 %v4364_v9  ;;  %22922 = vst [vmem:[#allocation60_spill] sm:$0xff] %v18023_v48  ;;  %v18028_v49 = vpop.f32.mrb[7].mxu0  ;;  %v12416_v9 = vld [vmem:[%s21203_s2 + $0x108] sm:$0xff]  }
 0x4d5   :  { %22923 = vst [vmem:[#allocation59_spill] sm:$0xff] %v18028_v49 }
 0x4d9   :  { %v18038_v48 = vpop.f32.mrb[8].mxu0 }
 0x4da   :  { %22929 = vst [vmem:[#allocation64_spill] sm:$0xff] %v18038_v48  ;;  %v18040_v22 = vpop.f32.mrb[9].mxu0 }
 0x4db   :  { %5370 = vmatmul.mubr.bf16.vlgmr.msra.gmra.mrb[0].mxu1 %v22924_v46  ;;  %22930 = vst [vmem:[#allocation63_spill] sm:$0xff] %v18040_v22  ;;  %v18042_v62 = vpop.f32.mrb[10].mxu0  ;;  %v12419_v22 = vld [vmem:[%s21203_s2 + $0x120] sm:$0xff]  }
 0x4dc   :  { %5627 = vmatpush1.bf16.msra.mxu1 %v12415_v20  ;;  %5377 = vmatprep.mubr.bf16.mxu1 %v22927_v32  ;;  %22931 = vst [vmem:[#allocation69_spill] sm:$0xff] %v18042_v62  ;;  %v12417_v20 = vld [vmem:[%s21203_s2 + $0x110] sm:$0xff]   ;;  %v18047_v49 = vpop.f32.mrb[11].mxu0  ;;  %v12418_v62 = vld [vmem:[%s21203_s2 + $0x118] sm:$0xff]  }
 0x4dd   :  { %5628 = vmatprep.subr.bf16.mxu1 %v22928_v21  ;;  %22932 = vst [vmem:[#allocation68_spill] sm:$0xff] %v18047_v49  ;;  %v22933_v32 = vld [vmem:[#allocation109_spill] sm:$0xff] }
 0x4de   :  { %v22934_v55 = vpack.c.bf16 %v17094_v0, %v22933_v32 }
 0x4e0   :  { %5629 = vmatpush1.bf16.msra.mxu1 %v12416_v9 }
 0x4e1   :  { %5630 = vmatprep.subr.bf16.mxu1 %v22928_v21  ;;  %v18058_v9 = vpop.f32.mrb[12].mxu0 }
 0x4e2   :  { %22935 = vst [vmem:[#allocation67_spill] sm:$0xff] %v18058_v9  ;;  %v18060_v48 = vpop.f32.mrb[13].mxu0 }
 0x4e3   :  { %5378 = vmatmul.mubr.bf16.gmra.mrb[4].mxu1 %v22924_v46  ;;  %22936 = vst [vmem:[#allocation84_spill] sm:$0xff] %v18060_v48  ;;  %v18062_v49 = vpop.f32.mrb[14].mxu0 }
 0x4e4   :  { %5385 = vmatprep.mubr.bf16.mxu1 %v22934_v55  ;;  %5631 = vmatpush1.bf16.msra.mxu1 %v12417_v20  ;;  %22937 = vst [vmem:[#allocation83_spill] sm:$0xff] %v18062_v49  ;;  %v18067_v16 = vpop.f32.mrb[15].mxu0  ;;  %v22939_v55 = vpack.c.bf16 %v17100_v6, %v17097_v54  ;;  %v12420_v20 = vld [vmem:[%s21203_s2 + $0x128] sm:$0xff]  }
 0x4e5   :  { %5632 = vmatprep.subr.bf16.mxu1 %v22928_v21  ;;  %22938 = vst [vmem:[#allocation136_spill] sm:$0xff] %v18067_v16  ;;  %v12421_v16 = vld [vmem:[%s21203_s2 + $0x130] sm:$0xff]  }
 0x4e8   :  { %5633 = vmatpush1.bf16.msra.mxu1 %v12418_v62 }
 0x4e9   :  { %5634 = vmatprep.subr.bf16.mxu1 %v22928_v21  ;;  %v18078_v62 = vpop.f32.mrb[16].mxu0 }
 0x4ea   :  { %22940 = vst [vmem:[#allocation88_spill] sm:$0xff] %v18078_v62  ;;  %v18080_v49 = vpop.f32.mrb[17].mxu0 }
 0x4eb   :  { %5386 = vmatmul.mubr.bf16.gmra.mrb[8].mxu1 %v22924_v46  ;;  %22941 = vst [vmem:[#allocation87_spill] sm:$0xff] %v18080_v49  ;;  %v18082_v9 = vpop.f32.mrb[18].mxu0  ;;  %v22961_v49 = vld [vmem:[#allocation160_spill] sm:$0xff] }
 0x4ec   :  { %5393 = vmatprep.mubr.bf16.mxu1 %v22939_v55  ;;  %5635 = vmatpush1.bf16.msra.mxu1 %v12419_v22  ;;  %22942 = vst [vmem:[#allocation242_spill] sm:$0xff] %v18082_v9  ;;  %v18087_v48 = vpop.f32.mrb[19].mxu0  ;;  %v4368_v22 = vpack.c.bf16 %v17208_v13, %v22904_v4  ;;  %v12422_v55 = vld [vmem:[%s21203_s2 + $0x138] sm:$0xff]  }
 0x4ed   :  { %5636 = vmatprep.subr.bf16.mxu1 %v22928_v21  ;;  %22943 = vst [vmem:[#allocation92_spill] sm:$0xff] %v18087_v48  ;;  %v12423_v48 = vld [vmem:[%s21203_s2 + $0x140] sm:$0xff]  }
 0x4f0   :  { %5637 = vmatpush1.bf16.msra.mxu1 %v12420_v20 }
 0x4f1   :  { %5638 = vmatprep.subr.bf16.mxu1 %v22928_v21  ;;  %v18097_v20 = vpop.f32.mrb[20].mxu0 }
 0x4f2   :  { %22944 = vst [vmem:[#allocation91_spill] sm:$0xff] %v18097_v20  ;;  %v18099_v9 = vpop.f32.mrb[21].mxu0 }
 0x4f3   :  { %5394 = vmatmul.mubr.bf16.gmra.mrb[12].mxu1 %v22924_v46  ;;  %22945 = vst [vmem:[#allocation97_spill] sm:$0xff] %v18099_v9  ;;  %v18101_v62 = vpop.f32.mrb[22].mxu0 }
 0x4f4   :  { %5401 = vmatprep.mubr.bf16.mxu1 %v4368_v22  ;;  %5639 = vmatpush1.bf16.msra.mxu1 %v12421_v16  ;;  %22946 = vst [vmem:[#allocation96_spill] sm:$0xff] %v18101_v62  ;;  %v18106_v46 = vpop.f32.mrb[23].mxu0  ;;  %v22948_v16 = vld [vmem:[#allocation213_spill] sm:$0xff]  ;;  %v22949_v22 = vpack.c.bf16 %v17144_v17, %v17141_v53  ;;  %v12424_v62 = vld [vmem:[%s21203_s2 + $0x148] sm:$0xff]  }
 0x4f5   :  { %5640 = vmatprep.subr.bf16.mxu1 %v22928_v21  ;;  %22947 = vst [vmem:[#allocation95_spill] sm:$0xff] %v18106_v46 }
 0x4f8   :  { %5641 = vmatpush1.bf16.msra.mxu1 %v12422_v55 }
 0x4f9   :  { %5642 = vmatprep.subr.bf16.mxu1 %v22928_v21  ;;  %v18117_v55 = vpop.f32.mrb[24].mxu0 }
 0x4fa   :  { %22950 = vst [vmem:[#allocation112_spill] sm:$0xff] %v18117_v55  ;;  %v18119_v20 = vpop.f32.mrb[25].mxu0 }
 0x4fb   :  { %5402 = vmatmul.mubr.bf16.gmra.mrb[16].mxu1 %v22948_v16  ;;  %22951 = vst [vmem:[#allocation111_spill] sm:$0xff] %v18119_v20  ;;  %v18121_v46 = vpop.f32.mrb[26].mxu0  ;;  %v12425_v16 = vld [vmem:[%s21203_s2 + $0x150] sm:$0xff]  }
 0x4fc   :  { %5409 = vmatprep.mubr.bf16.mxu1 %v22949_v22  ;;  %5643 = vmatpush1.bf16.msra.mxu1 %v12423_v48  ;;  %22952 = vst [vmem:[#allocation116_spill] sm:$0xff] %v18121_v46  ;;  %v18126_v9 = vpop.f32.mrb[27].mxu0  ;;  %v22954_v48 = vld [vmem:[#allocation204_spill] sm:$0xff]  ;;  %v22955_v22 = vpack.c.bf16 %v17156_v58, %v17153_v28 }
 0x4fd   :  { %5644 = vmatprep.subr.bf16.mxu1 %v22928_v21  ;;  %22953 = vst [vmem:[#allocation115_spill] sm:$0xff] %v18126_v9  ;;  %v22960_v9 = vld [vmem:[#allocation217_spill] sm:$0xff] }
 0x500   :  { %5645 = vmatpush1.bf16.msra.mxu1 %v12424_v62 }
 0x501   :  { %5646 = vmatprep.subr.bf16.mxu1 %v22928_v21 }
 0x503   :  { %5410 = vmatmul.mubr.bf16.gmra.mrb[20].mxu1 %v22954_v48  ;;  %v18134_v55 = vpop.f32.mrb[28].mxu0  ;;  %v12426_v48 = vld [vmem:[%s21203_s2 + $0x158] sm:$0xff]  }
 0x504   :  { %5417 = vmatprep.mubr.bf16.mxu1 %v22955_v22  ;;  %5647 = vmatpush1.bf16.msra.mxu1 %v12425_v16  ;;  %22956 = vst [vmem:[#allocation120_spill] sm:$0xff] %v18134_v55  ;;  %v18136_v62 = vpop.f32.mrb[29].mxu0  ;;  %v22962_v22 = vpack.c.bf16 %v17164_v51, %v22961_v49 }
 0x505   :  { %5648 = vmatprep.subr.bf16.mxu1 %v22928_v21  ;;  %22957 = vst [vmem:[#allocation119_spill] sm:$0xff] %v18136_v62  ;;  %v18138_v46 = vpop.f32.mrb[30].mxu0  ;;  %v22967_v62 = vld [vmem:[#allocation206_spill] sm:$0xff] }
 0x506   :  { %22958 = vst [vmem:[#allocation125_spill] sm:$0xff] %v18138_v46  ;;  %v18140_v20 = vpop.f32.mrb[31].mxu0 }
 0x507   :  { %22959 = vst [vmem:[#allocation124_spill] sm:$0xff] %v18140_v20 }
 0x508   :  { %5649 = vmatpush1.bf16.msra.mxu1 %v12426_v48 }
 0x509   :  { %5650 = vmatprep.subr.bf16.mxu1 %v22928_v21 }
 0x50b   :  { %5418 = vmatmul.mubr.bf16.gmra.mrb[24].mxu1 %v22960_v9  ;;  %v18149_v16 = vpop.f32.mrb[32].mxu0  ;;  %v4372_v9 = vpack.c.bf16 %v17274_v15, %v22904_v4 }
 0x50c   :  { %5425 = vmatprep.mubr.bf16.mxu1 %v22962_v22  ;;  %22963 = vst [vmem:[#allocation123_spill] sm:$0xff] %v18149_v16  ;;  %v18152_v55 = vpop.f32.mrb[33].mxu0 }
 0x50d   :  { %22964 = vst [vmem:[#allocation140_spill] sm:$0xff] %v18152_v55  ;;  %v18154_v46 = vpop.f32.mrb[34].mxu0  ;;  %v22984_v55 = vld [vmem:[#allocation157_spill] sm:$0xff] }
 0x50e   :  { %22965 = vst [vmem:[#allocation139_spill] sm:$0xff] %v18154_v46  ;;  %v18156_v20 = vpop.f32.mrb[35].mxu0  ;;  %v12427_v46 = vld [vmem:[%s21203_s2 + $0x160] sm:$0xff]  }
 0x50f   :  { %22966 = vst [vmem:[#allocation200_spill] sm:$0xff] %v18156_v20  ;;  %v22973_v20 = vpack.c.bf16 %v17186_v61, %v17183_v57  ;;  %5651 = vmatpush1.bf16.msra.mxu1 %v12427_v46 }
 0x510   :  { %5652 = vmatprep.subr.bf16.mxu1 %v22928_v21 }
 0x513   :  { %5426 = vmatmul.mubr.bf16.gmra.mrb[28].mxu1 %v22967_v62 }
 0x514   :  { %5433 = vmatprep.mubr.bf16.mxu1 %v4372_v9  ;;  %v18161_v25 = vpop.f32.mrb[36].mxu0 }
 0x515   :  { %22968 = vst [vmem:[#allocation144_spill] sm:$0xff] %v18161_v25  ;;  %v18163_v22 = vpop.f32.mrb[37].mxu0 }
 0x516   :  { %22969 = vst [vmem:[#allocation135_spill] sm:$0xff] %v18163_v22  ;;  %v18165_v48 = vpop.f32.mrb[38].mxu0 }
 0x517   :  { %22970 = vst [vmem:[#allocation143_spill] sm:$0xff] %v18165_v48  ;;  %v18167_v16 = vpop.f32.mrb[39].mxu0 }
 0x518   :  { %22971 = vst [vmem:[#allocation148_spill] sm:$0xff] %v18167_v16  ;;  %v22979_v16 = vpack.c.bf16 %v17205_v14, %v17202_v37 }
 0x51b   :  { %5434 = vmatmul.mubr.bf16.gmra.mrb[32].mxu1 %v22972_v23  ;;  %v22978_v23 = vld [vmem:[#allocation203_spill] sm:$0xff] }
 0x51c   :  { %5441 = vmatprep.mubr.bf16.mxu1 %v22973_v20  ;;  %v18176_v62 = vpop.f32.mrb[40].mxu0 }
 0x51d   :  { %22974 = vst [vmem:[#allocation147_spill] sm:$0xff] %v18176_v62  ;;  %v18179_v9 = vpop.f32.mrb[41].mxu0 }
 0x51e   :  { %22975 = vst [vmem:[#allocation153_spill] sm:$0xff] %v18179_v9  ;;  %v18181_v48 = vpop.f32.mrb[42].mxu0 }
 0x51f   :  { %22976 = vst [vmem:[#allocation152_spill] sm:$0xff] %v18181_v48  ;;  %v18183_v25 = vpop.f32.mrb[43].mxu0  ;;  %v12428_v48 = vld [vmem:[%s21203_s2 + $0x168] sm:$0xff]  }
 0x520   :  { %22977 = vst [vmem:[#allocation151_spill] sm:$0xff] %v18183_v25  ;;  %5653 = vmatpush1.bf16.msra.mxu1 %v12428_v48 }
 0x521   :  { %5654 = vmatprep.subr.bf16.mxu1 %v22928_v21 }
 0x523   :  { %5442 = vmatmul.mubr.bf16.gmra.mrb[36].mxu1 %v22978_v23  ;;  %v22985_v23 = vld [vmem:[#allocation131_spill] sm:$0xff] }
 0x524   :  { %5449 = vmatprep.mubr.bf16.mxu1 %v22979_v16  ;;  %v18189_v22 = vpop.f32.mrb[44].mxu0  ;;  %v22986_v25 = vpack.c.bf16 %v17222_v7, %v22985_v23 }
 0x525   :  { %22980 = vst [vmem:[#allocation180_spill] sm:$0xff] %v18189_v22  ;;  %v18191_v20 = vpop.f32.mrb[45].mxu0 }
 0x526   :  { %22981 = vst [vmem:[#allocation167_spill] sm:$0xff] %v18191_v20  ;;  %v18193_v46 = vpop.f32.mrb[46].mxu0  ;;  %v22991_v20 = vld [vmem:[#allocation205_spill] sm:$0xff] }
 0x527   :  { %22982 = vst [vmem:[#allocation172_spill] sm:$0xff] %v18193_v46  ;;  %v18195_v62 = vpop.f32.mrb[47].mxu0 }
 0x528   :  { %22983 = vst [vmem:[#allocation163_spill] sm:$0xff] %v18195_v62 }
 0x52b   :  { %5450 = vmatmul.mubr.bf16.gmra.mrb[40].mxu1 %v22984_v55  ;;  %v4376_v55 = vpack.c.bf16 %v17298_v27, %v22904_v4 }
 0x52c   :  { %5457 = vmatprep.mubr.bf16.mxu1 %v22986_v25  ;;  %v18204_v16 = vpop.f32.mrb[48].mxu0 }
 0x52d   :  { %22987 = vst [vmem:[#allocation171_spill] sm:$0xff] %v18204_v16  ;;  %v18207_v22 = vpop.f32.mrb[49].mxu0 }
 0x52e   :  { %22988 = vst [vmem:[#allocation182_spill] sm:$0xff] %v18207_v22  ;;  %v18209_v46 = vpop.f32.mrb[50].mxu0  ;;  %v23008_v22 = vld [vmem:[#allocation240_spill] sm:$0xff] }
 0x52f   :  { %22989 = vst [vmem:[#allocation184_spill] sm:$0xff] %v18209_v46  ;;  %v18211_v62 = vpop.f32.mrb[51].mxu0  ;;  %v12429_v46 = vld [vmem:[%s21203_s2 + $0x170] sm:$0xff]  }
 0x530   :  { %22990 = vst [vmem:[#allocation183_spill] sm:$0xff] %v18211_v62  ;;  %v22997_v62 = vpack.c.bf16 %v17228_v60, %v17225_v24  ;;  %5655 = vmatpush1.bf16.msra.mxu1 %v12429_v46 }
 0x531   :  { %5656 = vmatprep.subr.bf16.mxu1 %v22928_v21 }
 0x533   :  { %5458 = vmatmul.mubr.bf16.gmra.mrb[44].mxu1 %v22991_v20 }
 0x534   :  { %5465 = vmatprep.mubr.bf16.mxu1 %v4376_v55  ;;  %v18216_v9 = vpop.f32.mrb[52].mxu0 }
 0x535   :  { %22992 = vst [vmem:[#allocation189_spill] sm:$0xff] %v18216_v9  ;;  %v18218_v25 = vpop.f32.mrb[53].mxu0 }
 0x536   :  { %22993 = vst [vmem:[#allocation188_spill] sm:$0xff] %v18218_v25  ;;  %v18220_v48 = vpop.f32.mrb[54].mxu0 }
 0x537   :  { %22994 = vst [vmem:[#allocation199_spill] sm:$0xff] %v18220_v48  ;;  %v18222_v16 = vpop.f32.mrb[55].mxu0 }
 0x538   :  { %22995 = vst [vmem:[#allocation187_spill] sm:$0xff] %v18222_v16  ;;  %v23003_v16 = vpack.c.bf16 %v17249_v45, %v17246_v50 }
 0x53b   :  { %5466 = vmatmul.mubr.bf16.gmra.mrb[48].mxu1 %v22996_v44  ;;  %v23002_v44 = vld [vmem:[#allocation208_spill] sm:$0xff] }
 0x53c   :  { %5473 = vmatprep.mubr.bf16.mxu1 %v22997_v62  ;;  %v18231_v20 = vpop.f32.mrb[56].mxu0 }
 0x53d   :  { %22998 = vst [vmem:[#allocation192_spill] sm:$0xff] %v18231_v20  ;;  %v18234_v55 = vpop.f32.mrb[57].mxu0 }
 0x53e   :  { %22999 = vst [vmem:[#allocation191_spill] sm:$0xff] %v18234_v55  ;;  %v18236_v48 = vpop.f32.mrb[58].mxu0 }
 0x53f   :  { %23000 = vst [vmem:[#allocation170_spill] sm:$0xff] %v18236_v48  ;;  %v18238_v9 = vpop.f32.mrb[59].mxu0  ;;  %v12430_v48 = vld [vmem:[%s21203_s2 + $0x178] sm:$0xff]  }
 0x540   :  { %23001 = vst [vmem:[#allocation193_spill] sm:$0xff] %v18238_v9  ;;  %5657 = vmatpush1.bf16.msra.mxu1 %v12430_v48  ;;  %v23015_v48 = vld [vmem:[#allocation251_spill] sm:$0xff]  ;;  %v23028_v9 = vld [vmem:[#allocation101_spill] sm:$0xff] }
 0x541   :  { %5915 = vmatprep.subr.bf16.mxu1 %v22928_v21 }
 0x543   :  { %5474 = vmatmul.mubr.bf16.gmra.mrb[52].mxu1 %v23002_v44  ;;  %v23009_v44 = vpack.c.bf16 %v22784_v43, %v17260_v41 }
 0x544   :  { %5481 = vmatprep.mubr.bf16.mxu1 %v23003_v16  ;;  %v4380_v16 = vpack.c.bf16 %v17365_v3, %v22904_v4 }
 0x547   :  { %v18244_v25 = vpop.f32.mrb[60].mxu0 }
 0x548   :  { %23004 = vst [vmem:[#allocation196_spill] sm:$0xff] %v18244_v25  ;;  %v18246_v62 = vpop.f32.mrb[61].mxu0  ;;  %v23010_v25 = vld [vmem:[#allocation210_spill] sm:$0xff] }
 0x549   :  { %23005 = vst [vmem:[#allocation198_spill] sm:$0xff] %v18246_v62  ;;  %v18248_v46 = vpop.f32.mrb[62].mxu0  ;;  %v23016_v62 = vpack.c.bf16 %v17310_v8, %v17307_v31 }
 0x54a   :  { %23006 = vst [vmem:[#allocation197_spill] sm:$0xff] %v18248_v46  ;;  %v18250_v20 = vpop.f32.mrb[63].mxu0  ;;  %v23011_v46 = vld [vmem:[#allocation244_spill] sm:$0xff] }
 0x54b   :  { %23007 = vst [vmem:[#allocation202_spill] sm:$0xff] %v18250_v20  ;;  %5482 = vmatmul.mubr.bf16.gmra.mrb[56].mxu1 %v23008_v22  ;;  %v23012_v22 = vpack.c.bf16 %v17280_v5, %v17277_v59  ;;  %v23013_v20 = vld [vmem:[#allocation209_spill] sm:$0xff] }
 0x54c   :  { %5489 = vmatprep.mubr.bf16.mxu1 %v23009_v44  ;;  %v23014_v44 = vpack.c.bf16 %v22787_v2, %v17283_v1 }
 0x553   :  { %5490 = vmatmul.mubr.bf16.gmra.mrb[60].mxu1 %v23010_v25  ;;  %v4384_v25 = vpack.c.bf16 %v17379_v56, %v22904_v4 }
 0x554   :  { %5497 = vmatprep.mubr.bf16.mxu1 %v4380_v16  ;;  %v23018_v16 = vld [vmem:[#allocation18_spill] sm:$0xff] }
 0x55b   :  { %5498 = vmatmul.mubr.bf16.gmra.mrb[64].mxu1 %v23011_v46  ;;  %v23017_v46 = vld [vmem:[#allocation212_spill] sm:$0xff] }
 0x55c   :  { %5505 = vmatprep.mubr.bf16.mxu1 %v23012_v22  ;;  %v23020_v22 = vld [vmem:[#allocation214_spill] sm:$0xff] }
 0x563   :  { %5506 = vmatmul.mubr.bf16.gmra.mrb[68].mxu1 %v23013_v20  ;;  %v23019_v20 = vpack.c.bf16 %v17332_v10, %v17327_v19 }
 0x564   :  { %5513 = vmatprep.mubr.bf16.mxu1 %v23014_v44  ;;  %v23021_v44 = vpack.c.bf16 %v17338_v63, %v17335_v39 }
 0x56b   :  { %5514 = vmatmul.mubr.bf16.gmra.mrb[72].mxu1 %v23015_v48  ;;  %v23022_v48 = vld [vmem:[#allocation21_spill] sm:$0xff] }
 0x56c   :  { %5521 = vmatprep.mubr.bf16.mxu1 %v23016_v62  ;;  %v23023_v62 = vpack.c.bf16 %v22830_v38, %v17347_v29 }
 0x573   :  { %5522 = vmatmul.mubr.bf16.gmra.mrb[76].mxu1 %v23017_v46  ;;  %v23024_v46 = vld [vmem:[#allocation43_spill] sm:$0xff] }
 0x574   :  { %5529 = vmatprep.mubr.bf16.mxu1 %v4384_v25  ;;  %v4388_v25 = vpack.c.bf16 %v22820_v52, %v22904_v4 }
 0x57b   :  { %5530 = vmatmul.mubr.bf16.gmra.mrb[80].mxu1 %v23018_v16  ;;  %v23025_v16 = vld [vmem:[#allocation46_spill] sm:$0xff] }
 0x57c   :  { %5537 = vmatprep.mubr.bf16.mxu1 %v23019_v20  ;;  %v23026_v20 = vld [vmem:[#allocation137_spill] sm:$0xff] }
 0x583   :  { %5538 = vmatmul.mubr.bf16.gmra.mrb[84].mxu1 %v23020_v22  ;;  %v23027_v22 = vpack.c.bf16 %v22827_v12, %v23026_v20 }
 0x584   :  { %5545 = vmatprep.mubr.bf16.mxu1 %v23021_v44  ;;  %v23029_v44 = vld [vmem:[#allocation175_spill] sm:$0xff] }
 0x58b   :  { %5546 = vmatmul.mubr.bf16.gmra.mrb[88].mxu1 %v23022_v48  ;;  %v23030_v48 = vld [vmem:[#allocation176_spill] sm:$0xff] }
 0x58c   :  { %5553 = vmatprep.mubr.bf16.mxu1 %v23023_v62  ;;  %v23031_v55 = vpack.c.bf16 %v23029_v44, %v23030_v48  ;;  %v23033_v62 = vld [vmem:[#allocation179_spill] sm:$0xff] }
 0x58d   :  { %v23034_v52 = vpack.c.bf16 %v22855_v35, %v23033_v62 }
 0x593   :  { %5554 = vmatmul.mubr.bf16.gmra.mrb[92].mxu1 %v23024_v46  ;;  %v23035_v46 = vld [vmem:[#allocation50_spill] sm:$0xff] }
 0x594   :  { %5561 = vmatprep.mubr.bf16.mxu1 %v4388_v25  ;;  %v4392_v25 = vpack.c.bf16 %v22844_v33, %v22904_v4 }
 0x59b   :  { %5562 = vmatmul.mubr.bf16.gmra.mrb[96].mxu1 %v23025_v16  ;;  %v23036_v16 = vld [vmem:[#allocation23_spill] sm:$0xff] }
 0x59c   :  { %5569 = vmatprep.mubr.bf16.mxu1 %v23027_v22  ;;  %v23038_v22 = vld [vmem:[#allocation49_spill] sm:$0xff] }
 0x5a3   :  { %5570 = vmatmul.mubr.bf16.gmra.mrb[100].mxu1 %v23028_v9  ;;  %v23037_v9 = vpack.c.bf16 %v17408_v30, %v17393_v11 }
 0x5a4   :  { %5577 = vmatprep.mubr.bf16.mxu1 %v23031_v55  ;;  %v23040_v55 = vld [vmem:[#allocation74_spill] sm:$0xff] }
 0x5ab   :  { %5578 = vmatmul.mubr.bf16.gmra.mrb[104].mxu1 %v23032_v34  ;;  %v23039_v34 = vpack.c.bf16 %v22862_v36, %v17419_v47 }
 0x5ac   :  { %5585 = vmatprep.mubr.bf16.mxu1 %v23034_v52  ;;  %v23041_v52 = vld [vmem:[#allocation168_spill] sm:$0xff] }
 0x5ad   :  { %v23042_v4 = vpack.c.bf16 %v22887_v40, %v23041_v52 }
 0x5b3   :  { %5586 = vmatmul.mubr.bf16.gmra.mrb[108].mxu1 %v23035_v46  ;;  %v23043_v46 = vld [vmem:[#allocation130_spill] sm:$0xff] }
 0x5b4   :  { %5593 = vmatprep.mubr.bf16.mxu1 %v4392_v25  ;;  %v23044_v25 = vpack.c.bf16 %v22926_v26, %v22919_v42  ;;  %v12433_v26 = vld [vmem:[%s21203_s2 + $0x190] sm:$0xff]  }
 0x5b5   :  { %v23049_v42 = vld [vmem:[#allocation229_spill] sm:$0xff] }
 0x5bb   :  { %5594 = vmatmul.mubr.bf16.gmra.mrb[112].mxu1 %v23036_v16  ;;  %v12431_v16 = vld [vmem:[%s21203_s2 + $0x180] sm:$0xff]  }
 0x5bc   :  { %5601 = vmatprep.mubr.bf16.mxu1 %v23037_v9  ;;  %v23045_v9 = vld [vmem:[#allocation207_spill] sm:$0xff] }
 0x5c3   :  { %5602 = vmatmul.mubr.bf16.gmra.mrb[116].mxu1 %v23038_v22  ;;  %v23046_v22 = vld [vmem:[#allocation201_spill] sm:$0xff] }
 0x5c4   :  { %5609 = vmatprep.mubr.bf16.mxu1 %v23039_v34  ;;  %v23047_v36 = vpack.c.bf16 %v23045_v9, %v23046_v22  ;;  %v23048_v34 = vpack.c.bf16 %v22933_v32, %v22925_v18  ;;  %v23052_v18 = vpack.c.bf16 %v17097_v54, %v17094_v0  ;;  %v12434_v32 = vld [vmem:[%s21203_s2 + $0x198] sm:$0xff]   ;;  %v23056_v0 = vld [vmem:[#allocation235_spill] sm:$0xff]  ;;  %v12436_v22 = vld [vmem:[%s21203_s2 + $0x1a8] sm:$0xff]  }
 0x5c5   :  { %v23057_v54 = vpack.c.bf16 %v23056_v0, %v17100_v6  ;;  %v23061_v6 = vpack.c.bf16 %v17141_v53, %v17208_v13  ;;  %v23065_v53 = vpack.c.bf16 %v17153_v28, %v17144_v17  ;;  %v12440_v13 = vld [vmem:[%s21203_s2 + $0x1c8] sm:$0xff]   ;;  %v23069_v17 = vpack.c.bf16 %v22961_v49, %v17156_v58  ;;  %v23070_v28 = vld [vmem:[#allocation226_spill] sm:$0xff]  ;;  %v23075_v58 = vld [vmem:[#allocation255_spill] sm:$0xff] }
 0x5c6   :  { %v23076_v49 = vld [vmem:[#allocation267_spill] sm:$0xff] }
 0x5cb   :  { %5610 = vmatmul.mubr.bf16.gmra.mrb[120].mxu1 %v23040_v55 }
 0x5cc   :  { %5617 = vmatprep.mubr.bf16.mxu1 %v23042_v4  ;;  %v12432_v4 = vld [vmem:[%s21203_s2 + $0x188] sm:$0xff]  }
 0x5d3   :  { %5618 = vmatmul.mubr.bf16.gmra.mrb[124].mxu1 %v23043_v46  ;;  %v12435_v46 = vld [vmem:[%s21203_s2 + $0x1a0] sm:$0xff]  }
 0x5d4   :  { %5658 = vmatprep.mubr.bf16.mxu1 %v23044_v25  ;;  %v23053_v25 = vld [vmem:[#allocation233_spill] sm:$0xff] }
 0x5db   :  { %5659 = vmatmul.mubr.bf16.vlgmr.msra.gmra.mrb[0].mxu1 %v23047_v36  ;;  %v23050_v36 = vld [vmem:[#allocation227_spill] sm:$0xff] }
 0x5dc   :  { %5916 = vmatpush1.bf16.msra.mxu1 %v12431_v16  ;;  %5666 = vmatprep.mubr.bf16.mxu1 %v23048_v34  ;;  %v23051_v55 = vpack.c.bf16 %v23049_v42, %v23050_v36  ;;  %v23054_v16 = vld [vmem:[#allocation231_spill] sm:$0xff]  ;;  %v12437_v34 = vld [vmem:[%s21203_s2 + $0x1b0] sm:$0xff]   ;;  %v12438_v36 = vld [vmem:[%s21203_s2 + $0x1b8] sm:$0xff]  }
 0x5dd   :  { %5917 = vmatprep.subr.bf16.mxu1 %v22928_v21  ;;  %v23055_v9 = vpack.c.bf16 %v23053_v25, %v23054_v16  ;;  %v12441_v25 = vld [vmem:[%s21203_s2 + $0x1d0] sm:$0xff]  }
 0x5de   :  { %v23066_v16 = vld [vmem:[#allocation261_spill] sm:$0xff] }
 0x5e0   :  { %5918 = vmatpush1.bf16.msra.mxu1 %v12432_v4  ;;  %v23058_v4 = vld [vmem:[#allocation248_spill] sm:$0xff] }
 0x5e1   :  { %5919 = vmatprep.subr.bf16.mxu1 %v22928_v21 }
 0x5e3   :  { %5667 = vmatmul.mubr.bf16.gmra.mrb[4].mxu1 %v23051_v55  ;;  %v12439_v55 = vld [vmem:[%s21203_s2 + $0x1c0] sm:$0xff]  }
 0x5e4   :  { %5674 = vmatprep.mubr.bf16.mxu1 %v23052_v18  ;;  %5920 = vmatpush1.bf16.msra.mxu1 %v12433_v26  ;;  %v23059_v26 = vld [vmem:[#allocation237_spill] sm:$0xff]  ;;  %v23062_v18 = vld [vmem:[#allocation259_spill] sm:$0xff] }
 0x5e5   :  { %5921 = vmatprep.subr.bf16.mxu1 %v22928_v21  ;;  %v23060_v42 = vpack.c.bf16 %v23058_v4, %v23059_v26  ;;  %v23073_v4 = vld [vmem:[#allocation265_spill] sm:$0xff] }
 0x5e6   :  { %v23074_v26 = vpack.c.bf16 %v23073_v4, %v17164_v51  ;;  %v12443_v51 = vld [vmem:[%s21203_s2 + $0x1e0] sm:$0xff]   ;;  %v23100_v4 = vld [vmem:[#allocation70_spill] sm:$0xff] }
 0x5e8   :  { %5922 = vmatpush1.bf16.msra.mxu1 %v12434_v32  ;;  %v23063_v32 = vld [vmem:[#allocation257_spill] sm:$0xff] }
 0x5e9   :  { %5923 = vmatprep.subr.bf16.mxu1 %v22928_v21 }
 0x5eb   :  { %5675 = vmatmul.mubr.bf16.gmra.mrb[8].mxu1 %v23055_v9  ;;  %v23067_v9 = vld [vmem:[#allocation26_spill] sm:$0xff] }
 0x5ec   :  { %5682 = vmatprep.mubr.bf16.mxu1 %v23057_v54  ;;  %5924 = vmatpush1.bf16.msra.mxu1 %v12435_v46  ;;  %v23064_v46 = vpack.c.bf16 %v23062_v18, %v23063_v32  ;;  %v23068_v0 = vpack.c.bf16 %v23066_v16, %v23067_v9  ;;  %v23071_v54 = vld [vmem:[#allocation263_spill] sm:$0xff]  ;;  %v23082_v32 = vpack.c.bf16 %v17202_v37, %v17186_v61  ;;  %v12444_v61 = vld [vmem:[%s21203_s2 + $0x1e8] sm:$0xff]   ;;  %v23090_v37 = vld [vmem:[#allocation57_spill] sm:$0xff] }
 0x5ed   :  { %5925 = vmatprep.subr.bf16.mxu1 %v22928_v21  ;;  %v23091_v9 = vpack.c.bf16 %v23090_v37, %v17222_v7  ;;  %v12445_v7 = vld [vmem:[%s21203_s2 + $0x1f0] sm:$0xff]   ;;  %v23127_v37 = vld [vmem:[#allocation122_spill] sm:$0xff] }
 0x5f0   :  { %5926 = vmatpush1.bf16.msra.mxu1 %v12436_v22  ;;  %v23072_v22 = vpack.c.bf16 %v23070_v28, %v23071_v54  ;;  %v23097_v54 = vld [vmem:[#allocation66_spill] sm:$0xff] }
 0x5f1   :  { %5927 = vmatprep.subr.bf16.mxu1 %v22928_v21 }
 0x5f3   :  { %5683 = vmatmul.mubr.bf16.gmra.mrb[12].mxu1 %v23060_v42  ;;  %v23077_v42 = vpack.c.bf16 %v23075_v58, %v23076_v49  ;;  %v23105_v49 = vld [vmem:[#allocation58_spill] sm:$0xff] }
 0x5f4   :  { %5690 = vmatprep.mubr.bf16.mxu1 %v23061_v6  ;;  %5928 = vmatpush1.bf16.msra.mxu1 %v12437_v34  ;;  %v12442_v34 = vld [vmem:[%s21203_s2 + $0x1d8] sm:$0xff]   ;;  %v23078_v6 = vpack.c.bf16 %v17183_v57, %v17274_v15  ;;  %v23086_v57 = vpack.c.bf16 %v22985_v23, %v17205_v14  ;;  %v23095_v14 = vpack.c.bf16 %v17225_v24, %v17298_v27  ;;  %v23104_v27 = vld [vmem:[#allocation85_spill] sm:$0xff] }
 0x5f5   :  { %5929 = vmatprep.subr.bf16.mxu1 %v22928_v21  ;;  %v23087_v15 = vld [vmem:[#allocation42_spill] sm:$0xff]  ;;  %v23103_v24 = vpack.c.bf16 %v17260_v41, %v17249_v45  ;;  %v23112_v45 = vpack.c.bf16 %v17277_v59, %v17365_v3  ;;  %v23124_v3 = vld [vmem:[#allocation117_spill] sm:$0xff] }
 0x5f6   :  { %v23096_v23 = vld [vmem:[#allocation30_spill] sm:$0xff] }
 0x5f7   :  { %v23113_v41 = vld [vmem:[#allocation98_spill] sm:$0xff] }
 0x5f8   :  { %5930 = vmatpush1.bf16.msra.mxu1 %v12438_v36  ;;  %v23079_v36 = vld [vmem:[#allocation34_spill] sm:$0xff] }
 0x5f9   :  { %5931 = vmatprep.subr.bf16.mxu1 %v22928_v21 }
 0x5fb   :  { %5691 = vmatmul.mubr.bf16.gmra.mrb[16].mxu1 %v23064_v46  ;;  %v23083_v46 = vld [vmem:[#allocation38_spill] sm:$0xff] }
 0x5fc   :  { %5698 = vmatprep.mubr.bf16.mxu1 %v23065_v53  ;;  %5932 = vmatpush1.bf16.msra.mxu1 %v12439_v55  ;;  %v23080_v55 = vld [vmem:[#allocation29_spill] sm:$0xff] }
 0x5fd   :  { %5933 = vmatprep.subr.bf16.mxu1 %v22928_v21  ;;  %v23081_v18 = vpack.c.bf16 %v23079_v36, %v23080_v55  ;;  %v23084_v53 = vld [vmem:[#allocation33_spill] sm:$0xff]  ;;  %v23109_v36 = vld [vmem:[#allocation94_spill] sm:$0xff] }
 0x5fe   :  { %v23110_v55 = vld [vmem:[#allocation89_spill] sm:$0xff] }
 0x600   :  { %5934 = vmatpush1.bf16.msra.mxu1 %v12440_v13  ;;  %v23085_v13 = vpack.c.bf16 %v23083_v46, %v23084_v53  ;;  %v23116_v46 = vpack.c.bf16 %v17283_v1, %v17280_v5  ;;  %v23117_v53 = vld [vmem:[#allocation113_spill] sm:$0xff]  ;;  %v23129_v1 = vpack.c.bf16 %v17327_v19, %v17379_v56 }
 0x601   :  { %5935 = vmatprep.subr.bf16.mxu1 %v22928_v21  ;;  %v23141_v56 = vld [vmem:[#allocation149_spill] sm:$0xff] }
 0x603   :  { %5699 = vmatmul.mubr.bf16.gmra.mrb[20].mxu1 %v23068_v0  ;;  %v23092_v0 = vld [vmem:[#allocation61_spill] sm:$0xff] }
 0x604   :  { %5706 = vmatprep.mubr.bf16.mxu1 %v23069_v17  ;;  %5936 = vmatpush1.bf16.msra.mxu1 %v12441_v25  ;;  %v23088_v25 = vld [vmem:[#allocation37_spill] sm:$0xff]  ;;  %v23093_v17 = vld [vmem:[#allocation62_spill] sm:$0xff] }
 0x605   :  { %5937 = vmatprep.subr.bf16.mxu1 %v22928_v21  ;;  %v23089_v16 = vpack.c.bf16 %v23087_v15, %v23088_v25  ;;  %v23094_v28 = vpack.c.bf16 %v23092_v0, %v23093_v17  ;;  %v23121_v15 = vld [vmem:[#allocation118_spill] sm:$0xff] }
 0x606   :  { %v23122_v25 = vld [vmem:[#allocation114_spill] sm:$0xff] }
 0x607   :  { %v23123_v59 = vpack.c.bf16 %v23121_v15, %v23122_v25  ;;  %v23131_v0 = vld [vmem:[#allocation126_spill] sm:$0xff]  ;;  %v23183_v25 = vld [vmem:[#allocation216_spill] sm:$0xff] }
 0x608   :  { %5938 = vmatpush1.bf16.msra.mxu1 %v12442_v34  ;;  %v23099_v34 = vpack.c.bf16 %v17246_v50, %v17228_v60  ;;  %v12446_v60 = vld [vmem:[%s21203_s2 + $0x1f8] sm:$0xff]  }
 0x609   :  { %5939 = vmatprep.subr.bf16.mxu1 %v22928_v21  ;;  %v23107_v50 = vld [vmem:[#allocation90_spill] sm:$0xff] }
 0x60a   :  { %v23134_v17 = vld [vmem:[#allocation146_spill] sm:$0xff] }
 0x60b   :  { %5707 = vmatmul.mubr.bf16.gmra.mrb[24].mxu1 %v23072_v22  ;;  %v23098_v22 = vpack.c.bf16 %v23096_v23, %v23097_v54  ;;  %v23138_v23 = vld [vmem:[#allocation150_spill] sm:$0xff]  ;;  %v23139_v54 = vld [vmem:[#allocation145_spill] sm:$0xff] }
 0x60c   :  { %5714 = vmatprep.mubr.bf16.mxu1 %v23074_v26  ;;  %5940 = vmatpush1.bf16.msra.mxu1 %v12443_v51  ;;  %v23101_v26 = vld [vmem:[#allocation65_spill] sm:$0xff]  ;;  %v23140_v19 = vpack.c.bf16 %v23138_v23, %v23139_v54  ;;  %v23180_v15 = vld [vmem:[#allocation258_spill] sm:$0xff]  ;;  %v23202_v54 = vld [vmem:[#allocation15_spill] sm:$0xff] }
 0x60d   :  { %5941 = vmatprep.subr.bf16.mxu1 %v22928_v21  ;;  %v23102_v58 = vpack.c.bf16 %v23100_v4, %v23101_v26  ;;  %v23114_v51 = vld [vmem:[#allocation93_spill] sm:$0xff] }
 0x60e   :  { %v23148_v26 = vld [vmem:[#allocation173_spill] sm:$0xff] }
 0x60f   :  { %v23201_v23 = vld [vmem:[#allocation17_spill] sm:$0xff] }
 0x610   :  { %5942 = vmatpush1.bf16.msra.mxu1 %v12444_v61  ;;  %v23126_v61 = vld [vmem:[#allocation121_spill] sm:$0xff] }
 0x611   :  { %5943 = vmatprep.subr.bf16.mxu1 %v22928_v21  ;;  %v23128_v5 = vpack.c.bf16 %v23126_v61, %v23127_v37  ;;  %v23188_v61 = vld [vmem:[#allocation155_spill] sm:$0xff] }
 0x612   :  { %v23190_v37 = vld [vmem:[#allocation159_spill] sm:$0xff] }
 0x613   :  { %5715 = vmatmul.mubr.bf16.gmra.mrb[28].mxu1 %v23077_v42  ;;  %v23106_v42 = vpack.c.bf16 %v23104_v27, %v23105_v49  ;;  %v23153_v27 = vld [vmem:[#allocation181_spill] sm:$0xff]  ;;  %v23155_v49 = vpack.c.bf16 %v23033_v62, %v23029_v44  ;;  %v23168_v62 = vpack.c.bf16 %v17419_v47, %v17408_v30  ;;  %v23182_v47 = vld [vmem:[#allocation211_spill] sm:$0xff] }
 0x614   :  { %5722 = vmatprep.mubr.bf16.mxu1 %v23078_v6  ;;  %5944 = vmatpush1.bf16.msra.mxu1 %v12445_v7  ;;  %v23108_v6 = vpack.c.bf16 %v23107_v50, %v22784_v43  ;;  %v23118_v43 = vld [vmem:[#allocation86_spill] sm:$0xff] }
 0x615   :  { %5945 = vmatprep.subr.bf16.mxu1 %v22928_v21  ;;  %v23143_v7 = vld [vmem:[#allocation174_spill] sm:$0xff] }
 0x616   :  { %v23159_v50 = vld [vmem:[#allocation190_spill] sm:$0xff] }
 0x618   :  { %5946 = vmatpush1.bf16.msra.mxu1 %v12446_v60  ;;  %v23157_v60 = vld [vmem:[#allocation247_spill] sm:$0xff] }
 0x61b   :  { %5723 = vmatmul.mubr.bf16.gmra.mrb[32].mxu1 %v23081_v18  ;;  %v23111_v18 = vpack.c.bf16 %v23109_v36, %v23110_v55  ;;  %v23161_v36 = vld [vmem:[#allocation232_spill] sm:$0xff]  ;;  %v23162_v55 = vld [vmem:[#allocation230_spill] sm:$0xff] }
 0x61c   :  { %5730 = vmatprep.mubr.bf16.mxu1 %v23082_v32  ;;  %v23115_v32 = vpack.c.bf16 %v23113_v41, %v23114_v51  ;;  %v23169_v41 = vld [vmem:[#allocation236_spill] sm:$0xff]  ;;  %v23170_v51 = vld [vmem:[#allocation239_spill] sm:$0xff] }
 0x623   :  { %5731 = vmatmul.mubr.bf16.gmra.mrb[36].mxu1 %v23085_v13  ;;  %v23119_v13 = vpack.c.bf16 %v23117_v53, %v23118_v43  ;;  %v23174_v53 = vld [vmem:[#allocation254_spill] sm:$0xff] }
 0x624   :  { %5738 = vmatprep.mubr.bf16.mxu1 %v23086_v57  ;;  %v23120_v57 = vpack.c.bf16 %v17307_v31, %v22787_v2  ;;  %v23133_v2 = vpack.c.bf16 %v17335_v39, %v17332_v10  ;;  %v23146_v39 = vld [vmem:[#allocation194_spill] sm:$0xff] }
 0x625   :  { %v23147_v4 = vpack.c.bf16 %v23026_v20, %v23146_v39  ;;  %v23175_v43 = vld [vmem:[#allocation238_spill] sm:$0xff]  ;;  %v23209_v39 = vld [vmem:[#allocation24_spill] sm:$0xff] }
 0x62b   :  { %5739 = vmatmul.mubr.bf16.gmra.mrb[40].mxu1 %v23089_v16  ;;  %v23125_v16 = vpack.c.bf16 %v23124_v3, %v17310_v8  ;;  %v23186_v3 = vld [vmem:[#allocation219_spill] sm:$0xff] }
 0x62c   :  { %5746 = vmatprep.mubr.bf16.mxu1 %v23091_v9  ;;  %v23130_v9 = vld [vmem:[#allocation142_spill] sm:$0xff] }
 0x62d   :  { %v23132_v31 = vpack.c.bf16 %v23130_v9, %v23131_v0  ;;  %v23193_v9 = vld [vmem:[#allocation162_spill] sm:$0xff]  ;;  %v23194_v0 = vld [vmem:[#allocation243_spill] sm:$0xff] }
 0x633   :  { %5747 = vmatmul.mubr.bf16.gmra.mrb[44].mxu1 %v23094_v28  ;;  %v23135_v28 = vld [vmem:[#allocation141_spill] sm:$0xff] }
 0x634   :  { %5754 = vmatprep.mubr.bf16.mxu1 %v23095_v14  ;;  %v23136_v8 = vpack.c.bf16 %v23134_v17, %v23135_v28  ;;  %v23137_v14 = vpack.c.bf16 %v17347_v29, %v17338_v63  ;;  %v23151_v29 = vpack.c.bf16 %v23030_v48, %v22827_v12  ;;  %v23163_v12 = vpack.c.bf16 %v23161_v36, %v23162_v55  ;;  %v23197_v17 = vld [vmem:[#allocation241_spill] sm:$0xff]  ;;  %v23198_v28 = vld [vmem:[#allocation250_spill] sm:$0xff]  ;;  %v23225_v55 = vld [vmem:[#allocation195_spill] sm:$0xff] }
 0x635   :  { %v23164_v48 = vpack.c.bf16 %v17393_v11, %v22844_v33  ;;  %v23176_v11 = vpack.c.bf16 %v23174_v53, %v23175_v43  ;;  %v23177_v33 = vld [vmem:[#allocation256_spill] sm:$0xff]  ;;  %v23224_v36 = vld [vmem:[#allocation178_spill] sm:$0xff]  ;;  %v23237_v43 = vld [vmem:[#allocation35_spill] sm:$0xff] }
 0x63b   :  { %5755 = vmatmul.mubr.bf16.gmra.mrb[48].mxu1 %v23098_v22  ;;  %v23142_v22 = vpack.c.bf16 %v23141_v56, %v22830_v38  ;;  %v23204_v56 = vld [vmem:[#allocation45_spill] sm:$0xff] }
 0x63c   :  { %5762 = vmatprep.mubr.bf16.mxu1 %v23099_v34  ;;  %v23144_v34 = vld [vmem:[#allocation154_spill] sm:$0xff] }
 0x63d   :  { %v23145_v10 = vpack.c.bf16 %v23143_v7, %v23144_v34  ;;  %v23206_v7 = vld [vmem:[#allocation22_spill] sm:$0xff] }
 0x63e   :  { %v23207_v34 = vld [vmem:[#allocation138_spill] sm:$0xff] }
 0x643   :  { %5763 = vmatmul.mubr.bf16.gmra.mrb[52].mxu1 %v23102_v58  ;;  %v23149_v58 = vld [vmem:[#allocation169_spill] sm:$0xff] }
 0x644   :  { %5770 = vmatprep.mubr.bf16.mxu1 %v23103_v24  ;;  %v23150_v63 = vpack.c.bf16 %v23148_v26, %v23149_v58  ;;  %v23152_v24 = vld [vmem:[#allocation186_spill] sm:$0xff]  ;;  %v23211_v26 = vld [vmem:[#allocation25_spill] sm:$0xff] }
 0x645   :  { %v23154_v38 = vpack.c.bf16 %v23152_v24, %v23153_v27  ;;  %v23212_v58 = vld [vmem:[#allocation110_spill] sm:$0xff]  ;;  %v23216_v27 = vld [vmem:[#allocation129_spill] sm:$0xff] }
 0x646   :  { %v23215_v24 = vld [vmem:[#allocation106_spill] sm:$0xff] }
 0x64b   :  { %5771 = vmatmul.mubr.bf16.gmra.mrb[56].mxu1 %v23106_v42  ;;  %v23156_v42 = vld [vmem:[#allocation185_spill] sm:$0xff] }
 0x64c   :  { %5778 = vmatprep.mubr.bf16.mxu1 %v23108_v6  ;;  %v23158_v20 = vpack.c.bf16 %v23156_v42, %v23157_v60  ;;  %v23160_v6 = vpack.c.bf16 %v23159_v50, %v22855_v35  ;;  %v23171_v35 = vpack.c.bf16 %v23169_v41, %v23170_v51  ;;  %v23219_v42 = vld [vmem:[#allocation47_spill] sm:$0xff]  ;;  %v23220_v60 = vld [vmem:[#allocation133_spill] sm:$0xff]  ;;  %v23232_v41 = vld [vmem:[#allocation104_spill] sm:$0xff] }
 0x64d   :  { %v23222_v50 = vld [vmem:[#allocation71_spill] sm:$0xff]  ;;  %v23233_v51 = vld [vmem:[#allocation78_spill] sm:$0xff] }
 0x653   :  { %5779 = vmatmul.mubr.bf16.gmra.mrb[60].mxu1 %v23111_v18  ;;  %v23165_v18 = vld [vmem:[#allocation234_spill] sm:$0xff] }
 0x654   :  { %5786 = vmatprep.mubr.bf16.mxu1 %v23112_v45  ;;  %v23166_v45 = vld [vmem:[#allocation228_spill] sm:$0xff] }
 0x655   :  { %v23167_v44 = vpack.c.bf16 %v23165_v18, %v23166_v45  ;;  %v23228_v18 = vld [vmem:[#allocation76_spill] sm:$0xff] }
 0x656   :  { %v23229_v45 = vld [vmem:[#allocation132_spill] sm:$0xff] }
 0x65b   :  { %5787 = vmatmul.mubr.bf16.gmra.mrb[64].mxu1 %v23115_v32  ;;  %v23172_v32 = vld [vmem:[#allocation165_spill] sm:$0xff] }
 0x65c   :  { %5794 = vmatprep.mubr.bf16.mxu1 %v23116_v46  ;;  %v23173_v46 = vpack.c.bf16 %v23041_v52, %v23172_v32  ;;  %v23185_v52 = vld [vmem:[#allocation218_spill] sm:$0xff]  ;;  %v23235_v32 = vld [vmem:[#allocation80_spill] sm:$0xff] }
 0x663   :  { %5795 = vmatmul.mubr.bf16.gmra.mrb[68].mxu1 %v23119_v13  ;;  %v23178_v13 = vpack.c.bf16 %v23177_v33, %v22887_v40  ;;  %v23189_v40 = vld [vmem:[#allocation156_spill] sm:$0xff] }
 0x664   :  { %5802 = vmatprep.mubr.bf16.mxu1 %v23120_v57  ;;  %v23179_v57 = vld [vmem:[#allocation260_spill] sm:$0xff] }
 0x665   :  { %v23181_v30 = vpack.c.bf16 %v23179_v57, %v23180_v15  ;;  %v23238_v57 = vld [vmem:[#allocation40_spill] sm:$0xff] }
 0x66b   :  { %5803 = vmatmul.mubr.bf16.gmra.mrb[72].mxu1 %v23123_v59  ;;  %v23184_v59 = vld [vmem:[#allocation215_spill] sm:$0xff] }
 0x66c   :  { %5810 = vmatprep.mubr.bf16.mxu1 %v23125_v16  ;;  %v23187_v16 = vld [vmem:[#allocation220_spill] sm:$0xff] }
 0x673   :  { %5811 = vmatmul.mubr.bf16.gmra.mrb[76].mxu1 %v23128_v5  ;;  %v23191_v5 = vld [vmem:[#allocation245_spill] sm:$0xff] }
 0x674   :  { %5818 = vmatprep.mubr.bf16.mxu1 %v23129_v1  ;;  %v23192_v1 = vld [vmem:[#allocation164_spill] sm:$0xff] }
 0x67b   :  { %5819 = vmatmul.mubr.bf16.gmra.mrb[80].mxu1 %v23132_v31  ;;  %v23195_v31 = vld [vmem:[#allocation166_spill] sm:$0xff] }
 0x67c   :  { %5826 = vmatprep.mubr.bf16.mxu1 %v23133_v2  ;;  %v23196_v2 = vld [vmem:[#allocation249_spill] sm:$0xff] }
 0x683   :  { %5827 = vmatmul.mubr.bf16.gmra.mrb[84].mxu1 %v23136_v8  ;;  %v23199_v8 = vld [vmem:[#allocation53_spill] sm:$0xff] }
 0x684   :  { %5834 = vmatprep.mubr.bf16.mxu1 %v23137_v14  ;;  %v23200_v14 = vld [vmem:[#allocation253_spill] sm:$0xff] }
 0x68b   :  { %5835 = vmatmul.mubr.bf16.gmra.mrb[88].mxu1 %v23140_v19  ;;  %v23203_v19 = vld [vmem:[#allocation252_spill] sm:$0xff] }
 0x68c   :  { %5842 = vmatprep.mubr.bf16.mxu1 %v23142_v22  ;;  %v23205_v22 = vld [vmem:[#allocation16_spill] sm:$0xff] }
 0x693   :  { %5843 = vmatmul.mubr.bf16.gmra.mrb[92].mxu1 %v23145_v10  ;;  %v23208_v10 = vld [vmem:[#allocation44_spill] sm:$0xff] }
 0x694   :  { %5850 = vmatprep.mubr.bf16.mxu1 %v23147_v4  ;;  %v23210_v4 = vld [vmem:[#allocation48_spill] sm:$0xff] }
 0x69b   :  { %5851 = vmatmul.mubr.bf16.gmra.mrb[96].mxu1 %v23150_v63  ;;  %v23213_v63 = vld [vmem:[#allocation102_spill] sm:$0xff] }
 0x69c   :  { %5858 = vmatprep.mubr.bf16.mxu1 %v23151_v29  ;;  %v23214_v29 = vld [vmem:[#allocation52_spill] sm:$0xff] }
 0x6a3   :  { %5859 = vmatmul.mubr.bf16.gmra.mrb[100].mxu1 %v23154_v38  ;;  %v23217_v38 = vld [vmem:[#allocation105_spill] sm:$0xff] }
 0x6a4   :  { %5866 = vmatprep.mubr.bf16.mxu1 %v23155_v49  ;;  %v23218_v49 = vld [vmem:[#allocation51_spill] sm:$0xff] }
 0x6ab   :  { %5867 = vmatmul.mubr.bf16.gmra.mrb[104].mxu1 %v23158_v20  ;;  %v23221_v20 = vld [vmem:[#allocation103_spill] sm:$0xff] }
 0x6ac   :  { %5874 = vmatprep.mubr.bf16.mxu1 %v23160_v6  ;;  %v23223_v6 = vld [vmem:[#allocation128_spill] sm:$0xff] }
 0x6b3   :  { %5875 = vmatmul.mubr.bf16.gmra.mrb[108].mxu1 %v23163_v12  ;;  %v23226_v12 = vld [vmem:[#allocation177_spill] sm:$0xff] }
 0x6b4   :  { %5882 = vmatprep.mubr.bf16.mxu1 %v23164_v48  ;;  %v23227_v48 = vld [vmem:[#allocation127_spill] sm:$0xff] }
 0x6bb   :  { %5883 = vmatmul.mubr.bf16.gmra.mrb[112].mxu1 %v23167_v44  ;;  %v23230_v44 = vld [vmem:[#allocation99_spill] sm:$0xff] }
 0x6bc   :  { %5890 = vmatprep.mubr.bf16.mxu1 %v23168_v62  ;;  %v23231_v62 = vld [vmem:[#allocation31_spill] sm:$0xff] }
 0x6c3   :  { %5891 = vmatmul.mubr.bf16.gmra.mrb[116].mxu1 %v23171_v35  ;;  %v23234_v35 = vld [vmem:[#allocation75_spill] sm:$0xff] }
 0x6c4   :  { %5898 = vmatprep.mubr.bf16.mxu1 %v23173_v46  ;;  %v23236_v46 = vld [vmem:[#allocation100_spill] sm:$0xff] }
 0x6cb   :  { %5899 = vmatmul.mubr.bf16.gmra.mrb[120].mxu1 %v23176_v11 }
 0x6cc   :  { %5906 = vmatprep.mubr.bf16.mxu1 %v23178_v13 }
 0x6d3   :  { %5907 = vmatmul.mubr.bf16.gmra.mrb[124].mxu1 %v23181_v30 }
 0x6d4   :  { %5947 = vmatprep.mubr.bf16.mxu1 %v23182_v47  ;;  %v23239_v47 = vld [vmem:[#allocation39_spill] sm:$0xff] }
 0x6db   :  { %5948 = vmatmul.mubr.bf16.vlgmr.msra.gmra.mrb[0].mxu1 %v23183_v25  ;;  %v23240_v25 = vld [vmem:[#allocation264_spill] sm:$0xff] }
 0x6dc   :  { %5955 = vmatprep.mubr.bf16.mxu1 %v23184_v59  ;;  %v23241_v59 = vld [vmem:[#allocation262_spill] sm:$0xff] }
 0x6e3   :  { %5956 = vmatmul.mubr.bf16.gmra.mrb[4].mxu1 %v23185_v52  ;;  %v23242_v52 = vpack.c.bf16 %v23240_v25, %v23241_v59 }
 0x6e4   :  { %5963 = vmatprep.mubr.bf16.mxu1 %v23186_v3 }
 0x6eb   :  { %5964 = vmatmul.mubr.bf16.gmra.mrb[8].mxu1 %v23187_v16  ;;  %v23243_v16 = vld [vmem:[#allocation36_spill] sm:$0xff] }
 0x6ec   :  { %5971 = vmatprep.mubr.bf16.mxu1 %v23188_v61 }
 0x6f3   :  { %5972 = vmatmul.mubr.bf16.gmra.mrb[12].mxu1 %v23189_v40 }
 0x6f4   :  { %5979 = vmatprep.mubr.bf16.mxu1 %v23190_v37 }
 0x6fb   :  { %5980 = vmatmul.mubr.bf16.gmra.mrb[16].mxu1 %v23191_v5  ;;  %v23244_v5 = vld [vmem:[#allocation41_spill] sm:$0xff] }
 0x6fc   :  { %5987 = vmatprep.mubr.bf16.mxu1 %v23192_v1 }
 0x703   :  { %5988 = vmatmul.mubr.bf16.gmra.mrb[20].mxu1 %v23193_v9 }
 0x704   :  { %5995 = vmatprep.mubr.bf16.mxu1 %v23194_v0  ;;  %v23245_v0 = vmov 0.0  }
 0x70b   :  { %5996 = vmatmul.mubr.bf16.gmra.mrb[24].mxu1 %v23195_v31  ;;  %v23246_v31 = vld [vmem:[#allocation72_spill] sm:$0xff] }
 0x70c   :  { %6003 = vmatprep.mubr.bf16.mxu1 %v23196_v2  ;;  %v4460_v2 = vpack.c.bf16 %v23246_v31, %v23245_v0 }
 0x713   :  { %6004 = vmatmul.mubr.bf16.gmra.mrb[28].mxu1 %v23197_v17  ;;  %v23247_v17 = vld [vmem:[#allocation266_spill] sm:$0xff] }
 0x714   :  { %6011 = vmatprep.mubr.bf16.mxu1 %v23198_v28  ;;  %v23248_v28 = vld [vmem:[#allocation14_spill] sm:$0xff] }
 0x71b   :  { %6012 = vmatmul.mubr.bf16.gmra.mrb[32].mxu1 %v23199_v8  ;;  %v23249_v8 = vpack.c.bf16 %v23247_v17, %v23248_v28 }
 0x71c   :  { %6019 = vmatprep.mubr.bf16.mxu1 %v23200_v14 }
 0x723   :  { %6020 = vmatmul.mubr.bf16.gmra.mrb[36].mxu1 %v23201_v23  ;;  %v23250_v23 = vld [vmem:[#allocation55_spill] sm:$0xff] }
 0x724   :  { %6027 = vmatprep.mubr.bf16.mxu1 %v23202_v54 }
 0x72b   :  { %6028 = vmatmul.mubr.bf16.gmra.mrb[40].mxu1 %v23203_v19 }
 0x72c   :  { %6035 = vmatprep.mubr.bf16.mxu1 %v23204_v56 }
 0x733   :  { %6036 = vmatmul.mubr.bf16.gmra.mrb[44].mxu1 %v23205_v22  ;;  %v23251_v22 = vld [vmem:[#allocation59_spill] sm:$0xff] }
 0x734   :  { %6043 = vmatprep.mubr.bf16.mxu1 %v23206_v7 }
 0x73b   :  { %6044 = vmatmul.mubr.bf16.gmra.mrb[48].mxu1 %v23207_v34 }
 0x73c   :  { %6051 = vmatprep.mubr.bf16.mxu1 %v23208_v10  ;;  %v23252_v10 = vld [vmem:[#allocation223_spill] sm:$0xff] }
 0x743   :  { %6052 = vmatmul.mubr.bf16.gmra.mrb[52].mxu1 %v23209_v39  ;;  %v23253_v39 = vld [vmem:[#allocation77_spill] sm:$0xff] }
 0x744   :  { %6059 = vmatprep.mubr.bf16.mxu1 %v23210_v4  ;;  %v4461_v4 = vpack.c.bf16 %v23253_v39, %v23252_v10  ;;  %v23273_v10 = vld [vmem:[#allocation83_spill] sm:$0xff] }
 0x74b   :  { %6060 = vmatmul.mubr.bf16.gmra.mrb[56].mxu1 %v23211_v26  ;;  %v23254_v26 = vld [vmem:[#allocation28_spill] sm:$0xff] }
 0x74c   :  { %6067 = vmatprep.mubr.bf16.mxu1 %v23212_v58  ;;  %v23255_v58 = vld [vmem:[#allocation13_spill] sm:$0xff] }
 0x753   :  { %6068 = vmatmul.mubr.bf16.gmra.mrb[60].mxu1 %v23213_v63  ;;  %v23256_v63 = vpack.c.bf16 %v23254_v26, %v23255_v58  ;;  %v23274_v58 = vld [vmem:[#allocation87_spill] sm:$0xff] }
 0x754   :  { %6075 = vmatprep.mubr.bf16.mxu1 %v23214_v29 }
 0x75b   :  { %6076 = vmatmul.mubr.bf16.gmra.mrb[64].mxu1 %v23215_v24  ;;  %v23257_v24 = vld [vmem:[#allocation56_spill] sm:$0xff] }
 0x75c   :  { %6083 = vmatprep.mubr.bf16.mxu1 %v23216_v27 }
 0x763   :  { %6084 = vmatmul.mubr.bf16.gmra.mrb[68].mxu1 %v23217_v38 }
 0x764   :  { %6091 = vmatprep.mubr.bf16.mxu1 %v23218_v49 }
 0x76b   :  { %6092 = vmatmul.mubr.bf16.gmra.mrb[72].mxu1 %v23219_v42  ;;  %v23258_v42 = vld [vmem:[#allocation60_spill] sm:$0xff] }
 0x76c   :  { %6099 = vmatprep.mubr.bf16.mxu1 %v23220_v60 }
 0x773   :  { %6100 = vmatmul.mubr.bf16.gmra.mrb[76].mxu1 %v23221_v20 }
 0x774   :  { %6107 = vmatprep.mubr.bf16.mxu1 %v23222_v50  ;;  %v23259_v50 = vld [vmem:[#allocation82_spill] sm:$0xff] }
 0x77b   :  { %6108 = vmatmul.mubr.bf16.gmra.mrb[80].mxu1 %v23223_v6  ;;  %v23260_v6 = vld [vmem:[#allocation79_spill] sm:$0xff] }
 0x77c   :  { %6115 = vmatprep.mubr.bf16.mxu1 %v23224_v36  ;;  %v4462_v36 = vpack.c.bf16 %v23260_v6, %v23259_v50 }
 0x783   :  { %6116 = vmatmul.mubr.bf16.gmra.mrb[84].mxu1 %v23225_v55  ;;  %v23261_v55 = vld [vmem:[#allocation32_spill] sm:$0xff] }
 0x784   :  { %6123 = vmatprep.mubr.bf16.mxu1 %v23226_v12  ;;  %v23262_v12 = vld [vmem:[#allocation27_spill] sm:$0xff] }
 0x78b   :  { %6124 = vmatmul.mubr.bf16.gmra.mrb[88].mxu1 %v23227_v48  ;;  %v23263_v48 = vpack.c.bf16 %v23261_v55, %v23262_v12  ;;  %v12451_v55 = vld [vmem:[%s21204_s3 + $0x50] sm:$0xff]  }
 0x78c   :  { %6131 = vmatprep.mubr.bf16.mxu1 %v23228_v18  ;;  %v12452_v12 = vld [vmem:[%s21204_s3 + $0x10] sm:$0xff]  }
 0x793   :  { %6132 = vmatmul.mubr.bf16.gmra.mrb[92].mxu1 %v23229_v45  ;;  %v23264_v45 = vld [vmem:[#allocation63_spill] sm:$0xff] }
 0x794   :  { %6139 = vmatprep.mubr.bf16.mxu1 %v23230_v44 }
 0x79b   :  { %6140 = vmatmul.mubr.bf16.gmra.mrb[96].mxu1 %v23231_v62 }
 0x79c   :  { %6147 = vmatprep.mubr.bf16.mxu1 %v23232_v41 }
 0x7a3   :  { %6148 = vmatmul.mubr.bf16.gmra.mrb[100].mxu1 %v23233_v51  ;;  %v23265_v51 = vld [vmem:[#allocation68_spill] sm:$0xff] }
 0x7a4   :  { %6155 = vmatprep.mubr.bf16.mxu1 %v23234_v35 }
 0x7ab   :  { %6156 = vmatmul.mubr.bf16.gmra.mrb[104].mxu1 %v23235_v32 }
 0x7ac   :  { %6163 = vmatprep.mubr.bf16.mxu1 %v23236_v46  ;;  %v23266_v46 = vld [vmem:[#allocation81_spill] sm:$0xff] }
 0x7ae   :  { %v5949_v53 = vpop.f32.mrb[0].mxu1 }
 0x7af   :  { %v18632_v11 = vadd.f32 %v23237_v43, %v5949_v53  ;;  %v5951_v33 = vpop.f32.mrb[1].mxu1  ;;  %v23267_v53 = vld [vmem:[#allocation246_spill] sm:$0xff] }
 0x7b0   :  { %v5952_v13 = vpop.f32.mrb[2].mxu1  ;;  %v4463_v43 = vpack.c.bf16 %v23267_v53, %v23266_v46  ;;  %v12447_v33 = vld [vmem:[%s21204_s3 + $0x40] sm:$0xff]  }
 0x7b1   :  { %v18635_v15 = vadd.f32 %v23238_v57, %v5952_v13  ;;  %v5954_v30 = vpop.f32.mrb[3].mxu1  ;;  %v12448_v13 = vld [vmem:[%s21204_s3] sm:$0xff]   ;;  %11088 = vmatprep.subr.bf16.mxu0 %v12447_v33  ;;  %v6564_v50 = vmul.f32 %v18632_v11, %v18632_v11 }
 0x7b2   :  { %11089 = vmatpush3.bf16.msra.mxu0 %v12448_v13  ;;  %v23268_v30 = vld [vmem:[#allocation64_spill] sm:$0xff]  ;;  %v23277_v13 = vld [vmem:[#allocation242_spill] sm:$0xff] }
 0x7b3   :  { %6164 = vmatmul.mubr.bf16.gmra.mrb[108].mxu1 %v23239_v47  ;;  %v6494_v6 = vadd.f32 %v18635_v15, %v18632_v11 }
 0x7b4   :  { %6171 = vmatprep.mubr.bf16.mxu1 %v23242_v52  ;;  %v23269_v52 = vld [vmem:[#allocation69_spill] sm:$0xff] }
 0x7b6   :  { %v5957_v3 = vpop.f32.mrb[4].mxu1 }
 0x7b7   :  { %v18642_v61 = vadd.f32 %v23243_v16, %v5957_v3  ;;  %v5959_v40 = vpop.f32.mrb[5].mxu1 }
 0x7b8   :  { %v5960_v37 = vpop.f32.mrb[6].mxu1 }
 0x7b9   :  { %v18645_v1 = vadd.f32 %v23244_v5, %v5960_v37  ;;  %v5962_v9 = vpop.f32.mrb[7].mxu1  ;;  %v23270_v37 = vld [vmem:[#allocation84_spill] sm:$0xff] }
 0x7bb   :  { %6172 = vmatmul.mubr.bf16.gmra.mrb[112].mxu1 %v4460_v2  ;;  %v23271_v2 = vld [vmem:[#allocation136_spill] sm:$0xff] }
 0x7bc   :  { %6179 = vmatprep.mubr.bf16.mxu1 %v23249_v8  ;;  %v12449_v8 = vld [vmem:[%s21204_s3 + $0x48] sm:$0xff]  }
 0x7bd   :  { %11090 = vmatprep.subr.bf16.mxu0 %v12449_v8 }
 0x7be   :  { %v5965_v14 = vpop.f32.mrb[8].mxu1 }
 0x7bf   :  { %v18653_v54 = vadd.f32 %v23250_v23, %v5965_v14  ;;  %v5967_v19 = vpop.f32.mrb[9].mxu1  ;;  %v12450_v14 = vld [vmem:[%s21204_s3 + $0x8] sm:$0xff]  }
 0x7c0   :  { %v5968_v56 = vpop.f32.mrb[10].mxu1  ;;  %11091 = vmatpush3.bf16.msra.mxu0 %v12450_v14  ;;  %v23272_v19 = vld [vmem:[#allocation67_spill] sm:$0xff] }
 0x7c1   :  { %v18656_v7 = vadd.f32 %v23251_v22, %v5968_v56  ;;  %v5970_v34 = vpop.f32.mrb[11].mxu1  ;;  %11092 = vmatprep.subr.bf16.mxu0 %v12451_v55  ;;  %v6568_v33 = vmul.f32 %v18653_v54, %v18653_v54 }
 0x7c3   :  { %6180 = vmatmul.mubr.bf16.gmra.mrb[116].mxu1 %v4461_v4 }
 0x7c4   :  { %6187 = vmatprep.mubr.bf16.mxu1 %v23256_v63  ;;  %11093 = vmatpush3.bf16.msra.mxu0 %v12452_v12 }
 0x7c6   :  { %v5973_v29 = vpop.f32.mrb[12].mxu1 }
 0x7c7   :  { %v18664_v27 = vadd.f32 %v23257_v24, %v5973_v29  ;;  %v5975_v38 = vpop.f32.mrb[13].mxu1 }
 0x7c8   :  { %v5976_v49 = vpop.f32.mrb[14].mxu1  ;;  %v6565_v38 = vmul.f32 %v18635_v15, %v18635_v15 }
 0x7c9   :  { %v18667_v60 = vadd.f32 %v23258_v42, %v5976_v49  ;;  %v5978_v20 = vpop.f32.mrb[15].mxu1  ;;  %v23275_v49 = vld [vmem:[#allocation92_spill] sm:$0xff] }
 0x7cb   :  { %6188 = vmatmul.mubr.bf16.gmra.mrb[120].mxu1 %v4462_v36  ;;  %v6566_v36 = vmul.f32 %v18642_v61, %v18642_v61 }
 0x7cc   :  { %6195 = vmatprep.mubr.bf16.mxu1 %v23263_v48  ;;  %v6628_v48 = vadd.f32 %v6565_v38, %v6564_v50  ;;  %v23280_v50 = vld [vmem:[#allocation91_spill] sm:$0xff] }
 0x7ce   :  { %v5981_v18 = vpop.f32.mrb[16].mxu1 }
 0x7cf   :  { %v18675_v44 = vadd.f32 %v23264_v45, %v5981_v18  ;;  %v5983_v62 = vpop.f32.mrb[17].mxu1  ;;  %v6495_v18 = vadd.f32 %v6494_v6, %v18642_v61 }
 0x7d0   :  { %v5984_v41 = vpop.f32.mrb[18].mxu1  ;;  %v6629_v62 = vadd.f32 %v6628_v48, %v6566_v36 }
 0x7d1   :  { %v18678_v35 = vadd.f32 %v23265_v51, %v5984_v41  ;;  %v5986_v32 = vpop.f32.mrb[19].mxu1  ;;  %v6567_v41 = vmul.f32 %v18645_v1, %v18645_v1  ;;  %v23276_v51 = vld [vmem:[#allocation88_spill] sm:$0xff] }
 0x7d3   :  { %6196 = vmatmul.mubr.bf16.gmra.mrb[124].mxu1 %v4463_v43  ;;  %v6496_v43 = vadd.f32 %v6495_v18, %v18645_v1  ;;  %v6573_v48 = vmul.f32 %v18678_v35, %v18678_v35  ;;  %v23281_v18 = vld [vmem:[#allocation96_spill] sm:$0xff] }
 0x7d6   :  { %v5989_v57 = vpop.f32.mrb[20].mxu1 }
 0x7d7   :  { %v18689_v47 = vadd.f32 %v23268_v30, %v5989_v57  ;;  %v5991_v25 = vpop.f32.mrb[21].mxu1 }
 0x7d8   :  { %v5992_v59 = vpop.f32.mrb[22].mxu1  ;;  %v6630_v25 = vadd.f32 %v6629_v62, %v6567_v41 }
 0x7d9   :  { %v18692_v3 = vadd.f32 %v23269_v52, %v5992_v59  ;;  %v5994_v16 = vpop.f32.mrb[23].mxu1  ;;  %v6497_v59 = vadd.f32 %v6496_v43, %v18653_v54 }
 0x7da   :  { %v6631_v52 = vadd.f32 %v6630_v25, %v6568_v33  ;;  %v6569_v16 = vmul.f32 %v18656_v7, %v18656_v7 }
 0x7dc   :  { %v6632_v14 = vadd.f32 %v6631_v52, %v6569_v16 }
 0x7de   :  { %v5997_v40 = vpop.f32.mrb[24].mxu1 }
 0x7df   :  { %v18695_v5 = vadd.f32 %v23270_v37, %v5997_v40  ;;  %v5999_v9 = vpop.f32.mrb[25].mxu1  ;;  %v6498_v37 = vadd.f32 %v6497_v59, %v18656_v7 }
 0x7e0   :  { %v6000_v31 = vpop.f32.mrb[26].mxu1  ;;  %v6570_v9 = vmul.f32 %v18664_v27, %v18664_v27 }
 0x7e1   :  { %v18698_v17 = vadd.f32 %v23271_v2, %v6000_v31  ;;  %v6002_v28 = vpop.f32.mrb[27].mxu1  ;;  %v23278_v31 = vld [vmem:[#allocation97_spill] sm:$0xff] }
 0x7e6   :  { %v6005_v23 = vpop.f32.mrb[28].mxu1 }
 0x7e7   :  { %v18707_v56 = vadd.f32 %v23272_v19, %v6005_v23  ;;  %v6007_v22 = vpop.f32.mrb[29].mxu1  ;;  %v6499_v23 = vadd.f32 %v6498_v37, %v18664_v27  ;;  %v23279_v19 = vld [vmem:[#allocation95_spill] sm:$0xff] }
 0x7e8   :  { %v6008_v34 = vpop.f32.mrb[30].mxu1  ;;  %v23283_v37 = vld [vmem:[#allocation115_spill] sm:$0xff] }
 0x7e9   :  { %v18710_v39 = vadd.f32 %v23273_v10, %v6008_v34  ;;  %v6010_v4 = vpop.f32.mrb[31].mxu1  ;;  %v6633_v10 = vadd.f32 %v6632_v14, %v6570_v9  ;;  %v12455_v14 = vld [vmem:[%s21204_s3 + $0x60] sm:$0xff]  }
 0x7ea   :  { %v6571_v4 = vmul.f32 %v18667_v60, %v18667_v60 }
 0x7ee   :  { %v6013_v26 = vpop.f32.mrb[32].mxu1 }
 0x7ef   :  { %v18713_v63 = vadd.f32 %v23274_v58, %v6013_v26  ;;  %v6015_v29 = vpop.f32.mrb[33].mxu1  ;;  %v12453_v26 = vld [vmem:[%s21204_s3 + $0x58] sm:$0xff]  }
 0x7f0   :  { %v6016_v24 = vpop.f32.mrb[34].mxu1  ;;  %v12454_v58 = vld [vmem:[%s21204_s3 + $0x18] sm:$0xff]   ;;  %v6500_v29 = vadd.f32 %v6499_v23, %v18667_v60  ;;  %11094 = vmatprep.subr.bf16.mxu0 %v12453_v26  ;;  %v12456_v23 = vld [vmem:[%s21204_s3 + $0x20] sm:$0xff]   ;;  %v6578_v26 = vmul.f32 %v18707_v56, %v18707_v56 }
 0x7f1   :  { %v18718_v42 = vadd.f32 %v23275_v49, %v6016_v24  ;;  %v6018_v20 = vpop.f32.mrb[35].mxu1  ;;  %v6572_v24 = vmul.f32 %v18675_v44, %v18675_v44  ;;  %11095 = vmatpush3.bf16.msra.mxu0 %v12454_v58  ;;  %v6634_v49 = vadd.f32 %v6633_v10, %v6571_v4  ;;  %v23284_v58 = vld [vmem:[#allocation112_spill] sm:$0xff] }
 0x7f2   :  { %v6501_v20 = vadd.f32 %v6500_v29, %v18675_v44  ;;  %11096 = vmatprep.subr.bf16.mxu0 %v12455_v14 }
 0x7f3   :  { %v6635_v12 = vadd.f32 %v6634_v49, %v6572_v24 }
 0x7f4   :  { %v6502_v41 = vadd.f32 %v6501_v20, %v18678_v35 }
 0x7f5   :  { %11097 = vmatpush3.bf16.msra.mxu0 %v12456_v23 }
 0x7f6   :  { %v6021_v45 = vpop.f32.mrb[36].mxu1 }
 0x7f7   :  { %v18736_v32 = vadd.f32 %v23276_v51, %v6021_v45  ;;  %v6023_v46 = vpop.f32.mrb[37].mxu1  ;;  %v6574_v51 = vmul.f32 %v18689_v47, %v18689_v47 }
 0x7f8   :  { %v6024_v53 = vpop.f32.mrb[38].mxu1  ;;  %v6636_v46 = vadd.f32 %v6635_v12, %v6573_v48  ;;  %v6579_v48 = vmul.f32 %v18710_v39, %v18710_v39 }
 0x7f9   :  { %v18742_v57 = vadd.f32 %v23277_v13, %v6024_v53  ;;  %v6026_v30 = vpop.f32.mrb[39].mxu1  ;;  %v6503_v53 = vadd.f32 %v6502_v41, %v18689_v47  ;;  %v6575_v13 = vmul.f32 %v18692_v3, %v18692_v3 }
 0x7fa   :  { %v6637_v33 = vadd.f32 %v6636_v46, %v6574_v51  ;;  %v23282_v30 = vld [vmem:[#allocation111_spill] sm:$0xff] }
 0x7fb   :  { %v6504_v16 = vadd.f32 %v6503_v53, %v18692_v3  ;;  %v23286_v53 = vld [vmem:[#allocation119_spill] sm:$0xff] }
 0x7fe   :  { %v6029_v40 = vpop.f32.mrb[40].mxu1 }
 0x7ff   :  { %v18751_v2 = vadd.f32 %v23278_v31, %v6029_v40  ;;  %v6031_v28 = vpop.f32.mrb[41].mxu1  ;;  %v6576_v40 = vmul.f32 %v18695_v5, %v18695_v5 }
 0x800   :  { %v6032_v8 = vpop.f32.mrb[42].mxu1  ;;  %v6638_v28 = vadd.f32 %v6637_v33, %v6575_v13 }
 0x801   :  { %v18755_v22 = vadd.f32 %v23279_v19, %v6032_v8  ;;  %v6034_v34 = vpop.f32.mrb[43].mxu1  ;;  %v6505_v8 = vadd.f32 %v6504_v16, %v18695_v5 }
 0x802   :  { %v6639_v19 = vadd.f32 %v6638_v28, %v6576_v40  ;;  %v6577_v34 = vmul.f32 %v18698_v17, %v18698_v17  ;;  %v12457_v28 = vld [vmem:[%s21204_s3 + $0x68] sm:$0xff]  }
 0x803   :  { %v6506_v4 = vadd.f32 %v6505_v8, %v18698_v17  ;;  %v12458_v8 = vld [vmem:[%s21204_s3 + $0x28] sm:$0xff]   ;;  %11098 = vmatprep.subr.bf16.mxu0 %v12457_v28 }
 0x804   :  { %v6640_v49 = vadd.f32 %v6639_v19, %v6577_v34  ;;  %11099 = vmatpush3.bf16.msra.mxu0 %v12458_v8 }
 0x805   :  { %v6507_v20 = vadd.f32 %v6506_v4, %v18707_v56  ;;  %v23288_v4 = vld [vmem:[#allocation120_spill] sm:$0xff] }
 0x806   :  { %v6037_v38 = vpop.f32.mrb[44].mxu1  ;;  %v6641_v12 = vadd.f32 %v6640_v49, %v6578_v26  ;;  %v6584_v49 = vmul.f32 %v18751_v2, %v18751_v2 }
 0x807   :  { %v18770_v6 = vadd.f32 %v23280_v50, %v6037_v38  ;;  %v6039_v36 = vpop.f32.mrb[45].mxu1  ;;  %v23285_v50 = vld [vmem:[#allocation116_spill] sm:$0xff] }
 0x808   :  { %v6040_v55 = vpop.f32.mrb[46].mxu1  ;;  %v6642_v51 = vadd.f32 %v6641_v12, %v6579_v48 }
 0x809   :  { %v18775_v45 = vadd.f32 %v23281_v18, %v6040_v55  ;;  %v6042_v62 = vpop.f32.mrb[47].mxu1  ;;  %v6508_v18 = vadd.f32 %v6507_v20, %v18710_v39  ;;  %v23289_v20 = vld [vmem:[#allocation125_spill] sm:$0xff] }
 0x80a   :  { %v6580_v62 = vmul.f32 %v18713_v63, %v18713_v63 }
 0x80b   :  { %v6509_v46 = vadd.f32 %v6508_v18, %v18713_v63  ;;  %v6587_v8 = vmul.f32 %v18775_v45, %v18775_v45 }
 0x80e   :  { %v6045_v43 = vpop.f32.mrb[48].mxu1 }
 0x80f   :  { %v18784_v25 = vadd.f32 %v23282_v30, %v6045_v43  ;;  %v6047_v59 = vpop.f32.mrb[49].mxu1  ;;  %v6643_v30 = vadd.f32 %v6642_v51, %v6580_v62  ;;  %v6585_v62 = vmul.f32 %v18755_v22, %v18755_v22 }
 0x810   :  { %v6048_v52 = vpop.f32.mrb[50].mxu1  ;;  %v6581_v59 = vmul.f32 %v18718_v42, %v18718_v42 }
 0x811   :  { %v18790_v9 = vadd.f32 %v23283_v37, %v6048_v52  ;;  %v6050_v31 = vpop.f32.mrb[51].mxu1  ;;  %v23287_v52 = vld [vmem:[#allocation124_spill] sm:$0xff]  ;;  %v6510_v37 = vadd.f32 %v6509_v46, %v18718_v42  ;;  %v6586_v46 = vmul.f32 %v18770_v6, %v18770_v6 }
 0x812   :  { %v6582_v31 = vmul.f32 %v18736_v32, %v18736_v32  ;;  %v6644_v14 = vadd.f32 %v6643_v30, %v6581_v59 }
 0x813   :  { %v6511_v23 = vadd.f32 %v6510_v37, %v18736_v32 }
 0x814   :  { %v6645_v34 = vadd.f32 %v6644_v14, %v6582_v31 }
 0x816   :  { %v6053_v10 = vpop.f32.mrb[52].mxu1 }
 0x817   :  { %v18805_v29 = vadd.f32 %v23284_v58, %v6053_v10  ;;  %v6055_v24 = vpop.f32.mrb[53].mxu1  ;;  %v6583_v10 = vmul.f32 %v18742_v57, %v18742_v57 }
 0x818   :  { %v6056_v38 = vpop.f32.mrb[54].mxu1 }
 0x819   :  { %v18809_v36 = vadd.f32 %v23285_v50, %v6056_v38  ;;  %v6058_v55 = vpop.f32.mrb[55].mxu1  ;;  %v6512_v38 = vadd.f32 %v6511_v23, %v18742_v57  ;;  %v6646_v12 = vadd.f32 %v6645_v34, %v6583_v10  ;;  %v6588_v23 = vmul.f32 %v18784_v25, %v18784_v25 }
 0x81b   :  { %v6513_v48 = vadd.f32 %v6512_v38, %v18751_v2  ;;  %v6647_v18 = vadd.f32 %v6646_v12, %v6584_v49 }
 0x81d   :  { %v6514_v51 = vadd.f32 %v6513_v48, %v18755_v22  ;;  %v6648_v59 = vadd.f32 %v6647_v18, %v6585_v62  ;;  %v6590_v62 = vmul.f32 %v18805_v29, %v18805_v29 }
 0x81e   :  { %v6061_v41 = vpop.f32.mrb[56].mxu1 }
 0x81f   :  { %v18818_v43 = vadd.f32 %v23286_v53, %v6061_v41  ;;  %v6063_v33 = vpop.f32.mrb[57].mxu1  ;;  %v23290_v53 = vld [vmem:[#allocation140_spill] sm:$0xff]  ;;  %v6649_v28 = vadd.f32 %v6648_v59, %v6586_v46 }
 0x820   :  { %v6064_v13 = vpop.f32.mrb[58].mxu1 }
 0x821   :  { %v18823_v16 = vadd.f32 %v23287_v52, %v6064_v13  ;;  %v6066_v40 = vpop.f32.mrb[59].mxu1  ;;  %v6515_v52 = vadd.f32 %v6514_v51, %v18770_v6  ;;  %v6650_v34 = vadd.f32 %v6649_v28, %v6587_v8  ;;  %v6592_v28 = vmul.f32 %v18818_v43, %v18818_v43  ;;  %v23295_v8 = vld [vmem:[#allocation148_spill] sm:$0xff] }
 0x822   :  { %v23291_v40 = vld [vmem:[#allocation200_spill] sm:$0xff] }
 0x823   :  { %v6516_v14 = vadd.f32 %v6515_v52, %v18775_v45  ;;  %v6651_v49 = vadd.f32 %v6650_v34, %v6588_v23 }
 0x825   :  { %v6517_v10 = vadd.f32 %v6516_v14, %v18784_v25 }
 0x826   :  { %v6069_v19 = vpop.f32.mrb[60].mxu1 }
 0x827   :  { %v18838_v26 = vadd.f32 %v23288_v4, %v6069_v19  ;;  %v6071_v58 = vpop.f32.mrb[61].mxu1  ;;  %v23292_v4 = vld [vmem:[#allocation123_spill] sm:$0xff]  ;;  %v6518_v18 = vadd.f32 %v6517_v10, %v18790_v9 }
 0x828   :  { %v6072_v24 = vpop.f32.mrb[62].mxu1 }
 0x829   :  { %v18844_v50 = vadd.f32 %v23289_v20, %v6072_v24  ;;  %v6074_v55 = vpop.f32.mrb[63].mxu1  ;;  %v6589_v20 = vmul.f32 %v18790_v9, %v18790_v9  ;;  %v6519_v51 = vadd.f32 %v6518_v18, %v18805_v29 }
 0x82a   :  { %v23293_v55 = vld [vmem:[#allocation139_spill] sm:$0xff] }
 0x82e   :  { %v6077_v41 = vpop.f32.mrb[64].mxu1 }
 0x82f   :  { %v18853_v33 = vadd.f32 %v23290_v53, %v6077_v41  ;;  %v6079_v13 = vpop.f32.mrb[65].mxu1  ;;  %v6652_v41 = vadd.f32 %v6651_v49, %v6589_v20  ;;  %v6594_v49 = vmul.f32 %v18838_v26, %v18838_v26  ;;  %v23296_v20 = vld [vmem:[#allocation144_spill] sm:$0xff] }
 0x830   :  { %v6080_v30 = vpop.f32.mrb[66].mxu1  ;;  %v6591_v13 = vmul.f32 %v18809_v36, %v18809_v36 }
 0x831   :  { %v18857_v37 = vadd.f32 %v23291_v40, %v6080_v30  ;;  %v6082_v31 = vpop.f32.mrb[67].mxu1  ;;  %v6653_v53 = vadd.f32 %v6652_v41, %v6590_v62  ;;  %v23294_v30 = vld [vmem:[#allocation135_spill] sm:$0xff] }
 0x832   :  { %v6520_v31 = vadd.f32 %v6519_v51, %v18809_v36  ;;  %v23297_v51 = vld [vmem:[#allocation143_spill] sm:$0xff] }
 0x834   :  { %v6521_v34 = vadd.f32 %v6520_v31, %v18818_v43 }
 0x836   :  { %v6085_v19 = vpop.f32.mrb[68].mxu1 }
 0x837   :  { %v18866_v58 = vadd.f32 %v23292_v4, %v6085_v19  ;;  %v6087_v24 = vpop.f32.mrb[69].mxu1  ;;  %v6654_v19 = vadd.f32 %v6653_v53, %v6591_v13  ;;  %v6593_v4 = vmul.f32 %v18823_v16, %v18823_v16 }
 0x838   :  { %v6088_v38 = vpop.f32.mrb[70].mxu1 }
 0x839   :  { %v18871_v12 = vadd.f32 %v23293_v55, %v6088_v38  ;;  %v6090_v48 = vpop.f32.mrb[71].mxu1  ;;  %v6655_v10 = vadd.f32 %v6654_v19, %v6592_v28  ;;  %v6522_v38 = vadd.f32 %v6521_v34, %v18823_v16 }
 0x83b   :  { %v6656_v62 = vadd.f32 %v6655_v10, %v6593_v4  ;;  %v6523_v41 = vadd.f32 %v6522_v38, %v18838_v26  ;;  %v23299_v38 = vld [vmem:[#allocation151_spill] sm:$0xff] }
 0x83d   :  { %v6657_v13 = vadd.f32 %v6656_v62, %v6594_v49 }
 0x83e   :  { %v6093_v46 = vpop.f32.mrb[72].mxu1 }
 0x83f   :  { %v18880_v59 = vadd.f32 %v23294_v30, %v6093_v46  ;;  %v6095_v52 = vpop.f32.mrb[73].mxu1  ;;  %v6595_v30 = vmul.f32 %v18844_v50, %v18844_v50 }
 0x840   :  { %v6096_v40 = vpop.f32.mrb[74].mxu1  ;;  %v6524_v52 = vadd.f32 %v6523_v41, %v18844_v50 }
 0x841   :  { %v18886_v14 = vadd.f32 %v23295_v8, %v6096_v40  ;;  %v6098_v23 = vpop.f32.mrb[75].mxu1  ;;  %v6596_v40 = vmul.f32 %v18853_v33, %v18853_v33  ;;  %v6658_v28 = vadd.f32 %v6657_v13, %v6595_v30  ;;  %v6599_v13 = vmul.f32 %v18871_v12, %v18871_v12  ;;  %v23301_v30 = vld [vmem:[#allocation147_spill] sm:$0xff] }
 0x842   :  { %v6525_v8 = vadd.f32 %v6524_v52, %v18853_v33  ;;  %v23298_v23 = vld [vmem:[#allocation153_spill] sm:$0xff] }
 0x843   :  { %v6659_v4 = vadd.f32 %v6658_v28, %v6596_v40 }
 0x846   :  { %v6101_v24 = vpop.f32.mrb[76].mxu1 }
 0x847   :  { %v18895_v55 = vadd.f32 %v23296_v20, %v6101_v24  ;;  %v6103_v48 = vpop.f32.mrb[77].mxu1  ;;  %v6597_v24 = vmul.f32 %v18857_v37, %v18857_v37 }
 0x848   :  { %v6104_v18 = vpop.f32.mrb[78].mxu1  ;;  %v6526_v48 = vadd.f32 %v6525_v8, %v18857_v37  ;;  %v6600_v8 = vmul.f32 %v18880_v59, %v18880_v59 }
 0x849   :  { %v18899_v46 = vadd.f32 %v23297_v51, %v6104_v18  ;;  %v6106_v53 = vpop.f32.mrb[79].mxu1  ;;  %v6598_v18 = vmul.f32 %v18866_v58, %v18866_v58  ;;  %v6660_v62 = vadd.f32 %v6659_v4, %v6597_v24 }
 0x84a   :  { %v6527_v41 = vadd.f32 %v6526_v48, %v18866_v58 }
 0x84b   :  { %v6661_v53 = vadd.f32 %v6660_v62, %v6598_v18  ;;  %v6602_v62 = vmul.f32 %v18895_v55, %v18895_v55 }
 0x84c   :  { %v6528_v28 = vadd.f32 %v6527_v41, %v18871_v12  ;;  %v23305_v41 = vld [vmem:[#allocation167_spill] sm:$0xff] }
 0x84d   :  { %v6662_v4 = vadd.f32 %v6661_v53, %v6599_v13  ;;  %v23306_v13 = vld [vmem:[#allocation163_spill] sm:$0xff] }
 0x84e   :  { %v6109_v31 = vpop.f32.mrb[80].mxu1  ;;  %v6529_v24 = vadd.f32 %v6528_v28, %v18880_v59 }
 0x84f   :  { %v18908_v19 = vadd.f32 %v23298_v23, %v6109_v31  ;;  %v6111_v34 = vpop.f32.mrb[81].mxu1  ;;  %v23303_v23 = vld [vmem:[#allocation152_spill] sm:$0xff] }
 0x850   :  { %v6112_v10 = vpop.f32.mrb[82].mxu1  ;;  %v6530_v18 = vadd.f32 %v6529_v24, %v18886_v14 }
 0x851   :  { %v18913_v49 = vadd.f32 %v23299_v38, %v6112_v10  ;;  %v6114_v20 = vpop.f32.mrb[83].mxu1  ;;  %v6663_v38 = vadd.f32 %v6662_v4, %v6600_v8  ;;  %v6604_v24 = vmul.f32 %v18908_v19, %v18908_v19 }
 0x852   :  { %v6601_v20 = vmul.f32 %v18886_v14, %v18886_v14  ;;  %v6531_v53 = vadd.f32 %v6530_v18, %v18895_v55 }
 0x853   :  { %23300 = vst [vmem:[#allocation19_spill] sm:$0xff] %v18913_v49 }
 0x854   :  { %v6532_v4 = vadd.f32 %v6531_v53, %v18899_v46 }
 0x856   :  { %v6117_v51 = vpop.f32.mrb[84].mxu1 }
 0x857   :  { %v18922_v52 = vadd.f32 %v23301_v30, %v6117_v51  ;;  %v6119_v40 = vpop.f32.mrb[85].mxu1 }
 0x858   :  { %v6120_v31 = vpop.f32.mrb[86].mxu1 }
 0x859   :  { %23302 = vst [vmem:[#allocation54_spill] sm:$0xff] %v18922_v52  ;;  %v18928_v34 = vadd.f32 %v23303_v23, %v6120_v31  ;;  %v6122_v10 = vpop.f32.mrb[87].mxu1  ;;  %v6664_v31 = vadd.f32 %v6663_v38, %v6601_v20  ;;  %v23308_v38 = vld [vmem:[#allocation180_spill] sm:$0xff] }
 0x85a   :  { %v6603_v10 = vmul.f32 %v18899_v46, %v18899_v46 }
 0x85b   :  { %23304 = vst [vmem:[#allocation73_spill] sm:$0xff] %v18928_v34  ;;  %v6665_v23 = vadd.f32 %v6664_v31, %v6602_v62  ;;  %v6605_v62 = vmul.f32 %v18913_v49, %v18913_v49  ;;  %v23309_v31 = vld [vmem:[#allocation172_spill] sm:$0xff] }
 0x85e   :  { %v6125_v48 = vpop.f32.mrb[88].mxu1 }
 0x85f   :  { %v18937_v51 = vadd.f32 %v23305_v41, %v6125_v48  ;;  %v6127_v30 = vpop.f32.mrb[89].mxu1  ;;  %v6666_v41 = vadd.f32 %v6665_v23, %v6603_v10  ;;  %v6606_v23 = vmul.f32 %v18922_v52, %v18922_v52 }
 0x860   :  { %v6128_v40 = vpop.f32.mrb[90].mxu1  ;;  %v6533_v30 = vadd.f32 %v6532_v4, %v18908_v19 }
 0x861   :  { %v18941_v28 = vadd.f32 %v23306_v13, %v6128_v40  ;;  %v6130_v8 = vpop.f32.mrb[91].mxu1  ;;  %v6667_v13 = vadd.f32 %v6666_v41, %v6604_v24  ;;  %v6607_v24 = vmul.f32 %v18928_v34, %v18928_v34  ;;  %v23311_v41 = vld [vmem:[#allocation182_spill] sm:$0xff] }
 0x862   :  { %v6534_v21 = vadd.f32 %v6533_v30, %v18913_v49  ;;  %v6608_v30 = vmul.f32 %v18937_v51, %v18937_v51 }
 0x863   :  { %23307 = vst [vmem:[#allocation134_spill] sm:$0xff] %v18941_v28  ;;  %v6668_v10 = vadd.f32 %v6667_v13, %v6605_v62 }
 0x864   :  { %v6535_v4 = vadd.f32 %v6534_v21, %v18922_v52 }
 0x866   :  { %v6133_v48 = vpop.f32.mrb[92].mxu1 }
 0x867   :  { %v18950_v20 = vadd.f32 %v23308_v38, %v6133_v48  ;;  %v6135_v18 = vpop.f32.mrb[93].mxu1  ;;  %v6669_v38 = vadd.f32 %v6668_v10, %v6606_v23  ;;  %v6609_v10 = vmul.f32 %v18941_v28, %v18941_v28 }
 0x868   :  { %v6136_v40 = vpop.f32.mrb[94].mxu1 }
 0x869   :  { %v18955_v8 = vadd.f32 %v23309_v31, %v6136_v40  ;;  %v6138_v53 = vpop.f32.mrb[95].mxu1  ;;  %v6536_v31 = vadd.f32 %v6535_v4, %v18928_v34  ;;  %v6670_v21 = vadd.f32 %v6669_v38, %v6607_v24  ;;  %v6610_v4 = vmul.f32 %v18950_v20, %v18950_v20  ;;  %v23317_v24 = vld [vmem:[#allocation184_spill] sm:$0xff] }
 0x86a   :  { %v23313_v53 = vld [vmem:[#allocation183_spill] sm:$0xff] }
 0x86b   :  { %23310 = vst [vmem:[#allocation107_spill] sm:$0xff] %v18955_v8  ;;  %v6537_v62 = vadd.f32 %v6536_v31, %v18937_v51  ;;  %v6671_v23 = vadd.f32 %v6670_v21, %v6608_v30  ;;  %v6611_v21 = vmul.f32 %v18955_v8, %v18955_v8 }
 0x86e   :  { %v6141_v48 = vpop.f32.mrb[96].mxu1 }
 0x86f   :  { %v18964_v18 = vadd.f32 %v23311_v41, %v6141_v48  ;;  %v6143_v0 = vpop.f32.mrb[97].mxu1  ;;  %v23315_v41 = vld [vmem:[#allocation171_spill] sm:$0xff] }
 0x870   :  { %v6144_v40 = vpop.f32.mrb[98].mxu1  ;;  %v6538_v0 = vadd.f32 %v6537_v62, %v18941_v28 }
 0x871   :  { %23312 = vst [vmem:[#allocation108_spill] sm:$0xff] %v18964_v18  ;;  %v18970_v49 = vadd.f32 %v23313_v53, %v6144_v40  ;;  %v6146_v13 = vpop.f32.mrb[99].mxu1  ;;  %v6672_v53 = vadd.f32 %v6671_v23, %v6609_v10  ;;  %v6612_v28 = vmul.f32 %v18964_v18, %v18964_v18  ;;  %v23319_v23 = vld [vmem:[#allocation188_spill] sm:$0xff] }
 0x872   :  { %v6539_v38 = vadd.f32 %v6538_v0, %v18950_v20 }
 0x873   :  { %23314 = vst [vmem:[#allocation109_spill] sm:$0xff] %v18970_v49  ;;  %v6673_v13 = vadd.f32 %v6672_v53, %v6610_v4  ;;  %v6613_v4 = vmul.f32 %v18970_v49, %v18970_v49  ;;  %v23321_v53 = vld [vmem:[#allocation187_spill] sm:$0xff] }
 0x874   :  { %v6540_v62 = vadd.f32 %v6539_v38, %v18955_v8 }
 0x876   :  { %v6149_v48 = vpop.f32.mrb[100].mxu1 }
 0x877   :  { %v18979_v34 = vadd.f32 %v23315_v41, %v6149_v48  ;;  %v6151_v52 = vpop.f32.mrb[101].mxu1  ;;  %v6674_v41 = vadd.f32 %v6673_v13, %v6611_v21 }
 0x878   :  { %v6152_v40 = vpop.f32.mrb[102].mxu1  ;;  %v6541_v52 = vadd.f32 %v6540_v62, %v18964_v18 }
 0x879   :  { %23316 = vst [vmem:[#allocation213_spill] sm:$0xff] %v18979_v34  ;;  %v18983_v31 = vadd.f32 %v23317_v24, %v6152_v40  ;;  %v6154_v30 = vpop.f32.mrb[103].mxu1  ;;  %v6675_v24 = vadd.f32 %v6674_v41, %v6612_v28  ;;  %v6614_v13 = vmul.f32 %v18979_v34, %v18979_v34  ;;  %v23323_v41 = vld [vmem:[#allocation189_spill] sm:$0xff] }
 0x87a   :  { %v6542_v8 = vadd.f32 %v6541_v52, %v18970_v49 }
 0x87b   :  { %23318 = vst [vmem:[#allocation204_spill] sm:$0xff] %v18983_v31  ;;  %v6676_v21 = vadd.f32 %v6675_v24, %v6613_v4  ;;  %v6615_v28 = vmul.f32 %v18983_v31, %v18983_v31 }
 0x87c   :  { %v6543_v62 = vadd.f32 %v6542_v8, %v18979_v34 }
 0x87e   :  { %v6157_v48 = vpop.f32.mrb[104].mxu1 }
 0x87f   :  { %v18992_v10 = vadd.f32 %v23319_v23, %v6157_v48  ;;  %v6159_v0 = vpop.f32.mrb[105].mxu1  ;;  %v6677_v23 = vadd.f32 %v6676_v21, %v6614_v13 }
 0x880   :  { %v6160_v40 = vpop.f32.mrb[106].mxu1 }
 0x881   :  { %23320 = vst [vmem:[#allocation217_spill] sm:$0xff] %v18992_v10  ;;  %v18997_v30 = vadd.f32 %v23321_v53, %v6160_v40  ;;  %v6162_v38 = vpop.f32.mrb[107].mxu1  ;;  %v6544_v53 = vadd.f32 %v6543_v62, %v18983_v31  ;;  %v6616_v52 = vmul.f32 %v18992_v10, %v18992_v10  ;;  %v6678_v8 = vadd.f32 %v6677_v23, %v6615_v28  ;;  %v12460_v62 = vld [vmem:[%s21204_s3 + $0x30] sm:$0xff]  }
 0x882   :  { %v23325_v38 = vld [vmem:[#allocation199_spill] sm:$0xff] }
 0x883   :  { %23322 = vst [vmem:[#allocation160_spill] sm:$0xff] %v18997_v30  ;;  %v6545_v4 = vadd.f32 %v6544_v53, %v18992_v10  ;;  %v6679_v13 = vadd.f32 %v6678_v8, %v6616_v52  ;;  %v6617_v21 = vmul.f32 %v18997_v30, %v18997_v30  ;;  %v23329_v10 = vld [vmem:[#allocation193_spill] sm:$0xff] }
 0x885   :  { %v6546_v23 = vadd.f32 %v6545_v4, %v18997_v30  ;;  %v12462_v4 = vld [vmem:[%s21204_s3 + $0x38] sm:$0xff]  }
 0x886   :  { %v6165_v48 = vpop.f32.mrb[108].mxu1 }
 0x887   :  { %v19006_v0 = vadd.f32 %v23323_v41, %v6165_v48  ;;  %v6167_v18 = vpop.f32.mrb[109].mxu1  ;;  %v12461_v41 = vld [vmem:[%s21204_s3 + $0x78] sm:$0xff]  }
 0x888   :  { %v6168_v40 = vpop.f32.mrb[110].mxu1  ;;  %v12459_v18 = vld [vmem:[%s21204_s3 + $0x70] sm:$0xff]  }
 0x889   :  { %23324 = vst [vmem:[#allocation206_spill] sm:$0xff] %v19006_v0  ;;  %v19012_v49 = vadd.f32 %v23325_v38, %v6168_v40  ;;  %v6170_v24 = vpop.f32.mrb[111].mxu1  ;;  %v6618_v28 = vmul.f32 %v19006_v0, %v19006_v0  ;;  %v23327_v40 = vld [vmem:[#allocation191_spill] sm:$0xff]  ;;  %11100 = vmatprep.subr.bf16.mxu0 %v12459_v18  ;;  %v6547_v8 = vadd.f32 %v6546_v23, %v19006_v0  ;;  %v23334_v0 = vld [vmem:[#allocation170_spill] sm:$0xff] }
 0x88a   :  { %v6680_v24 = vadd.f32 %v6679_v13, %v6617_v21  ;;  %11101 = vmatpush3.bf16.msra.mxu0 %v12460_v62  ;;  %v12465_v62 = vld [vmem:[%s21204_s3 + $0xc8] sm:$0xff]  }
 0x88b   :  { %23326 = vst [vmem:[#allocation158_spill] sm:$0xff] %v19012_v49  ;;  %11102 = vmatprep.subr.bf16.mxu0 %v12461_v41  ;;  %v6619_v13 = vmul.f32 %v19012_v49, %v19012_v49  ;;  %v6548_v21 = vadd.f32 %v6547_v8, %v19012_v49  ;;  %v23333_v8 = vmov 0.0|0.0  }
 0x88e   :  { %v6173_v48 = vpop.f32.mrb[112].mxu1  ;;  %11103 = vmatpush3.bf16.msra.mxu0 %v12462_v4 }
 0x88f   :  { %v19030_v53 = vadd.f32 %v23327_v40, %v6173_v48  ;;  %v6175_v52 = vpop.f32.mrb[113].mxu1  ;;  %v12463_v48 = vld [vmem:[%s21204_s3 + $0xc0] sm:$0xff]   ;;  %v6681_v40 = vadd.f32 %v6680_v24, %v6618_v28  ;;  %v23331_v28 = vld [vmem:[#allocation192_spill] sm:$0xff] }
 0x890   :  { %v6176_v38 = vpop.f32.mrb[114].mxu1  ;;  %11152 = vmatprep.subr.bf16.mxu0 %v12463_v48 }
 0x891   :  { %23328 = vst [vmem:[#allocation203_spill] sm:$0xff] %v19030_v53  ;;  %v19034_v31 = vadd.f32 %v23329_v10, %v6176_v38  ;;  %v6178_v34 = vpop.f32.mrb[115].mxu1  ;;  %v6620_v10 = vmul.f32 %v19030_v53, %v19030_v53  ;;  %v6682_v41 = vadd.f32 %v6681_v40, %v6619_v13  ;;  %v6549_v23 = vadd.f32 %v6548_v21, %v19030_v53  ;;  %v12466_v40 = vld [vmem:[%s21204_s3 + $0x88] sm:$0xff]   ;;  %v12467_v13 = vld [vmem:[%s21204_s3 + $0xd0] sm:$0xff]  }
 0x892   :  { %v12464_v34 = vld [vmem:[%s21204_s3 + $0x80] sm:$0xff]   ;;  %7629 = vmatmul.mubr.bf16.vlgmr.msra.gmra.mrb[64].mxu0 %v23333_v8 }
 0x893   :  { %23330 = vst [vmem:[#allocation157_spill] sm:$0xff] %v19034_v31  ;;  %v6683_v4 = vadd.f32 %v6682_v41, %v6620_v10  ;;  %v6621_v49 = vmul.f32 %v19034_v31, %v19034_v31  ;;  %11153 = vmatpush3.bf16.msra.mxu0 %v12464_v34  ;;  %7636 = vmatprep.mubr.bf16.mxu0 %v23333_v8  ;;  %v12468_v34 = vld [vmem:[%s21204_s3 + $0x90] sm:$0xff]  }
 0x894   :  { %11154 = vmatprep.subr.bf16.mxu0 %v12465_v62  ;;  %v6550_v21 = vadd.f32 %v6549_v23, %v19034_v31  ;;  %v12469_v62 = vld [vmem:[%s21204_s3 + $0xd8] sm:$0xff]  }
 0x896   :  { %v6181_v18 = vpop.f32.mrb[116].mxu1 }
 0x897   :  { %v19055_v52 = vadd.f32 %v23331_v28, %v6181_v18  ;;  %v6183_v38 = vpop.f32.mrb[117].mxu1  ;;  %11155 = vmatpush3.bf16.msra.mxu0 %v12466_v40  ;;  %v23336_v28 = vld [vmem:[#allocation198_spill] sm:$0xff] }
 0x898   :  { %v6184_v24 = vpop.f32.mrb[118].mxu1  ;;  %11156 = vmatprep.subr.bf16.mxu0 %v12467_v13  ;;  %v23338_v13 = vld [vmem:[#allocation202_spill] sm:$0xff] }
 0x899   :  { %23332 = vst [vmem:[#allocation131_spill] sm:$0xff] %v19055_v52  ;;  %v19061_v48 = vadd.f32 %v23334_v0, %v6184_v24  ;;  %v6186_v30 = vpop.f32.mrb[119].mxu1  ;;  %v6622_v10 = vmul.f32 %v19055_v52, %v19055_v52  ;;  %v6684_v0 = vadd.f32 %v6683_v4, %v6621_v49 }
 0x89a   :  { %v6551_v30 = vadd.f32 %v6550_v21, %v19055_v52  ;;  %7637 = vmatmul.mubr.bf16.gmra.mrb[68].mxu0 %v23333_v8  ;;  %v23340_v8 = vld [vmem:[#allocation197_spill] sm:$0xff] }
 0x89b   :  { %23335 = vst [vmem:[#allocation205_spill] sm:$0xff] %v19061_v48  ;;  %v6685_v41 = vadd.f32 %v6684_v0, %v6622_v10  ;;  %v6623_v23 = vmul.f32 %v19061_v48, %v19061_v48  ;;  %11157 = vmatpush3.bf16.msra.mxu0 %v12468_v34  ;;  %v12470_v10 = vld [vmem:[%s21204_s3 + $0x98] sm:$0xff]   ;;  %v12471_v0 = vld [vmem:[%s21204_s3 + $0xe0] sm:$0xff]  }
 0x89c   :  { %v6552_v4 = vadd.f32 %v6551_v30, %v19061_v48  ;;  %11158 = vmatprep.subr.bf16.mxu0 %v12469_v62  ;;  %v12473_v62 = vld [vmem:[%s21204_s3 + $0xe8] sm:$0xff]  }
 0x89e   :  { %v6189_v18 = vpop.f32.mrb[120].mxu1 }
 0x89f   :  { %v19083_v38 = vadd.f32 %v23336_v28, %v6189_v18  ;;  %v6191_v49 = vpop.f32.mrb[121].mxu1  ;;  %v6686_v18 = vadd.f32 %v6685_v41, %v6623_v23  ;;  %11159 = vmatpush3.bf16.msra.mxu0 %v12470_v10  ;;  %v23339_v41 = vld [vmem:[#allocation196_spill] sm:$0xff] }
 0x8a0   :  { %v6192_v24 = vpop.f32.mrb[122].mxu1  ;;  %11160 = vmatprep.subr.bf16.mxu0 %v12471_v0 }
 0x8a1   :  { %23337 = vst [vmem:[#allocation161_spill] sm:$0xff] %v19083_v38  ;;  %v6624_v40 = vmul.f32 %v19083_v38, %v19083_v38  ;;  %v19090_v21 = vadd.f32 %v23338_v13, %v6192_v24  ;;  %v6194_v52 = vpop.f32.mrb[123].mxu1  ;;  %v6553_v30 = vadd.f32 %v6552_v4, %v19083_v38 }
 0x8a2   :  { %v12472_v52 = vld [vmem:[%s21204_s3 + $0xa0] sm:$0xff]  }
 0x8a3   :  { %v6687_v28 = vadd.f32 %v6686_v18, %v6624_v40  ;;  %v6625_v49 = vmul.f32 %v19090_v21, %v19090_v21  ;;  %v6554_v24 = vadd.f32 %v6553_v30, %v19090_v21  ;;  %11161 = vmatpush3.bf16.msra.mxu0 %v12472_v52  ;;  %v12474_v30 = vld [vmem:[%s21204_s3 + $0xa8] sm:$0xff]  }
 0x8a4   :  { %11162 = vmatprep.subr.bf16.mxu0 %v12473_v62 }
 0x8a5   :  { %v6688_v13 = vadd.f32 %v6687_v28, %v6625_v49  ;;  %v12475_v28 = vld [vmem:[%s21204_s3 + $0xf0] sm:$0xff]  }
 0x8a6   :  { %v6197_v34 = vpop.f32.mrb[124].mxu1 }
 0x8a7   :  { %v19109_v23 = vadd.f32 %v23339_v41, %v6197_v34  ;;  %v6199_v4 = vpop.f32.mrb[125].mxu1  ;;  %11163 = vmatpush3.bf16.msra.mxu0 %v12474_v30 }
 0x8a8   :  { %v6200_v40 = vpop.f32.mrb[126].mxu1  ;;  %11164 = vmatprep.subr.bf16.mxu0 %v12475_v28 }
 0x8a9   :  { %v6555_v10 = vadd.f32 %v6554_v24, %v19109_v23  ;;  %v6626_v18 = vmul.f32 %v19109_v23, %v19109_v23  ;;  %v6490_v38 = vadd.f32 %v23340_v8, %v6200_v40  ;;  %v6202_v0 = vpop.f32.mrb[127].mxu1  ;;  %v12476_v40 = vld [vmem:[%s21204_s3 + $0xb0] sm:$0xff]  }
 0x8ab   :  { %v6689_v48 = vadd.f32 %v6688_v13, %v6626_v18  ;;  %v6556_v31 = vadd.f32 %v6555_v10, %v6490_v38  ;;  %v6627_v53 = vmul.f32 %v6490_v38, %v6490_v38  ;;  %v12477_v13 = vld [vmem:[%s21204_s3 + $0xf8] sm:$0xff]   ;;  %11165 = vmatpush3.bf16.msra.mxu0 %v12476_v40 }
 0x8ac   :  { %11166 = vmatprep.subr.bf16.mxu0 %v12477_v13  ;;  %v23341_v40 = vld [vmem:[#allocation222_spill] sm:$0xff] }
 0x8ad   :  { %v6557_v49 = vrot.slane %v6556_v31, 4  ;;  %v6690_v34 = vadd.f32 %v6689_v48, %v6627_v53 }
 0x8af   :  { %v6558_v24 = vadd.f32 %v6557_v49, %v6556_v31  ;;  %v6691_v8 = vrot.slane %v6690_v34, 4  ;;  %v12478_v49 = vld [vmem:[%s21204_s3 + $0xb8] sm:$0xff]  }
 0x8b0   :  { %11167 = vmatpush3.bf16.msra.mxu0 %v12478_v49 }
 0x8b1   :  { %v6559_v41 = vrot.slane %v6558_v24, 2  ;;  %v6692_v52 = vadd.f32 %v6691_v8, %v6690_v34  ;;  %v12479_v34 = vld [vmem:[%s21204_s3 + $0x140] sm:$0xff]  }
 0x8b2   :  { %11216 = vmatprep.subr.bf16.mxu0 %v12479_v34 }
 0x8b3   :  { %v6560_v62 = vadd.f32 %v6559_v41, %v6558_v24  ;;  %v6693_v4 = vrot.slane %v6692_v52, 2  ;;  %v6493_v41 = vld [vmem:[#allocation6] sm:$0x3] }
 0x8b5   :  { %v6561_v10 = vrot.slane %v6560_v62, 1  ;;  %v6694_v18 = vadd.f32 %v6693_v4, %v6692_v52 }
 0x8b7   :  { %v6562_v53 = vadd.f32 %v6561_v10, %v6560_v62  ;;  %v6695_v48 = vrot.slane %v6694_v18, 1 }
 0x8b9   :  { %v6563_v31 = vmul.f32 0.0078125, %v6562_v53  ;;  %v6696_v0 = vadd.f32 %v6695_v48, %v6694_v18 }
 0x8bb   :  { %v6697_v30 = vmul.f32 0.0078125, %v6696_v0  ;;  %v6698_v28 = vmul.f32 %v6563_v31, %v6563_v31 }
 0x8bd   :  { %v6699_v24 = vsub.f32 %v6697_v30, %v6698_v28  ;;  %v23342_v28 = vld [vmem:[#allocation224_spill] sm:$0xff] }
 0x8bf   :  { %v6700_v8 = vadd.f32 1e-05, %v6699_v24 }
 0x8c1   :  { %12801 = vrsqrt.f32 %v6700_v8 }
 0x8cb   :  { %v12802_v52 = vpop.eup %12801 }
 0x8cc   :  { %v6702_v62 = vmul.f32 %v12802_v52, %v6493_v41  ;;  %v23344_v52 = vld [vmem:[#allocation225_spill] sm:$0xff] }
 0x8ce   :  { %v6703_v4 = vmul.f32 %v6702_v62, %v6563_v31  ;;  %v19134_v13 = vrot.slane %v6702_v62, %v23341_v40  ;;  %v23360_v40 = vld [vmem:[#allocation213_spill] sm:$0xff] }
 0x8d0   :  { %v6705_v10 = vrot.slane %v6703_v4, 7  ;;  %v6773_v18 = vmul.f32 %v19134_v13, %v19090_v21  ;;  %v6775_v53 = vmul.f32 %v19134_v13, %v6490_v38  ;;  %v19141_v48 = vmul.f32 %v19134_v13, %v18632_v11 }
 0x8d1   :  { %v19145_v0 = vmul.f32 %v19134_v13, %v18635_v15  ;;  %v19149_v31 = vmul.f32 %v19134_v13, %v18642_v61  ;;  %v19153_v30 = vmul.f32 %v19134_v13, %v18645_v1  ;;  %v19157_v21 = vmul.f32 %v19134_v13, %v18653_v54 }
 0x8d2   :  { %v6707_v38 = vsub.f32 %v6493_v41, %v6705_v10  ;;  %v19161_v11 = vmul.f32 %v19134_v13, %v18656_v7  ;;  %v19165_v15 = vmul.f32 %v19134_v13, %v18664_v27  ;;  %v19169_v61 = vmul.f32 %v19134_v13, %v18667_v60 }
 0x8d3   :  { %v19173_v1 = vmul.f32 %v19134_v13, %v18675_v44  ;;  %v19177_v54 = vmul.f32 %v19134_v13, %v18678_v35  ;;  %v19181_v7 = vmul.f32 %v19134_v13, %v18689_v47  ;;  %v19185_v27 = vmul.f32 %v19134_v13, %v18692_v3 }
 0x8d4   :  { %v19188_v49 = vrot.slane %v6707_v38, %v23342_v28  ;;  %v19192_v60 = vmul.f32 %v19134_v13, %v18695_v5  ;;  %v19196_v44 = vmul.f32 %v19134_v13, %v18698_v17  ;;  %v19200_v35 = vmul.f32 %v19134_v13, %v18707_v56  ;;  %v23359_v28 = vld [vmem:[#allocation109_spill] sm:$0xff] }
 0x8d5   :  { %v19204_v47 = vmul.f32 %v19134_v13, %v18710_v39  ;;  %v19208_v3 = vmul.f32 %v19134_v13, %v18713_v63  ;;  %v19212_v5 = vmul.f32 %v19134_v13, %v18718_v42  ;;  %v19216_v17 = vmul.f32 %v19134_v13, %v18736_v32 }
 0x8d6   :  { %v6841_v34 = vadd.f32 %v19188_v49, %v6773_v18  ;;  %v6843_v56 = vadd.f32 %v19188_v49, %v6775_v53  ;;  %v19222_v39 = vmul.f32 %v19134_v13, %v18742_v57  ;;  %v19226_v63 = vmul.f32 %v19134_v13, %v18751_v2  ;;  %v23353_v18 = vld [vmem:[#allocation19_spill] sm:$0xff] }
 0x8d7   :  { %v19230_v42 = vmul.f32 %v19134_v13, %v18755_v22  ;;  %v19234_v32 = vmul.f32 %v19134_v13, %v18770_v6  ;;  %v19238_v24 = vmul.f32 %v19134_v13, %v18775_v45  ;;  %v19242_v57 = vmul.f32 %v19134_v13, %v18784_v25 }
 0x8d8   :  { %v6905_v8 = vmax.f32 %v6841_v34, 0.0  ;;  %v6907_v41 = vmax.f32 %v6843_v56, 0.0  ;;  %v19246_v2 = vmul.f32 %v19134_v13, %v18790_v9  ;;  %v19250_v22 = vmul.f32 %v19134_v13, %v18805_v29  ;;  %v23355_v34 = vld [vmem:[#allocation73_spill] sm:$0xff] }
 0x8d9   :  { %v19254_v6 = vmul.f32 %v19134_v13, %v18809_v36  ;;  %v19258_v45 = vmul.f32 %v19134_v13, %v18818_v43  ;;  %v19262_v25 = vmul.f32 %v19134_v13, %v18823_v16  ;;  %v19266_v9 = vmul.f32 %v19134_v13, %v18838_v26 }
 0x8da   :  { %v19269_v62 = vmul.f32 %v23344_v52, %v6905_v8  ;;  %v19272_v29 = vmul.f32 %v23344_v52, %v6907_v41  ;;  %v19276_v36 = vmul.f32 %v19134_v13, %v18844_v50  ;;  %v19280_v43 = vmul.f32 %v19134_v13, %v18853_v33  ;;  %v23356_v8 = vld [vmem:[#allocation134_spill] sm:$0xff]  ;;  %v23357_v41 = vld [vmem:[#allocation107_spill] sm:$0xff]  ;;  %v23358_v33 = vld [vmem:[#allocation108_spill] sm:$0xff] }
 0x8db   :  { %23343 = vst [vmem:[#allocation208_spill] sm:$0xff] %v19266_v9  ;;  %v19284_v16 = vmul.f32 %v19134_v13, %v18857_v37  ;;  %v19288_v26 = vmul.f32 %v19134_v13, %v18866_v58  ;;  %v19292_v4 = vmul.f32 %v19134_v13, %v18871_v12  ;;  %v19296_v50 = vmul.f32 %v19134_v13, %v18880_v59  ;;  %v23354_v59 = vld [vmem:[#allocation54_spill] sm:$0xff]  ;;  %v23363_v52 = vld [vmem:[#allocation160_spill] sm:$0xff]  ;;  %v23370_v9 = vld [vmem:[#allocation161_spill] sm:$0xff] }
 0x8dc   :  { %23345 = vst [vmem:[#allocation240_spill] sm:$0xff] %v19269_v62  ;;  %23346 = vst [vmem:[#allocation210_spill] sm:$0xff] %v19272_v29  ;;  %v6749_v10 = vmul.f32 %v19134_v13, %v18886_v14  ;;  %v6750_v37 = vmul.f32 %v19134_v13, %v18895_v55  ;;  %v6751_v58 = vmul.f32 %v19134_v13, %v18899_v46  ;;  %v23361_v29 = vld [vmem:[#allocation204_spill] sm:$0xff]  ;;  %v23362_v62 = vld [vmem:[#allocation217_spill] sm:$0xff] }
 0x8dd   :  { %23347 = vst [vmem:[#allocation244_spill] sm:$0xff] %v19276_v36  ;;  %23348 = vst [vmem:[#allocation209_spill] sm:$0xff] %v19280_v43  ;;  %v6752_v12 = vmul.f32 %v19134_v13, %v18908_v19  ;;  %v6753_v53 = vmul.f32 %v19134_v13, %v23353_v18  ;;  %v6754_v38 = vmul.f32 %v19134_v13, %v23354_v59  ;;  %v23368_v43 = vld [vmem:[#allocation131_spill] sm:$0xff]  ;;  %v23369_v36 = vld [vmem:[#allocation205_spill] sm:$0xff] }
 0x8de   :  { %23349 = vst [vmem:[#allocation251_spill] sm:$0xff] %v19284_v16  ;;  %23350 = vst [vmem:[#allocation212_spill] sm:$0xff] %v19288_v26  ;;  %v6755_v56 = vmul.f32 %v19134_v13, %v23355_v34  ;;  %v6756_v14 = vmul.f32 %v19134_v13, %v18937_v51  ;;  %v6757_v55 = vmul.f32 %v19134_v13, %v23356_v8  ;;  %v23366_v26 = vld [vmem:[#allocation203_spill] sm:$0xff]  ;;  %v23367_v16 = vld [vmem:[#allocation157_spill] sm:$0xff] }
 0x8df   :  { %23351 = vst [vmem:[#allocation18_spill] sm:$0xff] %v19292_v4  ;;  %23352 = vst [vmem:[#allocation214_spill] sm:$0xff] %v19296_v50  ;;  %v6758_v46 = vmul.f32 %v19134_v13, %v18950_v20  ;;  %v6759_v19 = vmul.f32 %v19134_v13, %v23357_v41  ;;  %v6760_v18 = vmul.f32 %v19134_v13, %v23358_v33  ;;  %v23364_v50 = vld [vmem:[#allocation206_spill] sm:$0xff] }
 0x8e0   :  { %v6761_v59 = vmul.f32 %v19134_v13, %v23359_v28  ;;  %v6762_v34 = vmul.f32 %v19134_v13, %v23360_v40  ;;  %v6763_v51 = vmul.f32 %v19134_v13, %v23361_v29  ;;  %v6764_v8 = vmul.f32 %v19134_v13, %v23362_v62  ;;  %v23365_v4 = vld [vmem:[#allocation158_spill] sm:$0xff] }
 0x8e1   :  { %v6765_v20 = vmul.f32 %v19134_v13, %v23363_v52  ;;  %v6766_v41 = vmul.f32 %v19134_v13, %v23364_v50  ;;  %v6767_v33 = vmul.f32 %v19134_v13, %v23365_v4  ;;  %v6768_v28 = vmul.f32 %v19134_v13, %v23366_v26 }
 0x8e2   :  { %v6769_v40 = vmul.f32 %v19134_v13, %v23367_v16  ;;  %v6770_v29 = vmul.f32 %v19134_v13, %v23368_v43  ;;  %v6771_v62 = vmul.f32 %v19134_v13, %v23369_v36  ;;  %v6772_v52 = vmul.f32 %v19134_v13, %v23370_v9 }
 0x8e3   :  { %v6774_v50 = vmul.f32 %v19134_v13, %v19109_v23  ;;  %v19352_v4 = vadd.f32 %v19188_v49, %v19141_v48  ;;  %v19356_v26 = vadd.f32 %v19188_v49, %v19145_v0  ;;  %v19360_v43 = vadd.f32 %v19188_v49, %v19149_v31 }
 0x8e4   :  { %v19364_v36 = vadd.f32 %v19188_v49, %v19153_v30  ;;  %v19368_v9 = vadd.f32 %v19188_v49, %v19157_v21  ;;  %v19372_v23 = vadd.f32 %v19188_v49, %v19161_v11  ;;  %v19376_v13 = vadd.f32 %v19188_v49, %v19165_v15  ;;  %v23380_v16 = vld [vmem:[#allocation209_spill] sm:$0xff] }
 0x8e5   :  { %v19380_v48 = vadd.f32 %v19188_v49, %v19169_v61  ;;  %v19384_v0 = vadd.f32 %v19188_v49, %v19173_v1  ;;  %v19388_v31 = vadd.f32 %v19188_v49, %v19177_v54  ;;  %v19392_v30 = vadd.f32 %v19188_v49, %v19181_v7 }
 0x8e6   :  { %v19396_v21 = vadd.f32 %v19188_v49, %v19185_v27  ;;  %v19400_v11 = vadd.f32 %v19188_v49, %v19192_v60  ;;  %v19404_v15 = vadd.f32 %v19188_v49, %v19196_v44  ;;  %v19408_v61 = vadd.f32 %v19188_v49, %v19200_v35 }
 0x8e7   :  { %23371 = vst [vmem:[#allocation21_spill] sm:$0xff] %v19380_v48  ;;  %v19412_v1 = vadd.f32 %v19188_v49, %v19204_v47  ;;  %v19416_v54 = vadd.f32 %v19188_v49, %v19208_v3  ;;  %v19420_v7 = vadd.f32 %v19188_v49, %v19212_v5  ;;  %v19424_v27 = vadd.f32 %v19188_v49, %v19216_v17 }
 0x8e8   :  { %v19428_v60 = vadd.f32 %v19188_v49, %v19222_v39  ;;  %v19432_v44 = vadd.f32 %v19188_v49, %v19226_v63  ;;  %v19436_v35 = vadd.f32 %v19188_v49, %v19230_v42  ;;  %v19440_v47 = vadd.f32 %v19188_v49, %v19234_v32 }
 0x8e9   :  { %v19444_v3 = vadd.f32 %v19188_v49, %v19238_v24  ;;  %v19448_v5 = vadd.f32 %v19188_v49, %v19242_v57  ;;  %v19452_v17 = vadd.f32 %v19188_v49, %v19246_v2  ;;  %v19456_v39 = vadd.f32 %v19188_v49, %v19250_v22  ;;  %v23376_v24 = vld [vmem:[#allocation208_spill] sm:$0xff] }
 0x8ea   :  { %v19460_v63 = vadd.f32 %v19188_v49, %v19254_v6  ;;  %v19464_v42 = vadd.f32 %v19188_v49, %v19258_v45  ;;  %v19468_v32 = vadd.f32 %v19188_v49, %v19262_v25  ;;  %v19472_v57 = vadd.f32 %v19188_v49, %v23376_v24  ;;  %v23378_v2 = vld [vmem:[#allocation244_spill] sm:$0xff] }
 0x8eb   :  { %23372 = vst [vmem:[#allocation43_spill] sm:$0xff] %v19444_v3  ;;  %v19476_v22 = vadd.f32 %v19188_v49, %v23378_v2  ;;  %v19480_v6 = vadd.f32 %v19188_v49, %v23380_v16  ;;  %v19502_v16 = vadd.f32 %v19188_v49, %v6750_v37  ;;  %v19523_v37 = vadd.f32 %v19188_v49, %v6757_v55 }
 0x8ec   :  { %23373 = vst [vmem:[#allocation46_spill] sm:$0xff] %v19460_v63  ;;  %23374 = vst [vmem:[#allocation137_spill] sm:$0xff] %v19464_v42  ;;  %v23381_v63 = vld [vmem:[#allocation251_spill] sm:$0xff]  ;;  %v23382_v42 = vld [vmem:[#allocation212_spill] sm:$0xff]  ;;  %v19544_v55 = vadd.f32 %v19188_v49, %v6764_v8  ;;  %v19565_v8 = vadd.f32 %v19188_v49, %v6771_v62  ;;  %v6850_v62 = vmax.f32 %v19376_v13, 0.0  ;;  %v6860_v13 = vmax.f32 %v19416_v54, 0.0 }
 0x8ed   :  { %23375 = vst [vmem:[#allocation101_spill] sm:$0xff] %v19468_v32  ;;  %23377 = vst [vmem:[#allocation175_spill] sm:$0xff] %v19472_v57  ;;  %v19484_v45 = vadd.f32 %v19188_v49, %v23381_v63  ;;  %v19488_v25 = vadd.f32 %v19188_v49, %v23382_v42  ;;  %v23384_v32 = vld [vmem:[#allocation18_spill] sm:$0xff]  ;;  %v19505_v63 = vadd.f32 %v19188_v49, %v6751_v58 }
 0x8ee   :  { %23379 = vst [vmem:[#allocation176_spill] sm:$0xff] %v19476_v22  ;;  %v19492_v24 = vadd.f32 %v19188_v49, %v23384_v32  ;;  %v23385_v57 = vld [vmem:[#allocation214_spill] sm:$0xff]  ;;  %v19499_v22 = vadd.f32 %v19188_v49, %v6749_v10  ;;  %v19508_v42 = vadd.f32 %v19188_v49, %v6752_v12  ;;  %v19514_v32 = vadd.f32 %v19188_v49, %v6754_v38 }
 0x8ef   :  { %23383 = vst [vmem:[#allocation20_spill] sm:$0xff] %v19488_v25  ;;  %v19496_v2 = vadd.f32 %v19188_v49, %v23385_v57  ;;  %23386 = vst [vmem:[#allocation179_spill] sm:$0xff] %v19505_v63  ;;  %v19511_v25 = vadd.f32 %v19188_v49, %v6753_v53  ;;  %v19517_v57 = vadd.f32 %v19188_v49, %v6755_v56  ;;  %v23399_v63 = vld [vmem:[#allocation225_spill] sm:$0xff] }
 0x8f0   :  { %v19520_v10 = vadd.f32 %v19188_v49, %v6756_v14  ;;  %v19526_v58 = vadd.f32 %v19188_v49, %v6758_v46  ;;  %v19529_v12 = vadd.f32 %v19188_v49, %v6759_v19  ;;  %v19532_v53 = vadd.f32 %v19188_v49, %v6760_v18 }
 0x8f1   :  { %v19535_v38 = vadd.f32 %v19188_v49, %v6761_v59  ;;  %v19538_v56 = vadd.f32 %v19188_v49, %v6762_v34  ;;  %v19541_v14 = vadd.f32 %v19188_v49, %v6763_v51  ;;  %v19547_v46 = vadd.f32 %v19188_v49, %v6765_v20 }
 0x8f2   :  { %v19550_v19 = vadd.f32 %v19188_v49, %v6766_v41  ;;  %v19553_v18 = vadd.f32 %v19188_v49, %v6767_v33  ;;  %v19556_v59 = vadd.f32 %v19188_v49, %v6768_v28  ;;  %v19559_v34 = vadd.f32 %v19188_v49, %v6769_v40 }
 0x8f3   :  { %v19562_v51 = vadd.f32 %v19188_v49, %v6770_v29  ;;  %v19568_v20 = vadd.f32 %v19188_v49, %v6772_v52  ;;  %v19571_v41 = vadd.f32 %v19188_v49, %v6774_v50  ;;  %v6844_v33 = vmax.f32 %v19352_v4, 0.0 }
 0x8f4   :  { %23387 = vst [vmem:[#allocation50_spill] sm:$0xff] %v19553_v18  ;;  %23388 = vst [vmem:[#allocation23_spill] sm:$0xff] %v19556_v59  ;;  %v6846_v59 = vmax.f32 %v19360_v43, 0.0  ;;  %v6848_v29 = vmax.f32 %v19368_v9, 0.0  ;;  %v6853_v49 = vmax.f32 %v19388_v31, 0.0  ;;  %v6855_v4 = vmax.f32 %v19396_v21, 0.0 }
 0x8f5   :  { %23389 = vst [vmem:[#allocation49_spill] sm:$0xff] %v19559_v34  ;;  %23390 = vst [vmem:[#allocation74_spill] sm:$0xff] %v19562_v51  ;;  %v6857_v28 = vmax.f32 %v19404_v15, 0.0  ;;  %v6859_v51 = vmax.f32 %v19412_v1, 0.0  ;;  %v6862_v40 = vmax.f32 %v19424_v27, 0.0  ;;  %v6864_v50 = vmax.f32 %v19432_v44, 0.0 }
 0x8f6   :  { %23391 = vst [vmem:[#allocation168_spill] sm:$0xff] %v19568_v20  ;;  %23392 = vst [vmem:[#allocation130_spill] sm:$0xff] %v19571_v41  ;;  %v6866_v43 = vmax.f32 %v19440_v47, 0.0  ;;  %v6869_v1 = vmax.f32 %v19452_v17, 0.0  ;;  %v23393_v20 = vld [vmem:[#allocation46_spill] sm:$0xff]  ;;  %v23394_v41 = vld [vmem:[#allocation137_spill] sm:$0xff] }
 0x8f7   :  { %v6871_v52 = vmax.f32 %v23393_v20, 0.0  ;;  %v23395_v48 = vld [vmem:[#allocation101_spill] sm:$0xff]  ;;  %v23396_v34 = vld [vmem:[#allocation175_spill] sm:$0xff]  ;;  %v23397_v18 = vld [vmem:[#allocation176_spill] sm:$0xff]  ;;  %v6876_v47 = vmax.f32 %v19480_v6, 0.0  ;;  %v6880_v54 = vmax.f32 %v19496_v2, 0.0 }
 0x8f8   :  { %v6873_v31 = vmax.f32 %v23395_v48, 0.0  ;;  %v6875_v21 = vmax.f32 %v23397_v18, 0.0  ;;  %v23398_v3 = vld [vmem:[#allocation20_spill] sm:$0xff]  ;;  %v6882_v27 = vmax.f32 %v19502_v16, 0.0  ;;  %v6885_v18 = vmax.f32 %v19511_v25, 0.0 }
 0x8f9   :  { %v6878_v9 = vmax.f32 %v23398_v3, 0.0  ;;  %v6887_v15 = vmax.f32 %v19517_v57, 0.0  ;;  %v6889_v17 = vmax.f32 %v19523_v37, 0.0  ;;  %v6891_v20 = vmax.f32 %v19529_v12, 0.0 }
 0x8fa   :  { %v6892_v16 = vmax.f32 %v19532_v53, 0.0  ;;  %v6894_v48 = vmax.f32 %v19538_v56, 0.0  ;;  %v6896_v25 = vmax.f32 %v19544_v55, 0.0  ;;  %v6898_v6 = vmax.f32 %v19550_v19, 0.0 }
 0x8fb   :  { %v6903_v57 = vmax.f32 %v19565_v8, 0.0  ;;  %v19628_v3 = vmul.f32 %v23399_v63, %v6844_v33  ;;  %v19631_v37 = vmul.f32 %v23399_v63, %v6846_v59  ;;  %v19634_v12 = vmul.f32 %v23399_v63, %v6848_v29 }
 0x8fc   :  { %v19637_v53 = vmul.f32 %v23399_v63, %v6850_v62  ;;  %v6917_v56 = vmul.f32 %v23399_v63, %v6853_v49  ;;  %v6919_v55 = vmul.f32 %v23399_v63, %v6855_v4  ;;  %v6921_v19 = vmul.f32 %v23399_v63, %v6857_v28 }
 0x8fd   :  { %v6923_v8 = vmul.f32 %v23399_v63, %v6859_v51  ;;  %v19644_v33 = vmul.f32 %v23399_v63, %v6860_v13  ;;  %v19647_v59 = vmul.f32 %v23399_v63, %v6862_v40  ;;  %v19650_v29 = vmul.f32 %v23399_v63, %v6864_v50 }
 0x8fe   :  { %v19653_v62 = vmul.f32 %v23399_v63, %v6866_v43  ;;  %v6935_v49 = vmul.f32 %v23399_v63, %v6871_v52  ;;  %v6937_v4 = vmul.f32 %v23399_v63, %v6873_v31  ;;  %v19658_v28 = vmul.f32 %v23399_v63, %v6869_v1 }
 0x8ff   :  { %v6939_v51 = vmul.f32 %v23399_v63, %v6875_v21  ;;  %v19662_v13 = vmul.f32 %v23399_v63, %v6876_v47  ;;  %v6951_v40 = vmul.f32 %v23399_v63, %v6887_v15  ;;  %v19666_v50 = vmul.f32 %v23399_v63, %v6878_v9 }
 0x900   :  { %v19669_v43 = vmul.f32 %v23399_v63, %v6885_v18  ;;  %v6953_v52 = vmul.f32 %v23399_v63, %v6889_v17  ;;  %v6955_v31 = vmul.f32 %v23399_v63, %v6891_v20  ;;  %v19674_v1 = vmul.f32 %v23399_v63, %v6880_v54 }
 0x901   :  { %v19677_v21 = vmul.f32 %v23399_v63, %v6882_v27  ;;  %v19680_v47 = vmul.f32 %v23399_v63, %v6892_v16  ;;  %v19683_v15 = vmul.f32 %v23399_v63, %v6894_v48  ;;  %v19686_v9 = vmul.f32 %v23399_v63, %v6896_v25 }
 0x902   :  { %v19689_v18 = vmul.f32 %v23399_v63, %v6898_v6  ;;  %v19691_v17 = vpack.c.bf16 %v6921_v19, %v6919_v55  ;;  %v19693_v20 = vpack.c.bf16 %v6937_v4, %v6935_v49  ;;  %v19696_v54 = vmul.f32 %v23399_v63, %v6903_v57 }
 0x903   :  { %23400 = vst [vmem:[#allocation207_spill] sm:$0xff] %v19686_v9  ;;  %v19698_v27 = vpack.c.bf16 %v6953_v52, %v6951_v40  ;;  %v19700_v16 = vpack.c.bf16 %v6919_v55, %v6917_v56  ;;  %v19702_v44 = vpack.c.bf16 %v6923_v8, %v6921_v19  ;;  %v19705_v48 = vpack.c.bf16 %v6935_v49, %v19658_v28 }
 0x904   :  { %v19707_v25 = vpack.c.bf16 %v6939_v51, %v6937_v4  ;;  %v19710_v6 = vpack.c.bf16 %v6951_v40, %v19669_v43  ;;  %v19712_v2 = vpack.c.bf16 %v6955_v31, %v6953_v52  ;;  %v23406_v40 = vmov 0.0  }
 0x905   :  { %23401 = vst [vmem:[#allocation201_spill] sm:$0xff] %v19698_v27  ;;  %23402 = vst [vmem:[#allocation229_spill] sm:$0xff] %v19700_v16  ;;  %v19731_v52 = vpack.c.bf16 %v6917_v56, %v23406_v40  ;;  %v23408_v19 = vmax.f32 %v19384_v0, 0.0  ;;  %v23409_v8 = vmax.f32 %v19392_v30, 0.0  ;;  %v23410_v57 = vmax.f32 %v19400_v11, 0.0 }
 0x906   :  { %23403 = vst [vmem:[#allocation227_spill] sm:$0xff] %v19702_v44  ;;  %23404 = vst [vmem:[#allocation233_spill] sm:$0xff] %v19705_v48  ;;  %v23411_v51 = vmax.f32 %v19408_v61, 0.0  ;;  %v23412_v9 = vmax.f32 %v19448_v5, 0.0  ;;  %v23413_v0 = vmax.f32 %v19456_v39, 0.0  ;;  %v23414_v30 = vmax.f32 %v23394_v41, 0.0 }
 0x907   :  { %23405 = vst [vmem:[#allocation231_spill] sm:$0xff] %v19707_v25  ;;  %v6916_v27 = vmul.f32 %v23399_v63, %v23408_v19  ;;  %v6918_v49 = vmul.f32 %v23399_v63, %v23409_v8  ;;  %v6920_v4 = vmul.f32 %v23399_v63, %v23410_v57  ;;  %v23415_v57 = vmax.f32 %v23396_v34, 0.0 }
 0x908   :  { %v6922_v56 = vmul.f32 %v23399_v63, %v23411_v51  ;;  %v6932_v55 = vmul.f32 %v23399_v63, %v23412_v9  ;;  %v6934_v19 = vmul.f32 %v23399_v63, %v23413_v0  ;;  %v6936_v11 = vmul.f32 %v23399_v63, %v23414_v30 }
 0x909   :  { %v19753_v31 = vpack.c.bf16 %v6918_v49, %v6916_v27  ;;  %v6938_v61 = vmul.f32 %v23399_v63, %v23415_v57  ;;  %v23416_v8 = vmax.f32 %v19508_v42, 0.0  ;;  %v23418_v39 = vmax.f32 %v19514_v32, 0.0 }
 0x90a   :  { %v19764_v51 = vpack.c.bf16 %v6922_v56, %v6920_v4  ;;  %v19766_v9 = vpack.c.bf16 %v6934_v19, %v6932_v55  ;;  %v23419_v41 = vmax.f32 %v19520_v10, 0.0  ;;  %v6897_v34 = vmax.f32 %v19547_v46, 0.0 }
 0x90b   :  { %v6948_v5 = vmul.f32 %v23399_v63, %v23416_v8  ;;  %v6950_v27 = vmul.f32 %v23399_v63, %v23418_v39  ;;  %7644 = vmatprep.mubr.bf16.mxu0 %v19753_v31  ;;  %v19776_v0 = vpack.c.bf16 %v6938_v61, %v6936_v11  ;;  %v23420_v42 = vmax.f32 %v19526_v58, 0.0 }
 0x90c   :  { %23417 = vst [vmem:[#allocation235_spill] sm:$0xff] %v19764_v51  ;;  %v6952_v49 = vmul.f32 %v23399_v63, %v23419_v41  ;;  %v23421_v55 = vmax.f32 %v19364_v36, 0.0  ;;  %7645 = vmatmul.mubr.bf16.gmra.mrb[72].mxu0 %v19731_v52  ;;  %v23422_v56 = vmax.f32 %v19356_v26, 0.0  ;;  %v23423_v19 = vmax.f32 %v19372_v23, 0.0 }
 0x90d   :  { %v6954_v4 = vmul.f32 %v23399_v63, %v23420_v42  ;;  %v19787_v10 = vpack.c.bf16 %v6950_v27, %v6948_v5  ;;  %v23424_v30 = vmax.f32 %v19428_v60, 0.0  ;;  %v6893_v11 = vmax.f32 %v19535_v38, 0.0  ;;  %7652 = vmatprep.mubr.bf16.mxu0 %v19764_v51  ;;  %v23427_v60 = vld [vmem:[#allocation50_spill] sm:$0xff] }
 0x90e   :  { %v19784_v32 = vmul.f32 %v23399_v63, %v23421_v55  ;;  %v19792_v46 = vmul.f32 %v23399_v63, %v23422_v56  ;;  %v19797_v58 = vmul.f32 %v23399_v63, %v23423_v19  ;;  %v23425_v26 = vmax.f32 %v19420_v7, 0.0 }
 0x90f   :  { %v19802_v36 = vmul.f32 %v23399_v63, %v23424_v30  ;;  %v19806_v57 = vpack.c.bf16 %v6954_v4, %v6952_v49  ;;  %v23426_v23 = vmax.f32 %v19436_v35, 0.0  ;;  %v6899_v5 = vmax.f32 %v23427_v60, 0.0  ;;  %v23430_v49 = vld [vmem:[#allocation49_spill] sm:$0xff]  ;;  %v23435_v60 = vld [vmem:[#allocation23_spill] sm:$0xff]  ;;  %v23440_v30 = vld [vmem:[#allocation130_spill] sm:$0xff] }
 0x910   :  { %v19811_v61 = vmul.f32 %v23399_v63, %v23425_v26  ;;  %v6991_v39 = vpack.c.bf16 %v19797_v58, %v19784_v32  ;;  %v23428_v38 = vmax.f32 %v19492_v24, 0.0  ;;  %v23429_v7 = vmax.f32 %v19499_v22, 0.0  ;;  %v23433_v26 = vld [vmem:[#allocation21_spill] sm:$0xff]  ;;  %v23439_v22 = vld [vmem:[#allocation168_spill] sm:$0xff] }
 0x911   :  { %v19816_v8 = vmul.f32 %v23399_v63, %v23426_v23  ;;  %v6901_v35 = vmax.f32 %v23430_v49, 0.0  ;;  %v23431_v4 = vmax.f32 %v19484_v45, 0.0  ;;  %v23432_v24 = vmax.f32 %v19541_v14, 0.0  ;;  %v23436_v14 = vld [vmem:[#allocation74_spill] sm:$0xff] }
 0x912   :  { %v19824_v27 = vmul.f32 %v23399_v63, %v23428_v38  ;;  %v19829_v41 = vmul.f32 %v23399_v63, %v23429_v7  ;;  %v19847_v19 = vmul.f32 %v23399_v63, %v6897_v34  ;;  %v23434_v23 = vmax.f32 %v23433_v26, 0.0 }
 0x913   :  { %v19837_v55 = vmul.f32 %v23399_v63, %v23431_v4  ;;  %v19842_v56 = vmul.f32 %v23399_v63, %v23432_v24  ;;  %v6900_v38 = vmax.f32 %v23435_v60, 0.0  ;;  %v6902_v7 = vmax.f32 %v23436_v14, 0.0  ;;  %v23437_v4 = vld [vmem:[#allocation43_spill] sm:$0xff] }
 0x914   :  { %v19854_v45 = vmul.f32 %v23399_v63, %v23434_v23  ;;  %v23438_v24 = vmax.f32 %v23437_v4, 0.0  ;;  %v6904_v42 = vmax.f32 %v23439_v22, 0.0  ;;  %v6906_v51 = vmax.f32 %v23440_v30, 0.0  ;;  %7653 = vmatmul.mubr.bf16.gmra.mrb[76].mxu0 %v19691_v17  ;;  %v23441_v30 = vld [vmem:[#allocation179_spill] sm:$0xff] }
 0x915   :  { %v19872_v60 = vmul.f32 %v23399_v63, %v6893_v11  ;;  %v19877_v4 = vmul.f32 %v23399_v63, %v6901_v35  ;;  %7660 = vmatprep.mubr.bf16.mxu0 %v19766_v9  ;;  %v19889_v11 = vmul.f32 %v23399_v63, %v6899_v5  ;;  %v19892_v14 = vmul.f32 %v23399_v63, %v6900_v38  ;;  %v12481_v5 = vld [vmem:[%s21204_s3 + $0x148] sm:$0xff]  }
 0x916   :  { %v19863_v34 = vmul.f32 %v23399_v63, %v23438_v24  ;;  %v23442_v24 = vmax.f32 %v23441_v30, 0.0  ;;  %v19895_v35 = vmul.f32 %v23399_v63, %v6902_v7  ;;  %v19898_v23 = vmul.f32 %v23399_v63, %v6904_v42  ;;  %v23443_v42 = vld [vmem:[#allocation201_spill] sm:$0xff]  ;;  %v12480_v7 = vld [vmem:[%s21204_s3 + $0x100] sm:$0xff]  }
 0x917   :  { %v19901_v22 = vmul.f32 %v23399_v63, %v6906_v51  ;;  %v19917_v51 = vpack.c.bf16 %v19658_v28, %v23406_v40  ;;  %v19925_v38 = vpack.c.bf16 %v19669_v43, %v23406_v40  ;;  %v6990_v28 = vpack.c.bf16 %v19792_v46, %v23406_v40  ;;  %v12484_v30 = vld [vmem:[%s21204_s3 + $0x110] sm:$0xff]  }
 0x918   :  { %v19886_v49 = vmul.f32 %v23399_v63, %v23442_v24  ;;  %v23444_v43 = vmov 0.0|0.0   ;;  %v12482_v24 = vld [vmem:[%s21204_s3 + $0x108] sm:$0xff]  }
 0x91c   :  { %7661 = vmatmul.mubr.bf16.gmra.mrb[80].mxu0 %v19917_v51 }
 0x91d   :  { %7668 = vmatprep.mubr.bf16.mxu0 %v19776_v0 }
 0x924   :  { %7669 = vmatmul.mubr.bf16.gmra.mrb[84].mxu0 %v19693_v20 }
 0x925   :  { %7676 = vmatprep.mubr.bf16.mxu0 %v19787_v10 }
 0x92c   :  { %7677 = vmatmul.mubr.bf16.gmra.mrb[88].mxu0 %v19925_v38 }
 0x92d   :  { %7684 = vmatprep.mubr.bf16.mxu0 %v19806_v57 }
 0x934   :  { %7685 = vmatmul.mubr.bf16.gmra.mrb[92].mxu0 %v23443_v42 }
 0x935   :  { %7725 = vmatprep.mubr.bf16.mxu0 %v6990_v28  ;;  %v12483_v28 = vld [vmem:[%s21204_s3 + $0x150] sm:$0xff]  }
 0x93c   :  { %7726 = vmatmul.mubr.bf16.vlgmr.msra.gmra.mrb[96].mxu0 %v23444_v43 }
 0x93d   :  { %11217 = vmatpush3.bf16.msra.mxu0 %v12480_v7  ;;  %7733 = vmatprep.mubr.bf16.mxu0 %v6991_v39  ;;  %v12485_v7 = vld [vmem:[%s21204_s3 + $0x158] sm:$0xff]   ;;  %v6992_v39 = vpack.c.bf16 %v19811_v61, %v23406_v40 }
 0x93e   :  { %11218 = vmatprep.subr.bf16.mxu0 %v12481_v5  ;;  %v12487_v5 = vld [vmem:[%s21204_s3 + $0x160] sm:$0xff]  }
 0x941   :  { %11219 = vmatpush3.bf16.msra.mxu0 %v12482_v24  ;;  %v12486_v24 = vld [vmem:[%s21204_s3 + $0x118] sm:$0xff]  }
 0x942   :  { %11220 = vmatprep.subr.bf16.mxu0 %v12483_v28  ;;  %v12488_v28 = vld [vmem:[%s21204_s3 + $0x120] sm:$0xff]  }
 0x944   :  { %7734 = vmatmul.mubr.bf16.gmra.mrb[100].mxu0 %v23444_v43 }
 0x945   :  { %7741 = vmatprep.mubr.bf16.mxu0 %v6992_v39  ;;  %11221 = vmatpush3.bf16.msra.mxu0 %v12484_v30  ;;  %v12489_v39 = vld [vmem:[%s21204_s3 + $0x168] sm:$0xff]   ;;  %v23445_v30 = vpack.c.bf16 %v19816_v8, %v19802_v36 }
 0x946   :  { %11222 = vmatprep.subr.bf16.mxu0 %v12485_v7  ;;  %v12490_v7 = vld [vmem:[%s21204_s3 + $0x128] sm:$0xff]  }
 0x949   :  { %11223 = vmatpush3.bf16.msra.mxu0 %v12486_v24  ;;  %v12491_v24 = vld [vmem:[%s21204_s3 + $0x170] sm:$0xff]  }
 0x94a   :  { %11224 = vmatprep.subr.bf16.mxu0 %v12487_v5  ;;  %v12492_v5 = vld [vmem:[%s21204_s3 + $0x130] sm:$0xff]  }
 0x94c   :  { %7742 = vmatmul.mubr.bf16.gmra.mrb[104].mxu0 %v19700_v16 }
 0x94d   :  { %7749 = vmatprep.mubr.bf16.mxu0 %v23445_v30  ;;  %11225 = vmatpush3.bf16.msra.mxu0 %v12488_v28  ;;  %v12493_v30 = vld [vmem:[%s21204_s3 + $0x178] sm:$0xff]   ;;  %v6994_v28 = vpack.c.bf16 %v19837_v55, %v23406_v40 }
 0x94e   :  { %11226 = vmatprep.subr.bf16.mxu0 %v12489_v39  ;;  %v12494_v39 = vld [vmem:[%s21204_s3 + $0x138] sm:$0xff]  }
 0x951   :  { %11227 = vmatpush3.bf16.msra.mxu0 %v12490_v7  ;;  %v12495_v7 = vld [vmem:[%s21204_s3 + $0x1c0] sm:$0xff]  }
 0x952   :  { %11228 = vmatprep.subr.bf16.mxu0 %v12491_v24  ;;  %v23446_v24 = vpack.c.bf16 %v19829_v41, %v19824_v27 }
 0x954   :  { %7750 = vmatmul.mubr.bf16.gmra.mrb[108].mxu0 %v19702_v44 }
 0x955   :  { %7757 = vmatprep.mubr.bf16.mxu0 %v6994_v28  ;;  %11229 = vmatpush3.bf16.msra.mxu0 %v12492_v5  ;;  %v6996_v5 = vpack.c.bf16 %v19872_v60, %v23406_v40 }
 0x956   :  { %11230 = vmatprep.subr.bf16.mxu0 %v12493_v30 }
 0x959   :  { %11231 = vmatpush3.bf16.msra.mxu0 %v12494_v39 }
 0x95a   :  { %11280 = vmatprep.subr.bf16.mxu0 %v12495_v7 }
 0x95c   :  { %7758 = vmatmul.mubr.bf16.gmra.mrb[112].mxu0 %v19705_v48 }
 0x95d   :  { %7765 = vmatprep.mubr.bf16.mxu0 %v23446_v24  ;;  %v23447_v24 = vpack.c.bf16 %v19847_v19, %v19842_v56 }
 0x964   :  { %7766 = vmatmul.mubr.bf16.gmra.mrb[116].mxu0 %v19707_v25 }
 0x965   :  { %v11104_v28 = vpop.f32.mrb[64].mxu0  ;;  %7773 = vmatprep.mubr.bf16.mxu0 %v6996_v5 }
 0x966   :  { %v11105_v30 = vpop.f32.mrb[65].mxu0 }
 0x967   :  { %v19998_v26 = vadd.f32 %v11105_v30, %v11104_v28  ;;  %v11107_v63 = vpop.f32.mrb[66].mxu0  ;;  %v12497_v28 = vld [vmem:[%s21204_s3 + $0x1c8] sm:$0xff]   ;;  %v12503_v30 = vld [vmem:[%s21204_s3 + $0x1e0] sm:$0xff]  }
 0x968   :  { %v11108_v43 = vpop.f32.mrb[67].mxu0 }
 0x969   :  { %v20000_v39 = vadd.f32 %v11108_v43, %v11107_v63  ;;  %v23448_v63 = vpack.c.bf16 %v19784_v32, %v19792_v46  ;;  %v12496_v43 = vld [vmem:[%s21204_s3 + $0x180] sm:$0xff]   ;;  %v12499_v32 = vld [vmem:[%s21204_s3 + $0x1d0] sm:$0xff]   ;;  %v23451_v46 = vpack.c.bf16 %v19637_v53, %v19634_v12  ;;  %v12505_v53 = vld [vmem:[%s21204_s3 + $0x1e8] sm:$0xff]  }
 0x96a   :  { %v12504_v12 = vld [vmem:[%s21204_s3 + $0x1a0] sm:$0xff]  }
 0x96c   :  { %7774 = vmatmul.mubr.bf16.gmra.mrb[120].mxu0 %v19710_v6 }
 0x96d   :  { %v11110_v7 = vpop.f32.mrb[68].mxu0  ;;  %7781 = vmatprep.mubr.bf16.mxu0 %v23447_v24  ;;  %v12507_v24 = vld [vmem:[%s21204_s3 + $0x1f0] sm:$0xff]  }
 0x96e   :  { %v11111_v48 = vpop.f32.mrb[69].mxu0 }
 0x96f   :  { %v20006_v44 = vadd.f32 %v11111_v48, %v11110_v7  ;;  %v11113_v25 = vpop.f32.mrb[70].mxu0  ;;  %v23449_v48 = vpack.c.bf16 %v19631_v37, %v19628_v3  ;;  %v12500_v3 = vld [vmem:[%s21204_s3 + $0x190] sm:$0xff]   ;;  %v12501_v37 = vld [vmem:[%s21204_s3 + $0x1d8] sm:$0xff]   ;;  %v12506_v7 = vld [vmem:[%s21204_s3 + $0x1a8] sm:$0xff]  }
 0x970   :  { %v11114_v16 = vpop.f32.mrb[71].mxu0 }
 0x971   :  { %v20008_v5 = vadd.f32 %v11114_v16, %v11113_v25  ;;  %v23450_v16 = vpack.c.bf16 %v19854_v45, %v19797_v58  ;;  %v12498_v25 = vld [vmem:[%s21204_s3 + $0x188] sm:$0xff]   ;;  %v23452_v58 = vpack.c.bf16 %v19802_v36, %v19811_v61  ;;  %v12502_v45 = vld [vmem:[%s21204_s3 + $0x198] sm:$0xff]   ;;  %v23453_v36 = vpack.c.bf16 %v19647_v59, %v19644_v33  ;;  %v12508_v33 = vld [vmem:[%s21204_s3 + $0x1b0] sm:$0xff]  }
 0x972   :  { %v23454_v61 = vpack.c.bf16 %v19863_v34, %v19816_v8  ;;  %v12509_v59 = vld [vmem:[%s21204_s3 + $0x1f8] sm:$0xff]   ;;  %v23455_v8 = vpack.c.bf16 %v19653_v62, %v19650_v29  ;;  %v23456_v34 = vpack.c.bf16 %v19824_v27, %v19837_v55  ;;  %v23457_v29 = vpack.c.bf16 %v19666_v50, %v19662_v13  ;;  %v23463_v50 = vld [vmem:[#allocation207_spill] sm:$0xff] }
 0x973   :  { %v23458_v62 = vpack.c.bf16 %v19886_v49, %v19829_v41  ;;  %v23459_v27 = vpack.c.bf16 %v19677_v21, %v19674_v1  ;;  %v23460_v55 = vpack.c.bf16 %v19842_v56, %v19872_v60  ;;  %v23462_v13 = vpack.c.bf16 %v19889_v11, %v19847_v19  ;;  %v12512_v1 = vld [vmem:[%s21204_s3 + $0x208] sm:$0xff]   ;;  %v23465_v21 = vld [vmem:[#allocation235_spill] sm:$0xff] }
 0x974   :  { %7782 = vmatmul.mubr.bf16.gmra.mrb[124].mxu0 %v19712_v2  ;;  %v23464_v41 = vpack.c.bf16 %v19689_v18, %v23463_v50  ;;  %v12515_v18 = vld [vmem:[%s21204_s3 + $0x220] sm:$0xff]   ;;  %v23474_v50 = vpack.c.bf16 %v19696_v54, %v19877_v4 }
 0x975   :  { %7822 = vmatprep.mubr.bf16.mxu0 %v23448_v63  ;;  %v12510_v63 = vld [vmem:[%s21204_s3 + $0x1b8] sm:$0xff]  }
 0x97c   :  { %7823 = vmatmul.mubr.bf16.vlgmr.msra.gmra.mrb[128].mxu0 %v23449_v48 }
 0x97d   :  { %11281 = vmatpush3.bf16.msra.mxu0 %v12496_v43  ;;  %7830 = vmatprep.mubr.bf16.mxu0 %v23450_v16  ;;  %v12511_v43 = vld [vmem:[%s21204_s3 + $0x200] sm:$0xff]  }
 0x97e   :  { %11282 = vmatprep.subr.bf16.mxu0 %v12497_v28  ;;  %v23461_v28 = vpack.c.bf16 %v19683_v15, %v19680_v47  ;;  %v12513_v47 = vld [vmem:[%s21204_s3 + $0x210] sm:$0xff]   ;;  %v12514_v15 = vld [vmem:[%s21204_s3 + $0x218] sm:$0xff]  }
 0x981   :  { %11283 = vmatpush3.bf16.msra.mxu0 %v12498_v25  ;;  %v23467_v25 = vpack.c.bf16 %v19901_v22, %v19898_v23 }
 0x982   :  { %11284 = vmatprep.subr.bf16.mxu0 %v12499_v32 }
 0x984   :  { %7831 = vmatmul.mubr.bf16.gmra.mrb[132].mxu0 %v23451_v46  ;;  %v23468_v46 = vld [vmem:[#allocation240_spill] sm:$0xff] }
 0x985   :  { %7838 = vmatprep.mubr.bf16.mxu0 %v23452_v58  ;;  %11285 = vmatpush3.bf16.msra.mxu0 %v12500_v3  ;;  %v23469_v58 = vpack.c.bf16 %v23468_v46, %v19696_v54 }
 0x986   :  { %11286 = vmatprep.subr.bf16.mxu0 %v12501_v37 }
 0x989   :  { %11287 = vmatpush3.bf16.msra.mxu0 %v12502_v45  ;;  %v23470_v45 = vld [vmem:[#allocation229_spill] sm:$0xff] }
 0x98a   :  { %11288 = vmatprep.subr.bf16.mxu0 %v12503_v30 }
 0x98c   :  { %7839 = vmatmul.mubr.bf16.gmra.mrb[136].mxu0 %v23453_v36 }
 0x98d   :  { %7846 = vmatprep.mubr.bf16.mxu0 %v23454_v61  ;;  %11289 = vmatpush3.bf16.msra.mxu0 %v12504_v12  ;;  %v23471_v61 = vld [vmem:[#allocation227_spill] sm:$0xff] }
 0x98e   :  { %11290 = vmatprep.subr.bf16.mxu0 %v12505_v53 }
 0x991   :  { %11291 = vmatpush3.bf16.msra.mxu0 %v12506_v7  ;;  %v23472_v7 = vld [vmem:[#allocation233_spill] sm:$0xff] }
 0x992   :  { %11292 = vmatprep.subr.bf16.mxu0 %v12507_v24 }
 0x994   :  { %7847 = vmatmul.mubr.bf16.gmra.mrb[140].mxu0 %v23455_v8 }
 0x995   :  { %7854 = vmatprep.mubr.bf16.mxu0 %v23456_v34  ;;  %11293 = vmatpush3.bf16.msra.mxu0 %v12508_v33 }
 0x996   :  { %11294 = vmatprep.subr.bf16.mxu0 %v12509_v59 }
 0x999   :  { %11295 = vmatpush3.bf16.msra.mxu0 %v12510_v63 }
 0x99a   :  { %11786 = vmatprep.subr.bf16.mxu0 %v12511_v43 }
 0x99c   :  { %7855 = vmatmul.mubr.bf16.gmra.mrb[144].mxu0 %v23457_v29 }
 0x99d   :  { %7862 = vmatprep.mubr.bf16.mxu0 %v23458_v62 }
 0x9a4   :  { %7863 = vmatmul.mubr.bf16.gmra.mrb[148].mxu0 %v23459_v27 }
 0x9a5   :  { %7870 = vmatprep.mubr.bf16.mxu0 %v23460_v55 }
 0x9ac   :  { %7871 = vmatmul.mubr.bf16.gmra.mrb[152].mxu0 %v23461_v28 }
 0x9ad   :  { %7878 = vmatprep.mubr.bf16.mxu0 %v23462_v13 }
 0x9b4   :  { %7879 = vmatmul.mubr.bf16.gmra.mrb[156].mxu0 %v23464_v41 }
 0x9b5   :  { %7919 = vmatprep.mubr.bf16.mxu0 %v19753_v31  ;;  %v12518_v31 = vld [vmem:[%s21204_s3 + $0x238] sm:$0xff]  }
 0x9bc   :  { %7920 = vmatmul.mubr.bf16.vlgmr.msra.gmra.mrb[160].mxu0 %v19731_v52  ;;  %v12516_v52 = vld [vmem:[%s21204_s3 + $0x228] sm:$0xff]  }
 0x9bd   :  { %11787 = vmatpush3.bf16.msra.mxu0 %v12511_v43  ;;  %7927 = vmatprep.mubr.bf16.mxu0 %v23465_v21  ;;  %v23473_v43 = vld [vmem:[#allocation231_spill] sm:$0xff] }
 0x9be   :  { %11788 = vmatprep.subr.bf16.mxu0 %v12512_v1 }
 0x9c1   :  { %11789 = vmatpush3.bf16.msra.mxu0 %v12512_v1 }
 0x9c2   :  { %11790 = vmatprep.subr.bf16.mxu0 %v12513_v47 }
 0x9c4   :  { %7928 = vmatmul.mubr.bf16.gmra.mrb[164].mxu0 %v19691_v17  ;;  %v12517_v17 = vld [vmem:[%s21204_s3 + $0x230] sm:$0xff]  }
 0x9c5   :  { %7935 = vmatprep.mubr.bf16.mxu0 %v19766_v9  ;;  %11791 = vmatpush3.bf16.msra.mxu0 %v12513_v47 }
 0x9c6   :  { %11792 = vmatprep.subr.bf16.mxu0 %v12514_v15 }
 0x9c9   :  { %11793 = vmatpush3.bf16.msra.mxu0 %v12514_v15 }
 0x9ca   :  { %11794 = vmatprep.subr.bf16.mxu0 %v12515_v18 }
 0x9cc   :  { %7936 = vmatmul.mubr.bf16.gmra.mrb[168].mxu0 %v19917_v51 }
 0x9cd   :  { %7943 = vmatprep.mubr.bf16.mxu0 %v19776_v0  ;;  %11795 = vmatpush3.bf16.msra.mxu0 %v12515_v18 }
 0x9ce   :  { %11796 = vmatprep.subr.bf16.mxu0 %v12516_v52 }
 0x9d1   :  { %11797 = vmatpush3.bf16.msra.mxu0 %v12516_v52  ;;  %v23475_v52 = vld [vmem:[#allocation210_spill] sm:$0xff] }
 0x9d2   :  { %11798 = vmatprep.subr.bf16.mxu0 %v12517_v17 }
 0x9d4   :  { %7944 = vmatmul.mubr.bf16.gmra.mrb[172].mxu0 %v19693_v20  ;;  %v23466_v20 = vpack.c.bf16 %v19895_v35, %v19892_v14 }
 0x9d5   :  { %7951 = vmatprep.mubr.bf16.mxu0 %v19787_v10  ;;  %11799 = vmatpush3.bf16.msra.mxu0 %v12517_v17  ;;  %v23476_v17 = vpack.c.bf16 %v23475_v52, %v23468_v46 }
 0x9d6   :  { %11800 = vmatprep.subr.bf16.mxu0 %v12518_v31 }
 0x9d9   :  { %11801 = vmatpush3.bf16.msra.mxu0 %v12518_v31 }
 0x9dc   :  { %7952 = vmatmul.mubr.bf16.gmra.mrb[176].mxu0 %v19925_v38 }
 0x9dd   :  { %7959 = vmatprep.mubr.bf16.mxu0 %v19806_v57  ;;  %v7014_v57 = vpack.c.bf16 %v19877_v4, %v23406_v40 }
 0x9df   :  { %v11116_v9 = vpop.f32.mrb[72].mxu0 }
 0x9e0   :  { %v11117_v0 = vpop.f32.mrb[73].mxu0 }
 0x9e1   :  { %v20139_v56 = vadd.f32 %v11117_v0, %v11116_v9  ;;  %v11119_v19 = vpop.f32.mrb[74].mxu0 }
 0x9e2   :  { %v11120_v49 = vpop.f32.mrb[75].mxu0 }
 0x9e3   :  { %v20141_v60 = vadd.f32 %v11120_v49, %v11119_v19 }
 0x9e4   :  { %7960 = vmatmul.mubr.bf16.gmra.mrb[180].mxu0 %v23443_v42 }
 0x9e5   :  { %7967 = vmatprep.mubr.bf16.mxu0 %v23466_v20 }
 0x9e7   :  { %v11122_v10 = vpop.f32.mrb[76].mxu0 }
 0x9e8   :  { %v11123_v11 = vpop.f32.mrb[77].mxu0 }
 0x9e9   :  { %v20147_v51 = vadd.f32 %v11123_v11, %v11122_v10  ;;  %v11125_v38 = vpop.f32.mrb[78].mxu0 }
 0x9ea   :  { %v11126_v48 = vpop.f32.mrb[79].mxu0 }
 0x9eb   :  { %v20151_v16 = vadd.f32 %v11126_v48, %v11125_v38 }
 0x9ec   :  { %7968 = vmatmul.mubr.bf16.gmra.mrb[184].mxu0 %v7014_v57 }
 0x9ed   :  { %7975 = vmatprep.mubr.bf16.mxu0 %v23467_v25 }
 0x9ef   :  { %v11128_v42 = vpop.f32.mrb[80].mxu0 }
 0x9f0   :  { %v11129_v32 = vpop.f32.mrb[81].mxu0 }
 0x9f1   :  { %v20156_v14 = vadd.f32 %v11129_v32, %v11128_v42  ;;  %v11131_v35 = vpop.f32.mrb[82].mxu0 }
 0x9f2   :  { %v11132_v3 = vpop.f32.mrb[83].mxu0 }
 0x9f3   :  { %v20158_v37 = vadd.f32 %v11132_v3, %v11131_v35 }
 0x9f4   :  { %7976 = vmatmul.mubr.bf16.gmra.mrb[188].mxu0 %v23469_v58 }
 0x9f5   :  { %11802 = vmatprep.mubr.bf16.mxu0 %v23470_v45  ;;  %v12519_v45 = vld [vmem:[%s21205_s4] ss:$8 sps:$4 sm:$0xff]  }
 0x9f7   :  { %v11134_v30 = vpop.f32.mrb[84].mxu0 }
 0x9f8   :  { %v11135_v12 = vpop.f32.mrb[85].mxu0 }
 0x9f9   :  { %v20164_v53 = vadd.f32 %v11135_v12, %v11134_v30  ;;  %v11137_v23 = vpop.f32.mrb[86].mxu0 }
 0x9fa   :  { %v11138_v22 = vpop.f32.mrb[87].mxu0 }
 0x9fb   :  { %v20166_v36 = vadd.f32 %v11138_v22, %v11137_v23 }
 0x9fc   :  { %11803 = vmatmul.mubr.bf16.vlgmr.msra.gmra.mrb[192].mxu0 %v23471_v61  ;;  %v12524_v61 = vld [vmem:[%s21205_s4 + $0x14] ss:$8 sps:$4 sm:$0xff]  }
 0x9fd   :  { %11806 = vmatprep.mubr.bf16.mxu0 %v23472_v7 }
 0x9ff   :  { %v11140_v24 = vpop.f32.mrb[88].mxu0 }
 0xa00   :  { %v11141_v33 = vpop.f32.mrb[89].mxu0 }
 0xa01   :  { %v20170_v59 = vadd.f32 %v11141_v33, %v11140_v24  ;;  %v11143_v8 = vpop.f32.mrb[90].mxu0  ;;  %v12527_v33 = vld [vmem:[%s21205_s4 + $0x24] ss:$8 sps:$4 sm:$0xff]  }
 0xa02   :  { %v11144_v34 = vpop.f32.mrb[91].mxu0 }
 0xa03   :  { %v20172_v63 = vadd.f32 %v11144_v34, %v11143_v8  ;;  %v12525_v8 = vld [vmem:[%s21205_s4 + $0x20] ss:$8 sps:$4 sm:$0xff]  }
 0xa04   :  { %11807 = vmatmul.mubr.bf16.gmra.mrb[196].mxu0 %v23473_v43 }
 0xa05   :  { %11810 = vmatprep.mubr.bf16.mxu0 %v19710_v6 }
 0xa07   :  { %v11146_v29 = vpop.f32.mrb[92].mxu0 }
 0xa08   :  { %v11147_v62 = vpop.f32.mrb[93].mxu0 }
 0xa09   :  { %v20176_v27 = vadd.f32 %v11147_v62, %v11146_v29  ;;  %v11149_v55 = vpop.f32.mrb[94].mxu0 }
 0xa0a   :  { %v11150_v28 = vpop.f32.mrb[95].mxu0 }
 0xa0b   :  { %v20178_v13 = vadd.f32 %v11150_v28, %v11149_v55  ;;  %v12528_v55 = vld [vmem:[%s21205_s4 + $0x30] ss:$8 sps:$4 sm:$0xff]   ;;  %v12530_v28 = vld [vmem:[%s21205_s4 + $0x34] ss:$8 sps:$4 sm:$0xff]  }
 0xa0c   :  { %11811 = vmatmul.mubr.bf16.gmra.mrb[200].mxu0 %v19712_v2  ;;  %v23477_v2 = vmov 0.0|0.0  }
 0xa0d   :  { %11814 = vmatprep.mubr.bf16.mxu0 %v23474_v50 }
 0xa0f   :  { %v11168_v41 = vpop.f32.mrb[96].mxu0 }
 0xa10   :  { %v11169_v1 = vpop.f32.mrb[97].mxu0 }
 0xa11   :  { %v11170_v21 = vadd.f32 %v11169_v1, %v11168_v41  ;;  %v11171_v47 = vpop.f32.mrb[98].mxu0  ;;  %v12533_v1 = vld [vmem:[%s21205_s4 + $0x44] ss:$8 sps:$4 sm:$0xff]  }
 0xa12   :  { %v11172_v15 = vpop.f32.mrb[99].mxu0 }
 0xa13   :  { %v20185_v6 = vadd.f32 %v11170_v21, %v19998_v26  ;;  %v11173_v18 = vadd.f32 %v11172_v15, %v11171_v47  ;;  %v12531_v21 = vld [vmem:[%s21205_s4 + $0x40] ss:$8 sps:$4 sm:$0xff]  }
 0xa14   :  { %11815 = vmatmul.mubr.bf16.gmra.mrb[204].mxu0 %v23476_v17  ;;  %v12534_v17 = vld [vmem:[%s21205_s4 + $0x50] ss:$8 sps:$4 sm:$0xff]  }
 0xa15   :  { %v20191_v31 = vadd.f32 %v11173_v18, %v20000_v39  ;;  %9132 = vmatprep.mubr.bf16.mxu0 %v23477_v2 }
 0xa17   :  { %v11174_v54 = vpop.f32.mrb[100].mxu0 }
 0xa18   :  { %v11175_v4 = vpop.f32.mrb[101].mxu0 }
 0xa19   :  { %v11176_v9 = vadd.f32 %v11175_v4, %v11174_v54  ;;  %v11177_v0 = vpop.f32.mrb[102].mxu0  ;;  %v12536_v54 = vld [vmem:[%s21205_s4 + $0x54] ss:$8 sps:$4 sm:$0xff]  }
 0xa1a   :  { %v11178_v19 = vpop.f32.mrb[103].mxu0 }
 0xa1b   :  { %v20195_v49 = vadd.f32 %v11176_v9, %v20006_v44  ;;  %v11179_v26 = vadd.f32 %v11178_v19, %v11177_v0  ;;  %v12539_v0 = vld [vmem:[%s21205_s4 + $0x64] ss:$8 sps:$4 sm:$0xff]   ;;  %v12537_v19 = vld [vmem:[%s21205_s4 + $0x60] ss:$8 sps:$4 sm:$0xff]  }
 0xa1d   :  { %v20198_v20 = vadd.f32 %v11179_v26, %v20008_v5 }
 0xa1f   :  { %v11180_v10 = vpop.f32.mrb[104].mxu0 }
 0xa20   :  { %v11181_v11 = vpop.f32.mrb[105].mxu0 }
 0xa21   :  { %v11182_v38 = vadd.f32 %v11181_v11, %v11180_v10  ;;  %v11183_v57 = vpop.f32.mrb[106].mxu0 }
 0xa22   :  { %v11184_v39 = vpop.f32.mrb[107].mxu0 }
 0xa23   :  { %v20201_v48 = vadd.f32 %v11182_v38, %v20139_v56  ;;  %v11185_v25 = vadd.f32 %v11184_v39, %v11183_v57  ;;  %v12521_v56 = vld [vmem:[%s21205_s4 + $0x4] ss:$8 sps:$4 sm:$0xff]   ;;  %v12540_v57 = vld [vmem:[%s21205_s4 + $0x70] ss:$8 sps:$4 sm:$0xff]   ;;  %v12542_v39 = vld [vmem:[%s21205_s4 + $0x74] ss:$8 sps:$4 sm:$0xff]  }
 0xa24   :  { %9100 = vmatprep.subr.bf16.mxu0 %v12521_v56 }
 0xa25   :  { %v20204_v42 = vadd.f32 %v11185_v25, %v20141_v60  ;;  %9101 = vmatpush1.bf16.msra.mxu0 %v12519_v45 }
 0xa26   :  { %9102 = vmatprep.subr.bf16.mxu0 %v12524_v61 }
 0xa27   :  { %v11186_v32 = vpop.f32.mrb[108].mxu0 }
 0xa28   :  { %v11187_v35 = vpop.f32.mrb[109].mxu0 }
 0xa29   :  { %v11188_v44 = vadd.f32 %v11187_v35, %v11186_v32  ;;  %v11189_v3 = vpop.f32.mrb[110].mxu0  ;;  %v12545_v35 = vld [vmem:[%s21205_s4 + $0x84] ss:$8 sps:$4 sm:$0xff]  }
 0xa2a   :  { %v11190_v46 = vpop.f32.mrb[111].mxu0 }
 0xa2b   :  { %v20207_v5 = vadd.f32 %v11188_v44, %v20147_v51  ;;  %v11191_v58 = vadd.f32 %v11190_v46, %v11189_v3  ;;  %v12522_v51 = vld [vmem:[%s21205_s4 + $0x10] ss:$8 sps:$4 sm:$0xff]   ;;  %v12543_v44 = vld [vmem:[%s21205_s4 + $0x80] ss:$8 sps:$4 sm:$0xff]  }
 0xa2c   :  { %9103 = vmatpush1.bf16.msra.mxu0 %v12522_v51 }
 0xa2d   :  { %v20216_v60 = vadd.f32 %v11191_v58, %v20151_v16  ;;  %9104 = vmatprep.subr.bf16.mxu0 %v12527_v33  ;;  %v12551_v33 = vld [vmem:[%s21205_s4 + $0xa4] ss:$8 sps:$4 sm:$0xff]  }
 0xa2f   :  { %v11192_v30 = vpop.f32.mrb[112].mxu0 }
 0xa30   :  { %v11193_v12 = vpop.f32.mrb[113].mxu0  ;;  %9105 = vmatpush1.bf16.msra.mxu0 %v12525_v8 }
 0xa31   :  { %v11194_v23 = vadd.f32 %v11193_v12, %v11192_v30  ;;  %v11195_v22 = vpop.f32.mrb[114].mxu0  ;;  %9106 = vmatprep.subr.bf16.mxu0 %v12530_v28 }
 0xa32   :  { %v11196_v7 = vpop.f32.mrb[115].mxu0 }
 0xa33   :  { %v20225_v24 = vadd.f32 %v11194_v23, %v20156_v14  ;;  %v11197_v16 = vadd.f32 %v11196_v7, %v11195_v22  ;;  %v12546_v23 = vld [vmem:[%s21205_s4 + $0x90] ss:$8 sps:$4 sm:$0xff]  }
 0xa34   :  { %9107 = vmatpush1.bf16.msra.mxu0 %v12528_v55 }
 0xa35   :  { %v20234_v34 = vadd.f32 %v11197_v16, %v20158_v37  ;;  %9108 = vmatprep.subr.bf16.mxu0 %v12533_v1 }
 0xa37   :  { %v11198_v43 = vpop.f32.mrb[116].mxu0 }
 0xa38   :  { %v11199_v29 = vpop.f32.mrb[117].mxu0  ;;  %9109 = vmatpush1.bf16.msra.mxu0 %v12531_v21 }
 0xa39   :  { %v11200_v14 = vadd.f32 %v11199_v29, %v11198_v43  ;;  %v11201_v62 = vpop.f32.mrb[118].mxu0  ;;  %9110 = vmatprep.subr.bf16.mxu0 %v12536_v54 }
 0xa3a   :  { %v11202_v50 = vpop.f32.mrb[119].mxu0 }
 0xa3b   :  { %v20243_v41 = vadd.f32 %v11200_v14, %v20164_v53  ;;  %v11203_v37 = vadd.f32 %v11202_v50, %v11201_v62  ;;  %v12552_v14 = vld [vmem:[%s21205_s4 + $0xb0] ss:$8 sps:$4 sm:$0xff]   ;;  %v12554_v62 = vld [vmem:[%s21205_s4 + $0xb4] ss:$8 sps:$4 sm:$0xff]  }
 0xa3c   :  { %9111 = vmatpush1.bf16.msra.mxu0 %v12534_v17 }
 0xa3d   :  { %v20252_v47 = vadd.f32 %v11203_v37, %v20166_v36  ;;  %9112 = vmatprep.subr.bf16.mxu0 %v12539_v0  ;;  %v12555_v37 = vld [vmem:[%s21205_s4 + $0xc0] ss:$8 sps:$4 sm:$0xff]  }
 0xa3f   :  { %v11204_v15 = vpop.f32.mrb[120].mxu0 }
 0xa40   :  { %v11205_v18 = vpop.f32.mrb[121].mxu0  ;;  %9113 = vmatpush1.bf16.msra.mxu0 %v12537_v19 }
 0xa41   :  { %v11206_v53 = vadd.f32 %v11205_v18, %v11204_v15  ;;  %v11207_v52 = vpop.f32.mrb[122].mxu0  ;;  %9114 = vmatprep.subr.bf16.mxu0 %v12542_v39 }
 0xa42   :  { %v11208_v4 = vpop.f32.mrb[123].mxu0 }
 0xa43   :  { %v20261_v9 = vadd.f32 %v11206_v53, %v20170_v59  ;;  %v11209_v36 = vadd.f32 %v11208_v4, %v11207_v52  ;;  %v12558_v53 = vld [vmem:[%s21205_s4 + $0xd0] ss:$8 sps:$4 sm:$0xff]   ;;  %v12560_v52 = vld [vmem:[%s21205_s4 + $0xd4] ss:$8 sps:$4 sm:$0xff]  }
 0xa44   :  { %9115 = vmatpush1.bf16.msra.mxu0 %v12540_v57 }
 0xa45   :  { %v20270_v26 = vadd.f32 %v11209_v36, %v20172_v63  ;;  %9116 = vmatprep.subr.bf16.mxu0 %v12545_v35  ;;  %v12561_v36 = vld [vmem:[%s21205_s4 + $0xe0] ss:$8 sps:$4 sm:$0xff]  }
 0xa47   :  { %v11210_v10 = vpop.f32.mrb[124].mxu0 }
 0xa48   :  { %v11211_v11 = vpop.f32.mrb[125].mxu0  ;;  %9117 = vmatpush1.bf16.msra.mxu0 %v12543_v44 }
 0xa49   :  { %v11212_v59 = vadd.f32 %v11211_v11, %v11210_v10  ;;  %v11213_v38 = vpop.f32.mrb[126].mxu0 }
 0xa4a   :  { %v11214_v25 = vpop.f32.mrb[127].mxu0 }
 0xa4b   :  { %v20279_v32 = vadd.f32 %v11212_v59, %v20176_v27  ;;  %v11215_v63 = vadd.f32 %v11214_v25, %v11213_v38  ;;  %v12564_v59 = vld [vmem:[%s21205_s4 + $0xf0] ss:$8 sps:$4 sm:$0xff]   ;;  %v12566_v38 = vld [vmem:[%s21205_s4 + $0xf4] ss:$8 sps:$4 sm:$0xff]  }
 0xa4d   :  { %v20288_v3 = vadd.f32 %v11215_v63, %v20178_v13  ;;  %v12548_v13 = vld [vmem:[%s21205_s4 + $0x94] ss:$8 sps:$4 sm:$0xff]  }
 0xa4e   :  { %9118 = vmatprep.subr.bf16.mxu0 %v12548_v13 }
 0xa4f   :  { %v11232_v46 = vpop.f32.mrb[128].mxu0  ;;  %9119 = vmatpush1.bf16.msra.mxu0 %v12546_v23 }
 0xa50   :  { %v11233_v58 = vpop.f32.mrb[129].mxu0  ;;  %9120 = vmatprep.subr.bf16.mxu0 %v12551_v33 }
 0xa51   :  { %v11234_v27 = vadd.f32 %v11233_v58, %v11232_v46  ;;  %v11235_v45 = vpop.f32.mrb[130].mxu0 }
 0xa52   :  { %v11236_v56 = vpop.f32.mrb[131].mxu0 }
 0xa53   :  { %v20291_v30 = vadd.f32 %v11234_v27, %v20185_v6  ;;  %v11237_v12 = vadd.f32 %v11236_v56, %v11235_v45  ;;  %v12549_v6 = vld [vmem:[%s21205_s4 + $0xa0] ss:$8 sps:$4 sm:$0xff]  }
 0xa54   :  { %9121 = vmatpush1.bf16.msra.mxu0 %v12549_v6 }
 0xa55   :  { %v20300_v22 = vadd.f32 %v11237_v12, %v20191_v31  ;;  %9122 = vmatprep.subr.bf16.mxu0 %v12554_v62 }
 0xa57   :  { %v11238_v51 = vpop.f32.mrb[132].mxu0 }
 0xa58   :  { %v11239_v61 = vpop.f32.mrb[133].mxu0  ;;  %9123 = vmatpush1.bf16.msra.mxu0 %v12552_v14 }
 0xa59   :  { %v11240_v7 = vadd.f32 %v11239_v61, %v11238_v51  ;;  %v11241_v16 = vpop.f32.mrb[134].mxu0 }
 0xa5a   :  { %v11242_v8 = vpop.f32.mrb[135].mxu0 }
 0xa5b   :  { %v20309_v43 = vadd.f32 %v11240_v7, %v20195_v49  ;;  %v11243_v31 = vadd.f32 %v11242_v8, %v11241_v16 }
 0xa5d   :  { %v20312_v29 = vadd.f32 %v11243_v31, %v20198_v20  ;;  %v12557_v20 = vld [vmem:[%s21205_s4 + $0xc4] ss:$8 sps:$4 sm:$0xff]  }
 0xa5e   :  { %9124 = vmatprep.subr.bf16.mxu0 %v12557_v20 }
 0xa5f   :  { %v11244_v55 = vpop.f32.mrb[136].mxu0  ;;  %9125 = vmatpush1.bf16.msra.mxu0 %v12555_v37 }
 0xa60   :  { %v11245_v28 = vpop.f32.mrb[137].mxu0  ;;  %9126 = vmatprep.subr.bf16.mxu0 %v12560_v52 }
 0xa61   :  { %v11246_v49 = vadd.f32 %v11245_v28, %v11244_v55  ;;  %v11247_v50 = vpop.f32.mrb[138].mxu0 }
 0xa62   :  { %v11248_v1 = vpop.f32.mrb[139].mxu0 }
 0xa63   :  { %v20327_v21 = vadd.f32 %v11246_v49, %v20201_v48  ;;  %v11249_v15 = vadd.f32 %v11248_v1, %v11247_v50  ;;  %9127 = vmatpush1.bf16.msra.mxu0 %v12558_v53 }
 0xa65   :  { %v20330_v18 = vadd.f32 %v11249_v15, %v20204_v42  ;;  %v12563_v42 = vld [vmem:[%s21205_s4 + $0xe4] ss:$8 sps:$4 sm:$0xff]  }
 0xa66   :  { %9128 = vmatprep.subr.bf16.mxu0 %v12563_v42 }
 0xa67   :  { %v11250_v17 = vpop.f32.mrb[140].mxu0  ;;  %9129 = vmatpush1.bf16.msra.mxu0 %v12561_v36 }
 0xa68   :  { %v11251_v54 = vpop.f32.mrb[141].mxu0  ;;  %9130 = vmatprep.subr.bf16.mxu0 %v12566_v38 }
 0xa69   :  { %v11252_v48 = vadd.f32 %v11251_v54, %v11250_v17  ;;  %v11253_v4 = vpop.f32.mrb[142].mxu0 }
 0xa6a   :  { %v11254_v0 = vpop.f32.mrb[143].mxu0 }
 0xa6b   :  { %v20345_v19 = vadd.f32 %v11252_v48, %v20207_v5  ;;  %v11255_v10 = vadd.f32 %v11254_v0, %v11253_v4  ;;  %9131 = vmatpush1.bf16.msra.mxu0 %v12564_v59  ;;  %v12569_v59 = vld [vmem:[%s21205_s4 + $0x104] ss:$8 sps:$4 sm:$0xff]  }
 0xa6c   :  { %9153 = vmatprep.subr.bf16.mxu0 %v12569_v59  ;;  %v12599_v59 = vld [vmem:[%s21205_s4 + $0x1a4] ss:$8 sps:$4 sm:$0xff]  }
 0xa6d   :  { %v20348_v11 = vadd.f32 %v11255_v10, %v20216_v60 }
 0xa6e   :  { %9133 = vmatmul.mubr.bf16.vlgmr.msra.gmra.mrb[208].mxu0 %v23477_v2 }
 0xa6f   :  { %v11256_v57 = vpop.f32.mrb[144].mxu0 }
 0xa70   :  { %v11257_v39 = vpop.f32.mrb[145].mxu0 }
 0xa71   :  { %v11258_v5 = vadd.f32 %v11257_v39, %v11256_v57  ;;  %v11259_v25 = vpop.f32.mrb[146].mxu0  ;;  %v12570_v39 = vld [vmem:[%s21205_s4 + $0x110] ss:$8 sps:$4 sm:$0xff]  }
 0xa72   :  { %v11260_v63 = vpop.f32.mrb[147].mxu0 }
 0xa73   :  { %v20357_v35 = vadd.f32 %v11258_v5, %v20225_v24  ;;  %v11261_v60 = vadd.f32 %v11260_v63, %v11259_v25  ;;  %v12575_v5 = vld [vmem:[%s21205_s4 + $0x124] ss:$8 sps:$4 sm:$0xff]  }
 0xa75   :  { %v20361_v44 = vadd.f32 %v11261_v60, %v20234_v34 }
 0xa77   :  { %v11262_v46 = vpop.f32.mrb[148].mxu0 }
 0xa78   :  { %v11263_v58 = vpop.f32.mrb[149].mxu0 }
 0xa79   :  { %v11264_v27 = vadd.f32 %v11263_v58, %v11262_v46  ;;  %v11265_v45 = vpop.f32.mrb[150].mxu0  ;;  %v12578_v58 = vld [vmem:[%s21205_s4 + $0x134] ss:$8 sps:$4 sm:$0xff]  }
 0xa7a   :  { %v11266_v56 = vpop.f32.mrb[151].mxu0 }
 0xa7b   :  { %v20364_v12 = vadd.f32 %v11264_v27, %v20243_v41  ;;  %v11267_v23 = vadd.f32 %v11266_v56, %v11265_v45 }
 0xa7d   :  { %v20367_v13 = vadd.f32 %v11267_v23, %v20252_v47  ;;  %v12576_v23 = vld [vmem:[%s21205_s4 + $0x130] ss:$8 sps:$4 sm:$0xff]  }
 0xa7f   :  { %v11268_v24 = vpop.f32.mrb[152].mxu0 }
 0xa80   :  { %v11269_v51 = vpop.f32.mrb[153].mxu0 }
 0xa81   :  { %v11270_v61 = vadd.f32 %v11269_v51, %v11268_v24  ;;  %v11271_v7 = vpop.f32.mrb[154].mxu0  ;;  %v12581_v24 = vld [vmem:[%s21205_s4 + $0x144] ss:$8 sps:$4 sm:$0xff]  }
 0xa82   :  { %v11272_v16 = vpop.f32.mrb[155].mxu0 }
 0xa83   :  { %v20370_v34 = vadd.f32 %v11270_v61, %v20261_v9  ;;  %v11273_v6 = vadd.f32 %v11272_v16, %v11271_v7 }
 0xa85   :  { %v20373_v33 = vadd.f32 %v11273_v6, %v20270_v26  ;;  %v12584_v6 = vld [vmem:[%s21205_s4 + $0x154] ss:$8 sps:$4 sm:$0xff]  }
 0xa87   :  { %v11274_v8 = vpop.f32.mrb[156].mxu0 }
 0xa88   :  { %v11275_v31 = vpop.f32.mrb[157].mxu0 }
 0xa89   :  { %v11276_v41 = vadd.f32 %v11275_v31, %v11274_v8  ;;  %v11277_v14 = vpop.f32.mrb[158].mxu0 }
 0xa8a   :  { %v11278_v62 = vpop.f32.mrb[159].mxu0 }
 0xa8b   :  { %v20376_v47 = vadd.f32 %v11276_v41, %v20279_v32  ;;  %v11279_v55 = vadd.f32 %v11278_v62, %v11277_v14  ;;  %v12582_v14 = vld [vmem:[%s21205_s4 + $0x150] ss:$8 sps:$4 sm:$0xff]   ;;  %v12587_v62 = vld [vmem:[%s21205_s4 + $0x164] ss:$8 sps:$4 sm:$0xff]  }
 0xa8d   :  { %v20379_v28 = vadd.f32 %v11279_v55, %v20288_v3 }
 0xa8f   :  { %v11296_v49 = vpop.f32.mrb[160].mxu0 }
 0xa90   :  { %v11297_v50 = vpop.f32.mrb[161].mxu0 }
 0xa91   :  { %v11298_v9 = vadd.f32 %v11297_v50, %v11296_v49  ;;  %v11299_v37 = vpop.f32.mrb[162].mxu0 }
 0xa92   :  { %v11300_v20 = vpop.f32.mrb[163].mxu0 }
 0xa93   :  { %v11301_v1 = vadd.f32 %v11300_v20, %v11299_v37  ;;  %v20382_v26 = vadd.f32 %v11298_v9, %v20291_v30  ;;  %v12590_v37 = vld [vmem:[%s21205_s4 + $0x174] ss:$8 sps:$4 sm:$0xff]  }
 0xa95   :  { %v20385_v15 = vadd.f32 %v11301_v1, %v20300_v22  ;;  %v12567_v22 = vld [vmem:[%s21205_s4 + $0x100] ss:$8 sps:$4 sm:$0xff]  }
 0xa96   :  { %9154 = vmatpush1.bf16.msra.mxu0 %v12567_v22  ;;  %v12594_v22 = vld [vmem:[%s21205_s4 + $0x190] ss:$8 sps:$4 sm:$0xff]  }
 0xa97   :  { %v11302_v53 = vpop.f32.mrb[164].mxu0 }
 0xa98   :  { %v11303_v52 = vpop.f32.mrb[165].mxu0 }
 0xa99   :  { %v11304_v32 = vadd.f32 %v11303_v52, %v11302_v53  ;;  %v11305_v17 = vpop.f32.mrb[166].mxu0  ;;  %v12588_v52 = vld [vmem:[%s21205_s4 + $0x170] ss:$8 sps:$4 sm:$0xff]  }
 0xa9a   :  { %v11306_v54 = vpop.f32.mrb[167].mxu0 }
 0xa9b   :  { %v11307_v48 = vadd.f32 %v11306_v54, %v11305_v17  ;;  %v20388_v3 = vadd.f32 %v11304_v32, %v20309_v43  ;;  %v12593_v32 = vld [vmem:[%s21205_s4 + $0x184] ss:$8 sps:$4 sm:$0xff]  }
 0xa9d   :  { %v20391_v4 = vadd.f32 %v11307_v48, %v20312_v29  ;;  %v12572_v29 = vld [vmem:[%s21205_s4 + $0x114] ss:$8 sps:$4 sm:$0xff]  }
 0xa9e   :  { %9155 = vmatprep.subr.bf16.mxu0 %v12572_v29 }
 0xa9f   :  { %v11308_v36 = vpop.f32.mrb[168].mxu0  ;;  %9156 = vmatpush1.bf16.msra.mxu0 %v12570_v39 }
 0xaa0   :  { %v11309_v42 = vpop.f32.mrb[169].mxu0  ;;  %9157 = vmatprep.subr.bf16.mxu0 %v12575_v5 }
 0xaa1   :  { %v11310_v0 = vadd.f32 %v11309_v42, %v11308_v36  ;;  %v11311_v30 = vpop.f32.mrb[170].mxu0  ;;  %v12596_v42 = vld [vmem:[%s21205_s4 + $0x194] ss:$8 sps:$4 sm:$0xff]  }
 0xaa2   :  { %v11312_v10 = vpop.f32.mrb[171].mxu0 }
 0xaa3   :  { %v11313_v38 = vadd.f32 %v11312_v10, %v11311_v30  ;;  %v20400_v43 = vadd.f32 %v11310_v0, %v20327_v21 }
 0xaa5   :  { %v20406_v57 = vadd.f32 %v11313_v38, %v20330_v18  ;;  %v12573_v18 = vld [vmem:[%s21205_s4 + $0x120] ss:$8 sps:$4 sm:$0xff]  }
 0xaa6   :  { %9158 = vmatpush1.bf16.msra.mxu0 %v12573_v18  ;;  %v12600_v18 = vld [vmem:[%s21205_s4 + $0x1b0] ss:$8 sps:$4 sm:$0xff]  }
 0xaa7   :  { %v11314_v21 = vpop.f32.mrb[172].mxu0  ;;  %9159 = vmatprep.subr.bf16.mxu0 %v12578_v58 }
 0xaa8   :  { %v11315_v25 = vpop.f32.mrb[173].mxu0 }
 0xaa9   :  { %v11316_v63 = vadd.f32 %v11315_v25, %v11314_v21  ;;  %v11317_v60 = vpop.f32.mrb[174].mxu0  ;;  %v12602_v21 = vld [vmem:[%s21205_s4 + $0x1b4] ss:$8 sps:$4 sm:$0xff]  }
 0xaaa   :  { %v11318_v46 = vpop.f32.mrb[175].mxu0  ;;  %9160 = vmatpush1.bf16.msra.mxu0 %v12576_v23 }
 0xaab   :  { %v11319_v27 = vadd.f32 %v11318_v46, %v11317_v60  ;;  %v20421_v45 = vadd.f32 %v11316_v63, %v20345_v19  ;;  %v12579_v19 = vld [vmem:[%s21205_s4 + $0x140] ss:$8 sps:$4 sm:$0xff]   ;;  %9161 = vmatprep.subr.bf16.mxu0 %v12581_v24  ;;  %v12605_v46 = vld [vmem:[%s21205_s4 + $0x1c4] ss:$8 sps:$4 sm:$0xff]  }
 0xaac   :  { %v12603_v24 = vld [vmem:[%s21205_s4 + $0x1c0] ss:$8 sps:$4 sm:$0xff]  }
 0xaad   :  { %v20424_v56 = vadd.f32 %v11319_v27, %v20348_v11 }
 0xaae   :  { %9162 = vmatpush1.bf16.msra.mxu0 %v12579_v19 }
 0xaaf   :  { %v11320_v51 = vpop.f32.mrb[176].mxu0  ;;  %9163 = vmatprep.subr.bf16.mxu0 %v12584_v6 }
 0xab0   :  { %v11321_v61 = vpop.f32.mrb[177].mxu0 }
 0xab1   :  { %v11322_v7 = vadd.f32 %v11321_v61, %v11320_v51  ;;  %v11323_v16 = vpop.f32.mrb[178].mxu0 }
 0xab2   :  { %v11324_v11 = vpop.f32.mrb[179].mxu0  ;;  %9164 = vmatpush1.bf16.msra.mxu0 %v12582_v14 }
 0xab3   :  { %v11325_v8 = vadd.f32 %v11324_v11, %v11323_v16  ;;  %v20439_v31 = vadd.f32 %v11322_v7, %v20357_v35  ;;  %v12585_v35 = vld [vmem:[%s21205_s4 + $0x160] ss:$8 sps:$4 sm:$0xff]   ;;  %9165 = vmatprep.subr.bf16.mxu0 %v12587_v62 }
 0xab5   :  { %v20442_v41 = vadd.f32 %v11325_v8, %v20361_v44 }
 0xab6   :  { %9166 = vmatpush1.bf16.msra.mxu0 %v12585_v35 }
 0xab7   :  { %v11326_v55 = vpop.f32.mrb[180].mxu0  ;;  %9167 = vmatprep.subr.bf16.mxu0 %v12590_v37  ;;  %v12609_v37 = vld [vmem:[%s21205_s4 + $0x1e0] ss:$8 sps:$4 sm:$0xff]  }
 0xab8   :  { %v11327_v49 = vpop.f32.mrb[181].mxu0 }
 0xab9   :  { %v11328_v50 = vadd.f32 %v11327_v49, %v11326_v55  ;;  %v11329_v9 = vpop.f32.mrb[182].mxu0 }
 0xaba   :  { %v11330_v44 = vpop.f32.mrb[183].mxu0  ;;  %9168 = vmatpush1.bf16.msra.mxu0 %v12588_v52  ;;  %v12614_v52 = vld [vmem:[%s21205_s4 + $0x1f4] ss:$8 sps:$4 sm:$0xff]  }
 0xabb   :  { %v11331_v20 = vadd.f32 %v11330_v44, %v11329_v9  ;;  %v20457_v1 = vadd.f32 %v11328_v50, %v20364_v12  ;;  %v12591_v12 = vld [vmem:[%s21205_s4 + $0x180] ss:$8 sps:$4 sm:$0xff]   ;;  %9169 = vmatprep.subr.bf16.mxu0 %v12593_v32 }
 0xabd   :  { %v20460_v53 = vadd.f32 %v11331_v20, %v20367_v13 }
 0xabe   :  { %9170 = vmatpush1.bf16.msra.mxu0 %v12591_v12  ;;  %v12612_v12 = vld [vmem:[%s21205_s4 + $0x1f0] ss:$8 sps:$4 sm:$0xff]  }
 0xabf   :  { %v11332_v17 = vpop.f32.mrb[184].mxu0  ;;  %9171 = vmatprep.subr.bf16.mxu0 %v12596_v42 }
 0xac0   :  { %v11333_v54 = vpop.f32.mrb[185].mxu0 }
 0xac1   :  { %v11334_v48 = vadd.f32 %v11333_v54, %v11332_v17  ;;  %v11335_v36 = vpop.f32.mrb[186].mxu0 }
 0xac2   :  { %v11336_v13 = vpop.f32.mrb[187].mxu0  ;;  %9172 = vmatpush1.bf16.msra.mxu0 %v12594_v22 }
 0xac3   :  { %v11337_v0 = vadd.f32 %v11336_v13, %v11335_v36  ;;  %v20475_v30 = vadd.f32 %v11334_v48, %v20370_v34  ;;  %v12597_v34 = vld [vmem:[%s21205_s4 + $0x1a0] ss:$8 sps:$4 sm:$0xff]   ;;  %9173 = vmatprep.subr.bf16.mxu0 %v12599_v59  ;;  %v12617_v13 = vld [vmem:[%s21205_s4 + $0x204] ss:$8 sps:$4 sm:$0xff]  }
 0xac5   :  { %v20478_v10 = vadd.f32 %v11337_v0, %v20373_v33 }
 0xac6   :  { %9174 = vmatpush1.bf16.msra.mxu0 %v12597_v34 }
 0xac7   :  { %v11338_v38 = vpop.f32.mrb[188].mxu0  ;;  %9175 = vmatprep.subr.bf16.mxu0 %v12602_v21 }
 0xac8   :  { %v11339_v29 = vpop.f32.mrb[189].mxu0 }
 0xac9   :  { %v11340_v39 = vadd.f32 %v11339_v29, %v11338_v38  ;;  %v11341_v5 = vpop.f32.mrb[190].mxu0 }
 0xaca   :  { %v11342_v33 = vpop.f32.mrb[191].mxu0  ;;  %9176 = vmatpush1.bf16.msra.mxu0 %v12600_v18 }
 0xacb   :  { %v11343_v25 = vadd.f32 %v11342_v33, %v11341_v5  ;;  %v20493_v63 = vadd.f32 %v11340_v39, %v20376_v47  ;;  %9177 = vmatprep.subr.bf16.mxu0 %v12605_v46 }
 0xacd   :  { %v20496_v60 = vadd.f32 %v11343_v25, %v20379_v28 }
 0xace   :  { %9178 = vmatpush1.bf16.msra.mxu0 %v12603_v24 }
 0xacf   :  { %v11804_v58 = vpop.f32.mrb[192].mxu0 }
 0xad0   :  { %v20505_v27 = vadd.f32 %v11804_v58, %v20388_v3  ;;  %v8018_v23 = vpop.f32.mrb[193].mxu0  ;;  %v12608_v3 = vld [vmem:[%s21205_s4 + $0x1d4] ss:$8 sps:$4 sm:$0xff]  }
 0xad1   :  { %v20508_v47 = vadd.f32 %v8018_v23, %v20382_v26  ;;  %v11805_v28 = vpop.f32.mrb[194].mxu0  ;;  %9179 = vmatprep.subr.bf16.mxu0 %v12608_v3 }
 0xad2   :  { %v20514_v51 = vadd.f32 %v11805_v28, %v20391_v4  ;;  %v8021_v61 = vpop.f32.mrb[195].mxu0  ;;  %v12606_v4 = vld [vmem:[%s21205_s4 + $0x1d0] ss:$8 sps:$4 sm:$0xff]   ;;  %v8106_v11 = vmul.f32 %v20505_v27, %v20505_v27 }
 0xad3   :  { %v20520_v7 = vadd.f32 %v8021_v61, %v20385_v15  ;;  %v8104_v26 = vmul.f32 %v20508_v47, %v20508_v47  ;;  %v12611_v15 = vld [vmem:[%s21205_s4 + $0x1e4] ss:$8 sps:$4 sm:$0xff]   ;;  %9180 = vmatpush1.bf16.msra.mxu0 %v12606_v4 }
 0xad4   :  { %v8107_v49 = vmul.f32 %v20514_v51, %v20514_v51  ;;  %9181 = vmatprep.subr.bf16.mxu0 %v12611_v15 }
 0xad5   :  { %v8082_v16 = vadd.f32 %v20520_v7, %v20508_v47  ;;  %v8105_v19 = vmul.f32 %v20520_v7, %v20520_v7 }
 0xad7   :  { %v8083_v6 = vadd.f32 %v8082_v16, %v20505_v27  ;;  %v8120_v8 = vadd.f32 %v8105_v19, %v8104_v26  ;;  %v11808_v14 = vpop.f32.mrb[196].mxu0  ;;  %9182 = vmatpush1.bf16.msra.mxu0 %v12609_v37 }
 0xad8   :  { %v20538_v62 = vadd.f32 %v11808_v14, %v20421_v45  ;;  %v8034_v55 = vpop.f32.mrb[197].mxu0  ;;  %9183 = vmatprep.subr.bf16.mxu0 %v12614_v52 }
 0xad9   :  { %v8121_v50 = vadd.f32 %v8120_v8, %v8106_v11  ;;  %v20543_v9 = vadd.f32 %v8034_v55, %v20400_v43  ;;  %v8084_v35 = vadd.f32 %v8083_v6, %v20514_v51  ;;  %v11809_v44 = vpop.f32.mrb[198].mxu0 }
 0xada   :  { %v20550_v20 = vadd.f32 %v11809_v44, %v20424_v56  ;;  %v8037_v45 = vpop.f32.mrb[199].mxu0 }
 0xadb   :  { %v8085_v43 = vadd.f32 %v8084_v35, %v20543_v9  ;;  %v8108_v32 = vmul.f32 %v20543_v9, %v20543_v9  ;;  %v8122_v17 = vadd.f32 %v8121_v50, %v8107_v49  ;;  %v20559_v54 = vadd.f32 %v8037_v45, %v20406_v57  ;;  %9184 = vmatpush1.bf16.msra.mxu0 %v12612_v12 }
 0xadc   :  { %v8110_v57 = vmul.f32 %v20538_v62, %v20538_v62  ;;  %v8111_v29 = vmul.f32 %v20550_v20, %v20550_v20  ;;  %9206 = vmatprep.subr.bf16.mxu0 %v12617_v13 }
 0xadd   :  { %v8123_v48 = vadd.f32 %v8122_v17, %v8108_v32  ;;  %v8086_v36 = vadd.f32 %v8085_v43, %v20559_v54  ;;  %v8109_v56 = vmul.f32 %v20559_v54, %v20559_v54 }
 0xadf   :  { %v8087_v42 = vadd.f32 %v8086_v36, %v20538_v62  ;;  %v8124_v0 = vadd.f32 %v8123_v48, %v8109_v56  ;;  %v11812_v22 = vpop.f32.mrb[200].mxu0 }
 0xae0   :  { %v20574_v59 = vadd.f32 %v11812_v22, %v20457_v1  ;;  %v8050_v38 = vpop.f32.mrb[201].mxu0 }
 0xae1   :  { %v8125_v39 = vadd.f32 %v8124_v0, %v8110_v57  ;;  %v20579_v5 = vadd.f32 %v8050_v38, %v20439_v31  ;;  %v8088_v34 = vadd.f32 %v8087_v42, %v20550_v20  ;;  %v11813_v33 = vpop.f32.mrb[202].mxu0 }
 0xae2   :  { %v20583_v21 = vadd.f32 %v11813_v33, %v20460_v53  ;;  %v8053_v25 = vpop.f32.mrb[203].mxu0  ;;  %v8114_v24 = vmul.f32 %v20574_v59, %v20574_v59 }
 0xae3   :  { %v8089_v1 = vadd.f32 %v8088_v34, %v20579_v5  ;;  %v8112_v18 = vmul.f32 %v20579_v5, %v20579_v5  ;;  %v8126_v46 = vadd.f32 %v8125_v39, %v8111_v29  ;;  %v8054_v58 = vadd.f32 %v8053_v25, %v20442_v41 }
 0xae4   :  { %v8115_v19 = vmul.f32 %v20583_v21, %v20583_v21 }
 0xae5   :  { %v8127_v23 = vadd.f32 %v8126_v46, %v8112_v18  ;;  %v8090_v31 = vadd.f32 %v8089_v1, %v8054_v58  ;;  %v8113_v28 = vmul.f32 %v8054_v58, %v8054_v58  ;;  %v8081_v1 = vld [vmem:[#allocation7] sm:$0x3] }
 0xae7   :  { %v8091_v61 = vadd.f32 %v8090_v31, %v20574_v59  ;;  %v8128_v53 = vadd.f32 %v8127_v23, %v8113_v28  ;;  %v11816_v3 = vpop.f32.mrb[204].mxu0  ;;  %v23478_v31 = vld [vmem:[#allocation222_spill] sm:$0xff] }
 0xae8   :  { %v20593_v26 = vadd.f32 %v11816_v3, %v20493_v63  ;;  %v8066_v16 = vpop.f32.mrb[205].mxu0 }
 0xae9   :  { %v8129_v4 = vadd.f32 %v8128_v53, %v8114_v24  ;;  %v20598_v41 = vadd.f32 %v8066_v16, %v20475_v30  ;;  %v8092_v15 = vadd.f32 %v8091_v61, %v20583_v21  ;;  %v11817_v11 = vpop.f32.mrb[206].mxu0 }
 0xaea   :  { %v8078_v6 = vadd.f32 %v11817_v11, %v20496_v60  ;;  %v8069_v8 = vpop.f32.mrb[207].mxu0  ;;  %v8118_v30 = vmul.f32 %v20593_v26, %v20593_v26 }
 0xaeb   :  { %v8093_v14 = vadd.f32 %v8092_v15, %v20598_v41  ;;  %v8116_v63 = vmul.f32 %v20598_v41, %v20598_v41  ;;  %v8130_v55 = vadd.f32 %v8129_v4, %v8115_v19  ;;  %v8070_v49 = vadd.f32 %v8069_v8, %v20478_v10 }
 0xaec   :  { %v8119_v52 = vmul.f32 %v8078_v6, %v8078_v6 }
 0xaed   :  { %v8131_v50 = vadd.f32 %v8130_v55, %v8116_v63  ;;  %v8094_v35 = vadd.f32 %v8093_v14, %v8070_v49  ;;  %v8117_v44 = vmul.f32 %v8070_v49, %v8070_v49  ;;  %v23479_v55 = vld [vmem:[#allocation224_spill] sm:$0xff] }
 0xaef   :  { %v8095_v37 = vadd.f32 %v8094_v35, %v20593_v26  ;;  %v8132_v45 = vadd.f32 %v8131_v50, %v8117_v44 }
 0xaf1   :  { %v8096_v60 = vadd.f32 %v8095_v37, %v8078_v6  ;;  %v8133_v43 = vadd.f32 %v8132_v45, %v8118_v30 }
 0xaf3   :  { %v8097_v32 = vrot.slane %v8096_v60, 4  ;;  %v8134_v17 = vadd.f32 %v8133_v43, %v8119_v52 }
 0xaf5   :  { %v8098_v48 = vadd.f32 %v8097_v32, %v8096_v60  ;;  %v8135_v36 = vrot.slane %v8134_v17, 4  ;;  %v23480_v32 = vld [vmem:[#allocation225_spill] sm:$0xff] }
 0xaf7   :  { %v8099_v56 = vrot.slane %v8098_v48, 2  ;;  %v8136_v12 = vadd.f32 %v8135_v36, %v8134_v17 }
 0xaf9   :  { %v8100_v13 = vadd.f32 %v8099_v56, %v8098_v48  ;;  %v8137_v10 = vrot.slane %v8136_v12, 2 }
 0xafb   :  { %v8101_v57 = vrot.slane %v8100_v13, 1  ;;  %v8138_v42 = vadd.f32 %v8137_v10, %v8136_v12 }
 0xafd   :  { %v8102_v0 = vadd.f32 %v8101_v57, %v8100_v13  ;;  %v8139_v22 = vrot.slane %v8138_v42, 1 }
 0xaff   :  { %v8103_v38 = vmul.f32 0.03125, %v8102_v0  ;;  %v8140_v29 = vadd.f32 %v8139_v22, %v8138_v42 }
 0xb01   :  { %v8141_v39 = vmul.f32 0.03125, %v8140_v29  ;;  %v8142_v34 = vmul.f32 %v8103_v38, %v8103_v38 }
 0xb03   :  { %v8143_v33 = vsub.f32 %v8141_v39, %v8142_v34 }
 0xb05   :  { %v8144_v25 = vadd.f32 1e-05, %v8143_v33 }
 0xb07   :  { %12803 = vrsqrt.f32 %v8144_v25 }
 0xb11   :  { %v12804_v18 = vpop.eup %12803 }
 0xb12   :  { %v8146_v46 = vmul.f32 %v12804_v18, %v8081_v1 }
 0xb14   :  { %v8147_v23 = vmul.f32 %v8146_v46, %v8103_v38  ;;  %v8155_v28 = vrot.slane %v8146_v46, %v23478_v31 }
 0xb16   :  { %v8149_v24 = vrot.slane %v8147_v23, 7  ;;  %v8169_v61 = vmul.f32 %v8155_v28, %v8070_v49  ;;  %v8171_v53 = vmul.f32 %v8155_v28, %v8078_v6  ;;  %v8160_v3 = vmul.f32 %v8155_v28, %v20543_v9 }
 0xb17   :  { %v8162_v16 = vmul.f32 %v8155_v28, %v20538_v62  ;;  %v8161_v19 = vmul.f32 %v8155_v28, %v20559_v54  ;;  %v8165_v4 = vmul.f32 %v8155_v28, %v8054_v58  ;;  %v8163_v11 = vmul.f32 %v8155_v28, %v20550_v20 }
 0xb18   :  { %v8151_v15 = vsub.f32 %v8081_v1, %v8149_v24  ;;  %v8167_v8 = vmul.f32 %v8155_v28, %v20583_v21  ;;  %v8164_v14 = vmul.f32 %v8155_v28, %v20579_v5  ;;  %v8166_v63 = vmul.f32 %v8155_v28, %v20574_v59 }
 0xb19   :  { %v8157_v6 = vmul.f32 %v8155_v28, %v20520_v7  ;;  %v8159_v9 = vmul.f32 %v8155_v28, %v20514_v51  ;;  %v8156_v13 = vmul.f32 %v8155_v28, %v20508_v47  ;;  %v8158_v0 = vmul.f32 %v8155_v28, %v20505_v27 }
 0xb1a   :  { %v8175_v50 = vrot.slane %v8151_v15, %v23479_v55  ;;  %v8168_v18 = vmul.f32 %v8155_v28, %v20598_v41  ;;  %v8170_v46 = vmul.f32 %v8155_v28, %v20593_v26  ;;  %v12615_v28 = vld [vmem:[%s21205_s4 + $0x200] ss:$8 sps:$4 sm:$0xff]  }
 0xb1c   :  { %v8189_v49 = vadd.f32 %v8175_v50, %v8169_v61  ;;  %v8191_v62 = vadd.f32 %v8175_v50, %v8171_v53  ;;  %v8180_v35 = vadd.f32 %v8175_v50, %v8160_v3  ;;  %v8182_v54 = vadd.f32 %v8175_v50, %v8162_v16 }
 0xb1d   :  { %v8181_v58 = vadd.f32 %v8175_v50, %v8161_v19  ;;  %v8177_v44 = vadd.f32 %v8175_v50, %v8157_v6  ;;  %v8185_v30 = vadd.f32 %v8175_v50, %v8165_v4  ;;  %v8183_v20 = vadd.f32 %v8175_v50, %v8163_v11 }
 0xb1e   :  { %v8205_v37 = vmax.f32 %v8189_v49, 0.0  ;;  %v8207_v21 = vmax.f32 %v8191_v62, 0.0  ;;  %v8196_v45 = vmax.f32 %v8180_v35, 0.0  ;;  %v8198_v5 = vmax.f32 %v8182_v54, 0.0 }
 0xb1f   :  { %v8197_v52 = vmax.f32 %v8181_v58, 0.0  ;;  %v8193_v59 = vmax.f32 %v8177_v44, 0.0  ;;  %v8201_v60 = vmax.f32 %v8185_v30, 0.0  ;;  %v8199_v43 = vmax.f32 %v8183_v20, 0.0  ;;  %v12623_v30 = vld [vmem:[%s21205_s4 + $0x224] ss:$8 sps:$4 sm:$0xff]  }
 0xb20   :  { %v20621_v7 = vmul.f32 %v23480_v32, %v8205_v37  ;;  %v20624_v51 = vmul.f32 %v23480_v32, %v8207_v21  ;;  %v8212_v17 = vmul.f32 %v23480_v32, %v8196_v45  ;;  %v8214_v48 = vmul.f32 %v23480_v32, %v8198_v5  ;;  %v12621_v20 = vld [vmem:[%s21205_s4 + $0x220] ss:$8 sps:$4 sm:$0xff]   ;;  %v12626_v37 = vld [vmem:[%s21205_s4 + $0x234] ss:$8 sps:$4 sm:$0xff]   ;;  %v12624_v21 = vld [vmem:[%s21205_s4 + $0x230] ss:$8 sps:$4 sm:$0xff]  }
 0xb21   :  { %v8213_v36 = vmul.f32 %v23480_v32, %v8197_v52  ;;  %v8209_v56 = vmul.f32 %v23480_v32, %v8193_v59  ;;  %v8215_v12 = vmul.f32 %v23480_v32, %v8199_v43  ;;  %v8179_v42 = vadd.f32 %v8175_v50, %v8159_v9  ;;  %v12620_v9 = vld [vmem:[%s21205_s4 + $0x214] ss:$8 sps:$4 sm:$0xff]   ;;  %v12629_v45 = vld [vmem:[%s21205_s4 + $0x244] ss:$8 sps:$4 sm:$0xff]   ;;  %v12627_v5 = vld [vmem:[%s21205_s4 + $0x240] ss:$8 sps:$4 sm:$0xff]  }
 0xb22   :  { %v8235_v10 = vpack.c.bf16 %v20624_v51, %v20621_v7  ;;  %v20634_v57 = vpack.c.bf16 %v8214_v48, %v8212_v17  ;;  %v20642_v29 = vmul.f32 %v23480_v32, %v8201_v60  ;;  %v8176_v34 = vadd.f32 %v8175_v50, %v8156_v13  ;;  %v12632_v52 = vld [vmem:[%s21205_s4 + $0x254] ss:$8 sps:$4 sm:$0xff]   ;;  %v12630_v59 = vld [vmem:[%s21205_s4 + $0x250] ss:$8 sps:$4 sm:$0xff]   ;;  %v12635_v60 = vld [vmem:[%s21205_s4 + $0x264] ss:$8 sps:$4 sm:$0xff]  }
 0xb23   :  { %v20638_v22 = vpack.c.bf16 %v8213_v36, %v23406_v40  ;;  %v8227_v38 = vpack.c.bf16 %v8209_v56, %v23406_v40  ;;  %v20644_v39 = vpack.c.bf16 %v8215_v12, %v8213_v36  ;;  %v8195_v47 = vmax.f32 %v8179_v42, 0.0  ;;  %v12633_v43 = vld [vmem:[%s21205_s4 + $0x260] ss:$8 sps:$4 sm:$0xff]   ;;  %v12636_v17 = vld [vmem:[%s21205_s4 + $0x270] ss:$8 sps:$4 sm:$0xff]  }
 0xb24   :  { %9142 = vmatprep.mubr.bf16.mxu0 %v20634_v57  ;;  %v8178_v33 = vadd.f32 %v8175_v50, %v8158_v0  ;;  %v8187_v25 = vadd.f32 %v8175_v50, %v8167_v8  ;;  %v8184_v1 = vadd.f32 %v8175_v50, %v8164_v14  ;;  %v8186_v27 = vadd.f32 %v8175_v50, %v8166_v63  ;;  %v12641_v48 = vld [vmem:[%s21205_s4 + $0x284] ss:$8 sps:$4 sm:$0xff]   ;;  %v12639_v36 = vld [vmem:[%s21205_s4 + $0x280] ss:$8 sps:$4 sm:$0xff]   ;;  %v12642_v12 = vld [vmem:[%s21205_s4 + $0x290] ss:$8 sps:$4 sm:$0xff]  }
 0xb25   :  { %9143 = vmatmul.mubr.bf16.gmra.mrb[212].mxu0 %v20638_v22  ;;  %v8211_v23 = vmul.f32 %v23480_v32, %v8195_v47  ;;  %v8192_v24 = vmax.f32 %v8176_v34, 0.0  ;;  %v8188_v63 = vadd.f32 %v8175_v50, %v8168_v18  ;;  %v8190_v6 = vadd.f32 %v8175_v50, %v8170_v46  ;;  %v12618_v50 = vld [vmem:[%s21205_s4 + $0x210] ss:$8 sps:$4 sm:$0xff]   ;;  %v12647_v13 = vld [vmem:[%s21205_s4 + $0x2a4] ss:$8 sps:$4 sm:$0xff]  }
 0xb26   :  { %9185 = vmatprep.mubr.bf16.mxu0 %v8227_v38  ;;  %v8194_v61 = vmax.f32 %v8178_v33, 0.0  ;;  %v8203_v53 = vmax.f32 %v8187_v25, 0.0  ;;  %v8200_v3 = vmax.f32 %v8184_v1, 0.0  ;;  %v8202_v16 = vmax.f32 %v8186_v27, 0.0  ;;  %v12645_v42 = vld [vmem:[%s21205_s4 + $0x2a0] ss:$8 sps:$4 sm:$0xff]  }
 0xb27   :  { %v8231_v19 = vpack.c.bf16 %v8211_v23, %v8209_v56  ;;  %v20652_v4 = vmul.f32 %v23480_v32, %v8192_v24  ;;  %v8228_v62 = vpack.c.bf16 %v20642_v29, %v23406_v40  ;;  %v8204_v35 = vmax.f32 %v8188_v63, 0.0  ;;  %v12644_v56 = vld [vmem:[%s21205_s4 + $0x294] ss:$8 sps:$4 sm:$0xff]   ;;  %v12735_v38 = vld [vmem:[%s21210_s9 + $0xc0] sm:$0xff]   ;;  %v12737_v34 = vld [vmem:[%s21210_s9 + $0xc8] sm:$0xff]  }
 0xb28   :  { %v20655_v15 = vmul.f32 %v23480_v32, %v8194_v61  ;;  %v20658_v11 = vmul.f32 %v23480_v32, %v8203_v53  ;;  %v20661_v26 = vmul.f32 %v23480_v32, %v8200_v3  ;;  %v20664_v41 = vmul.f32 %v23480_v32, %v8202_v16  ;;  %v12650_v0 = vld [vmem:[%s21205_s4 + $0x2b4] ss:$8 sps:$4 sm:$0xff]   ;;  %v12736_v47 = vld [vmem:[%s21210_s9 + $0x80] sm:$0xff]   ;;  %v12648_v33 = vld [vmem:[%s21205_s4 + $0x2b0] ss:$8 sps:$4 sm:$0xff]   ;;  %11360 = vmatprep.subr.bf16.mxu1 %v12735_v38 }
 0xb29   :  { %v8206_v54 = vmax.f32 %v8190_v6, 0.0  ;;  %v20685_v58 = vmul.f32 %v23480_v32, %v8204_v35  ;;  %v12653_v25 = vld [vmem:[%s21205_s4 + $0x2c4] ss:$8 sps:$4 sm:$0xff]   ;;  %11361 = vmatpush3.bf16.msra.mxu1 %v12736_v47  ;;  %v12739_v27 = vld [vmem:[%s21210_s9 + $0xd0] sm:$0xff]   ;;  %v12651_v18 = vld [vmem:[%s21205_s4 + $0x2c0] ss:$8 sps:$4 sm:$0xff]  }
 0xb2a   :  { %v8229_v8 = vpack.c.bf16 %v20655_v15, %v20652_v4  ;;  %v8232_v14 = vpack.c.bf16 %v20658_v11, %v20642_v29  ;;  %v8230_v49 = vpack.c.bf16 %v20664_v41, %v20661_v26  ;;  %v12738_v1 = vld [vmem:[%s21210_s9 + $0x88] sm:$0xff]   ;;  %11362 = vmatprep.subr.bf16.mxu1 %v12737_v34  ;;  %v12656_v46 = vld [vmem:[%s21205_s4 + $0x2d4] ss:$8 sps:$4 sm:$0xff]   ;;  %v12654_v61 = vld [vmem:[%s21205_s4 + $0x2d0] ss:$8 sps:$4 sm:$0xff]  }
 0xb2b   :  { %v20688_v44 = vmul.f32 %v23480_v32, %v8206_v54  ;;  %v12638_v32 = vld [vmem:[%s21205_s4 + $0x274] ss:$8 sps:$4 sm:$0xff]   ;;  %v12659_v53 = vld [vmem:[%s21205_s4 + $0x2e4] ss:$8 sps:$4 sm:$0xff]   ;;  %v12663_v54 = vld [vmem:[%s21205_s4 + $0x300] ss:$8 sps:$4 sm:$0xff]  }
 0xb2c   :  { %v12740_v23 = vld [vmem:[%s21210_s9 + $0x90] sm:$0xff]   ;;  %v12741_v24 = vld [vmem:[%s21210_s9 + $0xd8] sm:$0xff]   ;;  %v12743_v16 = vld [vmem:[%s21210_s9 + $0xe0] sm:$0xff]  }
 0xb2d   :  { %9186 = vmatmul.mubr.bf16.vlgmr.msra.gmra.mrb[208].mxu0 %v23477_v2  ;;  %v8234_v2 = vpack.c.bf16 %v20688_v44, %v20685_v58  ;;  %11363 = vmatpush3.bf16.msra.mxu1 %v12738_v1  ;;  %v12742_v3 = vld [vmem:[%s21210_s9 + $0x98] sm:$0xff]   ;;  %v12744_v63 = vld [vmem:[%s21210_s9 + $0xa0] sm:$0xff]   ;;  %v12745_v6 = vld [vmem:[%s21210_s9 + $0xe8] sm:$0xff]  }
 0xb2e   :  { %9207 = vmatpush1.bf16.msra.mxu0 %v12615_v28  ;;  %9195 = vmatprep.mubr.bf16.mxu0 %v8228_v62  ;;  %v12662_v28 = vld [vmem:[%s21205_s4 + $0x2f4] ss:$8 sps:$4 sm:$0xff]   ;;  %v12665_v62 = vld [vmem:[%s21205_s4 + $0x304] ss:$8 sps:$4 sm:$0xff]   ;;  %v12669_v4 = vld [vmem:[%s21205_s4 + $0x320] ss:$8 sps:$4 sm:$0xff]  }
 0xb2f   :  { %9208 = vmatprep.subr.bf16.mxu0 %v12620_v9  ;;  %11364 = vmatprep.subr.bf16.mxu1 %v12739_v27  ;;  %v12660_v9 = vld [vmem:[%s21205_s4 + $0x2f0] ss:$8 sps:$4 sm:$0xff]   ;;  %v12746_v35 = vld [vmem:[%s21210_s9 + $0xa8] sm:$0xff]   ;;  %v12674_v29 = vld [vmem:[%s21205_s4 + $0x334] ss:$8 sps:$4 sm:$0xff]  }
 0xb30   :  { %v12672_v15 = vld [vmem:[%s21205_s4 + $0x330] ss:$8 sps:$4 sm:$0xff]   ;;  %v12677_v11 = vld [vmem:[%s21205_s4 + $0x344] ss:$8 sps:$4 sm:$0xff]   ;;  %v12680_v26 = vld [vmem:[%s21205_s4 + $0x354] ss:$8 sps:$4 sm:$0xff]  }
 0xb31   :  { %11365 = vmatpush3.bf16.msra.mxu1 %v12740_v23  ;;  %v12683_v41 = vld [vmem:[%s21205_s4 + $0x364] ss:$8 sps:$4 sm:$0xff]   ;;  %v12711_v47 = vld [vmem:[%s21205_s4 + $0x400] ss:$8 sps:$4 sm:$0xff]   ;;  %v12716_v34 = vld [vmem:[%s21205_s4 + $0x414] ss:$8 sps:$4 sm:$0xff]  }
 0xb32   :  { %9209 = vmatpush1.bf16.msra.mxu0 %v12618_v50  ;;  %11366 = vmatprep.subr.bf16.mxu1 %v12741_v24  ;;  %v12668_v50 = vld [vmem:[%s21205_s4 + $0x314] ss:$8 sps:$4 sm:$0xff]   ;;  %v12713_v38 = vld [vmem:[%s21205_s4 + $0x404] ss:$8 sps:$4 sm:$0xff]   ;;  %v12717_v1 = vld [vmem:[%s21205_s4 + $0x420] ss:$8 sps:$4 sm:$0xff]  }
 0xb33   :  { %9210 = vmatprep.subr.bf16.mxu0 %v12623_v30  ;;  %v12666_v30 = vld [vmem:[%s21205_s4 + $0x310] ss:$8 sps:$4 sm:$0xff]   ;;  %v12722_v58 = vld [vmem:[%s21205_s4 + $0x434] ss:$8 sps:$4 sm:$0xff]   ;;  %v12725_v27 = vld [vmem:[%s21205_s4 + $0x444] ss:$8 sps:$4 sm:$0xff]  }
 0xb34   :  { %v12720_v44 = vld [vmem:[%s21205_s4 + $0x430] ss:$8 sps:$4 sm:$0xff]   ;;  %v12731_v23 = vld [vmem:[%s21205_s4 + $0x464] ss:$8 sps:$4 sm:$0xff]   ;;  %v12729_v24 = vld [vmem:[%s21205_s4 + $0x460] ss:$8 sps:$4 sm:$0xff]  }
 0xb35   :  { %9196 = vmatmul.mubr.bf16.gmra.mrb[212].mxu0 %v20644_v39  ;;  %11367 = vmatpush3.bf16.msra.mxu1 %v12742_v3  ;;  %v12747_v3 = vld [vmem:[%s21210_s9 + $0xf0] sm:$0xff]  }
 0xb36   :  { %9211 = vmatpush1.bf16.msra.mxu0 %v12621_v20  ;;  %9238 = vmatprep.mubr.bf16.mxu0 %v8231_v19  ;;  %v12657_v19 = vld [vmem:[%s21205_s4 + $0x2e0] ss:$8 sps:$4 sm:$0xff]   ;;  %v12671_v20 = vld [vmem:[%s21205_s4 + $0x324] ss:$8 sps:$4 sm:$0xff]  }
 0xb37   :  { %9212 = vmatprep.subr.bf16.mxu0 %v12626_v37  ;;  %11368 = vmatprep.subr.bf16.mxu1 %v12743_v16  ;;  %v12684_v37 = vld [vmem:[%s21205_s4 + $0x370] ss:$8 sps:$4 sm:$0xff]  }
 0xb38   :  { %v12748_v16 = vld [vmem:[%s21210_s9 + $0xb0] sm:$0xff]  }
 0xb39   :  { %11369 = vmatpush3.bf16.msra.mxu1 %v12744_v63 }
 0xb3a   :  { %9213 = vmatpush1.bf16.msra.mxu0 %v12624_v21  ;;  %11370 = vmatprep.subr.bf16.mxu1 %v12745_v6  ;;  %v12689_v21 = vld [vmem:[%s21205_s4 + $0x384] ss:$8 sps:$4 sm:$0xff]  }
 0xb3b   :  { %9214 = vmatprep.subr.bf16.mxu0 %v12629_v45  ;;  %v12687_v45 = vld [vmem:[%s21205_s4 + $0x380] ss:$8 sps:$4 sm:$0xff]  }
 0xb3d   :  { %11371 = vmatpush3.bf16.msra.mxu1 %v12746_v35 }
 0xb3e   :  { %9215 = vmatpush1.bf16.msra.mxu0 %v12627_v5  ;;  %v12692_v5 = vld [vmem:[%s21205_s4 + $0x394] ss:$8 sps:$4 sm:$0xff]   ;;  %11372 = vmatprep.subr.bf16.mxu1 %v12747_v3 }
 0xb3f   :  { %9216 = vmatprep.subr.bf16.mxu0 %v12632_v52  ;;  %v12690_v52 = vld [vmem:[%s21205_s4 + $0x390] ss:$8 sps:$4 sm:$0xff]  }
 0xb41   :  { %11373 = vmatpush3.bf16.msra.mxu1 %v12748_v16 }
 0xb42   :  { %9217 = vmatpush1.bf16.msra.mxu0 %v12630_v59  ;;  %v12695_v59 = vld [vmem:[%s21205_s4 + $0x3a4] ss:$8 sps:$4 sm:$0xff]  }
 0xb43   :  { %9218 = vmatprep.subr.bf16.mxu0 %v12635_v60  ;;  %v12693_v60 = vld [vmem:[%s21205_s4 + $0x3a0] ss:$8 sps:$4 sm:$0xff]  }
 0xb46   :  { %9219 = vmatpush1.bf16.msra.mxu0 %v12633_v43  ;;  %v12698_v43 = vld [vmem:[%s21205_s4 + $0x3b4] ss:$8 sps:$4 sm:$0xff]  }
 0xb47   :  { %9220 = vmatprep.subr.bf16.mxu0 %v12638_v32  ;;  %v12696_v32 = vld [vmem:[%s21205_s4 + $0x3b0] ss:$8 sps:$4 sm:$0xff]  }
 0xb4a   :  { %9221 = vmatpush1.bf16.msra.mxu0 %v12636_v17  ;;  %v12701_v17 = vld [vmem:[%s21205_s4 + $0x3c4] ss:$8 sps:$4 sm:$0xff]  }
 0xb4b   :  { %9222 = vmatprep.subr.bf16.mxu0 %v12641_v48  ;;  %v12699_v48 = vld [vmem:[%s21205_s4 + $0x3c0] ss:$8 sps:$4 sm:$0xff]  }
 0xb4e   :  { %9223 = vmatpush1.bf16.msra.mxu0 %v12639_v36  ;;  %v12704_v36 = vld [vmem:[%s21205_s4 + $0x3d4] ss:$8 sps:$4 sm:$0xff]  }
 0xb4f   :  { %9224 = vmatprep.subr.bf16.mxu0 %v12644_v56  ;;  %v12702_v56 = vld [vmem:[%s21205_s4 + $0x3d0] ss:$8 sps:$4 sm:$0xff]  }
 0xb52   :  { %9225 = vmatpush1.bf16.msra.mxu0 %v12642_v12  ;;  %v12707_v12 = vld [vmem:[%s21205_s4 + $0x3e4] ss:$8 sps:$4 sm:$0xff]  }
 0xb53   :  { %9226 = vmatprep.subr.bf16.mxu0 %v12647_v13  ;;  %v12705_v13 = vld [vmem:[%s21205_s4 + $0x3e0] ss:$8 sps:$4 sm:$0xff]  }
 0xb56   :  { %9227 = vmatpush1.bf16.msra.mxu0 %v12645_v42  ;;  %v12710_v42 = vld [vmem:[%s21205_s4 + $0x3f4] ss:$8 sps:$4 sm:$0xff]  }
 0xb57   :  { %9228 = vmatprep.subr.bf16.mxu0 %v12650_v0  ;;  %v12708_v0 = vld [vmem:[%s21205_s4 + $0x3f0] ss:$8 sps:$4 sm:$0xff]  }
 0xb5a   :  { %9229 = vmatpush1.bf16.msra.mxu0 %v12648_v33  ;;  %v12714_v33 = vld [vmem:[%s21205_s4 + $0x410] ss:$8 sps:$4 sm:$0xff]  }
 0xb5b   :  { %9230 = vmatprep.subr.bf16.mxu0 %v12653_v25  ;;  %v12719_v25 = vld [vmem:[%s21205_s4 + $0x424] ss:$8 sps:$4 sm:$0xff]  }
 0xb5e   :  { %9231 = vmatpush1.bf16.msra.mxu0 %v12651_v18  ;;  %v12728_v18 = vld [vmem:[%s21205_s4 + $0x454] ss:$8 sps:$4 sm:$0xff]  }
 0xb5f   :  { %9232 = vmatprep.subr.bf16.mxu0 %v12656_v46  ;;  %v12726_v46 = vld [vmem:[%s21205_s4 + $0x450] ss:$8 sps:$4 sm:$0xff]  }
 0xb62   :  { %9233 = vmatpush1.bf16.msra.mxu0 %v12654_v61  ;;  %v12734_v61 = vld [vmem:[%s21205_s4 + $0x474] ss:$8 sps:$4 sm:$0xff]  }
 0xb63   :  { %9234 = vmatprep.subr.bf16.mxu0 %v12659_v53  ;;  %v12732_v53 = vld [vmem:[%s21205_s4 + $0x470] ss:$8 sps:$4 sm:$0xff]  }
 0xb66   :  { %9235 = vmatpush1.bf16.msra.mxu0 %v12657_v19  ;;  %v12750_v19 = vld [vmem:[%s21210_s9 + $0xb8] sm:$0xff]  }
 0xb67   :  { %9236 = vmatprep.subr.bf16.mxu0 %v12662_v28 }
 0xb6a   :  { %9237 = vmatpush1.bf16.msra.mxu0 %v12660_v9 }
 0xb6b   :  { %9259 = vmatprep.subr.bf16.mxu0 %v12665_v62 }
 0xb6d   :  { %9239 = vmatmul.mubr.bf16.vlgmr.msra.gmra.mrb[208].mxu0 %v8229_v8  ;;  %v12675_v8 = vld [vmem:[%s21205_s4 + $0x340] ss:$8 sps:$4 sm:$0xff]  }
 0xb6e   :  { %9248 = vmatprep.mubr.bf16.mxu0 %v8232_v14  ;;  %9260 = vmatpush1.bf16.msra.mxu0 %v12663_v54  ;;  %v12681_v14 = vld [vmem:[%s21205_s4 + $0x360] ss:$8 sps:$4 sm:$0xff]  }
 0xb6f   :  { %9261 = vmatprep.subr.bf16.mxu0 %v12668_v50 }
 0xb72   :  { %9262 = vmatpush1.bf16.msra.mxu0 %v12666_v30 }
 0xb73   :  { %9263 = vmatprep.subr.bf16.mxu0 %v12671_v20 }
 0xb75   :  { %9249 = vmatmul.mubr.bf16.gmra.mrb[212].mxu0 %v8230_v49  ;;  %v12686_v49 = vld [vmem:[%s21205_s4 + $0x374] ss:$8 sps:$4 sm:$0xff]  }
 0xb76   :  { %9264 = vmatpush1.bf16.msra.mxu0 %v12669_v4  ;;  %9291 = vmatprep.mubr.bf16.mxu0 %v20634_v57  ;;  %v12678_v57 = vld [vmem:[%s21205_s4 + $0x350] ss:$8 sps:$4 sm:$0xff]  }
 0xb77   :  { %9265 = vmatprep.subr.bf16.mxu0 %v12674_v29 }
 0xb7a   :  { %9266 = vmatpush1.bf16.msra.mxu0 %v12672_v15 }
 0xb7b   :  { %9267 = vmatprep.subr.bf16.mxu0 %v12677_v11 }
 0xb7e   :  { %9268 = vmatpush1.bf16.msra.mxu0 %v12675_v8 }
 0xb7f   :  { %9269 = vmatprep.subr.bf16.mxu0 %v12680_v26 }
 0xb82   :  { %9270 = vmatpush1.bf16.msra.mxu0 %v12678_v57 }
 0xb83   :  { %9271 = vmatprep.subr.bf16.mxu0 %v12683_v41 }
 0xb86   :  { %9272 = vmatpush1.bf16.msra.mxu0 %v12681_v14 }
 0xb87   :  { %9273 = vmatprep.subr.bf16.mxu0 %v12686_v49 }
 0xb8a   :  { %9274 = vmatpush1.bf16.msra.mxu0 %v12684_v37 }
 0xb8b   :  { %9275 = vmatprep.subr.bf16.mxu0 %v12689_v21 }
 0xb8e   :  { %9276 = vmatpush1.bf16.msra.mxu0 %v12687_v45 }
 0xb8f   :  { %9277 = vmatprep.subr.bf16.mxu0 %v12692_v5 }
 0xb92   :  { %9278 = vmatpush1.bf16.msra.mxu0 %v12690_v52 }
 0xb93   :  { %9279 = vmatprep.subr.bf16.mxu0 %v12695_v59 }
 0xb96   :  { %9280 = vmatpush1.bf16.msra.mxu0 %v12693_v60 }
 0xb97   :  { %9281 = vmatprep.subr.bf16.mxu0 %v12698_v43 }
 0xb9a   :  { %9282 = vmatpush1.bf16.msra.mxu0 %v12696_v32 }
 0xb9b   :  { %9283 = vmatprep.subr.bf16.mxu0 %v12701_v17 }
 0xb9e   :  { %9284 = vmatpush1.bf16.msra.mxu0 %v12699_v48 }
 0xb9f   :  { %9285 = vmatprep.subr.bf16.mxu0 %v12704_v36 }
 0xba2   :  { %9286 = vmatpush1.bf16.msra.mxu0 %v12702_v56 }
 0xba3   :  { %9287 = vmatprep.subr.bf16.mxu0 %v12707_v12 }
 0xba6   :  { %9288 = vmatpush1.bf16.msra.mxu0 %v12705_v13 }
 0xba7   :  { %9289 = vmatprep.subr.bf16.mxu0 %v12710_v42 }
 0xbaa   :  { %9290 = vmatpush1.bf16.msra.mxu0 %v12708_v0 }
 0xbab   :  { %9312 = vmatprep.subr.bf16.mxu0 %v12713_v38 }
 0xbad   :  { %9292 = vmatmul.mubr.bf16.vlgmr.msra.gmra.mrb[208].mxu0 %v20638_v22  ;;  %v8233_v22 = vpack.c.bf16 %v20621_v7, %v23406_v40  ;;  %v12723_v40 = vld [vmem:[%s21205_s4 + $0x440] ss:$8 sps:$4 sm:$0xff]  }
 0xbae   :  { %9301 = vmatprep.mubr.bf16.mxu0 %v8234_v2  ;;  %9313 = vmatpush1.bf16.msra.mxu0 %v12711_v47  ;;  %v23481_v2 = vmov 0   ;;  %v12751_v7 = vld [vmem:[%s21210_s9 + $0x40] sm:$0xff]  }
 0xbaf   :  { %9314 = vmatprep.subr.bf16.mxu0 %v12716_v34 }
 0xbb2   :  { %9315 = vmatpush1.bf16.msra.mxu0 %v12714_v33 }
 0xbb3   :  { %9316 = vmatprep.subr.bf16.mxu0 %v12719_v25 }
 0xbb5   :  { %9302 = vmatmul.mubr.bf16.gmra.mrb[212].mxu0 %v8233_v22 }
 0xbb6   :  { %9317 = vmatpush1.bf16.msra.mxu0 %v12717_v1  ;;  %9344 = vmatprep.mubr.bf16.mxu0 %v23481_v2 }
 0xbb7   :  { %9318 = vmatprep.subr.bf16.mxu0 %v12722_v58 }
 0xbba   :  { %9319 = vmatpush1.bf16.msra.mxu0 %v12720_v44 }
 0xbbb   :  { %9320 = vmatprep.subr.bf16.mxu0 %v12725_v27 }
 0xbbe   :  { %9321 = vmatpush1.bf16.msra.mxu0 %v12723_v40 }
 0xbbf   :  { %9322 = vmatprep.subr.bf16.mxu0 %v12728_v18 }
 0xbc2   :  { %9323 = vmatpush1.bf16.msra.mxu0 %v12726_v46 }
 0xbc3   :  { %9324 = vmatprep.subr.bf16.mxu0 %v12731_v23 }
 0xbc6   :  { %9325 = vmatpush1.bf16.msra.mxu0 %v12729_v24 }
 0xbc7   :  { %9326 = vmatprep.subr.bf16.mxu0 %v12734_v61 }
 0xbca   :  { %9327 = vmatpush1.bf16.msra.mxu0 %v12732_v53 }
 0xbcd   :  { %9345 = vmatmul.mubr.bf16.vlgmr.msra.gmra.mrb[208].mxu0 %v20644_v39  ;;  %v12749_v39 = vld [vmem:[%s21210_s9 + $0xf8] sm:$0xff]  }
 0xbce   :  { %9354 = vmatprep.mubr.bf16.mxu0 %v23481_v2  ;;  %11374 = vmatprep.subr.bf16.mxu1 %v12749_v39 }
 0xbcf   :  { %11375 = vmatpush3.bf16.msra.mxu1 %v12750_v19 }
 0xbd0   :  { %11382 = vmatprep.subr.bf16.mxu1 %v12751_v7 }
 0xbd5   :  { %9355 = vmatmul.mubr.bf16.gmra.mrb[212].mxu0 %v8235_v10 }
 0xca0   :  { %v20994_v51 = vpop.f32.mrb[208].mxu0 }
 0xca1   :  { %v20996_v10 = vpop.f32.mrb[209].mxu0  ;;  %v9386_v63 = vmul.f32 %v20994_v51, %v20994_v51 }
 0xca2   :  { %v20998_v28 = vpop.f32.mrb[210].mxu0  ;;  %v9387_v35 = vmul.f32 %v20996_v10, %v20996_v10 }
 0xca3   :  { %v9366_v6 = vadd.f32 %v20998_v28, %v20994_v51  ;;  %v9388_v9 = vmul.f32 %v20998_v28, %v20998_v28  ;;  %v21006_v62 = vpop.f32.mrb[211].mxu0 }
 0xca4   :  { %v9375_v54 = vadd.f32 %v21006_v62, %v20996_v10  ;;  %v9389_v50 = vmul.f32 %v21006_v62, %v21006_v62 }
 0xca5   :  { %v9394_v30 = vadd.f32 %v9388_v9, %v9386_v63  ;;  %v12936_v63 = vmov 1983009808  }
 0xca6   :  { %v9403_v20 = vadd.f32 %v9389_v50, %v9387_v35 }
 0xca8   :  { %v21014_v4 = vpop.f32.mrb[212].mxu0 }
 0xca9   :  { %v9367_v29 = vadd.f32 %v9366_v6, %v21014_v4  ;;  %v9390_v15 = vmul.f32 %v21014_v4, %v21014_v4  ;;  %v21019_v11 = vpop.f32.mrb[213].mxu0  ;;  %v9426_v6 = vunpack.c.l.s4 %v12936_v63 }
 0xcaa   :  { %v9376_v8 = vadd.f32 %v9375_v54, %v21019_v11  ;;  %v9391_v26 = vmul.f32 %v21019_v11, %v21019_v11  ;;  %v21024_v57 = vpop.f32.mrb[214].mxu0  ;;  %v23482_v54 = vld [vmem:[#allocation221_spill] sm:$0xff] }
 0xcab   :  { %v9395_v41 = vadd.f32 %v9394_v30, %v9390_v15  ;;  %v9368_v14 = vadd.f32 %v9367_v29, %v21024_v57  ;;  %v9392_v49 = vmul.f32 %v21024_v57, %v21024_v57  ;;  %v9362_v37 = vpop.f32.mrb[215].mxu0  ;;  %v9427_v9 = vunpack.c.0.s8 %v9426_v6  ;;  %v9365_v29 = vld [vmem:[%s21209_s8] sm:$0xf] }
 0xcac   :  { %v9404_v21 = vadd.f32 %v9403_v20, %v9391_v26  ;;  %v9377_v45 = vadd.f32 %v9376_v8, %v9362_v37  ;;  %v9393_v5 = vmul.f32 %v9362_v37, %v9362_v37  ;;  %v9441_v8 = vsub.s32 2, %v23482_v54  ;;  %v12767_v6 = vld [vmem:[%s21210_s9 + $0x140] sm:$0xff]  }
 0xcad   :  { %v9369_v52 = vrot.slane %v9368_v14, 4  ;;  %v9396_v59 = vadd.f32 %v9395_v41, %v9392_v49  ;;  %v9430_v50 = vsub.s32 %v9427_v9, %v23482_v54 }
 0xcae   :  { %v9378_v60 = vrot.slane %v9377_v45, 4  ;;  %v9405_v43 = vadd.f32 %v9404_v21, %v9393_v5 }
 0xcaf   :  { %v9370_v32 = vadd.f32 %v9369_v52, %v9368_v14  ;;  %v9397_v17 = vrot.slane %v9396_v59, 4 }
 0xcb0   :  { %v9379_v48 = vadd.f32 %v9378_v60, %v9377_v45  ;;  %v9406_v36 = vrot.slane %v9405_v43, 4 }
 0xcb1   :  { %v9371_v56 = vrot.slane %v9370_v32, 2  ;;  %v9398_v12 = vadd.f32 %v9397_v17, %v9396_v59 }
 0xcb2   :  { %v9380_v13 = vrot.slane %v9379_v48, 2  ;;  %v9407_v42 = vadd.f32 %v9406_v36, %v9405_v43 }
 0xcb3   :  { %v9372_v0 = vadd.f32 %v9371_v56, %v9370_v32  ;;  %v9399_v38 = vrot.slane %v9398_v12, 2 }
 0xcb4   :  { %v9381_v47 = vadd.f32 %v9380_v13, %v9379_v48  ;;  %v9408_v34 = vrot.slane %v9407_v42, 2 }
 0xcb5   :  { %v9373_v33 = vrot.slane %v9372_v0, 1  ;;  %v9400_v25 = vadd.f32 %v9399_v38, %v9398_v12 }
 0xcb6   :  { %v9382_v1 = vrot.slane %v9381_v47, 1  ;;  %v9409_v22 = vadd.f32 %v9408_v34, %v9407_v42 }
 0xcb7   :  { %v9374_v58 = vadd.f32 %v9373_v33, %v9372_v0  ;;  %v9401_v44 = vrot.slane %v9400_v25, 1 }
 0xcb8   :  { %v9383_v2 = vadd.f32 %v9382_v1, %v9381_v47  ;;  %v9410_v27 = vrot.slane %v9409_v22, 1 }
 0xcb9   :  { %v9384_v40 = vmul.f32 0.125, %v9374_v58  ;;  %v9402_v18 = vadd.f32 %v9401_v44, %v9400_v25  ;;  %v12753_v44 = vld [vmem:[%s21210_s9 + $0x48] sm:$0xff]  }
 0xcba   :  { %v9385_v46 = vmul.f32 0.125, %v9383_v2  ;;  %v9411_v23 = vadd.f32 %v9410_v27, %v9409_v22  ;;  %v12754_v27 = vld [vmem:[%s21210_s9 + $0x8] sm:$0xff]  }
 0xcbb   :  { %v9412_v24 = vmul.f32 0.125, %v9402_v18  ;;  %v9414_v61 = vmul.f32 %v9384_v40, %v9384_v40  ;;  %v12756_v18 = vld [vmem:[%s21210_s9 + $0x10] sm:$0xff]  }
 0xcbc   :  { %v9413_v53 = vmul.f32 0.125, %v9411_v23  ;;  %v9415_v3 = vmul.f32 %v9385_v46, %v9385_v46  ;;  %v12758_v23 = vld [vmem:[%s21210_s9 + $0x18] sm:$0xff]  }
 0xcbd   :  { %v9416_v16 = vsub.f32 %v9412_v24, %v9414_v61  ;;  %v12759_v24 = vld [vmem:[%s21210_s9 + $0x60] sm:$0xff]  }
 0xcbe   :  { %v9417_v39 = vsub.f32 %v9413_v53, %v9415_v3  ;;  %v12760_v61 = vld [vmem:[%s21210_s9 + $0x20] sm:$0xff]   ;;  %v12761_v53 = vld [vmem:[%s21210_s9 + $0x68] sm:$0xff]  }
 0xcbf   :  { %v9418_v19 = vadd.f32 1e-05, %v9416_v16  ;;  %v12762_v3 = vld [vmem:[%s21210_s9 + $0x28] sm:$0xff]   ;;  %v12763_v16 = vld [vmem:[%s21210_s9 + $0x70] sm:$0xff]  }
 0xcc0   :  { %v9419_v7 = vadd.f32 1e-05, %v9417_v39  ;;  %v12764_v39 = vld [vmem:[%s21210_s9 + $0x30] sm:$0xff]  }
 0xcc1   :  { %12805 = vrsqrt.f32 %v9418_v19  ;;  %v12765_v19 = vld [vmem:[%s21210_s9 + $0x78] sm:$0xff]  }
 0xcc2   :  { %12807 = vrsqrt.f32 %v9419_v7  ;;  %v12766_v7 = vld [vmem:[%s21210_s9 + $0x38] sm:$0xff]  }
 0xccb   :  { %v12806_v35 = vpop.eup %12805 }
 0xccc   :  { %v12808_v30 = vpop.eup %12807 }
 0xccd   :  { %v9424_v20 = vcombine.low %v12806_v35, %v12808_v30  ;;  %v12768_v35 = vld [vmem:[%s21210_s9 + $0x100] sm:$0xff]  }
 0xccf   :  { %v9431_v15 = vrot.slane %v9424_v20, %v9430_v50  ;;  %v12770_v20 = vld [vmem:[%s21210_s9 + $0x108] sm:$0xff]  }
 0xcd1   :  { %v9433_v26 = vmul.f32 %v9431_v15, %v9365_v29  ;;  %v12772_v15 = vld [vmem:[%s21210_s9 + $0x110] sm:$0xff]  }
 0xcd3   :  { %v9438_v41 = vrot.slane %v9433_v26, %v23478_v31  ;;  %v9442_v14 = vrot.slane %v9433_v26, %v9441_v8  ;;  %v12773_v8 = vld [vmem:[%s21210_s9 + $0x158] sm:$0xff]  }
 0xcd4   :  { %v12774_v26 = vld [vmem:[%s21210_s9 + $0x118] sm:$0xff]  }
 0xcd5   :  { %v9445_v49 = vmul.f32 %v9438_v41, %v9384_v40  ;;  %v9446_v21 = vmul.f32 %v9442_v14, %v9385_v46  ;;  %v9463_v45 = vrot.slane %v9438_v41, %v23478_v31  ;;  %v9467_v5 = vrot.slane %v9442_v14, %v23478_v31  ;;  %v12755_v40 = vld [vmem:[%s21210_s9 + $0x50] sm:$0xff]   ;;  %v12757_v46 = vld [vmem:[%s21210_s9 + $0x58] sm:$0xff]   ;;  %v12775_v41 = vld [vmem:[%s21210_s9 + $0x160] sm:$0xff]  }
 0xcd6   :  { %v9483_v31 = vsub.s32 3, %v23482_v54  ;;  %v12776_v14 = vld [vmem:[%s21210_s9 + $0x120] sm:$0xff]  }
 0xcd7   :  { %v9449_v52 = vcombine.low %v9445_v49, %v9446_v21  ;;  %v9475_v59 = vmul.f32 %v9467_v5, %v9362_v37  ;;  %v9471_v60 = vmul.f32 %v9467_v5, %v21006_v62  ;;  %v9470_v43 = vmul.f32 %v9463_v45, %v20998_v28  ;;  %v12777_v49 = vld [vmem:[%s21210_s9 + $0x168] sm:$0xff]  }
 0xcd8   :  { %v9469_v32 = vmul.f32 %v9467_v5, %v20996_v10  ;;  %v9468_v17 = vmul.f32 %v9463_v45, %v20994_v51  ;;  %v9473_v48 = vmul.f32 %v9467_v5, %v21019_v11  ;;  %v9472_v36 = vmul.f32 %v9463_v45, %v21014_v4  ;;  %v12778_v21 = vld [vmem:[%s21210_s9 + $0x128] sm:$0xff]   ;;  %v12780_v5 = vld [vmem:[%s21210_s9 + $0x130] sm:$0xff]  }
 0xcd9   :  { %v9456_v56 = vrot.slane %v9449_v52, %v9430_v50  ;;  %v9474_v12 = vmul.f32 %v9463_v45, %v21024_v57  ;;  %v12769_v50 = vld [vmem:[%s21210_s9 + $0x148] sm:$0xff]   ;;  %v12779_v45 = vld [vmem:[%s21210_s9 + $0x170] sm:$0xff]   ;;  %v12781_v52 = vld [vmem:[%s21210_s9 + $0x178] sm:$0xff]  }
 0xcdb   :  { %v9457_v13 = vrot.slane %v9456_v56, 7 }
 0xcdd   :  { %v9459_v42 = vsub.f32 %v9365_v29, %v9457_v13  ;;  %v12771_v29 = vld [vmem:[%s21210_s9 + $0x150] sm:$0xff]  }
 0xcde   :  { %v12787_v13 = vld [vmem:[%s21210_s9 + $0x1d0] sm:$0xff]  }
 0xcdf   :  { %v9480_v37 = vrot.slane %v9459_v42, %v23479_v55  ;;  %v9484_v62 = vrot.slane %v9459_v42, %v9483_v31  ;;  %v12788_v31 = vld [vmem:[%s21210_s9 + $0x190] sm:$0xff]   ;;  %v12789_v42 = vld [vmem:[%s21210_s9 + $0x1d8] sm:$0xff]  }
 0xce1   :  { %v9490_v28 = vrot.slane %v9480_v37, %v23479_v55  ;;  %v9494_v10 = vrot.slane %v9484_v62, %v23479_v55  ;;  %v12752_v55 = vld [vmem:[%s21210_s9] sm:$0xff]   ;;  %v12790_v37 = vld [vmem:[%s21210_s9 + $0x198] sm:$0xff]  }
 0xce2   :  { %v12791_v62 = vld [vmem:[%s21210_s9 + $0x1e0] sm:$0xff]  }
 0xce3   :  { %v21048_v0 = vadd.f32 %v9494_v10, %v9475_v59  ;;  %v9498_v51 = vadd.f32 %v9494_v10, %v9471_v60  ;;  %v9497_v11 = vadd.f32 %v9490_v28, %v9470_v43  ;;  %v9496_v38 = vadd.f32 %v9494_v10, %v9469_v32  ;;  %v12782_v59 = vld [vmem:[%s21210_s9 + $0x138] sm:$0xff]   ;;  %v12783_v43 = vld [vmem:[%s21210_s9 + $0x1c0] sm:$0xff]  }
 0xce4   :  { %v9495_v4 = vadd.f32 %v9490_v28, %v9468_v17  ;;  %v9500_v47 = vadd.f32 %v9494_v10, %v9473_v48  ;;  %v21050_v34 = vadd.f32 %v9490_v28, %v9472_v36  ;;  %v21052_v57 = vadd.f32 %v9490_v28, %v9474_v12  ;;  %v12784_v17 = vld [vmem:[%s21210_s9 + $0x180] sm:$0xff]   ;;  %v12785_v36 = vld [vmem:[%s21210_s9 + $0x1c8] sm:$0xff]  }
 0xce5   :  { %v9506_v33 = vmax.f32 %v9498_v51, 0.0  ;;  %v9505_v25 = vmax.f32 %v9497_v11, 0.0  ;;  %v9504_v1 = vmax.f32 %v9496_v38, 0.0  ;;  %v9510_v32 = vmax.f32 %v21048_v0, 0.0  ;;  %v12786_v12 = vld [vmem:[%s21210_s9 + $0x188] sm:$0xff]   ;;  %v12792_v28 = vld [vmem:[%s21210_s9 + $0x1a0] sm:$0xff]  }
 0xce6   :  { %v9503_v63 = vmax.f32 %v9495_v4, 0.0  ;;  %v9508_v9 = vmax.f32 %v9500_v47, 0.0  ;;  %v9507_v60 = vmax.f32 %v21050_v34, 0.0  ;;  %v12793_v10 = vld [vmem:[%s21210_s9 + $0x1e8] sm:$0xff]   ;;  %v12795_v51 = vld [vmem:[%s21210_s9 + $0x1f0] sm:$0xff]   ;;  %v12797_v38 = vld [vmem:[%s21210_s9 + $0x1f8] sm:$0xff]  }
 0xce7   :  { %v9514_v22 = vpack.c.bf16 %v9506_v33, %v9506_v33  ;;  %v9513_v58 = vpack.c.bf16 %v9505_v25, %v9505_v25  ;;  %v9512_v2 = vpack.c.bf16 %v9504_v1, %v9504_v1  ;;  %v9518_v56 = vpack.c.bf16 %v9510_v32, %v9510_v32  ;;  %v12794_v0 = vld [vmem:[%s21210_s9 + $0x1a8] sm:$0xff]   ;;  %v12796_v11 = vld [vmem:[%s21210_s9 + $0x1b0] sm:$0xff]   ;;  %v12798_v4 = vld [vmem:[%s21210_s9 + $0x1b8] sm:$0xff]  }
 0xce8   :  { %v9511_v54 = vpack.c.bf16 %v9503_v63, %v9503_v63  ;;  %v9516_v30 = vpack.c.bf16 %v9508_v9, %v9508_v9  ;;  %v9515_v48 = vpack.c.bf16 %v9507_v60, %v9507_v60  ;;  %v9509_v47 = vmax.f32 %v21052_v57, 0.0 }
 0xce9   :  { %9712 = vmatprep.mubr.bf16.mxu1 %v9514_v22 }
 0xcea   :  { %9713 = vmatmul.mubr.bf16.vlgmr.msra.gmra.mrb[128].mxu1 %v9513_v58  ;;  %v9517_v34 = vpack.c.bf16 %v9509_v47, %v9509_v47 }
 0xceb   :  { %11383 = vmatpush3.bf16.msra.mxu1 %v12752_v55  ;;  %9848 = vmatprep.mubr.bf16.mxu1 %v9512_v2 }
 0xcec   :  { %11384 = vmatprep.subr.bf16.mxu1 %v12753_v44 }
 0xcef   :  { %11385 = vmatpush3.bf16.msra.mxu1 %v12754_v27 }
 0xcf0   :  { %11386 = vmatprep.subr.bf16.mxu1 %v12755_v40 }
 0xcf3   :  { %11387 = vmatpush3.bf16.msra.mxu1 %v12756_v18 }
 0xcf4   :  { %11388 = vmatprep.subr.bf16.mxu1 %v12757_v46 }
 0xcf7   :  { %11389 = vmatpush3.bf16.msra.mxu1 %v12758_v23 }
 0xcf8   :  { %11390 = vmatprep.subr.bf16.mxu1 %v12759_v24 }
 0xcfb   :  { %11391 = vmatpush3.bf16.msra.mxu1 %v12760_v61 }
 0xcfc   :  { %11392 = vmatprep.subr.bf16.mxu1 %v12761_v53 }
 0xcff   :  { %11393 = vmatpush3.bf16.msra.mxu1 %v12762_v3 }
 0xd00   :  { %11394 = vmatprep.subr.bf16.mxu1 %v12763_v16 }
 0xd03   :  { %11395 = vmatpush3.bf16.msra.mxu1 %v12764_v39 }
 0xd04   :  { %11396 = vmatprep.subr.bf16.mxu1 %v12765_v19 }
 0xd07   :  { %11397 = vmatpush3.bf16.msra.mxu1 %v12766_v7  ;;  %v10918_v7 = vld [vmem:[#allocation9] ss:$0 sm:$0xff] }
 0xd08   :  { %11404 = vmatprep.subr.bf16.mxu1 %v12767_v6 }
 0xd0a   :  { %9849 = vmatmul.mubr.bf16.vlgmr.msra.gmra.mrb[132].mxu1 %v9511_v54 }
 0xd0b   :  { %11405 = vmatpush3.bf16.msra.mxu1 %v12768_v35  ;;  %10017 = vmatprep.mubr.bf16.mxu1 %v9516_v30 }
 0xd0c   :  { %11406 = vmatprep.subr.bf16.mxu1 %v12769_v50 }
 0xd0f   :  { %11407 = vmatpush3.bf16.msra.mxu1 %v12770_v20 }
 0xd10   :  { %11408 = vmatprep.subr.bf16.mxu1 %v12771_v29 }
 0xd13   :  { %11409 = vmatpush3.bf16.msra.mxu1 %v12772_v15 }
 0xd14   :  { %11410 = vmatprep.subr.bf16.mxu1 %v12773_v8 }
 0xd17   :  { %11411 = vmatpush3.bf16.msra.mxu1 %v12774_v26 }
 0xd18   :  { %11412 = vmatprep.subr.bf16.mxu1 %v12775_v41 }
 0xd1b   :  { %11413 = vmatpush3.bf16.msra.mxu1 %v12776_v14 }
 0xd1c   :  { %11414 = vmatprep.subr.bf16.mxu1 %v12777_v49 }
 0xd1f   :  { %11415 = vmatpush3.bf16.msra.mxu1 %v12778_v21 }
 0xd20   :  { %11416 = vmatprep.subr.bf16.mxu1 %v12779_v45 }
 0xd23   :  { %11417 = vmatpush3.bf16.msra.mxu1 %v12780_v5 }
 0xd24   :  { %11418 = vmatprep.subr.bf16.mxu1 %v12781_v52 }
 0xd27   :  { %11419 = vmatpush3.bf16.msra.mxu1 %v12782_v59 }
 0xd28   :  { %11426 = vmatprep.subr.bf16.mxu1 %v12783_v43 }
 0xd2a   :  { %10018 = vmatmul.mubr.bf16.vlgmr.msra.gmra.mrb[136].mxu1 %v9515_v48 }
 0xd2b   :  { %11427 = vmatpush3.bf16.msra.mxu1 %v12784_v17  ;;  %10187 = vmatprep.mubr.bf16.mxu1 %v9518_v56 }
 0xd2c   :  { %11428 = vmatprep.subr.bf16.mxu1 %v12785_v36 }
 0xd2f   :  { %11429 = vmatpush3.bf16.msra.mxu1 %v12786_v12 }
 0xd30   :  { %11430 = vmatprep.subr.bf16.mxu1 %v12787_v13 }
 0xd33   :  { %11431 = vmatpush3.bf16.msra.mxu1 %v12788_v31 }
 0xd34   :  { %11432 = vmatprep.subr.bf16.mxu1 %v12789_v42 }
 0xd37   :  { %11433 = vmatpush3.bf16.msra.mxu1 %v12790_v37 }
 0xd38   :  { %11434 = vmatprep.subr.bf16.mxu1 %v12791_v62 }
 0xd3b   :  { %11435 = vmatpush3.bf16.msra.mxu1 %v12792_v28 }
 0xd3c   :  { %11436 = vmatprep.subr.bf16.mxu1 %v12793_v10 }
 0xd3f   :  { %11437 = vmatpush3.bf16.msra.mxu1 %v12794_v0 }
 0xd40   :  { %11438 = vmatprep.subr.bf16.mxu1 %v12795_v51 }
 0xd43   :  { %11439 = vmatpush3.bf16.msra.mxu1 %v12796_v11 }
 0xd44   :  { %11440 = vmatprep.subr.bf16.mxu1 %v12797_v38 }
 0xd47   :  { %11441 = vmatpush3.bf16.msra.mxu1 %v12798_v4 }
 0xd4a   :  { %10188 = vmatmul.mubr.bf16.vlgmr.msra.gmra.mrb[140].mxu1 %v9517_v34 }
 0xdbd   :  { %v11376_v33 = vpop.f32.mrb[128].mxu1 }
 0xdbe   :  { %v11377_v25 = vpop.f32.mrb[129].mxu1 }
 0xdbf   :  { %v11378_v1 = vadd.f32 %v11377_v25, %v11376_v33  ;;  %v11379_v22 = vpop.f32.mrb[130].mxu1 }
 0xdc0   :  { %v11380_v58 = vpop.f32.mrb[131].mxu1 }
 0xddd   :  { %v11398_v55 = vpop.f32.mrb[132].mxu1 }
 0xdde   :  { %v11399_v44 = vpop.f32.mrb[133].mxu1 }
 0xddf   :  { %v11400_v2 = vadd.f32 %v11399_v44, %v11398_v55  ;;  %v11401_v27 = vpop.f32.mrb[134].mxu1 }
 0xde0   :  { %v11402_v40 = vpop.f32.mrb[135].mxu1 }
 0xde1   :  { %v9851_v18 = vadd.f32 %v11400_v2, %v11378_v1 }
 0xdfd   :  { %v11420_v46 = vpop.f32.mrb[136].mxu1 }
 0xdfe   :  { %v11421_v23 = vpop.f32.mrb[137].mxu1 }
 0xdff   :  { %v11422_v24 = vadd.f32 %v11421_v23, %v11420_v46  ;;  %v11423_v61 = vpop.f32.mrb[138].mxu1 }
 0xe00   :  { %v11424_v53 = vpop.f32.mrb[139].mxu1 }
 0xe01   :  { %v10025_v57 = vadd.f32 %v11422_v24, %v9851_v18 }
 0xe1d   :  { %v11442_v3 = vpop.f32.mrb[140].mxu1 }
 0xe1e   :  { %v11443_v16 = vpop.f32.mrb[141].mxu1 }
 0xe1f   :  { %v11444_v39 = vadd.f32 %v11443_v16, %v11442_v3  ;;  %v11445_v19 = vpop.f32.mrb[142].mxu1 }
 0xe20   :  { %v11446_v63 = vpop.f32.mrb[143].mxu1 }
 0xe21   :  { %v10195_v6 = vadd.f32 %v11444_v39, %v10025_v57 }
 0xe23   :  { %v10203_v9 = vadd.f32 %v10918_v7, %v10195_v6 }
 0xe25   :  { %10204 = vst [vmem:[%s21212_s11] sm:$0xff] %v10203_v9 }
 0xe26   :  { %10209 = vsyncpa [#allocation3], 1 }
 0xe27   :  { %10210 = vsyncpa [#allocation5], 1 }
 0xe28   :  { %10211 = vsyncpa [#allocation8], 1 }

</bundles_post_ra>
